<compile_context>
chip_gen: v7x
topology: tpu7x:2x2x1
jax: 0.10.0
libtpu: 0.0.40
codegen_flags: <defaults>
</compile_context>

<pallas_src>
import functools
import numpy as np
import jax
import jax.numpy as jnp
from jax.experimental import pallas as pl
from jax.experimental.pallas import tpu as pltpu

# Keep the f32 matmul path accurate on both the kernel and the pure-JAX reference.
jax.config.update("jax_default_matmul_precision", "highest")


def _glow_kernel(exps_ref, slogt_ref,                     # SMEM scalars
                 x_ref, cond_ref,                         # activations
                 wlin_ref, wfused_ref, w1c_ref, b1_ref,   # lane-packed weights
                 w2_ref, b2_ref, w3s_ref, b3s_ref, w3t_ref, b3t_ref,
                 y_ref, ld_ref,                           # outputs
                 *, flows, batch, dim, hidden):
    dot = functools.partial(jnp.dot, preferred_element_type=jnp.float32)

    x = x_ref[...]                                        # (B, dim)
    cond = cond_ref[...]                                  # (B, cond_dim)

    # Cond contribution (+bias) of the first coupling layer for ALL flows at once:
    # one wide dot, entirely off the serial per-step chain.
    cond_all = dot(cond, w1c_ref[...]) + b1_ref[...]      # (B, flows*hidden)

    log_det = jnp.zeros((batch, 1), jnp.float32)
    inv_b = 1.0 / batch
    inv_bm1 = 1.0 / (batch - 1)

    # Static unroll: flows is small; gives the scheduler ILP across the step body
    # and avoids dynamic lane-offset weight slicing.  Per-step live set is ~20
    # vregs so there is no spill pressure at these sizes.
    for f in range(flows):
        # ---- ActNorm (data-dependent init, as in torch's first forward) ------
        s1 = jnp.sum(x, axis=0, keepdims=True)            # two independent XLU
        s2 = jnp.sum(x * x, axis=0, keepdims=True)        # reductions (pipeline)
        mean = s1 * inv_b
        var = jnp.maximum((s2 - s1 * mean) * inv_bm1, 0.0)     # unbiased, clamped
        xn = (x - mean) * jax.lax.rsqrt(var + 1e-12)           # activation path
        ld1 = -jnp.sum(jnp.log(jnp.sqrt(var) + 1e-6))          # exact log-det path

        # ---- invertible 1x1 and the fused x1-path of the coupling MLP --------
        # Both depend only on xn -> the two MXU pushes issue back-to-back.
        cs = slice(f * dim, (f + 1) * dim)
        hs = slice(f * hidden, (f + 1) * hidden)
        x_lin = dot(xn, wlin_ref[:, cs])                            # (B, dim)
        h = jnp.maximum(dot(xn, wfused_ref[:, hs]) + cond_all[:, hs], 0.0)
        h = jnp.maximum(dot(h, w2_ref[:, hs]) + b2_ref[:, hs], 0.0)

        # ---- coupling tail: s/t heads already lane-aligned with x2 -----------
        # w3s/w3t (and b3s/b3t) are zero over the x1 lanes, so on those lanes
        # s_al == 0 and t_al == 0  ->  x_lin*exp(0)+0 == x1  (no concat/select).
        s_al = jnp.tanh(dot(h, w3s_ref[:, cs]) + b3s_ref[:, cs]) * exps_ref[f]
        t_al = dot(h, w3t_ref[:, cs]) + b3t_ref[:, cs]
        x = x_lin * jnp.exp(s_al) + t_al
        log_det = log_det + ld1 + jnp.sum(s_al, axis=-1, keepdims=True)

    y_ref[...] = x
    ld_ref[...] = log_det + slogt_ref[0]      # slogdet(W) pre-summed over flows


def glow_forward(x, cond, params):
    """Runs all flow steps in one Pallas kernel. Returns (y, log_det)."""
    f32 = jnp.float32
    B, dim = x.shape
    assert B >= 2, "ActNorm data-dependent init needs batch >= 2 (unbiased std)"
    d1 = dim // 2
    d2 = dim - d1
    flows, _, hidden = params["w2"].shape

    def pack(a):
        # (flows, r, c) -> (r, flows*c); step f lives at lanes [f*c, (f+1)*c).
        fl, r, c = a.shape
        return jnp.transpose(a, (1, 0, 2)).reshape(r, fl * c).astype(f32)

    w_lin = params["w_lin"].astype(f32)                   # (flows, dim, dim)
    w1 = params["w1"].astype(f32)                         # (flows, d1+cond_dim, hidden)
    w3 = params["w3"].astype(f32)                         # (flows, hidden, 2*d2)
    b3 = params["b3"].astype(f32)                         # (flows, 1, 2*d2)

    # ---- parameter-only glue (plain JAX) --------------------------------------
    # TODO(synk): slogdet (LU decomposition) has no clean Pallas equivalent; it is
    #             parameter-only so it is computed here, summed, and added once.
    slog_total = jnp.sum(jnp.linalg.slogdet(w_lin)[1]).astype(f32).reshape(1)
    exps = jnp.exp(params["scale"]).astype(f32)           # (flows,)
    # Fuse the x1-path of the first coupling layer into the 1x1 linear.
    w_fused = jnp.einsum("fij,fjh->fih", w_lin[:, :, :d1], w1[:, :d1, :])  # (flows, dim, hidden)
    # Lane-position the s/t heads of the last coupling layer onto the x2 lanes
    # (columns [d1, dim)), zero-padded over the x1 lanes.
    zw = jnp.zeros((flows, hidden, d1), f32)
    zb = jnp.zeros((flows, 1, d1), f32)
    w3s = jnp.concatenate([zw, w3[:, :, :d2]], axis=-1)   # (flows, hidden, dim)
    w3t = jnp.concatenate([zw, w3[:, :, d2:]], axis=-1)
    b3s = jnp.concatenate([zb, b3[:, :, :d2]], axis=-1)   # (flows, 1, dim)
    b3t = jnp.concatenate([zb, b3[:, :, d2:]], axis=-1)

    smem = pl.BlockSpec(memory_space=pltpu.MemorySpace.SMEM)
    vmem = pl.BlockSpec(memory_space=pltpu.MemorySpace.VMEM)
    kernel = functools.partial(_glow_kernel, flows=flows, batch=B, dim=dim, hidden=hidden)

    y, ld = pl.pallas_call(
        kernel,
        out_shape=(jax.ShapeDtypeStruct((B, dim), f32),
                   jax.ShapeDtypeStruct((B, 1), f32)),
        in_specs=[smem, smem] + [vmem] * 12,
        out_specs=(vmem, vmem),
    )(exps, slog_total, x.astype(f32), cond.astype(f32),
      pack(w_lin), pack(w_fused), pack(w1[:, d1:, :]), pack(params["b1"]),
      pack(params["w2"]), pack(params["b2"]),
      pack(w3s), pack(b3s), pack(w3t), pack(b3t))

    return y, ld[:, 0]


def init_params(key, dim, cond_dim, hidden, flows):
    """Deterministic synthetic parameters (shapes follow the torch module __init__)."""
    d1 = dim // 2
    d2 = dim - d1
    in1 = d1 + cond_dim
    ks = jax.random.split(key, 7)

    def lin(k, fan_in, shape):
        bound = 1.0 / np.sqrt(fan_in)
        return jax.random.uniform(k, shape, jnp.float32, -bound, bound)

    w_raw = jax.random.normal(ks[0], (flows, dim, dim), jnp.float32)
    w_lin = jnp.linalg.qr(w_raw)[0].astype(jnp.float32)   # orthogonal, like torch QR init

    return dict(
        w_lin=w_lin,                                      # (flows, dim, dim)
        w1=lin(ks[1], in1, (flows, in1, hidden)),
        b1=lin(ks[2], in1, (flows, 1, hidden)),
        w2=lin(ks[3], hidden, (flows, hidden, hidden)),
        b2=lin(ks[4], hidden, (flows, 1, hidden)),
        w3=lin(ks[5], hidden, (flows, hidden, 2 * d2)),
        b3=lin(ks[6], hidden, (flows, 1, 2 * d2)),
        scale=jnp.zeros((flows,), jnp.float32),           # nn.Parameter(torch.zeros(1)) per step
    )


def glow_reference(x, cond, params):
    """Pure-JAX reference with the exact PyTorch formulation (concat form)."""
    B, dim = x.shape
    d1 = dim // 2
    d2 = dim - d1
    flows = params["w_lin"].shape[0]
    log_det = jnp.zeros((B,), jnp.float32)
    for f in range(flows):
        mean = x.mean(0)
        std = jnp.std(x, axis=0, ddof=1)
        log_scale = jnp.log(1.0 / (std + 1e-6))
        x = (x - mean) * jnp.exp(log_scale)
        ld1 = log_scale.sum()
        ld2 = jnp.linalg.slogdet(params["w_lin"][f])[1]
        x = x @ params["w_lin"][f]
        x1, x2 = x[:, :d1], x[:, d1:]
        h = jnp.concatenate([x1, cond], -1)
        h = jax.nn.relu(h @ params["w1"][f] + params["b1"][f][0])
        h = jax.nn.relu(h @ params["w2"][f] + params["b2"][f][0])
        out = h @ params["w3"][f] + params["b3"][f][0]
        s = jnp.tanh(out[:, :d2]) * jnp.exp(params["scale"][f])
        t = out[:, d2:]
        y2 = x2 * jnp.exp(s) + t
        x = jnp.concatenate([x1, y2], -1)
        log_det = log_det + ld1 + ld2 + s.sum(-1)
    return x, log_det


if __name__ == "__main__":
    B, dim, cond_dim, hidden, flows = 8, 16, 8, 32, 8

    key = jax.random.PRNGKey(0)
    kx, kc, kp = jax.random.split(key, 3)
    x = jax.random.normal(kx, (B, dim), jnp.float32)
    cond = jax.random.normal(kc, (B, cond_dim), jnp.float32)
    params = init_params(kp, dim, cond_dim, hidden, flows)

    y, log_det = glow_forward(x, cond, params)
    jax.block_until_ready((y, log_det))

    y_ref, ld_ref = glow_reference(x, cond, params)
    assert y.shape == (B, dim) and log_det.shape == (B,)
    assert np.all(np.isfinite(np.asarray(y))) and np.all(np.isfinite(np.asarray(log_det)))
    assert np.allclose(np.asarray(y), np.asarray(y_ref), atol=2e-2, rtol=2e-2)
    assert np.allclose(np.asarray(log_det), np.asarray(ld_ref), atol=2e-2, rtol=2e-2)
    print("KERNEL_OK")
</pallas_src>

<mosaic_0001>
module attributes {stable_mosaic.version = 11 : i64} {
  func.func @_glow_kernel(%arg0: memref<8xf32, #tpu.memory_space<smem>>, %arg1: memref<1xf32, #tpu.memory_space<smem>>, %arg2: memref<8x16xf32, #tpu.memory_space<vmem>>, %arg3: memref<8x8xf32, #tpu.memory_space<vmem>>, %arg4: memref<16x128xf32, #tpu.memory_space<vmem>>, %arg5: memref<16x256xf32, #tpu.memory_space<vmem>>, %arg6: memref<8x256xf32, #tpu.memory_space<vmem>>, %arg7: memref<1x256xf32, #tpu.memory_space<vmem>>, %arg8: memref<32x256xf32, #tpu.memory_space<vmem>>, %arg9: memref<1x256xf32, #tpu.memory_space<vmem>>, %arg10: memref<32x128xf32, #tpu.memory_space<vmem>>, %arg11: memref<1x128xf32, #tpu.memory_space<vmem>>, %arg12: memref<32x128xf32, #tpu.memory_space<vmem>>, %arg13: memref<1x128xf32, #tpu.memory_space<vmem>>, %arg14: memref<8x16xf32, #tpu.memory_space<vmem>>, %arg15: memref<8x1xf32, #tpu.memory_space<vmem>>) attributes {dimension_semantics = [], scalar_prefetch = 0 : i64, scratch_operands = 0 : i64, tpu.core_type = #tpu.core_type<tc>} {
    %c0 = arith.constant 0 : index
    %c0_0 = arith.constant 0 : index
    %0 = vector.load %arg2[%c0, %c0_0] : memref<8x16xf32, #tpu.memory_space<vmem>>, vector<8x16xf32>
    %c0_1 = arith.constant 0 : index
    %c0_2 = arith.constant 0 : index
    %1 = vector.load %arg3[%c0_1, %c0_2] : memref<8x8xf32, #tpu.memory_space<vmem>>, vector<8x8xf32>
    %c0_3 = arith.constant 0 : index
    %c0_4 = arith.constant 0 : index
    %2 = vector.load %arg6[%c0_3, %c0_4] : memref<8x256xf32, #tpu.memory_space<vmem>>, vector<8x256xf32>
    %cst = arith.constant dense<0.000000e+00> : vector<8x256xf32>
    %3 = tpu.matmul %1, %2, %cst {dimension_numbers = #tpu.dot_dimension_numbers<[1], [0], [0], [1], [0, 0, 1, 1], [], []>, precision = #tpu.contract_precision<fp32>} : vector<8x8xf32>, vector<8x256xf32>, vector<8x256xf32> -> vector<8x256xf32>
    %c0_5 = arith.constant 0 : index
    %c0_6 = arith.constant 0 : index
    %4 = vector.load %arg7[%c0_5, %c0_6] : memref<1x256xf32, #tpu.memory_space<vmem>>, vector<1x256xf32>
    %5 = vector.broadcast %4 : vector<1x256xf32> to vector<8x256xf32>
    %6 = arith.addf %3, %5 : vector<8x256xf32>
    %cst_7 = arith.constant 0.000000e+00 : f32
    %7 = vector.broadcast %cst_7 : f32 to vector<8x1xf32>
    %cst_8 = arith.constant dense<0.000000e+00> : vector<16xf32>
    %8 = vector.multi_reduction <add>, %0, %cst_8 [0] : vector<8x16xf32> to vector<16xf32>
    %9 = vector.shape_cast %8 : vector<16xf32> to vector<1x16xf32>
    %10 = arith.mulf %0, %0 : vector<8x16xf32>
    %cst_9 = arith.constant dense<0.000000e+00> : vector<16xf32>
    %11 = vector.multi_reduction <add>, %10, %cst_9 [0] : vector<8x16xf32> to vector<16xf32>
    %12 = vector.shape_cast %11 : vector<16xf32> to vector<1x16xf32>
    %cst_10 = arith.constant 1.250000e-01 : f32
    %13 = vector.broadcast %cst_10 : f32 to vector<1x16xf32>
    %14 = arith.mulf %9, %13 : vector<1x16xf32>
    %15 = arith.mulf %9, %14 : vector<1x16xf32>
    %16 = arith.subf %12, %15 : vector<1x16xf32>
    %cst_11 = arith.constant 0.142857149 : f32
    %17 = vector.broadcast %cst_11 : f32 to vector<1x16xf32>
    %18 = arith.mulf %16, %17 : vector<1x16xf32>
    %cst_12 = arith.constant 0.000000e+00 : f32
    %19 = vector.broadcast %cst_12 : f32 to vector<1x16xf32>
    %20 = arith.maximumf %18, %19 : vector<1x16xf32>
    %21 = vector.broadcast %14 : vector<1x16xf32> to vector<8x16xf32>
    %22 = arith.subf %0, %21 : vector<8x16xf32>
    %cst_13 = arith.constant 9.99999996E-13 : f32
    %23 = vector.broadcast %cst_13 : f32 to vector<1x16xf32>
    %24 = arith.addf %20, %23 : vector<1x16xf32>
    %25 = math.rsqrt %24 : vector<1x16xf32>
    %26 = vector.broadcast %25 : vector<1x16xf32> to vector<8x16xf32>
    %27 = arith.mulf %22, %26 : vector<8x16xf32>
    %28 = math.sqrt %20 : vector<1x16xf32>
    %cst_14 = arith.constant 9.99999997E-7 : f32
    %29 = vector.broadcast %cst_14 : f32 to vector<1x16xf32>
    %30 = arith.addf %28, %29 : vector<1x16xf32>
    %31 = math.log %30 : vector<1x16xf32>
    %32 = vector.shape_cast %31 : vector<1x16xf32> to vector<1x1x16xf32>
    %cst_15 = arith.constant dense<0.000000e+00> : vector<1xf32>
    %33 = vector.multi_reduction <add>, %32, %cst_15 [1, 2] : vector<1x1x16xf32> to vector<1xf32>
    %34 = vector.shape_cast %33 : vector<1xf32> to vector<1x1x1xf32>
    %35 = vector.extract %34[0, 0, 0] : f32 from vector<1x1x1xf32>
    %cst_16 = arith.constant 0.000000e+00 : f32
    %36 = arith.subf %cst_16, %35 : f32
    %c0_17 = arith.constant 0 : index
    %c0_18 = arith.constant 0 : index
    %37 = vector.load %arg4[%c0_17, %c0_18] : memref<16x128xf32, #tpu.memory_space<vmem>>, vector<16x16xf32>
    %cst_19 = arith.constant dense<0.000000e+00> : vector<8x16xf32>
    %38 = tpu.matmul %27, %37, %cst_19 {dimension_numbers = #tpu.dot_dimension_numbers<[1], [0], [0], [1], [0, 0, 1, 1], [], []>, precision = #tpu.contract_precision<fp32>} : vector<8x16xf32>, vector<16x16xf32>, vector<8x16xf32> -> vector<8x16xf32>
    %c0_20 = arith.constant 0 : index
    %c0_21 = arith.constant 0 : index
    %39 = vector.load %arg5[%c0_20, %c0_21] : memref<16x256xf32, #tpu.memory_space<vmem>>, vector<16x32xf32>
    %cst_22 = arith.constant dense<0.000000e+00> : vector<8x32xf32>
    %40 = tpu.matmul %27, %39, %cst_22 {dimension_numbers = #tpu.dot_dimension_numbers<[1], [0], [0], [1], [0, 0, 1, 1], [], []>, precision = #tpu.contract_precision<fp32>} : vector<8x16xf32>, vector<16x32xf32>, vector<8x32xf32> -> vector<8x32xf32>
    %41 = vector.extract_strided_slice %6 {offsets = [0, 0], sizes = [8, 32], strides = [1, 1]} : vector<8x256xf32> to vector<8x32xf32>
    %42 = arith.addf %40, %41 : vector<8x32xf32>
    %cst_23 = arith.constant 0.000000e+00 : f32
    %43 = vector.broadcast %cst_23 : f32 to vector<8x32xf32>
    %44 = arith.maximumf %42, %43 : vector<8x32xf32>
    %c0_24 = arith.constant 0 : index
    %c0_25 = arith.constant 0 : index
    %45 = vector.load %arg8[%c0_24, %c0_25] : memref<32x256xf32, #tpu.memory_space<vmem>>, vector<32x32xf32>
    %cst_26 = arith.constant dense<0.000000e+00> : vector<8x32xf32>
    %46 = tpu.matmul %44, %45, %cst_26 {dimension_numbers = #tpu.dot_dimension_numbers<[1], [0], [0], [1], [0, 0, 1, 1], [], []>, precision = #tpu.contract_precision<fp32>} : vector<8x32xf32>, vector<32x32xf32>, vector<8x32xf32> -> vector<8x32xf32>
    %c0_27 = arith.constant 0 : index
    %c0_28 = arith.constant 0 : index
    %47 = vector.load %arg9[%c0_27, %c0_28] : memref<1x256xf32, #tpu.memory_space<vmem>>, vector<1x32xf32>
    %48 = vector.broadcast %47 : vector<1x32xf32> to vector<8x32xf32>
    %49 = arith.addf %46, %48 : vector<8x32xf32>
    %cst_29 = arith.constant 0.000000e+00 : f32
    %50 = vector.broadcast %cst_29 : f32 to vector<8x32xf32>
    %51 = arith.maximumf %49, %50 : vector<8x32xf32>
    %c0_30 = arith.constant 0 : index
    %c0_31 = arith.constant 0 : index
    %52 = vector.load %arg10[%c0_30, %c0_31] : memref<32x128xf32, #tpu.memory_space<vmem>>, vector<32x16xf32>
    %cst_32 = arith.constant dense<0.000000e+00> : vector<8x16xf32>
    %53 = tpu.matmul %51, %52, %cst_32 {dimension_numbers = #tpu.dot_dimension_numbers<[1], [0], [0], [1], [0, 0, 1, 1], [], []>, precision = #tpu.contract_precision<fp32>} : vector<8x32xf32>, vector<32x16xf32>, vector<8x16xf32> -> vector<8x16xf32>
    %c0_33 = arith.constant 0 : index
    %c0_34 = arith.constant 0 : index
    %54 = vector.load %arg11[%c0_33, %c0_34] : memref<1x128xf32, #tpu.memory_space<vmem>>, vector<1x16xf32>
    %55 = vector.broadcast %54 : vector<1x16xf32> to vector<8x16xf32>
    %56 = arith.addf %53, %55 : vector<8x16xf32>
    %57 = math.tanh %56 : vector<8x16xf32>
    %c0_35 = arith.constant 0 : index
    %58 = memref.load %arg0[%c0_35] : memref<8xf32, #tpu.memory_space<smem>>
    %59 = vector.broadcast %58 : f32 to vector<8x16xf32>
    %60 = arith.mulf %57, %59 : vector<8x16xf32>
    %c0_36 = arith.constant 0 : index
    %c0_37 = arith.constant 0 : index
    %61 = vector.load %arg12[%c0_36, %c0_37] : memref<32x128xf32, #tpu.memory_space<vmem>>, vector<32x16xf32>
    %cst_38 = arith.constant dense<0.000000e+00> : vector<8x16xf32>
    %62 = tpu.matmul %51, %61, %cst_38 {dimension_numbers = #tpu.dot_dimension_numbers<[1], [0], [0], [1], [0, 0, 1, 1], [], []>, precision = #tpu.contract_precision<fp32>} : vector<8x32xf32>, vector<32x16xf32>, vector<8x16xf32> -> vector<8x16xf32>
    %c0_39 = arith.constant 0 : index
    %c0_40 = arith.constant 0 : index
    %63 = vector.load %arg13[%c0_39, %c0_40] : memref<1x128xf32, #tpu.memory_space<vmem>>, vector<1x16xf32>
    %64 = vector.broadcast %63 : vector<1x16xf32> to vector<8x16xf32>
    %65 = arith.addf %62, %64 : vector<8x16xf32>
    %66 = math.exp %60 : vector<8x16xf32>
    %67 = arith.mulf %38, %66 : vector<8x16xf32>
    %68 = arith.addf %67, %65 : vector<8x16xf32>
    %69 = vector.broadcast %36 : f32 to vector<8x1xf32>
    %70 = arith.addf %7, %69 : vector<8x1xf32>
    %cst_41 = arith.constant dense<0.000000e+00> : vector<8xf32>
    %71 = vector.multi_reduction <add>, %60, %cst_41 [1] : vector<8x16xf32> to vector<8xf32>
    %72 = vector.shape_cast %71 : vector<8xf32> to vector<8x1xf32>
    %73 = arith.addf %70, %72 : vector<8x1xf32>
    %cst_42 = arith.constant dense<0.000000e+00> : vector<16xf32>
    %74 = vector.multi_reduction <add>, %68, %cst_42 [0] : vector<8x16xf32> to vector<16xf32>
    %75 = vector.shape_cast %74 : vector<16xf32> to vector<1x16xf32>
    %76 = arith.mulf %68, %68 : vector<8x16xf32>
    %cst_43 = arith.constant dense<0.000000e+00> : vector<16xf32>
    %77 = vector.multi_reduction <add>, %76, %cst_43 [0] : vector<8x16xf32> to vector<16xf32>
    %78 = vector.shape_cast %77 : vector<16xf32> to vector<1x16xf32>
    %cst_44 = arith.constant 1.250000e-01 : f32
    %79 = vector.broadcast %cst_44 : f32 to vector<1x16xf32>
    %80 = arith.mulf %75, %79 : vector<1x16xf32>
    %81 = arith.mulf %75, %80 : vector<1x16xf32>
    %82 = arith.subf %78, %81 : vector<1x16xf32>
    %cst_45 = arith.constant 0.142857149 : f32
    %83 = vector.broadcast %cst_45 : f32 to vector<1x16xf32>
    %84 = arith.mulf %82, %83 : vector<1x16xf32>
    %cst_46 = arith.constant 0.000000e+00 : f32
    %85 = vector.broadcast %cst_46 : f32 to vector<1x16xf32>
    %86 = arith.maximumf %84, %85 : vector<1x16xf32>
    %87 = vector.broadcast %80 : vector<1x16xf32> to vector<8x16xf32>
    %88 = arith.subf %68, %87 : vector<8x16xf32>
    %cst_47 = arith.constant 9.99999996E-13 : f32
    %89 = vector.broadcast %cst_47 : f32 to vector<1x16xf32>
    %90 = arith.addf %86, %89 : vector<1x16xf32>
    %91 = math.rsqrt %90 : vector<1x16xf32>
    %92 = vector.broadcast %91 : vector<1x16xf32> to vector<8x16xf32>
    %93 = arith.mulf %88, %92 : vector<8x16xf32>
    %94 = math.sqrt %86 : vector<1x16xf32>
    %cst_48 = arith.constant 9.99999997E-7 : f32
    %95 = vector.broadcast %cst_48 : f32 to vector<1x16xf32>
    %96 = arith.addf %94, %95 : vector<1x16xf32>
    %97 = math.log %96 : vector<1x16xf32>
    %98 = vector.shape_cast %97 : vector<1x16xf32> to vector<1x1x16xf32>
    %cst_49 = arith.constant dense<0.000000e+00> : vector<1xf32>
    %99 = vector.multi_reduction <add>, %98, %cst_49 [1, 2] : vector<1x1x16xf32> to vector<1xf32>
    %100 = vector.shape_cast %99 : vector<1xf32> to vector<1x1x1xf32>
    %101 = vector.extract %100[0, 0, 0] : f32 from vector<1x1x1xf32>
    %cst_50 = arith.constant 0.000000e+00 : f32
    %102 = arith.subf %cst_50, %101 : f32
    %c0_51 = arith.constant 0 : index
    %c16 = arith.constant 16 : index
    %103 = vector.load %arg4[%c0_51, %c16] : memref<16x128xf32, #tpu.memory_space<vmem>>, vector<16x16xf32>
    %cst_52 = arith.constant dense<0.000000e+00> : vector<8x16xf32>
    %104 = tpu.matmul %93, %103, %cst_52 {dimension_numbers = #tpu.dot_dimension_numbers<[1], [0], [0], [1], [0, 0, 1, 1], [], []>, precision = #tpu.contract_precision<fp32>} : vector<8x16xf32>, vector<16x16xf32>, vector<8x16xf32> -> vector<8x16xf32>
    %c0_53 = arith.constant 0 : index
    %c32 = arith.constant 32 : index
    %105 = vector.load %arg5[%c0_53, %c32] : memref<16x256xf32, #tpu.memory_space<vmem>>, vector<16x32xf32>
    %cst_54 = arith.constant dense<0.000000e+00> : vector<8x32xf32>
    %106 = tpu.matmul %93, %105, %cst_54 {dimension_numbers = #tpu.dot_dimension_numbers<[1], [0], [0], [1], [0, 0, 1, 1], [], []>, precision = #tpu.contract_precision<fp32>} : vector<8x16xf32>, vector<16x32xf32>, vector<8x32xf32> -> vector<8x32xf32>
    %107 = vector.extract_strided_slice %6 {offsets = [0, 32], sizes = [8, 32], strides = [1, 1]} : vector<8x256xf32> to vector<8x32xf32>
    %108 = arith.addf %106, %107 : vector<8x32xf32>
    %cst_55 = arith.constant 0.000000e+00 : f32
    %109 = vector.broadcast %cst_55 : f32 to vector<8x32xf32>
    %110 = arith.maximumf %108, %109 : vector<8x32xf32>
    %c0_56 = arith.constant 0 : index
    %c32_57 = arith.constant 32 : index
    %111 = vector.load %arg8[%c0_56, %c32_57] : memref<32x256xf32, #tpu.memory_space<vmem>>, vector<32x32xf32>
    %cst_58 = arith.constant dense<0.000000e+00> : vector<8x32xf32>
    %112 = tpu.matmul %110, %111, %cst_58 {dimension_numbers = #tpu.dot_dimension_numbers<[1], [0], [0], [1], [0, 0, 1, 1], [], []>, precision = #tpu.contract_precision<fp32>} : vector<8x32xf32>, vector<32x32xf32>, vector<8x32xf32> -> vector<8x32xf32>
    %c0_59 = arith.constant 0 : index
    %c32_60 = arith.constant 32 : index
    %113 = vector.load %arg9[%c0_59, %c32_60] : memref<1x256xf32, #tpu.memory_space<vmem>>, vector<1x32xf32>
    %114 = vector.broadcast %113 : vector<1x32xf32> to vector<8x32xf32>
    %115 = arith.addf %112, %114 : vector<8x32xf32>
    %cst_61 = arith.constant 0.000000e+00 : f32
    %116 = vector.broadcast %cst_61 : f32 to vector<8x32xf32>
    %117 = arith.maximumf %115, %116 : vector<8x32xf32>
    %c0_62 = arith.constant 0 : index
    %c16_63 = arith.constant 16 : index
    %118 = vector.load %arg10[%c0_62, %c16_63] : memref<32x128xf32, #tpu.memory_space<vmem>>, vector<32x16xf32>
    %cst_64 = arith.constant dense<0.000000e+00> : vector<8x16xf32>
    %119 = tpu.matmul %117, %118, %cst_64 {dimension_numbers = #tpu.dot_dimension_numbers<[1], [0], [0], [1], [0, 0, 1, 1], [], []>, precision = #tpu.contract_precision<fp32>} : vector<8x32xf32>, vector<32x16xf32>, vector<8x16xf32> -> vector<8x16xf32>
    %c0_65 = arith.constant 0 : index
    %c16_66 = arith.constant 16 : index
    %120 = vector.load %arg11[%c0_65, %c16_66] : memref<1x128xf32, #tpu.memory_space<vmem>>, vector<1x16xf32>
    %121 = vector.broadcast %120 : vector<1x16xf32> to vector<8x16xf32>
    %122 = arith.addf %119, %121 : vector<8x16xf32>
    %123 = math.tanh %122 : vector<8x16xf32>
    %c1 = arith.constant 1 : index
    %124 = memref.load %arg0[%c1] : memref<8xf32, #tpu.memory_space<smem>>
    %125 = vector.broadcast %124 : f32 to vector<8x16xf32>
    %126 = arith.mulf %123, %125 : vector<8x16xf32>
    %c0_67 = arith.constant 0 : index
    %c16_68 = arith.constant 16 : index
    %127 = vector.load %arg12[%c0_67, %c16_68] : memref<32x128xf32, #tpu.memory_space<vmem>>, vector<32x16xf32>
    %cst_69 = arith.constant dense<0.000000e+00> : vector<8x16xf32>
    %128 = tpu.matmul %117, %127, %cst_69 {dimension_numbers = #tpu.dot_dimension_numbers<[1], [0], [0], [1], [0, 0, 1, 1], [], []>, precision = #tpu.contract_precision<fp32>} : vector<8x32xf32>, vector<32x16xf32>, vector<8x16xf32> -> vector<8x16xf32>
    %c0_70 = arith.constant 0 : index
    %c16_71 = arith.constant 16 : index
    %129 = vector.load %arg13[%c0_70, %c16_71] : memref<1x128xf32, #tpu.memory_space<vmem>>, vector<1x16xf32>
    %130 = vector.broadcast %129 : vector<1x16xf32> to vector<8x16xf32>
    %131 = arith.addf %128, %130 : vector<8x16xf32>
    %132 = math.exp %126 : vector<8x16xf32>
    %133 = arith.mulf %104, %132 : vector<8x16xf32>
    %134 = arith.addf %133, %131 : vector<8x16xf32>
    %135 = vector.broadcast %102 : f32 to vector<8x1xf32>
    %136 = arith.addf %73, %135 : vector<8x1xf32>
    %cst_72 = arith.constant dense<0.000000e+00> : vector<8xf32>
    %137 = vector.multi_reduction <add>, %126, %cst_72 [1] : vector<8x16xf32> to vector<8xf32>
    %138 = vector.shape_cast %137 : vector<8xf32> to vector<8x1xf32>
    %139 = arith.addf %136, %138 : vector<8x1xf32>
    %cst_73 = arith.constant dense<0.000000e+00> : vector<16xf32>
    %140 = vector.multi_reduction <add>, %134, %cst_73 [0] : vector<8x16xf32> to vector<16xf32>
    %141 = vector.shape_cast %140 : vector<16xf32> to vector<1x16xf32>
    %142 = arith.mulf %134, %134 : vector<8x16xf32>
    %cst_74 = arith.constant dense<0.000000e+00> : vector<16xf32>
    %143 = vector.multi_reduction <add>, %142, %cst_74 [0] : vector<8x16xf32> to vector<16xf32>
    %144 = vector.shape_cast %143 : vector<16xf32> to vector<1x16xf32>
    %cst_75 = arith.constant 1.250000e-01 : f32
    %145 = vector.broadcast %cst_75 : f32 to vector<1x16xf32>
    %146 = arith.mulf %141, %145 : vector<1x16xf32>
    %147 = arith.mulf %141, %146 : vector<1x16xf32>
    %148 = arith.subf %144, %147 : vector<1x16xf32>
    %cst_76 = arith.constant 0.142857149 : f32
    %149 = vector.broadcast %cst_76 : f32 to vector<1x16xf32>
    %150 = arith.mulf %148, %149 : vector<1x16xf32>
    %cst_77 = arith.constant 0.000000e+00 : f32
    %151 = vector.broadcast %cst_77 : f32 to vector<1x16xf32>
    %152 = arith.maximumf %150, %151 : vector<1x16xf32>
    %153 = vector.broadcast %146 : vector<1x16xf32> to vector<8x16xf32>
    %154 = arith.subf %134, %153 : vector<8x16xf32>
    %cst_78 = arith.constant 9.99999996E-13 : f32
    %155 = vector.broadcast %cst_78 : f32 to vector<1x16xf32>
    %156 = arith.addf %152, %155 : vector<1x16xf32>
    %157 = math.rsqrt %156 : vector<1x16xf32>
    %158 = vector.broadcast %157 : vector<1x16xf32> to vector<8x16xf32>
    %159 = arith.mulf %154, %158 : vector<8x16xf32>
    %160 = math.sqrt %152 : vector<1x16xf32>
    %cst_79 = arith.constant 9.99999997E-7 : f32
    %161 = vector.broadcast %cst_79 : f32 to vector<1x16xf32>
    %162 = arith.addf %160, %161 : vector<1x16xf32>
    %163 = math.log %162 : vector<1x16xf32>
    %164 = vector.shape_cast %163 : vector<1x16xf32> to vector<1x1x16xf32>
    %cst_80 = arith.constant dense<0.000000e+00> : vector<1xf32>
    %165 = vector.multi_reduction <add>, %164, %cst_80 [1, 2] : vector<1x1x16xf32> to vector<1xf32>
    %166 = vector.shape_cast %165 : vector<1xf32> to vector<1x1x1xf32>
    %167 = vector.extract %166[0, 0, 0] : f32 from vector<1x1x1xf32>
    %cst_81 = arith.constant 0.000000e+00 : f32
    %168 = arith.subf %cst_81, %167 : f32
    %c0_82 = arith.constant 0 : index
    %c32_83 = arith.constant 32 : index
    %169 = vector.load %arg4[%c0_82, %c32_83] : memref<16x128xf32, #tpu.memory_space<vmem>>, vector<16x16xf32>
    %cst_84 = arith.constant dense<0.000000e+00> : vector<8x16xf32>
    %170 = tpu.matmul %159, %169, %cst_84 {dimension_numbers = #tpu.dot_dimension_numbers<[1], [0], [0], [1], [0, 0, 1, 1], [], []>, precision = #tpu.contract_precision<fp32>} : vector<8x16xf32>, vector<16x16xf32>, vector<8x16xf32> -> vector<8x16xf32>
    %c0_85 = arith.constant 0 : index
    %c64 = arith.constant 64 : index
    %171 = vector.load %arg5[%c0_85, %c64] : memref<16x256xf32, #tpu.memory_space<vmem>>, vector<16x32xf32>
    %cst_86 = arith.constant dense<0.000000e+00> : vector<8x32xf32>
    %172 = tpu.matmul %159, %171, %cst_86 {dimension_numbers = #tpu.dot_dimension_numbers<[1], [0], [0], [1], [0, 0, 1, 1], [], []>, precision = #tpu.contract_precision<fp32>} : vector<8x16xf32>, vector<16x32xf32>, vector<8x32xf32> -> vector<8x32xf32>
    %173 = vector.extract_strided_slice %6 {offsets = [0, 64], sizes = [8, 32], strides = [1, 1]} : vector<8x256xf32> to vector<8x32xf32>
    %174 = arith.addf %172, %173 : vector<8x32xf32>
    %cst_87 = arith.constant 0.000000e+00 : f32
    %175 = vector.broadcast %cst_87 : f32 to vector<8x32xf32>
    %176 = arith.maximumf %174, %175 : vector<8x32xf32>
    %c0_88 = arith.constant 0 : index
    %c64_89 = arith.constant 64 : index
    %177 = vector.load %arg8[%c0_88, %c64_89] : memref<32x256xf32, #tpu.memory_space<vmem>>, vector<32x32xf32>
    %cst_90 = arith.constant dense<0.000000e+00> : vector<8x32xf32>
    %178 = tpu.matmul %176, %177, %cst_90 {dimension_numbers = #tpu.dot_dimension_numbers<[1], [0], [0], [1], [0, 0, 1, 1], [], []>, precision = #tpu.contract_precision<fp32>} : vector<8x32xf32>, vector<32x32xf32>, vector<8x32xf32> -> vector<8x32xf32>
    %c0_91 = arith.constant 0 : index
    %c64_92 = arith.constant 64 : index
    %179 = vector.load %arg9[%c0_91, %c64_92] : memref<1x256xf32, #tpu.memory_space<vmem>>, vector<1x32xf32>
    %180 = vector.broadcast %179 : vector<1x32xf32> to vector<8x32xf32>
    %181 = arith.addf %178, %180 : vector<8x32xf32>
    %cst_93 = arith.constant 0.000000e+00 : f32
    %182 = vector.broadcast %cst_93 : f32 to vector<8x32xf32>
    %183 = arith.maximumf %181, %182 : vector<8x32xf32>
    %c0_94 = arith.constant 0 : index
    %c32_95 = arith.constant 32 : index
    %184 = vector.load %arg10[%c0_94, %c32_95] : memref<32x128xf32, #tpu.memory_space<vmem>>, vector<32x16xf32>
    %cst_96 = arith.constant dense<0.000000e+00> : vector<8x16xf32>
    %185 = tpu.matmul %183, %184, %cst_96 {dimension_numbers = #tpu.dot_dimension_numbers<[1], [0], [0], [1], [0, 0, 1, 1], [], []>, precision = #tpu.contract_precision<fp32>} : vector<8x32xf32>, vector<32x16xf32>, vector<8x16xf32> -> vector<8x16xf32>
    %c0_97 = arith.constant 0 : index
    %c32_98 = arith.constant 32 : index
    %186 = vector.load %arg11[%c0_97, %c32_98] : memref<1x128xf32, #tpu.memory_space<vmem>>, vector<1x16xf32>
    %187 = vector.broadcast %186 : vector<1x16xf32> to vector<8x16xf32>
    %188 = arith.addf %185, %187 : vector<8x16xf32>
    %189 = math.tanh %188 : vector<8x16xf32>
    %c2 = arith.constant 2 : index
    %190 = memref.load %arg0[%c2] : memref<8xf32, #tpu.memory_space<smem>>
    %191 = vector.broadcast %190 : f32 to vector<8x16xf32>
    %192 = arith.mulf %189, %191 : vector<8x16xf32>
    %c0_99 = arith.constant 0 : index
    %c32_100 = arith.constant 32 : index
    %193 = vector.load %arg12[%c0_99, %c32_100] : memref<32x128xf32, #tpu.memory_space<vmem>>, vector<32x16xf32>
    %cst_101 = arith.constant dense<0.000000e+00> : vector<8x16xf32>
    %194 = tpu.matmul %183, %193, %cst_101 {dimension_numbers = #tpu.dot_dimension_numbers<[1], [0], [0], [1], [0, 0, 1, 1], [], []>, precision = #tpu.contract_precision<fp32>} : vector<8x32xf32>, vector<32x16xf32>, vector<8x16xf32> -> vector<8x16xf32>
    %c0_102 = arith.constant 0 : index
    %c32_103 = arith.constant 32 : index
    %195 = vector.load %arg13[%c0_102, %c32_103] : memref<1x128xf32, #tpu.memory_space<vmem>>, vector<1x16xf32>
    %196 = vector.broadcast %195 : vector<1x16xf32> to vector<8x16xf32>
    %197 = arith.addf %194, %196 : vector<8x16xf32>
    %198 = math.exp %192 : vector<8x16xf32>
    %199 = arith.mulf %170, %198 : vector<8x16xf32>
    %200 = arith.addf %199, %197 : vector<8x16xf32>
    %201 = vector.broadcast %168 : f32 to vector<8x1xf32>
    %202 = arith.addf %139, %201 : vector<8x1xf32>
    %cst_104 = arith.constant dense<0.000000e+00> : vector<8xf32>
    %203 = vector.multi_reduction <add>, %192, %cst_104 [1] : vector<8x16xf32> to vector<8xf32>
    %204 = vector.shape_cast %203 : vector<8xf32> to vector<8x1xf32>
    %205 = arith.addf %202, %204 : vector<8x1xf32>
    %cst_105 = arith.constant dense<0.000000e+00> : vector<16xf32>
    %206 = vector.multi_reduction <add>, %200, %cst_105 [0] : vector<8x16xf32> to vector<16xf32>
    %207 = vector.shape_cast %206 : vector<16xf32> to vector<1x16xf32>
    %208 = arith.mulf %200, %200 : vector<8x16xf32>
    %cst_106 = arith.constant dense<0.000000e+00> : vector<16xf32>
    %209 = vector.multi_reduction <add>, %208, %cst_106 [0] : vector<8x16xf32> to vector<16xf32>
    %210 = vector.shape_cast %209 : vector<16xf32> to vector<1x16xf32>
    %cst_107 = arith.constant 1.250000e-01 : f32
    %211 = vector.broadcast %cst_107 : f32 to vector<1x16xf32>
    %212 = arith.mulf %207, %211 : vector<1x16xf32>
    %213 = arith.mulf %207, %212 : vector<1x16xf32>
    %214 = arith.subf %210, %213 : vector<1x16xf32>
    %cst_108 = arith.constant 0.142857149 : f32
    %215 = vector.broadcast %cst_108 : f32 to vector<1x16xf32>
    %216 = arith.mulf %214, %215 : vector<1x16xf32>
    %cst_109 = arith.constant 0.000000e+00 : f32
    %217 = vector.broadcast %cst_109 : f32 to vector<1x16xf32>
    %218 = arith.maximumf %216, %217 : vector<1x16xf32>
    %219 = vector.broadcast %212 : vector<1x16xf32> to vector<8x16xf32>
    %220 = arith.subf %200, %219 : vector<8x16xf32>
    %cst_110 = arith.constant 9.99999996E-13 : f32
    %221 = vector.broadcast %cst_110 : f32 to vector<1x16xf32>
    %222 = arith.addf %218, %221 : vector<1x16xf32>
    %223 = math.rsqrt %222 : vector<1x16xf32>
    %224 = vector.broadcast %223 : vector<1x16xf32> to vector<8x16xf32>
    %225 = arith.mulf %220, %224 : vector<8x16xf32>
    %226 = math.sqrt %218 : vector<1x16xf32>
    %cst_111 = arith.constant 9.99999997E-7 : f32
    %227 = vector.broadcast %cst_111 : f32 to vector<1x16xf32>
    %228 = arith.addf %226, %227 : vector<1x16xf32>
    %229 = math.log %228 : vector<1x16xf32>
    %230 = vector.shape_cast %229 : vector<1x16xf32> to vector<1x1x16xf32>
    %cst_112 = arith.constant dense<0.000000e+00> : vector<1xf32>
    %231 = vector.multi_reduction <add>, %230, %cst_112 [1, 2] : vector<1x1x16xf32> to vector<1xf32>
    %232 = vector.shape_cast %231 : vector<1xf32> to vector<1x1x1xf32>
    %233 = vector.extract %232[0, 0, 0] : f32 from vector<1x1x1xf32>
    %cst_113 = arith.constant 0.000000e+00 : f32
    %234 = arith.subf %cst_113, %233 : f32
    %c0_114 = arith.constant 0 : index
    %c48 = arith.constant 48 : index
    %235 = vector.load %arg4[%c0_114, %c48] : memref<16x128xf32, #tpu.memory_space<vmem>>, vector<16x16xf32>
    %cst_115 = arith.constant dense<0.000000e+00> : vector<8x16xf32>
    %236 = tpu.matmul %225, %235, %cst_115 {dimension_numbers = #tpu.dot_dimension_numbers<[1], [0], [0], [1], [0, 0, 1, 1], [], []>, precision = #tpu.contract_precision<fp32>} : vector<8x16xf32>, vector<16x16xf32>, vector<8x16xf32> -> vector<8x16xf32>
    %c0_116 = arith.constant 0 : index
    %c96 = arith.constant 96 : index
    %237 = vector.load %arg5[%c0_116, %c96] : memref<16x256xf32, #tpu.memory_space<vmem>>, vector<16x32xf32>
    %cst_117 = arith.constant dense<0.000000e+00> : vector<8x32xf32>
    %238 = tpu.matmul %225, %237, %cst_117 {dimension_numbers = #tpu.dot_dimension_numbers<[1], [0], [0], [1], [0, 0, 1, 1], [], []>, precision = #tpu.contract_precision<fp32>} : vector<8x16xf32>, vector<16x32xf32>, vector<8x32xf32> -> vector<8x32xf32>
    %239 = vector.extract_strided_slice %6 {offsets = [0, 96], sizes = [8, 32], strides = [1, 1]} : vector<8x256xf32> to vector<8x32xf32>
    %240 = arith.addf %238, %239 : vector<8x32xf32>
    %cst_118 = arith.constant 0.000000e+00 : f32
    %241 = vector.broadcast %cst_118 : f32 to vector<8x32xf32>
    %242 = arith.maximumf %240, %241 : vector<8x32xf32>
    %c0_119 = arith.constant 0 : index
    %c96_120 = arith.constant 96 : index
    %243 = vector.load %arg8[%c0_119, %c96_120] : memref<32x256xf32, #tpu.memory_space<vmem>>, vector<32x32xf32>
    %cst_121 = arith.constant dense<0.000000e+00> : vector<8x32xf32>
    %244 = tpu.matmul %242, %243, %cst_121 {dimension_numbers = #tpu.dot_dimension_numbers<[1], [0], [0], [1], [0, 0, 1, 1], [], []>, precision = #tpu.contract_precision<fp32>} : vector<8x32xf32>, vector<32x32xf32>, vector<8x32xf32> -> vector<8x32xf32>
    %c0_122 = arith.constant 0 : index
    %c96_123 = arith.constant 96 : index
    %245 = vector.load %arg9[%c0_122, %c96_123] : memref<1x256xf32, #tpu.memory_space<vmem>>, vector<1x32xf32>
    %246 = vector.broadcast %245 : vector<1x32xf32> to vector<8x32xf32>
    %247 = arith.addf %244, %246 : vector<8x32xf32>
    %cst_124 = arith.constant 0.000000e+00 : f32
    %248 = vector.broadcast %cst_124 : f32 to vector<8x32xf32>
    %249 = arith.maximumf %247, %248 : vector<8x32xf32>
    %c0_125 = arith.constant 0 : index
    %c48_126 = arith.constant 48 : index
    %250 = vector.load %arg10[%c0_125, %c48_126] : memref<32x128xf32, #tpu.memory_space<vmem>>, vector<32x16xf32>
    %cst_127 = arith.constant dense<0.000000e+00> : vector<8x16xf32>
    %251 = tpu.matmul %249, %250, %cst_127 {dimension_numbers = #tpu.dot_dimension_numbers<[1], [0], [0], [1], [0, 0, 1, 1], [], []>, precision = #tpu.contract_precision<fp32>} : vector<8x32xf32>, vector<32x16xf32>, vector<8x16xf32> -> vector<8x16xf32>
    %c0_128 = arith.constant 0 : index
    %c48_129 = arith.constant 48 : index
    %252 = vector.load %arg11[%c0_128, %c48_129] : memref<1x128xf32, #tpu.memory_space<vmem>>, vector<1x16xf32>
    %253 = vector.broadcast %252 : vector<1x16xf32> to vector<8x16xf32>
    %254 = arith.addf %251, %253 : vector<8x16xf32>
    %255 = math.tanh %254 : vector<8x16xf32>
    %c3 = arith.constant 3 : index
    %256 = memref.load %arg0[%c3] : memref<8xf32, #tpu.memory_space<smem>>
    %257 = vector.broadcast %256 : f32 to vector<8x16xf32>
    %258 = arith.mulf %255, %257 : vector<8x16xf32>
    %c0_130 = arith.constant 0 : index
    %c48_131 = arith.constant 48 : index
    %259 = vector.load %arg12[%c0_130, %c48_131] : memref<32x128xf32, #tpu.memory_space<vmem>>, vector<32x16xf32>
    %cst_132 = arith.constant dense<0.000000e+00> : vector<8x16xf32>
    %260 = tpu.matmul %249, %259, %cst_132 {dimension_numbers = #tpu.dot_dimension_numbers<[1], [0], [0], [1], [0, 0, 1, 1], [], []>, precision = #tpu.contract_precision<fp32>} : vector<8x32xf32>, vector<32x16xf32>, vector<8x16xf32> -> vector<8x16xf32>
    %c0_133 = arith.constant 0 : index
    %c48_134 = arith.constant 48 : index
    %261 = vector.load %arg13[%c0_133, %c48_134] : memref<1x128xf32, #tpu.memory_space<vmem>>, vector<1x16xf32>
    %262 = vector.broadcast %261 : vector<1x16xf32> to vector<8x16xf32>
    %263 = arith.addf %260, %262 : vector<8x16xf32>
    %264 = math.exp %258 : vector<8x16xf32>
    %265 = arith.mulf %236, %264 : vector<8x16xf32>
    %266 = arith.addf %265, %263 : vector<8x16xf32>
    %267 = vector.broadcast %234 : f32 to vector<8x1xf32>
    %268 = arith.addf %205, %267 : vector<8x1xf32>
    %cst_135 = arith.constant dense<0.000000e+00> : vector<8xf32>
    %269 = vector.multi_reduction <add>, %258, %cst_135 [1] : vector<8x16xf32> to vector<8xf32>
    %270 = vector.shape_cast %269 : vector<8xf32> to vector<8x1xf32>
    %271 = arith.addf %268, %270 : vector<8x1xf32>
    %cst_136 = arith.constant dense<0.000000e+00> : vector<16xf32>
    %272 = vector.multi_reduction <add>, %266, %cst_136 [0] : vector<8x16xf32> to vector<16xf32>
    %273 = vector.shape_cast %272 : vector<16xf32> to vector<1x16xf32>
    %274 = arith.mulf %266, %266 : vector<8x16xf32>
    %cst_137 = arith.constant dense<0.000000e+00> : vector<16xf32>
    %275 = vector.multi_reduction <add>, %274, %cst_137 [0] : vector<8x16xf32> to vector<16xf32>
    %276 = vector.shape_cast %275 : vector<16xf32> to vector<1x16xf32>
    %cst_138 = arith.constant 1.250000e-01 : f32
    %277 = vector.broadcast %cst_138 : f32 to vector<1x16xf32>
    %278 = arith.mulf %273, %277 : vector<1x16xf32>
    %279 = arith.mulf %273, %278 : vector<1x16xf32>
    %280 = arith.subf %276, %279 : vector<1x16xf32>
    %cst_139 = arith.constant 0.142857149 : f32
    %281 = vector.broadcast %cst_139 : f32 to vector<1x16xf32>
    %282 = arith.mulf %280, %281 : vector<1x16xf32>
    %cst_140 = arith.constant 0.000000e+00 : f32
    %283 = vector.broadcast %cst_140 : f32 to vector<1x16xf32>
    %284 = arith.maximumf %282, %283 : vector<1x16xf32>
    %285 = vector.broadcast %278 : vector<1x16xf32> to vector<8x16xf32>
    %286 = arith.subf %266, %285 : vector<8x16xf32>
    %cst_141 = arith.constant 9.99999996E-13 : f32
    %287 = vector.broadcast %cst_141 : f32 to vector<1x16xf32>
    %288 = arith.addf %284, %287 : vector<1x16xf32>
    %289 = math.rsqrt %288 : vector<1x16xf32>
    %290 = vector.broadcast %289 : vector<1x16xf32> to vector<8x16xf32>
    %291 = arith.mulf %286, %290 : vector<8x16xf32>
    %292 = math.sqrt %284 : vector<1x16xf32>
    %cst_142 = arith.constant 9.99999997E-7 : f32
    %293 = vector.broadcast %cst_142 : f32 to vector<1x16xf32>
    %294 = arith.addf %292, %293 : vector<1x16xf32>
    %295 = math.log %294 : vector<1x16xf32>
    %296 = vector.shape_cast %295 : vector<1x16xf32> to vector<1x1x16xf32>
    %cst_143 = arith.constant dense<0.000000e+00> : vector<1xf32>
    %297 = vector.multi_reduction <add>, %296, %cst_143 [1, 2] : vector<1x1x16xf32> to vector<1xf32>
    %298 = vector.shape_cast %297 : vector<1xf32> to vector<1x1x1xf32>
    %299 = vector.extract %298[0, 0, 0] : f32 from vector<1x1x1xf32>
    %cst_144 = arith.constant 0.000000e+00 : f32
    %300 = arith.subf %cst_144, %299 : f32
    %c0_145 = arith.constant 0 : index
    %c64_146 = arith.constant 64 : index
    %301 = vector.load %arg4[%c0_145, %c64_146] : memref<16x128xf32, #tpu.memory_space<vmem>>, vector<16x16xf32>
    %cst_147 = arith.constant dense<0.000000e+00> : vector<8x16xf32>
    %302 = tpu.matmul %291, %301, %cst_147 {dimension_numbers = #tpu.dot_dimension_numbers<[1], [0], [0], [1], [0, 0, 1, 1], [], []>, precision = #tpu.contract_precision<fp32>} : vector<8x16xf32>, vector<16x16xf32>, vector<8x16xf32> -> vector<8x16xf32>
    %c0_148 = arith.constant 0 : index
    %c128 = arith.constant 128 : index
    %303 = vector.load %arg5[%c0_148, %c128] : memref<16x256xf32, #tpu.memory_space<vmem>>, vector<16x32xf32>
    %cst_149 = arith.constant dense<0.000000e+00> : vector<8x32xf32>
    %304 = tpu.matmul %291, %303, %cst_149 {dimension_numbers = #tpu.dot_dimension_numbers<[1], [0], [0], [1], [0, 0, 1, 1], [], []>, precision = #tpu.contract_precision<fp32>} : vector<8x16xf32>, vector<16x32xf32>, vector<8x32xf32> -> vector<8x32xf32>
    %305 = vector.extract_strided_slice %6 {offsets = [0, 128], sizes = [8, 32], strides = [1, 1]} : vector<8x256xf32> to vector<8x32xf32>
    %306 = arith.addf %304, %305 : vector<8x32xf32>
    %cst_150 = arith.constant 0.000000e+00 : f32
    %307 = vector.broadcast %cst_150 : f32 to vector<8x32xf32>
    %308 = arith.maximumf %306, %307 : vector<8x32xf32>
    %c0_151 = arith.constant 0 : index
    %c128_152 = arith.constant 128 : index
    %309 = vector.load %arg8[%c0_151, %c128_152] : memref<32x256xf32, #tpu.memory_space<vmem>>, vector<32x32xf32>
    %cst_153 = arith.constant dense<0.000000e+00> : vector<8x32xf32>
    %310 = tpu.matmul %308, %309, %cst_153 {dimension_numbers = #tpu.dot_dimension_numbers<[1], [0], [0], [1], [0, 0, 1, 1], [], []>, precision = #tpu.contract_precision<fp32>} : vector<8x32xf32>, vector<32x32xf32>, vector<8x32xf32> -> vector<8x32xf32>
    %c0_154 = arith.constant 0 : index
    %c128_155 = arith.constant 128 : index
    %311 = vector.load %arg9[%c0_154, %c128_155] : memref<1x256xf32, #tpu.memory_space<vmem>>, vector<1x32xf32>
    %312 = vector.broadcast %311 : vector<1x32xf32> to vector<8x32xf32>
    %313 = arith.addf %310, %312 : vector<8x32xf32>
    %cst_156 = arith.constant 0.000000e+00 : f32
    %314 = vector.broadcast %cst_156 : f32 to vector<8x32xf32>
    %315 = arith.maximumf %313, %314 : vector<8x32xf32>
    %c0_157 = arith.constant 0 : index
    %c64_158 = arith.constant 64 : index
    %316 = vector.load %arg10[%c0_157, %c64_158] : memref<32x128xf32, #tpu.memory_space<vmem>>, vector<32x16xf32>
    %cst_159 = arith.constant dense<0.000000e+00> : vector<8x16xf32>
    %317 = tpu.matmul %315, %316, %cst_159 {dimension_numbers = #tpu.dot_dimension_numbers<[1], [0], [0], [1], [0, 0, 1, 1], [], []>, precision = #tpu.contract_precision<fp32>} : vector<8x32xf32>, vector<32x16xf32>, vector<8x16xf32> -> vector<8x16xf32>
    %c0_160 = arith.constant 0 : index
    %c64_161 = arith.constant 64 : index
    %318 = vector.load %arg11[%c0_160, %c64_161] : memref<1x128xf32, #tpu.memory_space<vmem>>, vector<1x16xf32>
    %319 = vector.broadcast %318 : vector<1x16xf32> to vector<8x16xf32>
    %320 = arith.addf %317, %319 : vector<8x16xf32>
    %321 = math.tanh %320 : vector<8x16xf32>
    %c4 = arith.constant 4 : index
    %322 = memref.load %arg0[%c4] : memref<8xf32, #tpu.memory_space<smem>>
    %323 = vector.broadcast %322 : f32 to vector<8x16xf32>
    %324 = arith.mulf %321, %323 : vector<8x16xf32>
    %c0_162 = arith.constant 0 : index
    %c64_163 = arith.constant 64 : index
    %325 = vector.load %arg12[%c0_162, %c64_163] : memref<32x128xf32, #tpu.memory_space<vmem>>, vector<32x16xf32>
    %cst_164 = arith.constant dense<0.000000e+00> : vector<8x16xf32>
    %326 = tpu.matmul %315, %325, %cst_164 {dimension_numbers = #tpu.dot_dimension_numbers<[1], [0], [0], [1], [0, 0, 1, 1], [], []>, precision = #tpu.contract_precision<fp32>} : vector<8x32xf32>, vector<32x16xf32>, vector<8x16xf32> -> vector<8x16xf32>
    %c0_165 = arith.constant 0 : index
    %c64_166 = arith.constant 64 : index
    %327 = vector.load %arg13[%c0_165, %c64_166] : memref<1x128xf32, #tpu.memory_space<vmem>>, vector<1x16xf32>
    %328 = vector.broadcast %327 : vector<1x16xf32> to vector<8x16xf32>
    %329 = arith.addf %326, %328 : vector<8x16xf32>
    %330 = math.exp %324 : vector<8x16xf32>
    %331 = arith.mulf %302, %330 : vector<8x16xf32>
    %332 = arith.addf %331, %329 : vector<8x16xf32>
    %333 = vector.broadcast %300 : f32 to vector<8x1xf32>
    %334 = arith.addf %271, %333 : vector<8x1xf32>
    %cst_167 = arith.constant dense<0.000000e+00> : vector<8xf32>
    %335 = vector.multi_reduction <add>, %324, %cst_167 [1] : vector<8x16xf32> to vector<8xf32>
    %336 = vector.shape_cast %335 : vector<8xf32> to vector<8x1xf32>
    %337 = arith.addf %334, %336 : vector<8x1xf32>
    %cst_168 = arith.constant dense<0.000000e+00> : vector<16xf32>
    %338 = vector.multi_reduction <add>, %332, %cst_168 [0] : vector<8x16xf32> to vector<16xf32>
    %339 = vector.shape_cast %338 : vector<16xf32> to vector<1x16xf32>
    %340 = arith.mulf %332, %332 : vector<8x16xf32>
    %cst_169 = arith.constant dense<0.000000e+00> : vector<16xf32>
    %341 = vector.multi_reduction <add>, %340, %cst_169 [0] : vector<8x16xf32> to vector<16xf32>
    %342 = vector.shape_cast %341 : vector<16xf32> to vector<1x16xf32>
    %cst_170 = arith.constant 1.250000e-01 : f32
    %343 = vector.broadcast %cst_170 : f32 to vector<1x16xf32>
    %344 = arith.mulf %339, %343 : vector<1x16xf32>
    %345 = arith.mulf %339, %344 : vector<1x16xf32>
    %346 = arith.subf %342, %345 : vector<1x16xf32>
    %cst_171 = arith.constant 0.142857149 : f32
    %347 = vector.broadcast %cst_171 : f32 to vector<1x16xf32>
    %348 = arith.mulf %346, %347 : vector<1x16xf32>
    %cst_172 = arith.constant 0.000000e+00 : f32
    %349 = vector.broadcast %cst_172 : f32 to vector<1x16xf32>
    %350 = arith.maximumf %348, %349 : vector<1x16xf32>
    %351 = vector.broadcast %344 : vector<1x16xf32> to vector<8x16xf32>
    %352 = arith.subf %332, %351 : vector<8x16xf32>
    %cst_173 = arith.constant 9.99999996E-13 : f32
    %353 = vector.broadcast %cst_173 : f32 to vector<1x16xf32>
    %354 = arith.addf %350, %353 : vector<1x16xf32>
    %355 = math.rsqrt %354 : vector<1x16xf32>
    %356 = vector.broadcast %355 : vector<1x16xf32> to vector<8x16xf32>
    %357 = arith.mulf %352, %356 : vector<8x16xf32>
    %358 = math.sqrt %350 : vector<1x16xf32>
    %cst_174 = arith.constant 9.99999997E-7 : f32
    %359 = vector.broadcast %cst_174 : f32 to vector<1x16xf32>
    %360 = arith.addf %358, %359 : vector<1x16xf32>
    %361 = math.log %360 : vector<1x16xf32>
    %362 = vector.shape_cast %361 : vector<1x16xf32> to vector<1x1x16xf32>
    %cst_175 = arith.constant dense<0.000000e+00> : vector<1xf32>
    %363 = vector.multi_reduction <add>, %362, %cst_175 [1, 2] : vector<1x1x16xf32> to vector<1xf32>
    %364 = vector.shape_cast %363 : vector<1xf32> to vector<1x1x1xf32>
    %365 = vector.extract %364[0, 0, 0] : f32 from vector<1x1x1xf32>
    %cst_176 = arith.constant 0.000000e+00 : f32
    %366 = arith.subf %cst_176, %365 : f32
    %c0_177 = arith.constant 0 : index
    %c80 = arith.constant 80 : index
    %367 = vector.load %arg4[%c0_177, %c80] : memref<16x128xf32, #tpu.memory_space<vmem>>, vector<16x16xf32>
    %cst_178 = arith.constant dense<0.000000e+00> : vector<8x16xf32>
    %368 = tpu.matmul %357, %367, %cst_178 {dimension_numbers = #tpu.dot_dimension_numbers<[1], [0], [0], [1], [0, 0, 1, 1], [], []>, precision = #tpu.contract_precision<fp32>} : vector<8x16xf32>, vector<16x16xf32>, vector<8x16xf32> -> vector<8x16xf32>
    %c0_179 = arith.constant 0 : index
    %c160 = arith.constant 160 : index
    %369 = vector.load %arg5[%c0_179, %c160] : memref<16x256xf32, #tpu.memory_space<vmem>>, vector<16x32xf32>
    %cst_180 = arith.constant dense<0.000000e+00> : vector<8x32xf32>
    %370 = tpu.matmul %357, %369, %cst_180 {dimension_numbers = #tpu.dot_dimension_numbers<[1], [0], [0], [1], [0, 0, 1, 1], [], []>, precision = #tpu.contract_precision<fp32>} : vector<8x16xf32>, vector<16x32xf32>, vector<8x32xf32> -> vector<8x32xf32>
    %371 = vector.extract_strided_slice %6 {offsets = [0, 160], sizes = [8, 32], strides = [1, 1]} : vector<8x256xf32> to vector<8x32xf32>
    %372 = arith.addf %370, %371 : vector<8x32xf32>
    %cst_181 = arith.constant 0.000000e+00 : f32
    %373 = vector.broadcast %cst_181 : f32 to vector<8x32xf32>
    %374 = arith.maximumf %372, %373 : vector<8x32xf32>
    %c0_182 = arith.constant 0 : index
    %c160_183 = arith.constant 160 : index
    %375 = vector.load %arg8[%c0_182, %c160_183] : memref<32x256xf32, #tpu.memory_space<vmem>>, vector<32x32xf32>
    %cst_184 = arith.constant dense<0.000000e+00> : vector<8x32xf32>
    %376 = tpu.matmul %374, %375, %cst_184 {dimension_numbers = #tpu.dot_dimension_numbers<[1], [0], [0], [1], [0, 0, 1, 1], [], []>, precision = #tpu.contract_precision<fp32>} : vector<8x32xf32>, vector<32x32xf32>, vector<8x32xf32> -> vector<8x32xf32>
    %c0_185 = arith.constant 0 : index
    %c160_186 = arith.constant 160 : index
    %377 = vector.load %arg9[%c0_185, %c160_186] : memref<1x256xf32, #tpu.memory_space<vmem>>, vector<1x32xf32>
    %378 = vector.broadcast %377 : vector<1x32xf32> to vector<8x32xf32>
    %379 = arith.addf %376, %378 : vector<8x32xf32>
    %cst_187 = arith.constant 0.000000e+00 : f32
    %380 = vector.broadcast %cst_187 : f32 to vector<8x32xf32>
    %381 = arith.maximumf %379, %380 : vector<8x32xf32>
    %c0_188 = arith.constant 0 : index
    %c80_189 = arith.constant 80 : index
    %382 = vector.load %arg10[%c0_188, %c80_189] : memref<32x128xf32, #tpu.memory_space<vmem>>, vector<32x16xf32>
    %cst_190 = arith.constant dense<0.000000e+00> : vector<8x16xf32>
    %383 = tpu.matmul %381, %382, %cst_190 {dimension_numbers = #tpu.dot_dimension_numbers<[1], [0], [0], [1], [0, 0, 1, 1], [], []>, precision = #tpu.contract_precision<fp32>} : vector<8x32xf32>, vector<32x16xf32>, vector<8x16xf32> -> vector<8x16xf32>
    %c0_191 = arith.constant 0 : index
    %c80_192 = arith.constant 80 : index
    %384 = vector.load %arg11[%c0_191, %c80_192] : memref<1x128xf32, #tpu.memory_space<vmem>>, vector<1x16xf32>
    %385 = vector.broadcast %384 : vector<1x16xf32> to vector<8x16xf32>
    %386 = arith.addf %383, %385 : vector<8x16xf32>
    %387 = math.tanh %386 : vector<8x16xf32>
    %c5 = arith.constant 5 : index
    %388 = memref.load %arg0[%c5] : memref<8xf32, #tpu.memory_space<smem>>
    %389 = vector.broadcast %388 : f32 to vector<8x16xf32>
    %390 = arith.mulf %387, %389 : vector<8x16xf32>
    %c0_193 = arith.constant 0 : index
    %c80_194 = arith.constant 80 : index
    %391 = vector.load %arg12[%c0_193, %c80_194] : memref<32x128xf32, #tpu.memory_space<vmem>>, vector<32x16xf32>
    %cst_195 = arith.constant dense<0.000000e+00> : vector<8x16xf32>
    %392 = tpu.matmul %381, %391, %cst_195 {dimension_numbers = #tpu.dot_dimension_numbers<[1], [0], [0], [1], [0, 0, 1, 1], [], []>, precision = #tpu.contract_precision<fp32>} : vector<8x32xf32>, vector<32x16xf32>, vector<8x16xf32> -> vector<8x16xf32>
    %c0_196 = arith.constant 0 : index
    %c80_197 = arith.constant 80 : index
    %393 = vector.load %arg13[%c0_196, %c80_197] : memref<1x128xf32, #tpu.memory_space<vmem>>, vector<1x16xf32>
    %394 = vector.broadcast %393 : vector<1x16xf32> to vector<8x16xf32>
    %395 = arith.addf %392, %394 : vector<8x16xf32>
    %396 = math.exp %390 : vector<8x16xf32>
    %397 = arith.mulf %368, %396 : vector<8x16xf32>
    %398 = arith.addf %397, %395 : vector<8x16xf32>
    %399 = vector.broadcast %366 : f32 to vector<8x1xf32>
    %400 = arith.addf %337, %399 : vector<8x1xf32>
    %cst_198 = arith.constant dense<0.000000e+00> : vector<8xf32>
    %401 = vector.multi_reduction <add>, %390, %cst_198 [1] : vector<8x16xf32> to vector<8xf32>
    %402 = vector.shape_cast %401 : vector<8xf32> to vector<8x1xf32>
    %403 = arith.addf %400, %402 : vector<8x1xf32>
    %cst_199 = arith.constant dense<0.000000e+00> : vector<16xf32>
    %404 = vector.multi_reduction <add>, %398, %cst_199 [0] : vector<8x16xf32> to vector<16xf32>
    %405 = vector.shape_cast %404 : vector<16xf32> to vector<1x16xf32>
    %406 = arith.mulf %398, %398 : vector<8x16xf32>
    %cst_200 = arith.constant dense<0.000000e+00> : vector<16xf32>
    %407 = vector.multi_reduction <add>, %406, %cst_200 [0] : vector<8x16xf32> to vector<16xf32>
    %408 = vector.shape_cast %407 : vector<16xf32> to vector<1x16xf32>
    %cst_201 = arith.constant 1.250000e-01 : f32
    %409 = vector.broadcast %cst_201 : f32 to vector<1x16xf32>
    %410 = arith.mulf %405, %409 : vector<1x16xf32>
    %411 = arith.mulf %405, %410 : vector<1x16xf32>
    %412 = arith.subf %408, %411 : vector<1x16xf32>
    %cst_202 = arith.constant 0.142857149 : f32
    %413 = vector.broadcast %cst_202 : f32 to vector<1x16xf32>
    %414 = arith.mulf %412, %413 : vector<1x16xf32>
    %cst_203 = arith.constant 0.000000e+00 : f32
    %415 = vector.broadcast %cst_203 : f32 to vector<1x16xf32>
    %416 = arith.maximumf %414, %415 : vector<1x16xf32>
    %417 = vector.broadcast %410 : vector<1x16xf32> to vector<8x16xf32>
    %418 = arith.subf %398, %417 : vector<8x16xf32>
    %cst_204 = arith.constant 9.99999996E-13 : f32
    %419 = vector.broadcast %cst_204 : f32 to vector<1x16xf32>
    %420 = arith.addf %416, %419 : vector<1x16xf32>
    %421 = math.rsqrt %420 : vector<1x16xf32>
    %422 = vector.broadcast %421 : vector<1x16xf32> to vector<8x16xf32>
    %423 = arith.mulf %418, %422 : vector<8x16xf32>
    %424 = math.sqrt %416 : vector<1x16xf32>
    %cst_205 = arith.constant 9.99999997E-7 : f32
    %425 = vector.broadcast %cst_205 : f32 to vector<1x16xf32>
    %426 = arith.addf %424, %425 : vector<1x16xf32>
    %427 = math.log %426 : vector<1x16xf32>
    %428 = vector.shape_cast %427 : vector<1x16xf32> to vector<1x1x16xf32>
    %cst_206 = arith.constant dense<0.000000e+00> : vector<1xf32>
    %429 = vector.multi_reduction <add>, %428, %cst_206 [1, 2] : vector<1x1x16xf32> to vector<1xf32>
    %430 = vector.shape_cast %429 : vector<1xf32> to vector<1x1x1xf32>
    %431 = vector.extract %430[0, 0, 0] : f32 from vector<1x1x1xf32>
    %cst_207 = arith.constant 0.000000e+00 : f32
    %432 = arith.subf %cst_207, %431 : f32
    %c0_208 = arith.constant 0 : index
    %c96_209 = arith.constant 96 : index
    %433 = vector.load %arg4[%c0_208, %c96_209] : memref<16x128xf32, #tpu.memory_space<vmem>>, vector<16x16xf32>
    %cst_210 = arith.constant dense<0.000000e+00> : vector<8x16xf32>
    %434 = tpu.matmul %423, %433, %cst_210 {dimension_numbers = #tpu.dot_dimension_numbers<[1], [0], [0], [1], [0, 0, 1, 1], [], []>, precision = #tpu.contract_precision<fp32>} : vector<8x16xf32>, vector<16x16xf32>, vector<8x16xf32> -> vector<8x16xf32>
    %c0_211 = arith.constant 0 : index
    %c192 = arith.constant 192 : index
    %435 = vector.load %arg5[%c0_211, %c192] : memref<16x256xf32, #tpu.memory_space<vmem>>, vector<16x32xf32>
    %cst_212 = arith.constant dense<0.000000e+00> : vector<8x32xf32>
    %436 = tpu.matmul %423, %435, %cst_212 {dimension_numbers = #tpu.dot_dimension_numbers<[1], [0], [0], [1], [0, 0, 1, 1], [], []>, precision = #tpu.contract_precision<fp32>} : vector<8x16xf32>, vector<16x32xf32>, vector<8x32xf32> -> vector<8x32xf32>
    %437 = vector.extract_strided_slice %6 {offsets = [0, 192], sizes = [8, 32], strides = [1, 1]} : vector<8x256xf32> to vector<8x32xf32>
    %438 = arith.addf %436, %437 : vector<8x32xf32>
    %cst_213 = arith.constant 0.000000e+00 : f32
    %439 = vector.broadcast %cst_213 : f32 to vector<8x32xf32>
    %440 = arith.maximumf %438, %439 : vector<8x32xf32>
    %c0_214 = arith.constant 0 : index
    %c192_215 = arith.constant 192 : index
    %441 = vector.load %arg8[%c0_214, %c192_215] : memref<32x256xf32, #tpu.memory_space<vmem>>, vector<32x32xf32>
    %cst_216 = arith.constant dense<0.000000e+00> : vector<8x32xf32>
    %442 = tpu.matmul %440, %441, %cst_216 {dimension_numbers = #tpu.dot_dimension_numbers<[1], [0], [0], [1], [0, 0, 1, 1], [], []>, precision = #tpu.contract_precision<fp32>} : vector<8x32xf32>, vector<32x32xf32>, vector<8x32xf32> -> vector<8x32xf32>
    %c0_217 = arith.constant 0 : index
    %c192_218 = arith.constant 192 : index
    %443 = vector.load %arg9[%c0_217, %c192_218] : memref<1x256xf32, #tpu.memory_space<vmem>>, vector<1x32xf32>
    %444 = vector.broadcast %443 : vector<1x32xf32> to vector<8x32xf32>
    %445 = arith.addf %442, %444 : vector<8x32xf32>
    %cst_219 = arith.constant 0.000000e+00 : f32
    %446 = vector.broadcast %cst_219 : f32 to vector<8x32xf32>
    %447 = arith.maximumf %445, %446 : vector<8x32xf32>
    %c0_220 = arith.constant 0 : index
    %c96_221 = arith.constant 96 : index
    %448 = vector.load %arg10[%c0_220, %c96_221] : memref<32x128xf32, #tpu.memory_space<vmem>>, vector<32x16xf32>
    %cst_222 = arith.constant dense<0.000000e+00> : vector<8x16xf32>
    %449 = tpu.matmul %447, %448, %cst_222 {dimension_numbers = #tpu.dot_dimension_numbers<[1], [0], [0], [1], [0, 0, 1, 1], [], []>, precision = #tpu.contract_precision<fp32>} : vector<8x32xf32>, vector<32x16xf32>, vector<8x16xf32> -> vector<8x16xf32>
    %c0_223 = arith.constant 0 : index
    %c96_224 = arith.constant 96 : index
    %450 = vector.load %arg11[%c0_223, %c96_224] : memref<1x128xf32, #tpu.memory_space<vmem>>, vector<1x16xf32>
    %451 = vector.broadcast %450 : vector<1x16xf32> to vector<8x16xf32>
    %452 = arith.addf %449, %451 : vector<8x16xf32>
    %453 = math.tanh %452 : vector<8x16xf32>
    %c6 = arith.constant 6 : index
    %454 = memref.load %arg0[%c6] : memref<8xf32, #tpu.memory_space<smem>>
    %455 = vector.broadcast %454 : f32 to vector<8x16xf32>
    %456 = arith.mulf %453, %455 : vector<8x16xf32>
    %c0_225 = arith.constant 0 : index
    %c96_226 = arith.constant 96 : index
    %457 = vector.load %arg12[%c0_225, %c96_226] : memref<32x128xf32, #tpu.memory_space<vmem>>, vector<32x16xf32>
    %cst_227 = arith.constant dense<0.000000e+00> : vector<8x16xf32>
    %458 = tpu.matmul %447, %457, %cst_227 {dimension_numbers = #tpu.dot_dimension_numbers<[1], [0], [0], [1], [0, 0, 1, 1], [], []>, precision = #tpu.contract_precision<fp32>} : vector<8x32xf32>, vector<32x16xf32>, vector<8x16xf32> -> vector<8x16xf32>
    %c0_228 = arith.constant 0 : index
    %c96_229 = arith.constant 96 : index
    %459 = vector.load %arg13[%c0_228, %c96_229] : memref<1x128xf32, #tpu.memory_space<vmem>>, vector<1x16xf32>
    %460 = vector.broadcast %459 : vector<1x16xf32> to vector<8x16xf32>
    %461 = arith.addf %458, %460 : vector<8x16xf32>
    %462 = math.exp %456 : vector<8x16xf32>
    %463 = arith.mulf %434, %462 : vector<8x16xf32>
    %464 = arith.addf %463, %461 : vector<8x16xf32>
    %465 = vector.broadcast %432 : f32 to vector<8x1xf32>
    %466 = arith.addf %403, %465 : vector<8x1xf32>
    %cst_230 = arith.constant dense<0.000000e+00> : vector<8xf32>
    %467 = vector.multi_reduction <add>, %456, %cst_230 [1] : vector<8x16xf32> to vector<8xf32>
    %468 = vector.shape_cast %467 : vector<8xf32> to vector<8x1xf32>
    %469 = arith.addf %466, %468 : vector<8x1xf32>
    %cst_231 = arith.constant dense<0.000000e+00> : vector<16xf32>
    %470 = vector.multi_reduction <add>, %464, %cst_231 [0] : vector<8x16xf32> to vector<16xf32>
    %471 = vector.shape_cast %470 : vector<16xf32> to vector<1x16xf32>
    %472 = arith.mulf %464, %464 : vector<8x16xf32>
    %cst_232 = arith.constant dense<0.000000e+00> : vector<16xf32>
    %473 = vector.multi_reduction <add>, %472, %cst_232 [0] : vector<8x16xf32> to vector<16xf32>
    %474 = vector.shape_cast %473 : vector<16xf32> to vector<1x16xf32>
    %cst_233 = arith.constant 1.250000e-01 : f32
    %475 = vector.broadcast %cst_233 : f32 to vector<1x16xf32>
    %476 = arith.mulf %471, %475 : vector<1x16xf32>
    %477 = arith.mulf %471, %476 : vector<1x16xf32>
    %478 = arith.subf %474, %477 : vector<1x16xf32>
    %cst_234 = arith.constant 0.142857149 : f32
    %479 = vector.broadcast %cst_234 : f32 to vector<1x16xf32>
    %480 = arith.mulf %478, %479 : vector<1x16xf32>
    %cst_235 = arith.constant 0.000000e+00 : f32
    %481 = vector.broadcast %cst_235 : f32 to vector<1x16xf32>
    %482 = arith.maximumf %480, %481 : vector<1x16xf32>
    %483 = vector.broadcast %476 : vector<1x16xf32> to vector<8x16xf32>
    %484 = arith.subf %464, %483 : vector<8x16xf32>
    %cst_236 = arith.constant 9.99999996E-13 : f32
    %485 = vector.broadcast %cst_236 : f32 to vector<1x16xf32>
    %486 = arith.addf %482, %485 : vector<1x16xf32>
    %487 = math.rsqrt %486 : vector<1x16xf32>
    %488 = vector.broadcast %487 : vector<1x16xf32> to vector<8x16xf32>
    %489 = arith.mulf %484, %488 : vector<8x16xf32>
    %490 = math.sqrt %482 : vector<1x16xf32>
    %cst_237 = arith.constant 9.99999997E-7 : f32
    %491 = vector.broadcast %cst_237 : f32 to vector<1x16xf32>
    %492 = arith.addf %490, %491 : vector<1x16xf32>
    %493 = math.log %492 : vector<1x16xf32>
    %494 = vector.shape_cast %493 : vector<1x16xf32> to vector<1x1x16xf32>
    %cst_238 = arith.constant dense<0.000000e+00> : vector<1xf32>
    %495 = vector.multi_reduction <add>, %494, %cst_238 [1, 2] : vector<1x1x16xf32> to vector<1xf32>
    %496 = vector.shape_cast %495 : vector<1xf32> to vector<1x1x1xf32>
    %497 = vector.extract %496[0, 0, 0] : f32 from vector<1x1x1xf32>
    %cst_239 = arith.constant 0.000000e+00 : f32
    %498 = arith.subf %cst_239, %497 : f32
    %c0_240 = arith.constant 0 : index
    %c112 = arith.constant 112 : index
    %499 = vector.load %arg4[%c0_240, %c112] : memref<16x128xf32, #tpu.memory_space<vmem>>, vector<16x16xf32>
    %cst_241 = arith.constant dense<0.000000e+00> : vector<8x16xf32>
    %500 = tpu.matmul %489, %499, %cst_241 {dimension_numbers = #tpu.dot_dimension_numbers<[1], [0], [0], [1], [0, 0, 1, 1], [], []>, precision = #tpu.contract_precision<fp32>} : vector<8x16xf32>, vector<16x16xf32>, vector<8x16xf32> -> vector<8x16xf32>
    %c0_242 = arith.constant 0 : index
    %c224 = arith.constant 224 : index
    %501 = vector.load %arg5[%c0_242, %c224] : memref<16x256xf32, #tpu.memory_space<vmem>>, vector<16x32xf32>
    %cst_243 = arith.constant dense<0.000000e+00> : vector<8x32xf32>
    %502 = tpu.matmul %489, %501, %cst_243 {dimension_numbers = #tpu.dot_dimension_numbers<[1], [0], [0], [1], [0, 0, 1, 1], [], []>, precision = #tpu.contract_precision<fp32>} : vector<8x16xf32>, vector<16x32xf32>, vector<8x32xf32> -> vector<8x32xf32>
    %503 = vector.extract_strided_slice %6 {offsets = [0, 224], sizes = [8, 32], strides = [1, 1]} : vector<8x256xf32> to vector<8x32xf32>
    %504 = arith.addf %502, %503 : vector<8x32xf32>
    %cst_244 = arith.constant 0.000000e+00 : f32
    %505 = vector.broadcast %cst_244 : f32 to vector<8x32xf32>
    %506 = arith.maximumf %504, %505 : vector<8x32xf32>
    %c0_245 = arith.constant 0 : index
    %c224_246 = arith.constant 224 : index
    %507 = vector.load %arg8[%c0_245, %c224_246] : memref<32x256xf32, #tpu.memory_space<vmem>>, vector<32x32xf32>
    %cst_247 = arith.constant dense<0.000000e+00> : vector<8x32xf32>
    %508 = tpu.matmul %506, %507, %cst_247 {dimension_numbers = #tpu.dot_dimension_numbers<[1], [0], [0], [1], [0, 0, 1, 1], [], []>, precision = #tpu.contract_precision<fp32>} : vector<8x32xf32>, vector<32x32xf32>, vector<8x32xf32> -> vector<8x32xf32>
    %c0_248 = arith.constant 0 : index
    %c224_249 = arith.constant 224 : index
    %509 = vector.load %arg9[%c0_248, %c224_249] : memref<1x256xf32, #tpu.memory_space<vmem>>, vector<1x32xf32>
    %510 = vector.broadcast %509 : vector<1x32xf32> to vector<8x32xf32>
    %511 = arith.addf %508, %510 : vector<8x32xf32>
    %cst_250 = arith.constant 0.000000e+00 : f32
    %512 = vector.broadcast %cst_250 : f32 to vector<8x32xf32>
    %513 = arith.maximumf %511, %512 : vector<8x32xf32>
    %c0_251 = arith.constant 0 : index
    %c112_252 = arith.constant 112 : index
    %514 = vector.load %arg10[%c0_251, %c112_252] : memref<32x128xf32, #tpu.memory_space<vmem>>, vector<32x16xf32>
    %cst_253 = arith.constant dense<0.000000e+00> : vector<8x16xf32>
    %515 = tpu.matmul %513, %514, %cst_253 {dimension_numbers = #tpu.dot_dimension_numbers<[1], [0], [0], [1], [0, 0, 1, 1], [], []>, precision = #tpu.contract_precision<fp32>} : vector<8x32xf32>, vector<32x16xf32>, vector<8x16xf32> -> vector<8x16xf32>
    %c0_254 = arith.constant 0 : index
    %c112_255 = arith.constant 112 : index
    %516 = vector.load %arg11[%c0_254, %c112_255] : memref<1x128xf32, #tpu.memory_space<vmem>>, vector<1x16xf32>
    %517 = vector.broadcast %516 : vector<1x16xf32> to vector<8x16xf32>
    %518 = arith.addf %515, %517 : vector<8x16xf32>
    %519 = math.tanh %518 : vector<8x16xf32>
    %c7 = arith.constant 7 : index
    %520 = memref.load %arg0[%c7] : memref<8xf32, #tpu.memory_space<smem>>
    %521 = vector.broadcast %520 : f32 to vector<8x16xf32>
    %522 = arith.mulf %519, %521 : vector<8x16xf32>
    %c0_256 = arith.constant 0 : index
    %c112_257 = arith.constant 112 : index
    %523 = vector.load %arg12[%c0_256, %c112_257] : memref<32x128xf32, #tpu.memory_space<vmem>>, vector<32x16xf32>
    %cst_258 = arith.constant dense<0.000000e+00> : vector<8x16xf32>
    %524 = tpu.matmul %513, %523, %cst_258 {dimension_numbers = #tpu.dot_dimension_numbers<[1], [0], [0], [1], [0, 0, 1, 1], [], []>, precision = #tpu.contract_precision<fp32>} : vector<8x32xf32>, vector<32x16xf32>, vector<8x16xf32> -> vector<8x16xf32>
    %c0_259 = arith.constant 0 : index
    %c112_260 = arith.constant 112 : index
    %525 = vector.load %arg13[%c0_259, %c112_260] : memref<1x128xf32, #tpu.memory_space<vmem>>, vector<1x16xf32>
    %526 = vector.broadcast %525 : vector<1x16xf32> to vector<8x16xf32>
    %527 = arith.addf %524, %526 : vector<8x16xf32>
    %528 = math.exp %522 : vector<8x16xf32>
    %529 = arith.mulf %500, %528 : vector<8x16xf32>
    %530 = arith.addf %529, %527 : vector<8x16xf32>
    %531 = vector.broadcast %498 : f32 to vector<8x1xf32>
    %532 = arith.addf %469, %531 : vector<8x1xf32>
    %cst_261 = arith.constant dense<0.000000e+00> : vector<8xf32>
    %533 = vector.multi_reduction <add>, %522, %cst_261 [1] : vector<8x16xf32> to vector<8xf32>
    %534 = vector.shape_cast %533 : vector<8xf32> to vector<8x1xf32>
    %535 = arith.addf %532, %534 : vector<8x1xf32>
    %c0_262 = arith.constant 0 : index
    %c0_263 = arith.constant 0 : index
    %536 = vector.load %arg14[%c0_262, %c0_263] : memref<8x16xf32, #tpu.memory_space<vmem>>, vector<8x16xf32>
    tpu.vector_store %arg14[%c0_262, %c0_263], %530 {strides = array<i32>} : memref<8x16xf32, #tpu.memory_space<vmem>>, vector<8x16xf32>,
    %c0_264 = arith.constant 0 : index
    %537 = memref.load %arg1[%c0_264] : memref<1xf32, #tpu.memory_space<smem>>
    %538 = vector.broadcast %537 : f32 to vector<8x1xf32>
    %539 = arith.addf %535, %538 : vector<8x1xf32>
    %c0_265 = arith.constant 0 : index
    %c0_266 = arith.constant 0 : index
    %540 = vector.load %arg15[%c0_265, %c0_266] : memref<8x1xf32, #tpu.memory_space<vmem>>, vector<8x1xf32>
    tpu.vector_store %arg15[%c0_265, %c0_266], %539 {strides = array<i32>} : memref<8x1xf32, #tpu.memory_space<vmem>>, vector<8x1xf32>,
    return
  }
}

</mosaic_0001>

<bundles_post_ra>
// kernel: tpu_custom_call.1
= control target key start
LH: loop header
LB: loop body
LE: loop exit
PB: predicated region body
PF: predicated region fallthrough
CT: control target
= control target key end

     0   :  { %s29521_s0 = inlined_call_operand.vmem [shape: f32[8], index: 0, kind: input, shape index: {}]   ;;  %s29522_s1 = inlined_call_operand.<no memory space> [shape: f32[1], index: 1, kind: input, shape index: {}]   ;;  %s29523_s2 = inlined_call_operand.hbm [shape: f32[8,16], index: 2, kind: input, shape index: {}]   ;;  %s29524_s3 = inlined_call_operand.hbm [shape: f32[8,8], index: 3, kind: input, shape index: {}]   ;;  %s29525_s4 = inlined_call_operand.hbm [shape: f32[16,128], index: 4, kind: input, shape index: {}]   ;;  %s29526_s5 = inlined_call_operand.hbm [shape: f32[16,256], index: 5, kind: input, shape index: {}]   ;;  %s29527_s6 = inlined_call_operand.hbm [shape: f32[8,256], index: 6, kind: input, shape index: {}]   ;;  %s29528_s7 = inlined_call_operand.vmem [shape: f32[1,256], index: 7, kind: input, shape index: {}]   ;;  %s29529_s8 = inlined_call_operand.hbm [shape: f32[32,256], index: 8, kind: input, shape index: {}]   ;;  %s29530_s9 = inlined_call_operand.vmem [shape: f32[1,256], index: 9, kind: input, shape index: {}]   ;;  %s29531_s10 = inlined_call_operand.vmem [shape: f32[32,128], index: 10, kind: input, shape index: {}]   ;;  %s29532_s11 = inlined_call_operand.vmem [shape: f32[1,128], index: 11, kind: input, shape index: {}]   ;;  %s29533_s12 = inlined_call_operand.hbm [shape: f32[32,128], index: 12, kind: input, shape index: {}]   ;;  %s29534_s13 = inlined_call_operand.vmem [shape: f32[1,128], index: 13, kind: input, shape index: {}]   ;;  %s29535_s14 = inlined_call_operand.hbm [shape: f32[8,16], index: 14, kind: output, shape index: {0}]   ;;  %s29536_s15 = inlined_call_operand.vmem [shape: f32[8,1], index: 15, kind: output, shape index: {1}]  }
   0x1   :  { %29765 = sst [smem:[#allocation184_spill]] %s29536_s15 }
   0x2   :  { %22 = vsyncpa [#allocation6], 0 }
   0x3   :  { %23 = vsyncpa [#allocation4], 0 }
   0x4   :  { %24 = vsyncpa [#allocation9], 0 }
   0x5   :  { %25 = vsyncpa [#allocation12], 0 }
   0x6   :  { %26 = vsyncpa [#allocation15], 0 }
   0x7   :  { %27 = vsyncpa [#allocation5], 0  ;;  %s25796_s18 = smov [#allocation8]   ;;  %s25797_s20 = smov [#allocation11]  }
   0x8   :  { %s56_s19 = sshll.u32 %s25796_s18, 4  ;;  %s77_s21 = sshll.u32 %s25797_s20, 4  ;;  %s57_s19 = int_to_ptr.vmem [resolvable:$true] %s56_s19  ;;  %s25898_s21 = int_to_ptr.vmem [resolvable:$true] %s77_s21 }
   0x9   :  { %s25596_s24 = scalar_lea.hbm %s29524_s3, 128 }
   0xa   :  { %p25597_p0 = scmp.ne.s32.totalorder %s29524_s3, %s25596_s24  ;;  %p25600_p1 = scmp.lt.u32.totalorder %s25596_s24, %s29524_s3 }
   0xc   :  { %p25602_p2 = pnand %p25600_p1, %p25597_p0 }
   0xe   :  { %25605 = shalt.err (!%p25602_p2)
}
   0xf   :  { %s25606_s29 = scalar_lea.vmem %s57_s19, 128  ;;  %p25611_p4 = scmp.lt.s32.totalorder %s57_s19, %s57_s19 }
  0x10   :  { %p25607_p3 = scmp.ne.s32.totalorder %s57_s19, %s25606_s29  ;;  %p25612_p5 = scmp.lt.s32.totalorder %s25606_s29, %s25606_s29 }
  0x12   :  { %p25613_p6 = por %p25612_p5, %p25611_p4 }
  0x14   :  { %p25614_p7 = pnand %p25613_p6, %p25607_p3 }
  0x16   :  { %25617 = shalt.err (!%p25614_p7)
}
  0x17   :  { %59 = dma.hbm_to_vmem [thread:$0]  %s29524_s3, 128, %s57_s19, [#allocation9]  }
  0x18   :  { %s25618_s20 = scalar_lea.hbm %s29526_s5, 512 }
  0x19   :  { %p25619_p8 = scmp.ne.s32.totalorder %s29526_s5, %s25618_s20  ;;  %p25622_p9 = scmp.lt.u32.totalorder %s25618_s20, %s29526_s5 }
  0x1b   :  { %p25624_p10 = pnand %p25622_p9, %p25619_p8 }
  0x1d   :  { %25627 = shalt.err (!%p25624_p10)
}
  0x1e   :  { %s25628_s26 = scalar_lea.vmem %s25898_s21, 512  ;;  %p25633_p12 = scmp.lt.s32.totalorder %s25898_s21, %s25898_s21 }
  0x1f   :  { %p25629_p11 = scmp.ne.s32.totalorder %s25898_s21, %s25628_s26  ;;  %p25634_p13 = scmp.lt.s32.totalorder %s25628_s26, %s25628_s26 }
  0x21   :  { %p25635_p0 = por %p25634_p13, %p25633_p12 }
  0x23   :  { %p25636_p1 = pnand %p25635_p0, %p25629_p11 }
  0x25   :  { %25639 = shalt.err (!%p25636_p1)
}
  0x26   :  { %s25798_s3 = smov 256   ;;  %s25799_s19 = smov 16  }
  0x27   :  { %83 = dma.hbm_to_vmem [thread:$0]  %s29526_s5, 512, %s25898_s21, [#allocation12], %s25798_s3, %s25798_s3, %s25799_s19  }
  0x28   :  { %s34_s16 = sshll.u32 %s29521_s0, 4  ;;  %s25800_s17 = smov [#allocation14]   ;;  %s35_s16 = int_to_ptr.vmem [resolvable:$true] %s34_s16 }
  0x29   :  { %s101_s18 = sshll.u32 %s25800_s17, 4  ;;  %s25640_s23 = scalar_lea.hbm %s29529_s8, 1024  ;;  %s102_s18 = int_to_ptr.vmem [resolvable:$true] %s101_s18 }
  0x2a   :  { %p25641_p2 = scmp.ne.s32.totalorder %s29529_s8, %s25640_s23  ;;  %p25644_p3 = scmp.lt.u32.totalorder %s25640_s23, %s29529_s8 }
  0x2c   :  { %p25646_p4 = pnand %p25644_p3, %p25641_p2 }
  0x2e   :  { %25649 = shalt.err (!%p25646_p4)
}
  0x2f   :  { %s25650_s5 = scalar_lea.vmem %s102_s18, 1024  ;;  %p25655_p6 = scmp.lt.s32.totalorder %s102_s18, %s102_s18 }
  0x30   :  { %p25651_p5 = scmp.ne.s32.totalorder %s102_s18, %s25650_s5  ;;  %p25656_p7 = scmp.lt.s32.totalorder %s25650_s5, %s25650_s5 }
  0x32   :  { %p25657_p8 = por %p25656_p7, %p25655_p6 }
  0x34   :  { %p25658_p9 = pnand %p25657_p8, %p25651_p5 }
  0x36   :  { %25661 = shalt.err (!%p25658_p9)
}
  0x37   :  { %107 = dma.hbm_to_vmem [thread:$0]  %s29529_s8, 1024, %s102_s18, [#allocation15], %s25798_s3, %s25798_s3, %s25799_s19  }
  0x38   :  { %s25662_s27 = scalar_lea.vmem %s35_s16, 16  ;;  %p25667_p11 = scmp.lt.s32.totalorder %s35_s16, %s35_s16 }
  0x39   :  { %p25663_p10 = scmp.ne.s32.totalorder %s35_s16, %s25662_s27  ;;  %p25668_p12 = scmp.lt.s32.totalorder %s25662_s27, %s25662_s27 }
  0x3b   :  { %p25669_p13 = por %p25668_p12, %p25667_p11 }
  0x3d   :  { %p25670_p0 = pnand %p25669_p13, %p25663_p10 }
  0x3f   :  { %25673 = shalt.err (!%p25670_p0)
}
  0x40   :  { %s25801_s15 = smov [#allocation3]   ;;  %s25802_s28 = smov [#allocation7]  }
  0x41   :  { %37 = dma.vmem_to_smem %s35_s16, 16, %s25801_s15, [#allocation6]  }
  0x42   :  { %s46_s29 = sshll.u32 %s25802_s28, 4  ;;  %s25803_s30 = smov [#allocation10]   ;;  %s47_s29 = int_to_ptr.vmem [resolvable:$true] %s46_s29 }
  0x43   :  { %s65_s17 = sshll.u32 %s25803_s30, 4  ;;  %s25674_s8 = scalar_lea.hbm %s29523_s2, 128  ;;  %s25946_s17 = int_to_ptr.vmem [resolvable:$true] %s65_s17 }
  0x44   :  { %p25675_p1 = scmp.ne.s32.totalorder %s29523_s2, %s25674_s8  ;;  %p25678_p2 = scmp.lt.u32.totalorder %s25674_s8, %s29523_s2 }
  0x46   :  { %p25680_p3 = pnand %p25678_p2, %p25675_p1 }
  0x48   :  { %25683 = shalt.err (!%p25680_p3)
}
  0x49   :  { %s25684_s16 = scalar_lea.vmem %s47_s29, 128  ;;  %p25689_p5 = scmp.lt.s32.totalorder %s47_s29, %s47_s29 }
  0x4a   :  { %p25685_p4 = scmp.ne.s32.totalorder %s47_s29, %s25684_s16  ;;  %p25690_p6 = scmp.lt.s32.totalorder %s25684_s16, %s25684_s16 }
  0x4c   :  { %p25691_p7 = por %p25690_p6, %p25689_p5 }
  0x4e   :  { %p25692_p8 = pnand %p25691_p7, %p25685_p4 }
  0x50   :  { %25695 = shalt.err (!%p25692_p8)
}
  0x51   :  { %49 = dma.hbm_to_vmem [thread:$0]  %s29523_s2, 128, %s47_s29, [#allocation4]  }
  0x52   :  { %s25696_s21 = scalar_lea.hbm %s29525_s4, 256 }
  0x53   :  { %p25697_p9 = scmp.ne.s32.totalorder %s29525_s4, %s25696_s21  ;;  %p25700_p10 = scmp.lt.u32.totalorder %s25696_s21, %s29525_s4 }
  0x55   :  { %p25702_p11 = pnand %p25700_p10, %p25697_p9 }
  0x57   :  { %25705 = shalt.err (!%p25702_p11)
}
  0x58   :  { %s25706_s20 = scalar_lea.vmem %s25946_s17, 256  ;;  %p25711_p13 = scmp.lt.s32.totalorder %s25946_s17, %s25946_s17 }
  0x59   :  { %p25707_p12 = scmp.ne.s32.totalorder %s25946_s17, %s25706_s20  ;;  %p25712_p0 = scmp.lt.s32.totalorder %s25706_s20, %s25706_s20 }
  0x5b   :  { %p25713_p1 = por %p25712_p0, %p25711_p13 }
  0x5d   :  { %p25714_p2 = pnand %p25713_p1, %p25707_p12 }
  0x5f   :  { %25717 = shalt.err (!%p25714_p2)
}
  0x60   :  { %s25804_s2 = smov 128   ;;  %s25805_s29 = smov 8  }
  0x61   :  { %71 = dma.hbm_to_vmem [thread:$0]  %s29525_s4, 256, %s25946_s17, [#allocation9], %s25804_s2, %s25804_s2, %s25805_s29  }
  0x62   :  { %s25806_s3 = smov [#allocation13]   ;;  %s25807_s23 = smov [#allocation16]  }
  0x63   :  { %s90_s18 = sshll.u32 %s25806_s3, 4  ;;  %s119_s24 = sshll.u32 %s25807_s23, 4  ;;  %s91_s18 = int_to_ptr.vmem [resolvable:$true] %s90_s18  ;;  %s25980_s24 = int_to_ptr.vmem [resolvable:$true] %s119_s24 }
  0x64   :  { %s25718_s26 = scalar_lea.hbm %s29527_s6, 256 }
  0x65   :  { %p25719_p3 = scmp.ne.s32.totalorder %s29527_s6, %s25718_s26  ;;  %p25722_p4 = scmp.lt.u32.totalorder %s25718_s26, %s29527_s6 }
  0x67   :  { %p25724_p5 = pnand %p25722_p4, %p25719_p3 }
  0x69   :  { %25727 = shalt.err (!%p25724_p5)
}
  0x6a   :  { %s25728_s4 = scalar_lea.vmem %s91_s18, 256  ;;  %p25733_p7 = scmp.lt.s32.totalorder %s91_s18, %s91_s18 }
  0x6b   :  { %p25729_p6 = scmp.ne.s32.totalorder %s91_s18, %s25728_s4  ;;  %p25734_p8 = scmp.lt.s32.totalorder %s25728_s4, %s25728_s4 }
  0x6d   :  { %p25735_p9 = por %p25734_p8, %p25733_p7 }
  0x6f   :  { %p25736_p10 = pnand %p25735_p9, %p25729_p6 }
  0x71   :  { %25739 = shalt.err (!%p25736_p10)
}
  0x72   :  { %93 = dma.hbm_to_vmem [thread:$0]  %s29527_s6, 256, %s91_s18, [#allocation12]  }
  0x73   :  { %s25740_s20 = scalar_lea.hbm %s29533_s12, 512 }
  0x74   :  { %p25741_p11 = scmp.ne.s32.totalorder %s29533_s12, %s25740_s20  ;;  %p25744_p12 = scmp.lt.u32.totalorder %s25740_s20, %s29533_s12 }
  0x76   :  { %p25746_p13 = pnand %p25744_p12, %p25741_p11 }
  0x78   :  { %25749 = shalt.err (!%p25746_p13)
}
  0x79   :  { %s25750_s16 = scalar_lea.vmem %s25980_s24, 512  ;;  %p25755_p1 = scmp.lt.s32.totalorder %s25980_s24, %s25980_s24 }
  0x7a   :  { %p25751_p0 = scmp.ne.s32.totalorder %s25980_s24, %s25750_s16  ;;  %p25756_p2 = scmp.lt.s32.totalorder %s25750_s16, %s25750_s16 }
  0x7c   :  { %p25757_p3 = por %p25756_p2, %p25755_p1 }
  0x7e   :  { %p25758_p4 = pnand %p25757_p3, %p25751_p0 }
  0x80   :  { %25761 = shalt.err (!%p25758_p4)
}
  0x81   :  { %125 = dma.hbm_to_vmem [thread:$0]  %s29533_s12, 512, %s25980_s24, [#allocation15], %s25804_s2, %s25804_s2, %s25805_s29  }
  0x82   :  { %25784 = dma.done.wait [#allocation6], 16  }
  0x83   :  { %25785 = vsyncadd [#allocation6], 4294967280 }
  0x84   :  { %25786 = dma.done.wait [#allocation4], 128  }
  0x85   :  { %25787 = vsyncadd [#allocation4], 4294967168 }
  0x86   :  { %25788 = dma.done.wait [#allocation9], 384  }
  0x87   :  { %25789 = vsyncadd [#allocation9], 4294966912 }
  0x88   :  { %25790 = dma.done.wait [#allocation12], 768  }
  0x89   :  { %25791 = vsyncadd [#allocation12], 4294966528 }
  0x8a   :  { %25792 = dma.done.wait [#allocation15], 1536  }
  0x8b   :  { %25793 = vsyncadd [#allocation15], 4294965760 }
  0x8c   :  { %152 = sfence }
  0x8d   :  { %v156_v0 = vld [vmem:[#allocation13 + $0x8] sm:$0xff]  ;;  %v155_v1 = vld [vmem:[#allocation13] sm:$0xff]  ;;  %vm169_vm0 = vcmask 64512   ;;  %v29537_v5 = vmov 0.0   ;;  %vm638_vm1 = vcmask 130048   ;;  %v29539_v18 = vmov 0.0|0.0  }
  0x8e   :  { %v154_v2 = vld [vmem:[#allocation8] sm:$0xff]  ;;  %v26014_v3 = vand.u32 4294901760, %v156_v0  ;;  %v26016_v4 = vand.u32 4294901760, %v155_v1  ;;  %325 = vmatprep.mubr.f32.mxu0 %v29537_v5  ;;  %239 = vmatprep.mubr.f32.mxu1 %v29537_v5  ;;  %v26022_v8 = vld [vmem:[#allocation7] sm:$0xff]  ;;  %v26035_v26 = vld [vmem:[#allocation10] sm:$0xff]  ;;  %vm25810_vm2 = vmmov 0  }
  0x8f   :  { %v171_v6 = vsel %vm169_vm0, %v154_v2, 0  ;;  %v639_v11 = vsel %vm638_vm1, %v26022_v8, 0.0  ;;  %v646_v12 = vmul.f32 %v26022_v8, %v26022_v8  ;;  %v26037_v27 = vld [vmem:[#allocation10 + $0x8] sm:$0xff]  ;;  %v691_v34 = vand.u32 4294901760, %v26035_v26  ;;  %v26054_v47 = vld [vmem:[#allocation11] sm:$0xff]  ;;  %v26056_v48 = vld [vmem:[#allocation11 + $0x10] sm:$0xff] }
  0x90   :  { %v26020_v7 = vand.u32 4294901760, %v171_v6  ;;  %v252_v9 = vsub.f32 %v156_v0, %v26014_v3  ;;  %v258_v10 = vsub.f32 %v155_v1, %v26016_v4  ;;  %174 = vmatprep.subr.mxu1 %v26014_v3  ;;  %v640_v16 = vrot.slane %v639_v11, 4  ;;  %s25811_s12 = smov 96   ;;  %s25812_s2 = smov 112  }
  0x91   :  { %176 = vmatpush1.msra.mxu1 %v26016_v4  ;;  %v647_v17 = vsel %vm638_vm1, %v646_v12, 0.0  ;;  %v694_v35 = vand.u32 4294901760, %v26037_v27  ;;  %v1152_v50 = vand.u32 4294901760, %v26054_v47  ;;  %v1155_v51 = vand.u32 4294901760, %v26056_v48  ;;  %3638 = vrot.lane.b32.xlu0 %v26054_v47, %s25811_s12  ;;  %s25813_s27 = smov 64   ;;  %s25814_s4 = smov 32  }
  0x92   :  { %v241_v13 = vsub.f32 %v171_v6, %v26020_v7  ;;  %v253_v14 = vand.u32 4294901760, %v252_v9  ;;  %v259_v15 = vand.u32 4294901760, %v258_v10  ;;  %23959 = vmatprep.subr.bf16.mxu1 %v29539_v18  ;;  %v648_v20 = vrot.slane %v647_v17, 4  ;;  %3168 = vrot.lane.b32.xlu1 %v26035_v26, %s25812_s2  ;;  %s25815_s17 = smov 80   ;;  %s25816_s15 = smov 48  }
  0x93   :  { %v641_v23 = vadd.f32 %v640_v16, %v639_v11  ;;  %v26042_v38 = vpack.c.bf16 %v694_v35, %v691_v34  ;;  %v26064_v52 = vsub.f32 %v26054_v47, %v1152_v50  ;;  %v1237_v53 = vsub.f32 %v26056_v48, %v1155_v51  ;;  %s20687_s29 = sld [smem:[#allocation3 + $0x1]]  ;;  %s20688_s24 = sld [smem:[#allocation3 + $0x2]] }
  0x94   :  { %v242_v19 = vand.u32 4294901760, %v241_v13  ;;  %v254_v21 = vsub.f32 %v252_v9, %v253_v14  ;;  %v260_v22 = vsub.f32 %v258_v10, %v259_v15  ;;  %v649_v25 = vadd.f32 %v648_v20, %v647_v17  ;;  %s20692_s5 = sld [smem:[#allocation3 + $0x5]]  ;;  %s20693_s0 = sld [smem:[#allocation3 + $0x6]] }
  0x95   :  { %v642_v30 = vrot.slane %v641_v23, 2  ;;  %v26068_v54 = vsub.f32 %v26035_v26, %v691_v34  ;;  %v26071_v55 = vsub.f32 %v26037_v27, %v694_v35  ;;  %v1231_v57 = vand.u32 4294901760, %v26064_v52  ;;  %3640 = vrot.lane.b32.xlu0 %v26056_v48, %s25811_s12 }
  0x96   :  { %v243_v24 = vsub.f32 %v241_v13, %v242_v19  ;;  %v255_v28 = vand.u32 4294901760, %v254_v21  ;;  %v261_v29 = vand.u32 4294901760, %v260_v22  ;;  %v650_v32 = vrot.slane %v649_v25, 2  ;;  %3170 = vrot.lane.b32.xlu1 %v26037_v27, %s25812_s2  ;;  %v26153_v22 = vld [vmem:[#allocation14 + $0x10] sm:$0xff] }
  0x97   :  { %v643_v33 = vadd.f32 %v642_v30, %v641_v23  ;;  %v1238_v58 = vand.u32 4294901760, %v1237_v53  ;;  %v770_v60 = vand.u32 4294901760, %v26068_v54  ;;  %v777_v61 = vand.u32 4294901760, %v26071_v55  ;;  %v26155_v23 = vld [vmem:[#allocation14] sm:$0xff] }
  0x98   :  { %v244_v31 = vand.u32 4294901760, %v243_v24  ;;  %256 = vmatprep.subr.mxu0 %v255_v28  ;;  %v651_v36 = vadd.f32 %v650_v32, %v649_v25  ;;  %v23978_v63 = vpack.c.bf16 %v1155_v51, %v1152_v50  ;;  %v1232_v1 = vsub.f32 %v26064_v52, %v1231_v57  ;;  %v26171_v32 = vld [vmem:[#allocation14 + $0x20] sm:$0xff] }
  0x99   :  { %262 = vmatpush1.msra.mxu0 %v261_v29  ;;  %v644_v37 = vrot.slane %v643_v33, 1  ;;  %v1239_v2 = vsub.f32 %v1237_v53, %v1238_v58  ;;  %v778_v6 = vsub.f32 %v26071_v55, %v777_v61  ;;  %v23990_v20 = vpack.c.bf16 %v1238_v58, %v1231_v57 }
  0x9a   :  { %245 = vmatmul.mubr.f32.vlgmr.msra.gmra.mrb[0].mxu1 %v244_v31  ;;  %327 = vmatmul.mubr.f32.vlgmr.msra.gmra.mrb[0].mxu0 %v26020_v7  ;;  %v652_v39 = vrot.slane %v651_v36, 1  ;;  %v23972_v21 = vpack.c.bf16 %v777_v61, %v770_v60  ;;  %v1627_v24 = vand.u32 4294901760, %v26155_v23  ;;  %v1630_v25 = vand.u32 4294901760, %v26153_v22  ;;  %v26169_v31 = vld [vmem:[#allocation14 + $0x30] sm:$0xff] }
  0x9b   :  { %335 = vmatprep.subr.mxu0 %v252_v9  ;;  %401 = vmatprep.mubr.f32.mxu0 %v29537_v5  ;;  %v645_v40 = vadd.f32 %v644_v37, %v643_v33  ;;  %v1233_v9 = vand.u32 4294901760, %v1232_v1  ;;  %v1633_v33 = vand.u32 4294901760, %v26171_v32  ;;  %v1636_v34 = vand.u32 4294901760, %v26169_v31 }
  0x9c   :  { %338 = vmatpush1.msra.mxu0 %v258_v10  ;;  %23961 = vmatpush3.bf16.msra.mxu1 %v26042_v38  ;;  %v653_v41 = vadd.f32 %v652_v39, %v651_v36  ;;  %v1240_v10 = vand.u32 4294901760, %v1239_v2  ;;  %v26161_v28 = vpack.c.bf16 %v1630_v25, %v1627_v24  ;;  %v26164_v29 = vsub.f32 %v26155_v23, %v1627_v24  ;;  %v26224_v24 = vld [vmem:[%s29531_s10] sm:$0xff] }
  0x9d   :  { %411 = vmatprep.subr.mxu0 %v26014_v3  ;;  %21707 = vmatprep.mubr.msk.f32.mxu1 %vm25810_vm2, %v29537_v5  ;;  %v654_v42 = vmul.f32 0.125, %v645_v40  ;;  %v26167_v30 = vsub.f32 %v26153_v22, %v1630_v25  ;;  %v26181_v37 = vpack.c.bf16 %v1636_v34, %v1633_v33  ;;  %v26187_v39 = vsub.f32 %v26169_v31, %v1636_v34  ;;  %v26231_v25 = vld [vmem:[%s29531_s10 + $0x10] sm:$0xff]  ;;  %v26239_v34 = vld [vmem:[#allocation16 + $0x10] sm:$0xff] }
  0x9e   :  { %23962 = vmatprep.subr.bf16.mxu1 %v29539_v18  ;;  %4112 = vrot.lane.b32.xlu1 %v26155_v23, %s25811_s12  ;;  %v1708_v35 = vand.u32 4294901760, %v26164_v29  ;;  %vm1622_vm3 = vcmask 261120   ;;  %vm673_vm6 = vcmask 122880  }
  0x9f   :  { %v655_v43 = vmul.f32 %v654_v42, %v645_v40  ;;  %v659_v56 = vsub.f32 %v26022_v8, %v654_v42  ;;  %v1715_v36 = vand.u32 4294901760, %v26167_v30 }
  0xa0   :  { %v1709_v40 = vsub.f32 %v26164_v29, %v1708_v35 }
  0xa1   :  { %v656_v44 = vsub.f32 %v653_v41, %v655_v43  ;;  %v1716_v41 = vsub.f32 %v26167_v30, %v1715_v36  ;;  %v26205_v57 = vpack.c.bf16 %v1715_v36, %v1708_v35  ;;  %v26246_v35 = vld [vmem:[%s29532_s11] ss:$0 sm:$0xff] }
  0xa2   :  { %404 = vmatmul.mubr.f32.vlgmr.msra.gmra.mrb[0].mxu0 %v241_v13  ;;  %v779_v13 = vand.u32 4294901760, %v778_v6  ;;  %4116 = vrot.lane.b32.xlu1 %v26171_v32, %s25811_s12  ;;  %v1710_v42 = vand.u32 4294901760, %v1709_v40 }
  0xa3   :  { %413 = vmatpush1.msra.mxu0 %v26016_v4  ;;  %476 = vmatprep.mubr.f32.mxu0 %v29537_v5  ;;  %v657_v45 = vmul.f32 0.14285715, %v656_v44  ;;  %v1729_v44 = vand.u32 4294901760, %v26187_v39 }
  0xa4   :  { %489 = vmatprep.subr.mxu0 %v253_v14 }
  0xa5   :  { %v26052_v46 = vmax.f32 %v657_v45, 0.0  ;;  %v1717_v45 = vand.u32 4294901760, %v1716_v41  ;;  %v1730_v50 = vsub.f32 %v26187_v39, %v1729_v44 }
  0xa7   :  { %v660_v49 = vadd.f32 1e-12, %v26052_v46  ;;  %v26197_v51 = vpack.c.bf16 %v1717_v45, %v1710_v42  ;;  %vm665_vm4 = vcmp.eq.f32.partialorder %v26052_v46, inf  ;;  %vm667_vm5 = vcmp.eq.f32.partialorder %v26052_v46, 0.0 }
  0xa9   :  { %25505 = vrsqrt.f32 %v660_v49 }
  0xaa   :  { %480 = vmatmul.mubr.f32.vlgmr.msra.gmra.mrb[0].mxu0 %v242_v19  ;;  %v23966_v19 = vpack.c.bf16 %v26071_v55, %v26068_v54  ;;  %v24008_v55 = vpack.c.bf16 %v26167_v30, %v26164_v29  ;;  %v26347_v29 = vld [vmem:[#allocation14 + $0x18] sm:$0xff]  ;;  %25507 = vrsqrt.f32 %v26052_v46 }
  0xab   :  { %493 = vmatpush1.msra.mxu0 %v259_v15  ;;  %556 = vmatprep.mubr.f32.mxu0 %v29537_v5  ;;  %v23981_v15 = vpack.c.bf16 %v1240_v10, %v1233_v9  ;;  %v26351_v30 = vld [vmem:[#allocation14 + $0x38] sm:$0xff] }
  0xac   :  { %565 = vmatprep.subr.mxu0 %v26014_v3 }
  0xb2   :  { %558 = vmatmul.mubr.f32.vlgmr.msra.gmra.mrb[0].mxu0 %v26020_v7 }
  0xb3   :  { %567 = vmatpush1.msra.mxu0 %v26016_v4  ;;  %630 = vmatprep.mubr.f32.mxu0 %v29537_v5  ;;  %v25506_v59 = vpop.eup %25505  ;;  %v771_v4 = vsub.f32 %v26068_v54, %v770_v60 }
  0xb4   :  { %23977 = vmatprep.subr.bf16.mxu0 %v29539_v18  ;;  %v662_v62 = vmul.f32 %v25506_v59, %v659_v56  ;;  %v159_v59 = vlaneseq }
  0xb5   :  { %v772_v12 = vand.u32 4294901760, %v771_v4 }
  0xb6   :  { %v688_v0 = vsel %vm638_vm1, %v662_v62, 0  ;;  %v160_v62 = vshrl.u32 %v159_v59, 7 }
  0xb7   :  { %v26083_v3 = vand.u32 4294901760, %v688_v0  ;;  %v23963_v17 = vpack.c.bf16 %v779_v13, %v772_v12 }
  0xb8   :  { %v165_v1 = vsub.s32 1, %v160_v62 }
  0xb9   :  { %v758_v8 = vsub.f32 %v688_v0, %v26083_v3  ;;  %v157_v0 = vld [vmem:[%s29528_s7] sm:$0x3]  ;;  %s20689_s7 = sld [smem:[#allocation3 + $0x3]] }
  0xba   :  { %632 = vmatmul.mubr.f32.vlgmr.msra.gmra.mrb[0].mxu0 %v26020_v7  ;;  %v23984_v7 = vpack.c.bf16 %v1237_v53, %v26064_v52  ;;  %v1731_v53 = vand.u32 4294901760, %v1730_v50 }
  0xbb   :  { %23979 = vmatpush3.bf16.msra.mxu0 %v23978_v63  ;;  %21749 = vmatprep.mubr.msk.f32.mxu0 %vm25810_vm2, %v29537_v5  ;;  %v759_v11 = vand.u32 4294901760, %v758_v8 }
  0xbc   :  { %23980 = vmatprep.subr.bf16.mxu0 %v29539_v18 }
  0xbd   :  { %v760_v14 = vsub.f32 %v758_v8, %v759_v11 }
  0xbf   :  { %v761_v16 = vand.u32 4294901760, %v760_v14 }
  0xc1   :  { %21750 = vmatmul.mubr.f32.vlgmr.msra.gmra.mrb[2].mxu0 %v761_v16  ;;  %21708 = vmatmul.mubr.f32.vlgmr.msra.gmra.mrb[2].mxu1 %v761_v16 }
  0xc2   :  { %23982 = vmatpush3.bf16.msra.mxu0 %v23981_v15  ;;  %21756 = vmatprep.mubr.msk.f32.mxu0 %vm25810_vm2, %v29537_v5 }
  0xc3   :  { %23983 = vmatprep.subr.bf16.mxu0 %v29539_v18  ;;  %23964 = vmatpush3.bf16.msra.mxu1 %v23963_v17 }
  0xc4   :  { %21714 = vmatprep.mubr.msk.f32.mxu1 %vm25810_vm2, %v29537_v5  ;;  %23965 = vmatprep.subr.bf16.mxu1 %v29539_v18 }
  0xc9   :  { %21757 = vmatmul.mubr.f32.vlgmr.msra.gmra.mrb[2].mxu0 %v26083_v3  ;;  %21715 = vmatmul.mubr.f32.vlgmr.msra.gmra.mrb[2].mxu1 %v26083_v3 }
  0xca   :  { %23985 = vmatpush3.bf16.msra.mxu0 %v23984_v7  ;;  %21763 = vmatprep.mubr.msk.f32.mxu0 %vm25810_vm2, %v29537_v5 }
  0xcb   :  { %23986 = vmatprep.subr.bf16.mxu0 %v29539_v18  ;;  %23967 = vmatpush3.bf16.msra.mxu1 %v23966_v19 }
  0xcc   :  { %21721 = vmatprep.mubr.msk.f32.mxu1 %vm25810_vm2, %v29537_v5  ;;  %23968 = vmatprep.subr.bf16.mxu1 %v29539_v18 }
  0xd1   :  { %21764 = vmatmul.mubr.f32.vlgmr.msra.gmra.mrb[2].mxu0 %v758_v8  ;;  %21722 = vmatmul.mubr.f32.vlgmr.msra.gmra.mrb[2].mxu1 %v758_v8 }
  0xd2   :  { %23988 = vmatpush3.bf16.msra.mxu0 %v23978_v63  ;;  %21770 = vmatprep.mubr.msk.f32.mxu0 %vm25810_vm2, %v29537_v5 }
  0xd3   :  { %23989 = vmatprep.subr.bf16.mxu0 %v29539_v18  ;;  %23970 = vmatpush3.bf16.msra.mxu1 %v26042_v38 }
  0xd4   :  { %21728 = vmatprep.mubr.msk.f32.mxu1 %vm25810_vm2, %v29537_v5  ;;  %23971 = vmatprep.subr.bf16.mxu1 %v29539_v18 }
  0xd9   :  { %21771 = vmatmul.mubr.f32.vlgmr.msra.gmra.mrb[2].mxu0 %v759_v11  ;;  %21729 = vmatmul.mubr.f32.vlgmr.msra.gmra.mrb[2].mxu1 %v759_v11 }
  0xda   :  { %23991 = vmatpush3.bf16.msra.mxu0 %v23990_v20  ;;  %21777 = vmatprep.mubr.msk.f32.mxu0 %vm25810_vm2, %v29537_v5 }
  0xdb   :  { %23992 = vmatprep.subr.bf16.mxu0 %v29539_v18  ;;  %21735 = vmatprep.mubr.msk.f32.mxu1 %vm25810_vm2, %v29537_v5 }
  0xdc   :  { %23973 = vmatpush3.bf16.msra.mxu1 %v23972_v21 }
  0xdd   :  { %23974 = vmatprep.subr.bf16.mxu1 %v29539_v18 }
  0xe1   :  { %21778 = vmatmul.mubr.f32.vlgmr.msra.gmra.mrb[2].mxu0 %v26083_v3  ;;  %21736 = vmatmul.mubr.f32.vlgmr.msra.gmra.mrb[2].mxu1 %v26083_v3 }
  0xe2   :  { %23994 = vmatpush3.bf16.msra.mxu0 %v23978_v63  ;;  %21784 = vmatprep.mubr.msk.f32.mxu0 %vm25810_vm2, %v29537_v5  ;;  %v161_v63 = vsub.s32 0, %v160_v62 }
  0xe3   :  { %24031 = vmatprep.subr.bf16.mxu0 %v29539_v18  ;;  %23976 = vmatpush3.bf16.msra.mxu1 %v26042_v38  ;;  %v26184_v38 = vsub.f32 %v26171_v32, %v1633_v33  ;;  %v26235_v33 = vld [vmem:[#allocation16] sm:$0xff] }
  0xe4   :  { %21742 = vmatprep.mubr.msk.f32.mxu1 %vm25810_vm2, %v29537_v5  ;;  %23995 = vmatprep.subr.bf16.mxu1 %v29539_v18  ;;  %v162_v2 = vrot.slane %v157_v0, %v161_v63  ;;  %v2627_v59 = vand.u32 4294901760, %v26235_v33 }
  0xe5   :  { %v1722_v43 = vand.u32 4294901760, %v26184_v38  ;;  %v24011_v56 = vpack.c.bf16 %v26187_v39, %v26184_v38 }
  0xe7   :  { %v1723_v49 = vsub.f32 %v26184_v38, %v1722_v43  ;;  %v26207_v58 = vpack.c.bf16 %v1729_v44, %v1722_v43 }
  0xe9   :  { %21785 = vmatmul.mubr.f32.vlgmr.msra.gmra.mrb[2].mxu0 %v26083_v3  ;;  %21743 = vmatmul.mubr.f32.vlgmr.msra.gmra.mrb[2].mxu1 %v26083_v3  ;;  %v1724_v52 = vand.u32 4294901760, %v1723_v49  ;;  %v166_v3 = vrot.slane %v157_v0, %v165_v1  ;;  %v26416_v1 = vsub.f32 %v26235_v33, %v2627_v59 }
  0xea   :  { %21861 = vmatprep.mubr.msk.f32.mxu0 %vm25810_vm2, %v29537_v5  ;;  %21795 = vmatprep.mubr.msk.f32.mxu1 %vm25810_vm2, %v29537_v5 }
  0xeb   :  { %23997 = vmatpush3.bf16.msra.mxu1 %v26161_v28  ;;  %v26199_v54 = vpack.c.bf16 %v1731_v53, %v1724_v52  ;;  %v26384_v53 = vld [vmem:[%s29530_s9] ss:$0 sm:$0xff] }
  0xec   :  { %23998 = vmatprep.subr.bf16.mxu1 %v29539_v18  ;;  %4124 = vrot.lane.b32.xlu1 %v26384_v53, %s25811_s12 }
  0xef   :  { %24000 = vmatpush3.bf16.msra.mxu1 %v26181_v37 }
  0xf0   :  { %24001 = vmatprep.subr.bf16.mxu1 %v29539_v18 }
 0x16d   :  { %v246_v60 = vpop.f32.mrb[0].mxu1 }
 0x16e   :  { %v248_v61 = vpop.f32.mrb[1].mxu1  ;;  %v247_v4 = vadd.f32 %v246_v60, %v162_v2 }
 0x16f   :  { %v249_v6 = vadd.f32 %v248_v61, %v166_v3  ;;  %v26424_v3 = vld [vmem:[%s29531_s10 + $0x18] sm:$0xff] }
 0x170   :  { %v329_v8 = vadd.f32 nan, %v247_v4 }
 0x171   :  { %v331_v9 = vadd.f32 nan, %v249_v6 }
 0x172   :  { %v406_v10 = vadd.f32 nan, %v329_v8  ;;  %v2136_v8 = vand.u32 4294901760, %v26424_v3 }
 0x173   :  { %v408_v11 = vadd.f32 nan, %v331_v9  ;;  %v2633_v9 = vand.u32 4294901760, %v26239_v34 }
 0x174   :  { %v482_v12 = vadd.f32 nan, %v406_v10 }
 0x175   :  { %v484_v13 = vadd.f32 nan, %v408_v11 }
 0x176   :  { %v560_v14 = vadd.f32 nan, %v482_v12 }
 0x177   :  { %v562_v15 = vadd.f32 nan, %v484_v13 }
 0x18d   :  { %v633_v16 = vpop.f32.mrb[0].mxu0 }
 0x18e   :  { %v634_v17 = vadd.f32 %v633_v16, %v560_v14  ;;  %v25112_v7 = vadd.f32 %v633_v16, %v247_v4  ;;  %v635_v19 = vpop.f32.mrb[1].mxu0  ;;  %v26426_v4 = vld [vmem:[#allocation16 + $0x18] sm:$0xff]  ;;  %v26448_v16 = vsub.f32 %v26424_v3, %v2136_v8 }
 0x18f   :  { %v26212_v20 = vadd.f32 %v635_v19, %v562_v15  ;;  %v26214_v21 = vadd.f32 %v635_v19, %v249_v6  ;;  %v2133_v6 = vand.u32 4294901760, %v26231_v25  ;;  %v2636_v10 = vand.u32 4294901760, %v26426_v4 }
 0x190   :  { %3645 = vrot.lane.b32.xlu0 %v25112_v7, %s25811_s12 }
 0x191   :  { %29766 = vst [vmem:[#allocation24_spill] sm:$0xff] %v26212_v20  ;;  %v26442_v14 = vpack.c.bf16 %v2136_v8, %v2133_v6  ;;  %v26445_v15 = vsub.f32 %v26231_v25, %v2133_v6 }
 0x194   :  { %4114 = vrot.lane.b32.xlu0 %v26153_v22, %s25811_s12 }
 0x198   :  { %4118 = vrot.lane.b32.xlu0 %v26169_v31, %s25811_s12 }
 0x19c   :  { %4620 = vrot.lane.b32.xlu0 %v26224_v24, %s25812_s2 }
 0x1a0   :  { %4624 = vrot.lane.b32.xlu0 %v26231_v25, %s25812_s2 }
 0x1a4   :  { %5131 = vrot.lane.b32.xlu0 %v26235_v33, %s25812_s2 }
 0x1a8   :  { %5135 = vrot.lane.b32.xlu0 %v26239_v34, %s25812_s2 }
 0x1ac   :  { %4632 = vrot.lane.b32.xlu0 %v26246_v35, %s25812_s2 }
 0x1b0   :  { %6154 = vrot.lane.b32.xlu0 %v26054_v47, %s25813_s27 }
 0x1b4   :  { %5686 = vrot.lane.b32.xlu0 %v26035_v26, %s25811_s12 }
 0x1b8   :  { %6160 = vrot.lane.b32.xlu0 %v25112_v7, %s25813_s27 }
 0x1bc   :  { %6625 = vrot.lane.b32.xlu0 %v26153_v22, %s25813_s27  ;;  %v1606_v36 = vpop.f32.mrb[2].mxu0 }
 0x1bd   :  { %v25115_v40 = vadd.f32 %v1606_v36, %v634_v17  ;;  %v21786_v41 = vpop.f32.mrb[3].mxu0  ;;  %v26450_v17 = vpack.c.bf16 %v2636_v10, %v2633_v9 }
 0x1bf   :  { %v1610_v42 = vmax.f32 %v25115_v40, 0.0  ;;  %v2708_v40 = vand.u32 4294901760, %v26416_v1 }
 0x1c0   :  { %6629 = vrot.lane.b32.xlu0 %v26169_v31, %s25813_s27 }
 0x1c1   :  { %v1624_v43 = vsel %vm1622_vm3, %v1610_v42, 0  ;;  %v26470_v42 = vsub.f32 %v26426_v4, %v2636_v10 }
 0x1c2   :  { %v1695_v44 = vand.u32 4294901760, %v1624_v43 }
 0x1c4   :  { %7127 = vrot.lane.b32.xlu0 %v26224_v24, %s25811_s12  ;;  %v1696_v45 = vsub.f32 %v1624_v43, %v1695_v44  ;;  %v2222_v43 = vand.u32 4294901760, %v26445_v15 }
 0x1c6   :  { %v1697_v49 = vand.u32 4294901760, %v1696_v45 }
 0x1c8   :  { %7131 = vrot.lane.b32.xlu0 %v26231_v25, %s25811_s12  ;;  %v1698_v50 = vsub.f32 %v1696_v45, %v1697_v49 }
 0x1ca   :  { %v1699_v52 = vand.u32 4294901760, %v1698_v50 }
 0x1cc   :  { %7634 = vrot.lane.b32.xlu0 %v26235_v33, %s25811_s12  ;;  %21796 = vmatmul.mubr.f32.vlgmr.msra.gmra.mrb[4].mxu1 %v1699_v52  ;;  %v2709_v52 = vsub.f32 %v26416_v1, %v2708_v40 }
 0x1cd   :  { %24003 = vmatpush3.bf16.msra.mxu1 %v26197_v51  ;;  %21806 = vmatprep.mubr.msk.f32.mxu1 %vm25810_vm2, %v29537_v5 }
 0x1ce   :  { %24004 = vmatprep.subr.bf16.mxu1 %v29539_v18  ;;  %v2710_v6 = vand.u32 4294901760, %v2709_v52 }
 0x1d0   :  { %7638 = vrot.lane.b32.xlu0 %v26239_v34, %s25811_s12 }
 0x1d1   :  { %24006 = vmatpush3.bf16.msra.mxu1 %v26199_v54  ;;  %v26391_v54 = vld [vmem:[%s29531_s10 + $0x8] sm:$0xff] }
 0x1d2   :  { %24007 = vmatprep.subr.bf16.mxu1 %v29539_v18  ;;  %4622 = vrot.lane.b32.xlu1 %v26391_v54, %s25812_s2 }
 0x1d4   :  { %7139 = vrot.lane.b32.xlu0 %v26246_v35, %s25811_s12  ;;  %21807 = vmatmul.mubr.f32.vlgmr.msra.gmra.mrb[4].mxu1 %v1695_v44 }
 0x1d5   :  { %24009 = vmatpush3.bf16.msra.mxu1 %v24008_v55  ;;  %21817 = vmatprep.mubr.msk.f32.mxu1 %vm25810_vm2, %v29537_v5  ;;  %v26393_v55 = vld [vmem:[#allocation16 + $0x8] sm:$0xff] }
 0x1d6   :  { %24010 = vmatprep.subr.bf16.mxu1 %v29539_v18  ;;  %v2630_v60 = vand.u32 4294901760, %v26393_v55  ;;  %4626 = vrot.lane.b32.xlu1 %v26424_v3, %s25812_s2 }
 0x1d8   :  { %8657 = vrot.lane.b32.xlu0 %v26054_v47, %s25814_s4  ;;  %v26315_v47 = vpop.f32.mrb[2].mxu1  ;;  %v26413_v0 = vpack.c.bf16 %v2630_v60, %v2627_v59  ;;  %v26419_v2 = vsub.f32 %v26393_v55, %v2630_v60 }
 0x1d9   :  { %24012 = vmatpush3.bf16.msra.mxu1 %v24011_v56 }
 0x1da   :  { %24013 = vmatprep.subr.bf16.mxu1 %v29539_v18  ;;  %v2715_v41 = vand.u32 4294901760, %v26419_v2  ;;  %5133 = vrot.lane.b32.xlu1 %v26393_v55, %s25812_s2 }
 0x1dc   :  { %8189 = vrot.lane.b32.xlu0 %v26035_v26, %s25815_s17  ;;  %21818 = vmatmul.mubr.f32.vlgmr.msra.gmra.mrb[4].mxu1 %v1696_v45 }
 0x1dd   :  { %24015 = vmatpush3.bf16.msra.mxu1 %v26161_v28  ;;  %21828 = vmatprep.mubr.msk.f32.mxu1 %vm25810_vm2, %v29537_v5 }
 0x1de   :  { %24016 = vmatprep.subr.bf16.mxu1 %v29539_v18  ;;  %5137 = vrot.lane.b32.xlu1 %v26426_v4, %s25812_s2 }
 0x1e0   :  { %8663 = vrot.lane.b32.xlu0 %v25112_v7, %s25814_s4  ;;  %v26453_v7 = vsub.f32 %v26239_v34, %v2633_v9 }
 0x1e1   :  { %24018 = vmatpush3.bf16.msra.mxu1 %v26181_v37 }
 0x1e2   :  { %24019 = vmatprep.subr.bf16.mxu1 %v29539_v18  ;;  %v2722_v45 = vand.u32 4294901760, %v26453_v7 }
 0x1e4   :  { %9128 = vrot.lane.b32.xlu0 %v26153_v22, %s25814_s4  ;;  %21829 = vmatmul.mubr.f32.vlgmr.msra.gmra.mrb[4].mxu1 %v1697_v49  ;;  %v21744_v22 = vpop.f32.mrb[3].mxu1  ;;  %v2723_v9 = vsub.f32 %v26453_v7, %v2722_v45 }
 0x1e5   :  { %24021 = vmatpush3.bf16.msra.mxu1 %v26205_v57  ;;  %21839 = vmatprep.mubr.msk.f32.mxu1 %vm25810_vm2, %v29537_v5  ;;  %v2127_v57 = vand.u32 4294901760, %v26224_v24  ;;  %v2716_v22 = vsub.f32 %v26419_v2, %v2715_v41 }
 0x1e6   :  { %24022 = vmatprep.subr.bf16.mxu1 %v29539_v18 }
 0x1e7   :  { %v26408_v62 = vsub.f32 %v26224_v24, %v2127_v57  ;;  %v2717_v8 = vand.u32 4294901760, %v2716_v22 }
 0x1e8   :  { %9132 = vrot.lane.b32.xlu0 %v26169_v31, %s25814_s4  ;;  %v26357_v31 = vpop.permute.xlu0 %3638 }
 0x1e9   :  { %24024 = vmatpush3.bf16.msra.mxu1 %v26207_v58  ;;  %v2130_v58 = vand.u32 4294901760, %v26391_v54  ;;  %v29542_v11 = vand.u32 4294901760, %v26408_v62 }
 0x1ea   :  { %24025 = vmatprep.subr.bf16.mxu1 %v29539_v18 }
 0x1eb   :  { %v26405_v61 = vpack.c.bf16 %v2130_v58, %v2127_v57  ;;  %v26411_v63 = vsub.f32 %v26391_v54, %v2130_v58  ;;  %v2209_v19 = vsub.f32 %v26408_v62, %v29542_v11  ;;  %v2223_v57 = vsub.f32 %v26445_v15, %v2222_v43 }
 0x1ec   :  { %9630 = vrot.lane.b32.xlu0 %v26224_v24, %s25815_s17  ;;  %21840 = vmatmul.mubr.f32.vlgmr.msra.gmra.mrb[4].mxu1 %v1695_v44 }
 0x1ed   :  { %24027 = vmatpush3.bf16.msra.mxu1 %v26161_v28  ;;  %21850 = vmatprep.mubr.msk.f32.mxu1 %vm25810_vm2, %v29537_v5  ;;  %v26339_v28 = vld [vmem:[#allocation11 + $0x8] sm:$0xff]  ;;  %v29541_v12 = vand.u32 4294901760, %v26411_v63  ;;  %v2210_v49 = vand.u32 4294901760, %v2209_v19  ;;  %v2224_v10 = vand.u32 4294901760, %v2223_v57 }
 0x1ee   :  { %24028 = vmatprep.subr.bf16.mxu1 %v29539_v18  ;;  %24033 = vmatpush3.bf16.msra.mxu0 %v26405_v61 }
 0x1ef   :  { %24034 = vmatprep.subr.bf16.mxu0 %v29539_v18  ;;  %v2216_v36 = vsub.f32 %v26411_v63, %v29541_v12  ;;  %v2724_v12 = vand.u32 4294901760, %v2723_v9 }
 0x1f0   :  { %9634 = vrot.lane.b32.xlu0 %v26231_v25, %s25815_s17 }
 0x1f1   :  { %24030 = vmatpush3.bf16.msra.mxu1 %v26181_v37  ;;  %v26361_v37 = vpop.permute.xlu0 %3640  ;;  %v2217_v50 = vand.u32 4294901760, %v2216_v36  ;;  %v2729_v36 = vand.u32 4294901760, %v26470_v42 }
 0x1f2   :  { %24067 = vmatprep.subr.bf16.mxu1 %v29539_v18  ;;  %24036 = vmatpush3.bf16.msra.mxu0 %v26442_v14 }
 0x1f3   :  { %24037 = vmatprep.subr.bf16.mxu0 %v29539_v18  ;;  %v26487_v60 = vpack.c.bf16 %v2217_v50, %v2210_v49  ;;  %v2730_v11 = vsub.f32 %v26470_v42, %v2729_v36  ;;  %v26533_v9 = vpack.c.bf16 %v2729_v36, %v2722_v45 }
 0x1f4   :  { %10137 = vrot.lane.b32.xlu0 %v26235_v33, %s25815_s17  ;;  %21851 = vmatmul.mubr.f32.vlgmr.msra.gmra.mrb[4].mxu1 %v1695_v44  ;;  %v2229_v44 = vand.u32 4294901760, %v26448_v16 }
 0x1f5   :  { %21927 = vmatprep.mubr.msk.f32.mxu1 %vm25810_vm2, %v29537_v5  ;;  %24069 = vmatpush3.bf16.msra.mxu1 %v26413_v0  ;;  %v26491_v5 = vpack.c.bf16 %v2717_v8, %v2710_v6  ;;  %v2731_v49 = vand.u32 4294901760, %v2730_v11  ;;  %v26519_v11 = vld [vmem:[%s29534_s13] ss:$0 sm:$0xff]  ;;  %v26525_v8 = vpack.c.bf16 %v2715_v41, %v2708_v40  ;;  %v29774_v40 = vand.u32 4294901760, %v26411_v63 }
 0x1f6   :  { %24070 = vmatprep.subr.bf16.mxu1 %v29539_v18  ;;  %v2230_v58 = vsub.f32 %v26448_v16, %v2229_v44  ;;  %5143 = vrot.lane.b32.xlu1 %v26519_v11, %s25812_s2  ;;  %v26551_v45 = vpack.c.bf16 %v2229_v44, %v2222_v43  ;;  %v668_v43 = vand.u32 2147483648, %v26052_v46  ;;  %s2612_s2 = sld [smem:[#allocation3]] }
 0x1f7   :  { %v26502_v52 = vpack.c.bf16 %v2731_v49, %v2724_v12 }
 0x1f8   :  { %10141 = vrot.lane.b32.xlu0 %v26239_v34, %s25815_s17  ;;  %v2231_v19 = vand.u32 4294901760, %v2230_v58 }
 0x1f9   :  { %24072 = vmatpush3.bf16.msra.mxu1 %v26450_v17 }
 0x1fa   :  { %24073 = vmatprep.subr.bf16.mxu1 %v29539_v18  ;;  %v26493_v18 = vpack.c.bf16 %v2231_v19, %v2224_v10  ;;  %6156 = vrot.lane.b32.xlu1 %v26056_v48, %s25813_s27  ;;  %v29773_v10 = vand.u32 4294901760, %v26408_v62 }
 0x1fc   :  { %9642 = vrot.lane.b32.xlu0 %v26246_v35, %s25815_s17  ;;  %v26543_v41 = vpack.c.bf16 %v29774_v40, %v29773_v10 }
 0x1fe   :  { %5688 = vrot.lane.b32.xlu1 %v26037_v27, %s25811_s12 }
 0x200   :  { %10692 = vrot.lane.b32.xlu0 %v26035_v26, %s25813_s27 }
 0x202   :  { %v26367_v38 = vpop.permute.xlu0 %3645  ;;  %6623 = vrot.lane.b32.xlu1 %v26155_v23, %s25813_s27 }
 0x203   :  { %29767 = vst [vmem:[#allocation25_spill] sm:$0xff] %v26367_v38 }
 0x204   :  { %12122 = vrot.lane.b32.xlu0 %v26224_v24, %s25813_s27 }
 0x206   :  { %v26371_v39 = vpop.permute.xlu0 %4114  ;;  %6627 = vrot.lane.b32.xlu1 %v26171_v32, %s25813_s27 }
 0x208   :  { %12126 = vrot.lane.b32.xlu0 %v26231_v25, %s25813_s27 }
 0x20a   :  { %v26377_v51 = vpop.permute.xlu0 %4118  ;;  %6635 = vrot.lane.b32.xlu1 %v26384_v53, %s25813_s27 }
 0x20c   :  { %12629 = vrot.lane.b32.xlu0 %v26235_v33, %s25813_s27 }
 0x20e   :  { %v26395_v56 = vpop.permute.xlu0 %4620  ;;  %7129 = vrot.lane.b32.xlu1 %v26391_v54, %s25811_s12 }
 0x210   :  { %12633 = vrot.lane.b32.xlu0 %v26239_v34, %s25813_s27 }
 0x212   :  { %v26439_v13 = vpop.permute.xlu0 %4624  ;;  %7133 = vrot.lane.b32.xlu1 %v26424_v3, %s25811_s12 }
 0x213   :  { %29768 = vst [vmem:[#allocation26_spill] sm:$0xff] %v26439_v13 }
 0x214   :  { %12134 = vrot.lane.b32.xlu0 %v26246_v35, %s25813_s27 }
 0x216   :  { %v26483_v59 = vpop.permute.xlu0 %5131  ;;  %7636 = vrot.lane.b32.xlu1 %v26393_v55, %s25811_s12 }
 0x217   :  { %29769 = vst [vmem:[#allocation27_spill] sm:$0xff] %v26483_v59 }
 0x218   :  { %13654 = vrot.lane.b32.xlu0 %v26339_v28, %s25811_s12 }
 0x21a   :  { %v26500_v50 = vpop.permute.xlu0 %5135  ;;  %7640 = vrot.lane.b32.xlu1 %v26426_v4, %s25811_s12 }
 0x21b   :  { %29770 = vst [vmem:[#allocation28_spill] sm:$0xff] %v26500_v50 }
 0x21c   :  { %13184 = vrot.lane.b32.xlu0 %v26035_v26, %s25816_s15 }
 0x21e   :  { %v26512_v6 = vpop.permute.xlu0 %4632  ;;  %7646 = vrot.lane.b32.xlu1 %v26519_v11, %s25811_s12 }
 0x21f   :  { %29771 = vst [vmem:[#allocation29_spill] sm:$0xff] %v26512_v6 }
 0x220   :  { %13661 = vrot.lane.b32.xlu0 %v26214_v21, %s25811_s12 }
 0x222   :  { %8659 = vrot.lane.b32.xlu1 %v26056_v48, %s25814_s4 }
 0x224   :  { %14130 = vrot.lane.b32.xlu0 %v26347_v29, %s25811_s12 }
 0x226   :  { %8191 = vrot.lane.b32.xlu1 %v26037_v27, %s25815_s17 }
 0x228   :  { %14134 = vrot.lane.b32.xlu0 %v26351_v30, %s25811_s12 }
 0x22a   :  { %9126 = vrot.lane.b32.xlu1 %v26155_v23, %s25814_s4 }
 0x22c   :  { %14632 = vrot.lane.b32.xlu0 %v26224_v24, %s25816_s15 }
 0x22e   :  { %9130 = vrot.lane.b32.xlu1 %v26171_v32, %s25814_s4 }
 0x230   :  { %14636 = vrot.lane.b32.xlu0 %v26231_v25, %s25816_s15 }
 0x232   :  { %9138 = vrot.lane.b32.xlu1 %v26384_v53, %s25814_s4 }
 0x234   :  { %15139 = vrot.lane.b32.xlu0 %v26235_v33, %s25816_s15 }
 0x236   :  { %9632 = vrot.lane.b32.xlu1 %v26391_v54, %s25815_s17 }
 0x238   :  { %15143 = vrot.lane.b32.xlu0 %v26239_v34, %s25816_s15 }
 0x23a   :  { %9636 = vrot.lane.b32.xlu1 %v26424_v3, %s25815_s17 }
 0x23c   :  { %14644 = vrot.lane.b32.xlu0 %v26246_v35, %s25816_s15 }
 0x23e   :  { %10139 = vrot.lane.b32.xlu1 %v26393_v55, %s25815_s17 }
 0x240   :  { %16162 = vrot.lane.b32.xlu0 %v26339_v28, %s25813_s27 }
 0x242   :  { %10143 = vrot.lane.b32.xlu1 %v26426_v4, %s25815_s17 }
 0x244   :  { %15694 = vrot.lane.b32.xlu0 %v26035_v26, %s25814_s4 }
 0x246   :  { %10149 = vrot.lane.b32.xlu1 %v26519_v11, %s25815_s17 }
 0x248   :  { %16168 = vrot.lane.b32.xlu0 %v26214_v21, %s25813_s27 }
 0x24a   :  { %10694 = vrot.lane.b32.xlu1 %v26037_v27, %s25813_s27 }
 0x24c   :  { %16633 = vrot.lane.b32.xlu0 %v26347_v29, %s25813_s27 }
 0x24e   :  { %12124 = vrot.lane.b32.xlu1 %v26391_v54, %s25813_s27 }
 0x250   :  { %16637 = vrot.lane.b32.xlu0 %v26351_v30, %s25813_s27 }
 0x252   :  { %12128 = vrot.lane.b32.xlu1 %v26424_v3, %s25813_s27 }
 0x254   :  { %17135 = vrot.lane.b32.xlu0 %v26224_v24, %s25814_s4 }
 0x256   :  { %12631 = vrot.lane.b32.xlu1 %v26393_v55, %s25813_s27 }
 0x258   :  { %17139 = vrot.lane.b32.xlu0 %v26231_v25, %s25814_s4 }
 0x25a   :  { %12635 = vrot.lane.b32.xlu1 %v26426_v4, %s25813_s27 }
 0x25c   :  { %17642 = vrot.lane.b32.xlu0 %v26235_v33, %s25814_s4 }
 0x25e   :  { %12641 = vrot.lane.b32.xlu1 %v26519_v11, %s25813_s27 }
 0x260   :  { %17646 = vrot.lane.b32.xlu0 %v26239_v34, %s25814_s4 }
 0x264   :  { %17147 = vrot.lane.b32.xlu0 %v26246_v35, %s25814_s4  ;;  %v26531_v35 = vpop.permute.xlu0 %6154 }
 0x265   :  { %29772 = vst [vmem:[#allocation30_spill] sm:$0xff] %v26531_v35 }
 0x268   :  { %18665 = vrot.lane.b32.xlu0 %v26339_v28, %s25814_s4  ;;  %v26545_v28 = vpop.permute.xlu0 %5686 }
 0x269   :  { %29775 = vst [vmem:[#allocation31_spill] sm:$0xff] %v26545_v28 }
 0x26c   :  { %18197 = vrot.lane.b32.xlu0 %v26035_v26, %s25799_s19  ;;  %v26557_v26 = vpop.permute.xlu0 %6160 }
 0x26d   :  { %29776 = vst [vmem:[#allocation32_spill] sm:$0xff] %v26557_v26 }
 0x270   :  { %18671 = vrot.lane.b32.xlu0 %v26214_v21, %s25814_s4  ;;  %v26563_v21 = vpop.permute.xlu0 %6625 }
 0x271   :  { %29777 = vst [vmem:[#allocation33_spill] sm:$0xff] %v26563_v21 }
 0x274   :  { %19136 = vrot.lane.b32.xlu0 %v26347_v29, %s25814_s4  ;;  %v26573_v29 = vpop.permute.xlu0 %6629 }
 0x275   :  { %29778 = vst [vmem:[#allocation34_spill] sm:$0xff] %v26573_v29 }
 0x278   :  { %19140 = vrot.lane.b32.xlu0 %v26351_v30, %s25814_s4  ;;  %v26579_v30 = vpop.permute.xlu0 %7127 }
 0x279   :  { %29779 = vst [vmem:[#allocation35_spill] sm:$0xff] %v26579_v30 }
 0x27c   :  { %19638 = vrot.lane.b32.xlu0 %v26224_v24, %s25799_s19  ;;  %v26591_v24 = vpop.permute.xlu0 %7131 }
 0x27d   :  { %29780 = vst [vmem:[#allocation36_spill] sm:$0xff] %v26591_v24 }
 0x280   :  { %19642 = vrot.lane.b32.xlu0 %v26231_v25, %s25799_s19  ;;  %v26597_v25 = vpop.permute.xlu0 %7634 }
 0x281   :  { %29781 = vst [vmem:[#allocation37_spill] sm:$0xff] %v26597_v25 }
 0x284   :  { %20145 = vrot.lane.b32.xlu0 %v26235_v33, %s25799_s19  ;;  %v26601_v33 = vpop.permute.xlu0 %7638 }
 0x285   :  { %29782 = vst [vmem:[#allocation38_spill] sm:$0xff] %v26601_v33 }
 0x288   :  { %20149 = vrot.lane.b32.xlu0 %v26239_v34, %s25799_s19  ;;  %v26607_v48 = vpop.permute.xlu0 %7139  ;;  %v25508_v34 = vpop.eup %25507 }
 0x289   :  { %29783 = vst [vmem:[#allocation39_spill] sm:$0xff] %v26607_v48  ;;  %v664_v44 = vmul.f32 %v25508_v34, %v26052_v46 }
 0x28b   :  { %v666_v19 = vsel %vm665_vm4, %v26052_v46, %v664_v44 }
 0x28c   :  { %v26612_v23 = vpop.permute.xlu0 %8657  ;;  %v669_v36 = vsel %vm667_vm5, %v668_v43, %v666_v19 }
 0x28d   :  { %29784 = vst [vmem:[#allocation40_spill] sm:$0xff] %v26612_v23  ;;  %v670_v10 = vadd.f32 1e-06, %v669_v36  ;;  %v26642_v36 = vpop.permute.xlu1 %3168 }
 0x28f   :  { %25509 = vlog2.f32 %v670_v10 }
 0x290   :  { %v26618_v32 = vpop.permute.xlu0 %8189 }
 0x291   :  { %29785 = vst [vmem:[#allocation41_spill] sm:$0xff] %v26618_v32 }
 0x294   :  { %v26627_v49 = vpop.permute.xlu0 %8663 }
 0x295   :  { %29786 = vst [vmem:[#allocation42_spill] sm:$0xff] %v26627_v49  ;;  %v29791_v49 = vmov 0.0|0.0  }
 0x298   :  { %v26633_v40 = vpop.permute.xlu0 %9128 }
 0x299   :  { %29787 = vst [vmem:[#allocation43_spill] sm:$0xff] %v26633_v40  ;;  %v25510_v12 = vpop.eup %25509  ;;  %v29793_v40 = vmov 0.0  }
 0x29a   :  { %v672_v44 = vmul.f32 0.6931472, %v25510_v12 }
 0x29c   :  { %v26637_v58 = vpop.permute.xlu0 %9132  ;;  %v674_v10 = vsel %vm673_vm6, %v672_v44, 0.0 }
 0x29d   :  { %29788 = vst [vmem:[#allocation44_spill] sm:$0xff] %v26637_v58 }
 0x2a7   :  { %675 = vadd.xlane.f32.xlu0 %v674_v10 }
 0x2c7   :  { %v2107_v34 = vpop.f32.mrb[4].mxu1 }
 0x2c8   :  { %v25116_v46 = vadd.f32 %v26384_v53, %v2107_v34  ;;  %v21852_v43 = vpop.f32.mrb[5].mxu1  ;;  %v26650_v53 = vld [vmem:[#allocation11 + $0x18] sm:$0xff]  ;;  %v26652_v34 = vpop.permute.xlu0 %9630 }
 0x2c9   :  { %29789 = vst [vmem:[#allocation45_spill] sm:$0xff] %v26652_v34  ;;  %13656 = vrot.lane.b32.xlu1 %v26650_v53, %s25811_s12 }
 0x2ca   :  { %v2111_v19 = vmax.f32 %v25116_v46, 0.0  ;;  %v26659_v46 = vpop.permute.xlu1 %3170 }
 0x2cc   :  { %v2124_v57 = vsel %vm1622_vm3, %v2111_v19, 0  ;;  %v26662_v19 = vpop.permute.xlu0 %9634 }
 0x2cd   :  { %v26648_v22 = vand.u32 4294901760, %v2124_v57  ;;  %29790 = vst [vmem:[#allocation46_spill] sm:$0xff] %v26662_v19  ;;  %13186 = vrot.lane.b32.xlu1 %v26037_v27, %s25816_s15  ;;  %v29850_v30 = vand.u32 4294901760, %v26662_v19 }
 0x2ce   :  { %v26666_v20 = vpop.permute.xlu1 %4112 }
 0x2cf   :  { %v2196_v43 = vsub.f32 %v2124_v57, %v26648_v22  ;;  %v26670_v57 = vld [vmem:[#allocation14 + $0x8] sm:$0xff] }
 0x2d0   :  { %v26674_v58 = vpop.permute.xlu0 %10137 }
 0x2d1   :  { %v26657_v12 = vand.u32 4294901760, %v2196_v43  ;;  %29792 = vst [vmem:[#allocation47_spill] sm:$0xff] %v26674_v58  ;;  %14128 = vrot.lane.b32.xlu1 %v26670_v57, %s25811_s12 }
 0x2d3   :  { %v2198_v44 = vsub.f32 %v2196_v43, %v26657_v12 }
 0x2d4   :  { %v26690_v27 = vpop.permute.xlu0 %10141 }
 0x2d5   :  { %v2199_v10 = vand.u32 4294901760, %v2198_v44  ;;  %29794 = vst [vmem:[#allocation48_spill] sm:$0xff] %v26690_v27 }
 0x2d7   :  { %21862 = vmatmul.mubr.f32.vlgmr.msra.gmra.mrb[4].mxu0 %v2199_v10  ;;  %21928 = vmatmul.mubr.f32.vlgmr.msra.gmra.mrb[6].mxu1 %v2199_v10 }
 0x2d8   :  { %24039 = vmatpush3.bf16.msra.mxu0 %v26487_v60  ;;  %24075 = vmatpush3.bf16.msra.mxu1 %v26491_v5  ;;  %v26686_v5 = vpop.permute.xlu1 %4116  ;;  %v29795_v60 = vpack.c.bf16 %v26411_v63, %v26408_v62  ;;  %v29798_v63 = vpack.c.bf16 %v26448_v16, %v26445_v15  ;;  %v26725_v15 = vld [vmem:[%s29530_s9 + $0x1] ss:$0 sm:$0xff] }
 0x2d9   :  { %24040 = vmatprep.subr.bf16.mxu0 %v29791_v49  ;;  %24076 = vmatprep.subr.bf16.mxu1 %v29791_v49 }
 0x2da   :  { %21938 = vmatprep.mubr.msk.f32.mxu1 %vm25810_vm2, %v29793_v40  ;;  %21872 = vmatprep.mubr.msk.f32.mxu0 %vm25810_vm2, %v29793_v40 }
 0x2dc   :  { %24042 = vmatpush3.bf16.msra.mxu0 %v26493_v18  ;;  %24078 = vmatpush3.bf16.msra.mxu1 %v26502_v52  ;;  %v29796_v18 = vpack.c.bf16 %v26419_v2, %v26416_v1  ;;  %v26698_v52 = vld [vmem:[#allocation14 + $0x28] sm:$0xff]  ;;  %v26708_v62 = vpop.permute.xlu1 %4124  ;;  %v29799_v1 = vpack.c.bf16 %v26470_v42, %v26453_v7  ;;  %v26718_v2 = vpop.permute.xlu0 %9642  ;;  %v29546_v7 = vand.u32 4294901760, %v26642_v36  ;;  %v29545_v42 = vand.u32 4294901760, %v26659_v46 }
 0x2dd   :  { %24043 = vmatprep.subr.bf16.mxu0 %v29791_v49  ;;  %24079 = vmatprep.subr.bf16.mxu1 %v29791_v49  ;;  %29797 = vst [vmem:[#allocation49_spill] sm:$0xff] %v26708_v62  ;;  %29800 = vst [vmem:[#allocation50_spill] sm:$0xff] %v26718_v2 }
 0x2de   :  { %14132 = vrot.lane.b32.xlu1 %v26698_v52, %s25811_s12 }
 0x2df   :  { %21939 = vmatmul.mubr.f32.vlgmr.msra.gmra.mrb[8].mxu1 %v26648_v22  ;;  %21873 = vmatmul.mubr.f32.vlgmr.msra.gmra.mrb[4].mxu0 %v26648_v22 }
 0x2e0   :  { %24045 = vmatpush3.bf16.msra.mxu0 %v29795_v60  ;;  %24081 = vmatpush3.bf16.msra.mxu1 %v29796_v18  ;;  %v26729_v16 = vpop.permute.xlu1 %4622 }
 0x2e1   :  { %24046 = vmatprep.subr.bf16.mxu0 %v29791_v49  ;;  %24082 = vmatprep.subr.bf16.mxu1 %v29791_v49 }
 0x2e2   :  { %21949 = vmatprep.mubr.msk.f32.mxu1 %vm25810_vm2, %v29793_v40  ;;  %21883 = vmatprep.mubr.msk.f32.mxu0 %vm25810_vm2, %v29793_v40 }
 0x2e3   :  { %14140 = vrot.lane.b32.xlu1 %v26725_v15, %s25811_s12 }
 0x2e4   :  { %24048 = vmatpush3.bf16.msra.mxu0 %v29798_v63  ;;  %24084 = vmatpush3.bf16.msra.mxu1 %v29799_v1  ;;  %v26753_v44 = vpop.permute.xlu1 %4626  ;;  %v25585_v63 = vld [vmem:[#allocation10 + $0x8] sm:$0xff]  ;;  %v29548_v1 = vand.u32 4294901760, %v26357_v31 }
 0x2e5   :  { %24049 = vmatprep.subr.bf16.mxu0 %v29791_v49  ;;  %24091 = vmatprep.subr.bf16.mxu1 %v29791_v49  ;;  %29802 = vst [vmem:[#allocation52_spill] sm:$0xff] %v26753_v44 }
 0x2e7   :  { %21950 = vmatmul.mubr.f32.vlgmr.msra.gmra.mrb[10].mxu1 %v2196_v43  ;;  %21884 = vmatmul.mubr.f32.vlgmr.msra.gmra.mrb[4].mxu0 %v2196_v43  ;;  %v26749_v43 = vpack.c.bf16 %v29545_v42, %v29546_v7  ;;  %v29547_v42 = vand.u32 4294901760, %v26361_v37 }
 0x2e8   :  { %24051 = vmatpush3.bf16.msra.mxu0 %v26405_v61  ;;  %24093 = vmatpush3.bf16.msra.mxu1 %v26525_v8  ;;  %v26739_v8 = vpop.permute.xlu0 %10692 }
 0x2e9   :  { %24052 = vmatprep.subr.bf16.mxu0 %v29791_v49  ;;  %24094 = vmatprep.subr.bf16.mxu1 %v29791_v49  ;;  %29801 = vst [vmem:[#allocation51_spill] sm:$0xff] %v26739_v8 }
 0x2ea   :  { %21971 = vmatprep.mubr.msk.f32.mxu1 %vm25810_vm2, %v29793_v40  ;;  %21894 = vmatprep.mubr.msk.f32.mxu0 %vm25810_vm2, %v29793_v40 }
 0x2eb   :  { %14634 = vrot.lane.b32.xlu1 %v26391_v54, %s25816_s15 }
 0x2ec   :  { %24054 = vmatpush3.bf16.msra.mxu0 %v26442_v14  ;;  %24096 = vmatpush3.bf16.msra.mxu1 %v26533_v9  ;;  %v26761_v9 = vpop.permute.xlu0 %12122 }
 0x2ed   :  { %24055 = vmatprep.subr.bf16.mxu0 %v29791_v49  ;;  %24103 = vmatprep.subr.bf16.mxu1 %v29791_v49  ;;  %29803 = vst [vmem:[#allocation53_spill] sm:$0xff] %v26761_v9 }
 0x2ef   :  { %21972 = vmatmul.mubr.f32.vlgmr.msra.gmra.mrb[12].mxu1 %v26648_v22  ;;  %21895 = vmatmul.mubr.f32.vlgmr.msra.gmra.mrb[4].mxu0 %v26657_v12 }
 0x2f0   :  { %24057 = vmatpush3.bf16.msra.mxu0 %v26543_v41  ;;  %21905 = vmatprep.mubr.msk.f32.mxu0 %vm25810_vm2, %v29793_v40  ;;  %v26771_v41 = vpop.permute.xlu1 %5133  ;;  %v26774_v10 = vpop.permute.xlu0 %12126 }
 0x2f1   :  { %24058 = vmatprep.subr.bf16.mxu0 %v29791_v49  ;;  %24105 = vmatpush3.bf16.msra.mxu1 %v26749_v43  ;;  %29804 = vst [vmem:[#allocation54_spill] sm:$0xff] %v26771_v41  ;;  %29805 = vst [vmem:[#allocation55_spill] sm:$0xff] %v26774_v10  ;;  %v29875_v38 = vand.u32 4294901760, %v26774_v10 }
 0x2f2   :  { %21989 = vmatprep.mubr.msk.f32.mxu1 %vm25810_vm2, %v29793_v40  ;;  %24106 = vmatprep.subr.bf16.mxu1 %v29791_v49 }
 0x2f3   :  { %14638 = vrot.lane.b32.xlu1 %v26424_v3, %s25816_s15 }
 0x2f4   :  { %24060 = vmatpush3.bf16.msra.mxu0 %v26551_v45  ;;  %v26782_v45 = vpop.permute.xlu1 %5137  ;;  %v26788_v60 = vpop.permute.xlu0 %12629 }
 0x2f5   :  { %24061 = vmatprep.subr.bf16.mxu0 %v29791_v49  ;;  %29806 = vst [vmem:[#allocation56_spill] sm:$0xff] %v26782_v45  ;;  %29807 = vst [vmem:[#allocation57_spill] sm:$0xff] %v26788_v60 }
 0x2f7   :  { %21906 = vmatmul.mubr.f32.vlgmr.msra.gmra.mrb[4].mxu0 %v26648_v22  ;;  %15141 = vrot.lane.b32.xlu1 %v26393_v55, %s25816_s15 }
 0x2f8   :  { %24063 = vmatpush3.bf16.msra.mxu0 %v26405_v61  ;;  %21916 = vmatprep.mubr.msk.f32.mxu0 %vm25810_vm2, %v29793_v40  ;;  %v26797_v61 = vpop.permute.xlu1 %5143 }
 0x2f9   :  { %24064 = vmatprep.subr.bf16.mxu0 %v29791_v49  ;;  %29808 = vst [vmem:[#allocation58_spill] sm:$0xff] %v26797_v61 }
 0x2fb   :  { %15145 = vrot.lane.b32.xlu1 %v26426_v4, %s25816_s15 }
 0x2fc   :  { %24066 = vmatpush3.bf16.msra.mxu0 %v26442_v14  ;;  %v26799_v14 = vpop.permute.xlu0 %12633  ;;  %v26806_v18 = vpop.permute.xlu1 %6156 }
 0x2fd   :  { %24085 = vmatprep.subr.bf16.mxu0 %v29791_v49  ;;  %29809 = vst [vmem:[#allocation59_spill] sm:$0xff] %v26799_v14  ;;  %29810 = vst [vmem:[#allocation60_spill] sm:$0xff] %v26806_v18 }
 0x2ff   :  { %21917 = vmatmul.mubr.f32.vlgmr.msra.gmra.mrb[4].mxu0 %v26648_v22  ;;  %15151 = vrot.lane.b32.xlu1 %v26519_v11, %s25816_s15 }
 0x300   :  { %24087 = vmatpush3.bf16.msra.mxu0 %v26413_v0  ;;  %21960 = vmatprep.mubr.msk.f32.mxu0 %vm25810_vm2, %v29793_v40  ;;  %v26815_v7 = vpop.permute.xlu0 %12134 }
 0x301   :  { %24088 = vmatprep.subr.bf16.mxu0 %v29791_v49  ;;  %29811 = vst [vmem:[#allocation61_spill] sm:$0xff] %v26815_v7 }
 0x303   :  { %16164 = vrot.lane.b32.xlu1 %v26650_v53, %s25813_s27 }
 0x304   :  { %24090 = vmatpush3.bf16.msra.mxu0 %v26450_v17  ;;  %v26830_v2 = vpop.permute.xlu0 %13654 }
 0x305   :  { %24097 = vmatprep.subr.bf16.mxu0 %v29791_v49  ;;  %29813 = vst [vmem:[#allocation63_spill] sm:$0xff] %v26830_v2 }
 0x307   :  { %21961 = vmatmul.mubr.f32.vlgmr.msra.gmra.mrb[6].mxu0 %v26657_v12  ;;  %15696 = vrot.lane.b32.xlu1 %v25585_v63, %s25814_s4  ;;  %v26821_v12 = vpack.c.bf16 %v29547_v42, %v29548_v1 }
 0x308   :  { %24099 = vmatpush3.bf16.msra.mxu0 %v26413_v0  ;;  %21982 = vmatprep.mubr.msk.f32.mxu0 %vm25810_vm2, %v29793_v40  ;;  %v26826_v0 = vpop.permute.xlu1 %5688  ;;  %v26842_v42 = vpop.permute.xlu0 %13184 }
 0x309   :  { %24100 = vmatprep.subr.bf16.mxu0 %v29791_v49  ;;  %29812 = vst [vmem:[#allocation62_spill] sm:$0xff] %v26826_v0  ;;  %29815 = vst [vmem:[#allocation65_spill] sm:$0xff] %v26842_v42  ;;  %v29608_v0 = vand.u32 4294901760, %v26761_v9 }
 0x30b   :  { %16631 = vrot.lane.b32.xlu1 %v26670_v57, %s25813_s27  ;;  %v27048_v59 = vsub.f32 %v26761_v9, %v29608_v0 }
 0x30c   :  { %24102 = vmatpush3.bf16.msra.mxu0 %v26450_v17  ;;  %v26838_v17 = vpop.permute.xlu1 %6623  ;;  %v26848_v1 = vpop.permute.xlu0 %13661 }
 0x30d   :  { %24121 = vmatprep.subr.bf16.mxu0 %v29791_v49  ;;  %29814 = vst [vmem:[#allocation64_spill] sm:$0xff] %v26838_v17  ;;  %29817 = vst [vmem:[#allocation67_spill] sm:$0xff] %v26848_v1 }
 0x30f   :  { %21983 = vmatmul.mubr.f32.vlgmr.msra.gmra.mrb[8].mxu0 %v26648_v22  ;;  %16635 = vrot.lane.b32.xlu1 %v26698_v52, %s25813_s27 }
 0x310   :  { %24123 = vmatpush3.bf16.msra.mxu0 %v26821_v12  ;;  %22031 = vmatprep.mubr.msk.f32.mxu0 %vm25810_vm2, %v29793_v40  ;;  %v26846_v22 = vpop.permute.xlu1 %6627  ;;  %v26856_v48 = vpop.permute.xlu0 %14130 }
 0x311   :  { %24124 = vmatprep.subr.bf16.mxu0 %v29791_v49  ;;  %29816 = vst [vmem:[#allocation66_spill] sm:$0xff] %v26846_v22  ;;  %29819 = vst [vmem:[#allocation69_spill] sm:$0xff] %v26856_v48 }
 0x313   :  { %16643 = vrot.lane.b32.xlu1 %v26725_v15, %s25813_s27 }
 0x314   :  { %v26852_v7 = vpop.permute.xlu1 %6635  ;;  %v26862_v32 = vpop.permute.xlu0 %14134 }
 0x315   :  { %29818 = vst [vmem:[#allocation68_spill] sm:$0xff] %v26852_v7  ;;  %29821 = vst [vmem:[#allocation71_spill] sm:$0xff] %v26862_v32 }
 0x317   :  { %17137 = vrot.lane.b32.xlu1 %v26391_v54, %s25814_s4 }
 0x318   :  { %v26860_v23 = vpop.permute.xlu1 %7129  ;;  %v26870_v7 = vpop.permute.xlu0 %14632 }
 0x319   :  { %29820 = vst [vmem:[#allocation70_spill] sm:$0xff] %v26860_v23  ;;  %29823 = vst [vmem:[#allocation73_spill] sm:$0xff] %v26870_v7 }
 0x31b   :  { %17141 = vrot.lane.b32.xlu1 %v26424_v3, %s25814_s4 }
 0x31c   :  { %v26866_v1 = vpop.permute.xlu1 %7133  ;;  %v26877_v26 = vpop.permute.xlu0 %14636 }
 0x31d   :  { %29822 = vst [vmem:[#allocation72_spill] sm:$0xff] %v26866_v1  ;;  %29826 = vst [vmem:[#allocation76_spill] sm:$0xff] %v26877_v26 }
 0x31f   :  { %17644 = vrot.lane.b32.xlu1 %v26393_v55, %s25814_s4 }
 0x320   :  { %v26872_v33 = vpop.permute.xlu1 %7636  ;;  %v26885_v1 = vpop.permute.xlu0 %15139 }
 0x321   :  { %29824 = vst [vmem:[#allocation74_spill] sm:$0xff] %v26872_v33  ;;  %29828 = vst [vmem:[#allocation78_spill] sm:$0xff] %v26885_v1 }
 0x323   :  { %17648 = vrot.lane.b32.xlu1 %v26426_v4, %s25814_s4 }
 0x324   :  { %v26875_v25 = vpop.permute.xlu1 %7640 }
 0x325   :  { %29825 = vst [vmem:[#allocation75_spill] sm:$0xff] %v26875_v25  ;;  %v26893_v25 = vpop.permute.xlu0 %15143 }
 0x326   :  { %29831 = vst [vmem:[#allocation81_spill] sm:$0xff] %v26893_v25 }
 0x327   :  { %17654 = vrot.lane.b32.xlu1 %v26519_v11, %s25814_s4 }
 0x328   :  { %v26881_v24 = vpop.permute.xlu1 %7646 }
 0x329   :  { %29827 = vst [vmem:[#allocation77_spill] sm:$0xff] %v26881_v24 }
 0x32b   :  { %18667 = vrot.lane.b32.xlu1 %v26650_v53, %s25814_s4 }
 0x32c   :  { %v26887_v53 = vpop.permute.xlu1 %8659 }
 0x32d   :  { %29829 = vst [vmem:[#allocation79_spill] sm:$0xff] %v26887_v53 }
 0x32f   :  { %18199 = vrot.lane.b32.xlu1 %v25585_v63, %s25799_s19 }
 0x330   :  { %v26891_v63 = vpop.permute.xlu1 %8191 }
 0x331   :  { %29830 = vst [vmem:[#allocation80_spill] sm:$0xff] %v26891_v63 }
 0x333   :  { %19134 = vrot.lane.b32.xlu1 %v26670_v57, %s25814_s4 }
 0x334   :  { %v26897_v57 = vpop.permute.xlu1 %9126 }
 0x335   :  { %29832 = vst [vmem:[#allocation82_spill] sm:$0xff] %v26897_v57 }
 0x337   :  { %19138 = vrot.lane.b32.xlu1 %v26698_v52, %s25814_s4  ;;  %v26901_v52 = vpop.permute.xlu0 %14644 }
 0x338   :  { %29833 = vst [vmem:[#allocation83_spill] sm:$0xff] %v26901_v52  ;;  %v26903_v24 = vpop.permute.xlu1 %9130 }
 0x339   :  { %29834 = vst [vmem:[#allocation84_spill] sm:$0xff] %v26903_v24 }
 0x33b   :  { %19146 = vrot.lane.b32.xlu1 %v26725_v15, %s25814_s4  ;;  %v26909_v53 = vpop.permute.xlu0 %16162 }
 0x33c   :  { %v26907_v15 = vpop.permute.xlu1 %9138  ;;  %29836 = vst [vmem:[#allocation86_spill] sm:$0xff] %v26909_v53 }
 0x33d   :  { %29835 = vst [vmem:[#allocation85_spill] sm:$0xff] %v26907_v15 }
 0x33f   :  { %19640 = vrot.lane.b32.xlu1 %v26391_v54, %s25799_s19  ;;  %v29562_v54 = vand.u32 4294901760, %v26652_v34  ;;  %v26922_v24 = vpop.permute.xlu0 %15694 }
 0x340   :  { %v26914_v57 = vpop.permute.xlu1 %9632 }
 0x341   :  { %29837 = vst [vmem:[#allocation87_spill] sm:$0xff] %v26914_v57  ;;  %v26920_v52 = vsub.f32 %v26652_v34, %v29562_v54 }
 0x343   :  { %19644 = vrot.lane.b32.xlu1 %v26424_v3, %s25799_s19  ;;  %v29565_v3 = vand.u32 4294901760, %v26914_v57  ;;  %29838 = vst [vmem:[#allocation88_spill] sm:$0xff] %v26920_v52  ;;  %v26933_v63 = vpop.permute.xlu0 %16168 }
 0x344   :  { %v26931_v15 = vpop.permute.xlu1 %9636  ;;  %29841 = vst [vmem:[#allocation91_spill] sm:$0xff] %v26933_v63 }
 0x345   :  { %29840 = vst [vmem:[#allocation90_spill] sm:$0xff] %v26931_v15 }
 0x347   :  { %20147 = vrot.lane.b32.xlu1 %v26393_v55, %s25799_s19  ;;  %v26927_v55 = vsub.f32 %v26914_v57, %v29565_v3  ;;  %v26939_v54 = vpop.permute.xlu0 %16633  ;;  %v29573_v3 = vand.u32 4294901760, %v26674_v58  ;;  %v29576_v57 = vand.u32 4294901760, %v26690_v27 }
 0x348   :  { %v26935_v33 = vpop.permute.xlu1 %10139  ;;  %29844 = vst [vmem:[#allocation94_spill] sm:$0xff] %v26939_v54 }
 0x349   :  { %29839 = vst [vmem:[#allocation89_spill] sm:$0xff] %v26927_v55  ;;  %29842 = vst [vmem:[#allocation92_spill] sm:$0xff] %v26935_v33  ;;  %v29578_v55 = vand.u32 4294901760, %v26931_v15  ;;  %v29581_v52 = vand.u32 4294901760, %v26935_v33 }
 0x34b   :  { %20151 = vrot.lane.b32.xlu1 %v26426_v4, %s25799_s19  ;;  %v26949_v4 = vsub.f32 %v26674_v58, %v29573_v3  ;;  %v26951_v63 = vpop.permute.xlu0 %16637  ;;  %v26966_v3 = vsub.f32 %v26662_v19, %v29850_v30  ;;  %v26971_v58 = vsub.f32 %v26931_v15, %v29578_v55  ;;  %v26976_v17 = vsub.f32 %v26935_v33, %v29581_v52 }
 0x34c   :  { %v26937_v22 = vpop.permute.xlu1 %10143  ;;  %29847 = vst [vmem:[#allocation97_spill] sm:$0xff] %v26951_v63 }
 0x34d   :  { %29843 = vst [vmem:[#allocation93_spill] sm:$0xff] %v26937_v22  ;;  %29846 = vst [vmem:[#allocation96_spill] sm:$0xff] %v26949_v4  ;;  %v29584_v29 = vand.u32 4294901760, %v26937_v22 }
 0x34e   :  { %29851 = vst [vmem:[#allocation100_spill] sm:$0xff] %v26966_v3  ;;  %29852 = vst [vmem:[#allocation101_spill] sm:$0xff] %v26971_v58 }
 0x34f   :  { %29853 = vst [vmem:[#allocation102_spill] sm:$0xff] %v26976_v17  ;;  %v26991_v19 = vpop.permute.xlu0 %17135 }
 0x350   :  { %v26941_v34 = vpop.permute.xlu1 %10149  ;;  %29855 = vst [vmem:[#allocation104_spill] sm:$0xff] %v26991_v19 }
 0x351   :  { %29845 = vst [vmem:[#allocation95_spill] sm:$0xff] %v26941_v34  ;;  %v26958_v34 = vsub.f32 %v26690_v27, %v29576_v57  ;;  %v26981_v57 = vsub.f32 %v26937_v22, %v29584_v29 }
 0x353   :  { %29848 = vst [vmem:[#allocation98_spill] sm:$0xff] %v26958_v34  ;;  %29854 = vst [vmem:[#allocation103_spill] sm:$0xff] %v26981_v57  ;;  %v26995_v33 = vpop.permute.xlu0 %17139 }
 0x354   :  { %v26961_v23 = vpop.permute.xlu1 %10694  ;;  %29857 = vst [vmem:[#allocation106_spill] sm:$0xff] %v26995_v33 }
 0x355   :  { %29849 = vst [vmem:[#allocation99_spill] sm:$0xff] %v26961_v23  ;;  %v29877_v0 = vand.u32 4294901760, %v26961_v23 }
 0x357   :  { %v27001_v22 = vpop.permute.xlu0 %17642  ;;  %v27069_v9 = vsub.f32 %v26961_v23, %v29877_v0 }
 0x358   :  { %v26989_v15 = vpop.permute.xlu1 %12124  ;;  %29859 = vst [vmem:[#allocation108_spill] sm:$0xff] %v27001_v22 }
 0x35b   :  { %v27005_v30 = vpop.permute.xlu0 %17646 }
 0x35c   :  { %v26993_v52 = vpop.permute.xlu1 %12128 }
 0x35d   :  { %29856 = vst [vmem:[#allocation105_spill] sm:$0xff] %v26993_v52  ;;  %v29879_v44 = vand.u32 4294901760, %v26993_v52 }
 0x35f   :  { %v27011_v57 = vpop.permute.xlu0 %17147  ;;  %v27080_v13 = vsub.f32 %v26993_v52, %v29879_v44  ;;  %v29885_v52 = vand.u32 4294901760, %v26357_v31 }
 0x360   :  { %v26997_v21 = vpop.permute.xlu1 %12631  ;;  %29863 = vst [vmem:[#allocation112_spill] sm:$0xff] %v27011_v57  ;;  %v29606_v57 = vand.u32 4294901760, %v26739_v8 }
 0x361   :  { %29858 = vst [vmem:[#allocation107_spill] sm:$0xff] %v26997_v21  ;;  %29880 = vst [vmem:[#allocation125_spill] sm:$0xff] %v27080_v13 }
 0x362   :  { %v27043_v41 = vsub.f32 %v26739_v8, %v29606_v57  ;;  %v27063_v57 = vsub.f32 %v26774_v10, %v29875_v38  ;;  %v29881_v38 = vand.u32 4294901760, %v26997_v21  ;;  %v29883_v10 = vand.u32 4294901760, %v26799_v14 }
 0x363   :  { %v27015_v4 = vpop.permute.xlu0 %18665 }
 0x364   :  { %v26999_v29 = vpop.permute.xlu1 %12635  ;;  %29865 = vst [vmem:[#allocation114_spill] sm:$0xff] %v27015_v4  ;;  %29876 = vst [vmem:[#allocation124_spill] sm:$0xff] %v27063_v57  ;;  %v27085_v8 = vsub.f32 %v26997_v21, %v29881_v38  ;;  %v27091_v23 = vsub.f32 %v26799_v14, %v29883_v10  ;;  %v27101_v38 = vsub.f32 %v26357_v31, %v29885_v52  ;;  %v29888_v52 = vand.u32 4294901760, %v26830_v2 }
 0x365   :  { %v29619_v44 = vand.u32 4294901760, %v26999_v29  ;;  %v29892_v31 = vand.u32 4294901760, %v26361_v37 }
 0x366   :  { %29882 = vst [vmem:[#allocation126_spill] sm:$0xff] %v27085_v8  ;;  %29884 = vst [vmem:[#allocation127_spill] sm:$0xff] %v27091_v23  ;;  %v27120_v0 = vsub.f32 %v26830_v2, %v29888_v52  ;;  %v29893_v52 = vand.u32 4294901760, %v26842_v42  ;;  %v29902_v8 = vand.u32 4294901760, %v26642_v36 }
 0x367   :  { %v27021_v61 = vpop.permute.xlu0 %18197 }
 0x368   :  { %v27003_v27 = vpop.permute.xlu1 %12641  ;;  %29868 = vst [vmem:[#allocation117_spill] sm:$0xff] %v27021_v61  ;;  %29889 = vst [vmem:[#allocation130_spill] sm:$0xff] %v27120_v0  ;;  %v27141_v2 = vsub.f32 %v26842_v42, %v29893_v52  ;;  %v29903_v52 = vand.u32 4294901760, %v27101_v38 }
 0x369   :  { %29860 = vst [vmem:[#allocation109_spill] sm:$0xff] %v27003_v27 }
 0x36a   :  { %29894 = vst [vmem:[#allocation132_spill] sm:$0xff] %v27141_v2 }
 0x36b   :  { %v27025_v27 = vpop.permute.xlu0 %18671 }
 0x36c   :  { %v27007_v17 = vpop.permute.xlu1 %13656  ;;  %29870 = vst [vmem:[#allocation119_spill] sm:$0xff] %v27025_v27 }
 0x36d   :  { %29861 = vst [vmem:[#allocation110_spill] sm:$0xff] %v27007_v17  ;;  %v29890_v21 = vand.u32 4294901760, %v27007_v17 }
 0x36f   :  { %v27029_v35 = vpop.permute.xlu0 %19136  ;;  %v27125_v10 = vsub.f32 %v27007_v17, %v29890_v21  ;;  %v29896_v17 = vand.u32 4294901760, %v26856_v48 }
 0x370   :  { %v27009_v55 = vpop.permute.xlu1 %13186 }
 0x371   :  { %29862 = vst [vmem:[#allocation111_spill] sm:$0xff] %v27009_v55  ;;  %29891 = vst [vmem:[#allocation131_spill] sm:$0xff] %v27125_v10 }
 0x373   :  { %v27056_v50 = vpop.permute.xlu0 %19140 }
 0x374   :  { %v27013_v34 = vpop.permute.xlu1 %14128 }
 0x375   :  { %29864 = vst [vmem:[#allocation113_spill] sm:$0xff] %v27013_v34  ;;  %v29900_v21 = vand.u32 4294901760, %v27013_v34 }
 0x377   :  { %v27163_v10 = vsub.f32 %v27013_v34, %v29900_v21  ;;  %v29904_v21 = vand.u32 4294901760, %v26659_v46 }
 0x378   :  { %v27017_v58 = vpop.permute.xlu1 %14132 }
 0x379   :  { %29866 = vst [vmem:[#allocation115_spill] sm:$0xff] %v27017_v58  ;;  %29901 = vst [vmem:[#allocation136_spill] sm:$0xff] %v27163_v10  ;;  %v27181_v0 = vsub.f32 %v26659_v46, %v29904_v21  ;;  %v29912_v10 = vand.u32 4294901760, %v26870_v7 }
 0x37c   :  { %v27019_v3 = vpop.permute.xlu1 %14140 }
 0x37d   :  { %29867 = vst [vmem:[#allocation116_spill] sm:$0xff] %v27019_v3  ;;  %v29610_v3 = vand.u32 4294901760, %v26788_v60 }
 0x37f   :  { %v27053_v62 = vsub.f32 %v26788_v60, %v29610_v3  ;;  %v29878_v3 = vand.u32 4294901760, %v26989_v15  ;;  %v27114_v60 = vsub.f32 %v26999_v29, %v29619_v44  ;;  %v27150_v44 = vsub.f32 %v26856_v48, %v29896_v17 }
 0x380   :  { %v27023_v6 = vpop.permute.xlu1 %14634 }
 0x381   :  { %29869 = vst [vmem:[#allocation118_spill] sm:$0xff] %v27023_v6  ;;  %29873 = vst [vmem:[#allocation122_spill] sm:$0xff] %v27053_v62  ;;  %v27074_v45 = vsub.f32 %v26989_v15, %v29878_v3  ;;  %v27128_v3 = vpop.permute.xlu0 %19638  ;;  %v27136_v62 = vsub.f32 %v26361_v37, %v29892_v31  ;;  %v29898_v31 = vand.u32 4294901760, %v27009_v55  ;;  %v27170_v37 = vsub.f32 %v26642_v36, %v29902_v8 }
 0x382   :  { %29887 = vst [vmem:[#allocation129_spill] sm:$0xff] %v27114_v60  ;;  %29897 = vst [vmem:[#allocation134_spill] sm:$0xff] %v27150_v44  ;;  %v29910_v21 = vand.u32 4294901760, %v27023_v6  ;;  %v27208_v8 = vsub.f32 %v26870_v7, %v29912_v10  ;;  %v29914_v44 = vand.u32 4294901760, %v26877_v26 }
 0x383   :  { %v27157_v60 = vsub.f32 %v27009_v55, %v29898_v31  ;;  %v3729_v55 = vsub.f32 %v27101_v38, %v29903_v52  ;;  %v29906_v31 = vand.u32 4294901760, %v26862_v32 }
 0x384   :  { %v27027_v18 = vpop.permute.xlu1 %14638  ;;  %v27203_v17 = vsub.f32 %v27023_v6, %v29910_v21  ;;  %29913 = vst [vmem:[#allocation141_spill] sm:$0xff] %v27208_v8  ;;  %v29653_v6 = vand.u32 4294901760, %v26885_v1  ;;  %v29920_v21 = vand.u32 4294901760, %v27170_v37 }
 0x385   :  { %29871 = vst [vmem:[#allocation120_spill] sm:$0xff] %v27027_v18  ;;  %29899 = vst [vmem:[#allocation135_spill] sm:$0xff] %v27157_v60  ;;  %v27185_v34 = vpop.permute.xlu0 %19642  ;;  %v27193_v48 = vsub.f32 %v26862_v32, %v29906_v31  ;;  %v29908_v60 = vand.u32 4294901760, %v27017_v58  ;;  %v27213_v31 = vsub.f32 %v26877_v26, %v29914_v44  ;;  %v29916_v2 = vand.u32 4294901760, %v27027_v18 }
 0x386   :  { %29911 = vst [vmem:[#allocation140_spill] sm:$0xff] %v27203_v17  ;;  %v3730_v26 = vand.u32 4294901760, %v3729_v55  ;;  %v27239_v10 = vsub.f32 %v26885_v1, %v29653_v6  ;;  %v29921_v6 = vand.u32 4294901760, %v27029_v35 }
 0x387   :  { %29907 = vst [vmem:[#allocation138_spill] sm:$0xff] %v27193_v48  ;;  %v27198_v46 = vsub.f32 %v27017_v58, %v29908_v60  ;;  %29915 = vst [vmem:[#allocation142_spill] sm:$0xff] %v27213_v31  ;;  %v27218_v60 = vsub.f32 %v27027_v18, %v29916_v2  ;;  %v29919_v2 = vand.u32 4294901760, %v27136_v62  ;;  %v29658_v18 = vand.u32 4294901760, %v26893_v25 }
 0x388   :  { %v27033_v28 = vpop.permute.xlu1 %15141  ;;  %v3258_v31 = vsub.f32 %v27170_v37, %v29920_v21  ;;  %v27257_v17 = vsub.f32 %v27029_v35, %v29921_v6  ;;  %v29925_v21 = vand.u32 4294901760, %v27056_v50 }
 0x389   :  { %29872 = vst [vmem:[#allocation121_spill] sm:$0xff] %v27033_v28  ;;  %29909 = vst [vmem:[#allocation139_spill] sm:$0xff] %v27198_v46  ;;  %v3736_v58 = vsub.f32 %v27136_v62, %v29919_v2  ;;  %v27244_v55 = vpop.permute.xlu0 %20145  ;;  %v27249_v2 = vsub.f32 %v26893_v25, %v29658_v18  ;;  %v29924_v18 = vand.u32 4294901760, %v27033_v28 }
 0x38a   :  { %29917 = vst [vmem:[#allocation143_spill] sm:$0xff] %v27218_v60  ;;  %29922 = vst [vmem:[#allocation145_spill] sm:$0xff] %v27257_v17  ;;  %v29923_v60 = vand.u32 4294901760, %v27181_v0  ;;  %v27272_v1 = vsub.f32 %v27056_v50, %v29925_v21  ;;  %v3259_v13 = vand.u32 4294901760, %v3258_v31  ;;  %v29681_v21 = vand.u32 4294901760, %v27244_v55 }
 0x38b   :  { %v27267_v25 = vsub.f32 %v27033_v28, %v29924_v18  ;;  %v3737_v46 = vand.u32 4294901760, %v3736_v58  ;;  %v29674_v18 = vand.u32 4294901760, %v27185_v34  ;;  %v29675_v58 = vand.u32 4294901760, %v26909_v53 }
 0x38c   :  { %v27058_v27 = vpop.permute.xlu1 %15145  ;;  %v3265_v7 = vsub.f32 %v27181_v0, %v29923_v60 }
 0x38d   :  { %29874 = vst [vmem:[#allocation123_spill] sm:$0xff] %v27058_v27  ;;  %v29927_v48 = vand.u32 4294901760, %v27058_v27  ;;  %v27298_v57 = vpop.permute.xlu0 %20149  ;;  %v27308_v31 = vsub.f32 %v26909_v53, %v29675_v58 }
 0x38e   :  { %29931 = vst [vmem:[#allocation149_spill] sm:$0xff] %v27298_v57 }
 0x38f   :  { %v27279_v60 = vsub.f32 %v27058_v27, %v29927_v48  ;;  %v3266_v48 = vand.u32 4294901760, %v3265_v7  ;;  %v27295_v27 = vsub.f32 %v27185_v34, %v29674_v18  ;;  %29933 = vst [vmem:[#allocation151_spill] sm:$0xff] %v27308_v31  ;;  %v27327_v7 = vsub.f32 %v27244_v55, %v29681_v21 }
 0x390   :  { %v27108_v14 = vpop.permute.xlu1 %15151  ;;  %v29941_v21 = vand.u32 4294901760, %v26939_v54 }
 0x391   :  { %29886 = vst [vmem:[#allocation128_spill] sm:$0xff] %v27108_v14  ;;  %29930 = vst [vmem:[#allocation148_spill] sm:$0xff] %v27295_v27 }
 0x392   :  { %29936 = vst [vmem:[#allocation154_spill] sm:$0xff] %v27327_v7 }
 0x394   :  { %v27145_v14 = vpop.permute.xlu1 %16164 }
 0x395   :  { %29895 = vst [vmem:[#allocation133_spill] sm:$0xff] %v27145_v14 }
 0x398   :  { %v27187_v36 = vpop.permute.xlu1 %15696 }
 0x399   :  { %29905 = vst [vmem:[#allocation137_spill] sm:$0xff] %v27187_v36  ;;  %v29939_v53 = vand.u32 4294901760, %v27187_v36 }
 0x39b   :  { %v27341_v58 = vsub.f32 %v27187_v36, %v29939_v53 }
 0x39c   :  { %v27229_v44 = vpop.permute.xlu1 %16631 }
 0x39d   :  { %29918 = vst [vmem:[#allocation144_spill] sm:$0xff] %v27229_v44  ;;  %29940 = vst [vmem:[#allocation156_spill] sm:$0xff] %v27341_v58 }
 0x3a0   :  { %v27274_v6 = vpop.permute.xlu1 %16635 }
 0x3a1   :  { %29926 = vst [vmem:[#allocation146_spill] sm:$0xff] %v27274_v6 }
 0x3aa   :  { %v2701_v52 = vpop.f32.mrb[6].mxu1 }
 0x3ab   :  { %v21929_v32 = vpop.f32.mrb[7].mxu1  ;;  %v2702_v8 = vadd.f32 %v26519_v11, %v2701_v52  ;;  %v29928_v11 = vand.u32 4294901760, %v27128_v3 }
 0x3ad   :  { %v27284_v52 = vsub.f32 %v27128_v3, %v29928_v11  ;;  %v29676_v11 = vand.u32 4294901760, %v27145_v14 }
 0x3af   :  { %29929 = vst [vmem:[#allocation147_spill] sm:$0xff] %v27284_v52  ;;  %v27314_v23 = vsub.f32 %v27145_v14, %v29676_v11  ;;  %v29937_v14 = vand.u32 4294901760, %v26922_v24  ;;  %v27346_v11 = vsub.f32 %v26939_v54, %v29941_v21 }
 0x3b1   :  { %29934 = vst [vmem:[#allocation152_spill] sm:$0xff] %v27314_v23  ;;  %v676_v23 = vpop.xlane.xlu0 %675  ;;  %29942 = vst [vmem:[#allocation157_spill] sm:$0xff] %v27346_v11  ;;  %v29950_v11 = vand.u32 4294901760, %v27101_v38 }
 0x3b2   :  { %v2792_v32 = vpop.f32.mrb[8].mxu1  ;;  %v677_v54 = vrot.slane %v676_v23, 4 }
 0x3b3   :  { %v2793_v28 = vadd.f32 %v2792_v32, %v2702_v8  ;;  %v21940_v42 = vpop.f32.mrb[9].mxu1  ;;  %v27302_v8 = vpack.c.bf16 %v3737_v46, %v3730_v26  ;;  %v27318_v26 = vpack.c.bf16 %v3266_v48, %v3259_v13  ;;  %v27334_v13 = vsub.f32 %v26922_v24, %v29937_v14 }
 0x3b4   :  { %v27300_v42 = vpop.permute.xlu1 %16643  ;;  %v678_v58 = vadd.f32 %v677_v54, %v676_v23  ;;  %v29953_v14 = vand.u32 4294901760, %v26995_v33 }
 0x3b5   :  { %29932 = vst [vmem:[#allocation150_spill] sm:$0xff] %v27300_v42  ;;  %29938 = vst [vmem:[#allocation155_spill] sm:$0xff] %v27334_v13  ;;  %v29943_v42 = vand.u32 4294901760, %v27298_v57 }
 0x3b6   :  { %v27403_v23 = vsub.f32 %v26995_v33, %v29953_v14  ;;  %v29961_v14 = vand.u32 4294901760, %v27170_v37  ;;  %v29962_v33 = vand.u32 4294901760, %v27181_v0 }
 0x3b7   :  { %v27351_v31 = vsub.f32 %v27298_v57, %v29943_v42  ;;  %v29696_v57 = vand.u32 4294901760, %v27274_v6 }
 0x3b8   :  { %v27320_v46 = vpop.permute.xlu1 %17137  ;;  %29954 = vst [vmem:[#allocation162_spill] sm:$0xff] %v27403_v23 }
 0x3b9   :  { %29935 = vst [vmem:[#allocation153_spill] sm:$0xff] %v27320_v46  ;;  %29944 = vst [vmem:[#allocation158_spill] sm:$0xff] %v27351_v31  ;;  %v27380_v13 = vsub.f32 %v27274_v6, %v29696_v57  ;;  %v29952_v6 = vand.u32 4294901760, %v26991_v19 }
 0x3ba   :  { %v2872_v32 = vpop.f32.mrb[10].mxu1 }
 0x3bb   :  { %v27336_v48 = vadd.f32 %v2872_v32, %v2793_v28  ;;  %v21951_v18 = vpop.f32.mrb[11].mxu1  ;;  %29949 = vst [vmem:[#allocation161_spill] sm:$0xff] %v27380_v13  ;;  %v679_v28 = vrot.slane %v678_v58, 2  ;;  %v27398_v36 = vsub.f32 %v26991_v19, %v29952_v6  ;;  %v27425_v19 = vpack.c.bf16 %v29962_v33, %v29961_v14 }
 0x3bc   :  { %v29945_v18 = vand.u32 4294901760, %v27229_v44  ;;  %v27363_v21 = vpop.permute.xlu1 %17141 }
 0x3bd   :  { %v29957_v54 = vand.u32 4294901760, %v27363_v21  ;;  %v680_v13 = vadd.f32 %v679_v28, %v678_v58 }
 0x3be   :  { %v27359_v53 = vsub.f32 %v27229_v44, %v29945_v18  ;;  %v29947_v44 = vand.u32 4294901760, %v26951_v63 }
 0x3c0   :  { %29946 = vst [vmem:[#allocation159_spill] sm:$0xff] %v27359_v53  ;;  %v27375_v32 = vsub.f32 %v26951_v63, %v29947_v44  ;;  %v27382_v42 = vpop.permute.xlu1 %17644  ;;  %v29951_v63 = vand.u32 4294901760, %v27136_v62 }
 0x3c2   :  { %29948 = vst [vmem:[#allocation160_spill] sm:$0xff] %v27375_v32  ;;  %v3032_v53 = vpop.f32.mrb[12].mxu1  ;;  %v27393_v57 = vpack.c.bf16 %v29951_v63, %v29950_v11  ;;  %v27413_v63 = vsub.f32 %v27363_v21, %v29957_v54  ;;  %v29959_v11 = vand.u32 4294901760, %v27001_v22  ;;  %v29709_v32 = vand.u32 4294901760, %v27382_v42 }
 0x3c3   :  { %v21973_v18 = vpop.f32.mrb[13].mxu1  ;;  %v29727_v54 = vand.u32 4294901760, %v27021_v61 }
 0x3c4   :  { %v29955_v18 = vand.u32 4294901760, %v27320_v46  ;;  %29958 = vst [vmem:[#allocation164_spill] sm:$0xff] %v27413_v63  ;;  %v27418_v6 = vsub.f32 %v27001_v22, %v29959_v11  ;;  %v681_v22 = vrot.slane %v680_v13, 1  ;;  %v27437_v58 = vsub.f32 %v27382_v42, %v29709_v32 }
 0x3c5   :  { %v29716_v32 = vand.u32 4294901760, %v27015_v4 }
 0x3c6   :  { %v27408_v44 = vsub.f32 %v27320_v46, %v29955_v18  ;;  %29960 = vst [vmem:[#allocation165_spill] sm:$0xff] %v27418_v6  ;;  %v27427_v18 = vpop.permute.xlu1 %17648  ;;  %v29710_v46 = vand.u32 4294901760, %v27005_v30  ;;  %29963 = vst [vmem:[#allocation166_spill] sm:$0xff] %v27437_v58  ;;  %v682_v14 = vadd.f32 %v681_v22, %v680_v13  ;;  %v27482_v58 = vsub.f32 %v27021_v61, %v29727_v54 }
 0x3c7   :  { %v29713_v28 = vand.u32 4294901760, %v27427_v18  ;;  %v27463_v13 = vsub.f32 %v27015_v4, %v29716_v32  ;;  %v25586_v32 = vld [vmem:[%s29532_s11] ss:$0 sm:$0xff]  ;;  %v29975_v6 = vand.u32 4294901760, %v27056_v50 }
 0x3c8   :  { %29956 = vst [vmem:[#allocation163_spill] sm:$0xff] %v27408_v44  ;;  %v27442_v33 = vsub.f32 %v27005_v30, %v29710_v46  ;;  %25467 = vpush %v682_v14 }
 0x3c9   :  { %v27452_v11 = vsub.f32 %v27427_v18, %v29713_v28  ;;  %29968 = vst [vmem:[#allocation171_spill] sm:$0xff] %v27463_v13 }
 0x3ca   :  { %29964 = vst [vmem:[#allocation167_spill] sm:$0xff] %v27442_v33  ;;  %v27447_v44 = vpop.permute.xlu1 %17654 }
 0x3cb   :  { %29965 = vst [vmem:[#allocation168_spill] sm:$0xff] %v27447_v44  ;;  %29966 = vst [vmem:[#allocation169_spill] sm:$0xff] %v27452_v11 }
 0x3ce   :  { %v27457_v63 = vpop.permute.xlu1 %18667 }
 0x3cf   :  { %29967 = vst [vmem:[#allocation170_spill] sm:$0xff] %v27457_v63  ;;  %v29722_v22 = vand.u32 4294901760, %v27457_v63 }
 0x3d1   :  { %v27469_v14 = vsub.f32 %v27457_v63, %v29722_v22 }
 0x3d2   :  { %v27471_v28 = vpop.permute.xlu1 %18199  ;;  %v2607_v44 = vpop.f32.mrb[4].mxu0 }
 0x3d3   :  { %29969 = vst [vmem:[#allocation172_spill] sm:$0xff] %v27469_v14  ;;  %29970 = vst [vmem:[#allocation173_spill] sm:$0xff] %v27471_v28  ;;  %v29730_v11 = vand.u32 4294901760, %v27471_v28  ;;  %v25117_v4 = vadd.f32 %v25586_v32, %v2607_v44  ;;  %v21918_v33 = vpop.f32.mrb[5].mxu0  ;;  %v29972_v32 = vand.u32 4294901760, %v27029_v35  ;;  %v2613_v35 = vstv %s2612_s2 }
 0x3d5   :  { %v27487_v22 = vsub.f32 %v27471_v28, %v29730_v11  ;;  %25511 = vtanh.f32 %v25117_v4 }
 0x3d6   :  { %v19135_v46 = vpop.permute.xlu1 %19134 }
 0x3d7   :  { %29971 = vst [vmem:[#allocation174_spill] sm:$0xff] %v27487_v22  ;;  %v19153_v13 = vand.u32 4294901760, %v19135_v46 }
 0x3d9   :  { %v27493_v44 = vpack.c.bf16 %v29972_v32, %v19153_v13  ;;  %v27495_v33 = vsub.f32 %v19135_v46, %v19153_v13 }
 0x3da   :  { %v19139_v54 = vpop.permute.xlu1 %19138  ;;  %v2949_v63 = vpop.f32.mrb[6].mxu0 }
 0x3db   :  { %29973 = vst [vmem:[#allocation175_spill] sm:$0xff] %v27493_v44  ;;  %29974 = vst [vmem:[#allocation176_spill] sm:$0xff] %v27495_v33  ;;  %v19159_v11 = vand.u32 4294901760, %v19139_v54  ;;  %v2950_v4 = vadd.f32 %v2949_v63, %v27336_v48  ;;  %v21962_v28 = vpop.f32.mrb[7].mxu0 }
 0x3dd   :  { %v27502_v23 = vpack.c.bf16 %v29975_v6, %v19159_v11  ;;  %v27504_v14 = vsub.f32 %v19139_v54, %v19159_v11  ;;  %v3033_v32 = vadd.f32 %v3032_v53, %v2950_v4  ;;  %v29977_v54 = vand.u32 4294901760, %v27128_v3 }
 0x3de   :  { %v27506_v44 = vpop.permute.xlu1 %19146 }
 0x3df   :  { %29976 = vst [vmem:[#allocation177_spill] sm:$0xff] %v27506_v44  ;;  %v25512_v13 = vpop.eup %25511 }
 0x3e0   :  { %v2614_v22 = vmul.f32 %v25512_v13, %v2613_v35  ;;  %v29979_v13 = vand.u32 4294901760, %v27185_v34 }
 0x3e2   :  { %v19641_v61 = vpop.permute.xlu1 %19640  ;;  %v3111_v33 = vmul.f32 1.442695, %v2614_v22  ;;  %v3107_v17 = vpop.f32.mrb[8].mxu0  ;;  %v3117_v48 = vsel %vm638_vm1, %v2614_v22, 0.0 }
 0x3e3   :  { %v19660_v63 = vand.u32 4294901760, %v19641_v61  ;;  %v3108_v50 = vadd.f32 %v3107_v17, %v3033_v32  ;;  %v21984_v6 = vpop.f32.mrb[9].mxu0  ;;  %3118 = vadd.xlane.f32.xlu1 %v3117_v48  ;;  %v29981_v32 = vand.u32 4294901760, %v27244_v55 }
 0x3e4   :  { %25513 = vpow2.f32 %v3111_v33 }
 0x3e5   :  { %v27513_v53 = vpack.c.bf16 %v19660_v63, %v29977_v54  ;;  %v27515_v11 = vsub.f32 %v19641_v61, %v19660_v63 }
 0x3e6   :  { %v19645_v28 = vpop.permute.xlu1 %19644 }
 0x3e7   :  { %29978 = vst [vmem:[#allocation178_spill] sm:$0xff] %v27515_v11  ;;  %v19666_v35 = vand.u32 4294901760, %v19645_v28 }
 0x3e9   :  { %v27521_v46 = vpack.c.bf16 %v19666_v35, %v29979_v13  ;;  %v27523_v22 = vsub.f32 %v19645_v28, %v19666_v35 }
 0x3ea   :  { %v20148_v17 = vpop.permute.xlu1 %20147 }
 0x3eb   :  { %29980 = vst [vmem:[#allocation179_spill] sm:$0xff] %v27523_v22  ;;  %v20164_v3 = vand.u32 4294901760, %v20148_v17 }
 0x3ed   :  { %v27529_v61 = vpack.c.bf16 %v20164_v3, %v29981_v32  ;;  %v27531_v48 = vsub.f32 %v20148_v17, %v20164_v3 }
 0x3ee   :  { %v27533_v63 = vpop.permute.xlu1 %20151  ;;  %v25514_v6 = vpop.eup %25513 }
 0x3ef   :  { %29982 = vst [vmem:[#allocation180_spill] sm:$0xff] %v27529_v61  ;;  %29983 = vst [vmem:[#allocation181_spill] sm:$0xff] %v27531_v48  ;;  %v29749_v54 = vand.u32 4294901760, %v27533_v63  ;;  %v3113_v28 = vmul.f32 %v25514_v6, %v26315_v47 }
 0x3f0   :  { %29984 = vst [vmem:[#allocation182_spill] sm:$0xff] %v27533_v63 }
 0x3f1   :  { %v27542_v35 = vsub.f32 %v27533_v63, %v29749_v54  ;;  %v3114_v55 = vadd.f32 %v3113_v28, %v3108_v50 }
 0x3f3   :  { %29985 = vst [vmem:[#allocation183_spill] sm:$0xff] %v27542_v35  ;;  %v3121_v17 = vsel %vm638_vm1, %v3114_v55, 0.0  ;;  %v3128_v3 = vmul.f32 %v3114_v55, %v3114_v55 }
 0x3f4   :  { %v3122_v32 = vrot.slane %v3121_v17, 4 }
 0x3f5   :  { %v3129_v33 = vsel %vm638_vm1, %v3128_v3, 0.0 }
 0x3f6   :  { %v3123_v4 = vadd.f32 %v3122_v32, %v3121_v17  ;;  %v3130_v34 = vrot.slane %v3129_v33, 4 }
 0x3f8   :  { %v3124_v44 = vrot.slane %v3123_v4, 2  ;;  %v3131_v48 = vadd.f32 %v3130_v34, %v3129_v33 }
 0x3fa   :  { %v3125_v47 = vadd.f32 %v3124_v44, %v3123_v4  ;;  %v3132_v6 = vrot.slane %v3131_v48, 2 }
 0x3fc   :  { %v3126_v7 = vrot.slane %v3125_v47, 1  ;;  %v3133_v22 = vadd.f32 %v3132_v6, %v3131_v48 }
 0x3fe   :  { %v3127_v54 = vadd.f32 %v3126_v7, %v3125_v47  ;;  %v3134_v27 = vrot.slane %v3133_v22, 1  ;;  %v29989_v47 = vld [vmem:[#allocation52_spill] sm:$0xff] }
 0x3ff   :  { %v29761_v6 = vand.u32 4294901760, %v29989_v47 }
 0x400   :  { %v3136_v50 = vmul.f32 0.125, %v3127_v54  ;;  %v3135_v28 = vadd.f32 %v3134_v27, %v3133_v22 }
 0x402   :  { %v3137_v11 = vmul.f32 %v3136_v50, %v3127_v54  ;;  %v3141_v17 = vsub.f32 %v3114_v55, %v3136_v50  ;;  %v29988_v55 = vld [vmem:[#allocation26_spill] sm:$0xff] }
 0x404   :  { %v3138_v13 = vsub.f32 %v3135_v28, %v3137_v11 }
 0x406   :  { %v3139_v35 = vmul.f32 0.14285715, %v3138_v13  ;;  %v4645_v13 = vand.u32 4294901760, %v29988_v55 }
 0x408   :  { %v3140_v31 = vmax.f32 %v3139_v35, 0.0  ;;  %v27619_v28 = vpack.c.bf16 %v29761_v6, %v4645_v13 }
 0x40a   :  { %v3142_v52 = vadd.f32 1e-12, %v3140_v31  ;;  %25515 = vrsqrt.f32 %v3140_v31  ;;  %vm3147_vm7 = vcmp.eq.f32.partialorder %v3140_v31, inf  ;;  %v3150_v44 = vand.u32 2147483648, %v3140_v31 }
 0x40b   :  { %vm3149_vm8 = vcmp.eq.f32.partialorder %v3140_v31, 0.0 }
 0x40c   :  { %25517 = vrsqrt.f32 %v3142_v52 }
 0x414   :  { %v25516_v3 = vpop.eup %25515 }
 0x415   :  { %v3146_v32 = vmul.f32 %v25516_v3, %v3140_v31 }
 0x416   :  { %v25518_v61 = vpop.eup %25517 }
 0x417   :  { %v3144_v4 = vmul.f32 %v25518_v61, %v3141_v17  ;;  %v3148_v33 = vsel %vm3147_vm7, %v3140_v31, %v3146_v32 }
 0x418   :  { %v3151_v7 = vsel %vm3149_vm8, %v3150_v44, %v3148_v33 }
 0x419   :  { %v3175_v48 = vsel %vm638_vm1, %v3144_v4, 0  ;;  %v3152_v27 = vadd.f32 1e-06, %v3151_v7 }
 0x41a   :  { %v3244_v22 = vand.u32 4294901760, %v3175_v48 }
 0x41b   :  { %25519 = vlog2.f32 %v3152_v27 }
 0x41c   :  { %v3245_v11 = vsub.f32 %v3175_v48, %v3244_v22 }
 0x41e   :  { %v3246_v34 = vand.u32 4294901760, %v3245_v11 }
 0x420   :  { %v3247_v54 = vsub.f32 %v3245_v11, %v3246_v34 }
 0x422   :  { %v3248_v35 = vand.u32 4294901760, %v3247_v54 }
 0x424   :  { %21990 = vmatmul.mubr.f32.vlgmr.msra.gmra.mrb[14].mxu1 %v3248_v35  ;;  %22032 = vmatmul.mubr.f32.vlgmr.msra.gmra.mrb[10].mxu0 %v3248_v35 }
 0x425   :  { %v25520_v52 = vpop.eup %25519  ;;  %24126 = vmatpush3.bf16.msra.mxu0 %v27302_v8  ;;  %24108 = vmatpush3.bf16.msra.mxu1 %v27318_v26  ;;  %v29986_v8 = vpack.c.bf16 %v27136_v62, %v27101_v38  ;;  %v29987_v26 = vpack.c.bf16 %v27181_v0, %v27170_v37  ;;  %v4131_v62 = vand.u32 4294901760, %v26666_v20  ;;  %v4140_v38 = vand.u32 4294901760, %v26377_v51 }
 0x426   :  { %v3154_v61 = vmul.f32 0.6931472, %v25520_v52  ;;  %21996 = vmatprep.mubr.msk.f32.mxu1 %vm25810_vm2, %v29793_v40  ;;  %22038 = vmatprep.mubr.msk.f32.mxu0 %vm25810_vm2, %v29793_v40  ;;  %v4137_v37 = vand.u32 4294901760, %v26686_v5 }
 0x427   :  { %24127 = vmatprep.subr.bf16.mxu0 %v29791_v49  ;;  %24109 = vmatprep.subr.bf16.mxu1 %v29791_v49  ;;  %v4211_v27 = vsub.f32 %v26666_v20, %v4131_v62 }
 0x428   :  { %v3155_v31 = vsel %vm673_vm6, %v3154_v61, 0.0  ;;  %v27610_v50 = vpack.c.bf16 %v4140_v38, %v4137_v37 }
 0x429   :  { %3156 = vadd.xlane.f32.xlu0 %v3155_v31  ;;  %v4232_v31 = vsub.f32 %v26377_v51, %v4140_v38 }
 0x42c   :  { %21997 = vmatmul.mubr.f32.vlgmr.msra.gmra.mrb[14].mxu1 %v3244_v22  ;;  %22039 = vmatmul.mubr.f32.vlgmr.msra.gmra.mrb[10].mxu0 %v3244_v22 }
 0x42d   :  { %24129 = vmatpush3.bf16.msra.mxu0 %v29986_v8  ;;  %24111 = vmatpush3.bf16.msra.mxu1 %v29987_v26  ;;  %v4212_v8 = vand.u32 4294901760, %v4211_v27  ;;  %v4225_v26 = vsub.f32 %v26686_v5, %v4137_v37 }
 0x42e   :  { %22003 = vmatprep.mubr.msk.f32.mxu1 %vm25810_vm2, %v29793_v40  ;;  %22045 = vmatprep.mubr.msk.f32.mxu0 %vm25810_vm2, %v29793_v40 }
 0x42f   :  { %24130 = vmatprep.subr.bf16.mxu0 %v29791_v49  ;;  %24112 = vmatprep.subr.bf16.mxu1 %v29791_v49  ;;  %v4213_v20 = vsub.f32 %v4211_v27, %v4212_v8 }
 0x434   :  { %22004 = vmatmul.mubr.f32.vlgmr.msra.gmra.mrb[14].mxu1 %v3245_v11  ;;  %22046 = vmatmul.mubr.f32.vlgmr.msra.gmra.mrb[10].mxu0 %v3245_v11 }
 0x435   :  { %24132 = vmatpush3.bf16.msra.mxu0 %v26821_v12  ;;  %24114 = vmatpush3.bf16.msra.mxu1 %v26749_v43 }
 0x436   :  { %22010 = vmatprep.mubr.msk.f32.mxu1 %vm25810_vm2, %v29793_v40  ;;  %22052 = vmatprep.mubr.msk.f32.mxu0 %vm25810_vm2, %v29793_v40 }
 0x437   :  { %24133 = vmatprep.subr.bf16.mxu0 %v29791_v49  ;;  %24115 = vmatprep.subr.bf16.mxu1 %v29791_v49 }
 0x43c   :  { %22011 = vmatmul.mubr.f32.vlgmr.msra.gmra.mrb[14].mxu1 %v3246_v34  ;;  %22053 = vmatmul.mubr.f32.vlgmr.msra.gmra.mrb[10].mxu0 %v3246_v34  ;;  %v29990_v34 = vld [vmem:[#allocation25_spill] sm:$0xff] }
 0x43d   :  { %24135 = vmatpush3.bf16.msra.mxu0 %v27393_v57  ;;  %24117 = vmatpush3.bf16.msra.mxu1 %v27425_v19  ;;  %v4134_v19 = vand.u32 4294901760, %v26371_v39  ;;  %v4639_v57 = vand.u32 4294901760, %v26395_v56 }
 0x43e   :  { %22017 = vmatprep.mubr.msk.f32.mxu1 %vm25810_vm2, %v29793_v40  ;;  %22059 = vmatprep.mubr.msk.f32.mxu0 %vm25810_vm2, %v29793_v40 }
 0x43f   :  { %24136 = vmatprep.subr.bf16.mxu0 %v29791_v49  ;;  %24118 = vmatprep.subr.bf16.mxu1 %v29791_v49  ;;  %v27598_v0 = vpack.c.bf16 %v4134_v19, %v4131_v62  ;;  %v4218_v48 = vsub.f32 %v26371_v39, %v4134_v19  ;;  %v4233_v19 = vand.u32 4294901760, %v4232_v31  ;;  %v4226_v62 = vand.u32 4294901760, %v4225_v26 }
 0x441   :  { %v4219_v61 = vand.u32 4294901760, %v4218_v48  ;;  %v24152_v37 = vpack.c.bf16 %v4218_v48, %v4211_v27  ;;  %v29991_v27 = vld [vmem:[#allocation27_spill] sm:$0xff] }
 0x443   :  { %v4220_v39 = vsub.f32 %v4218_v48, %v4219_v61  ;;  %v24167_v48 = vpack.c.bf16 %v4233_v19, %v4226_v62 }
 0x444   :  { %22018 = vmatmul.mubr.f32.vlgmr.msra.gmra.mrb[14].mxu1 %v3244_v22  ;;  %22060 = vmatmul.mubr.f32.vlgmr.msra.gmra.mrb[10].mxu0 %v3244_v22 }
 0x445   :  { %24138 = vmatpush3.bf16.msra.mxu0 %v26821_v12  ;;  %24120 = vmatpush3.bf16.msra.mxu1 %v26749_v43  ;;  %v4642_v12 = vand.u32 4294901760, %v26729_v16 }
 0x446   :  { %22024 = vmatprep.mubr.msk.f32.mxu1 %vm25810_vm2, %v29793_v40  ;;  %22066 = vmatprep.mubr.msk.f32.mxu0 %vm25810_vm2, %v29793_v40 }
 0x447   :  { %24139 = vmatprep.subr.bf16.mxu1 %v29791_v49  ;;  %24175 = vmatprep.subr.bf16.mxu0 %v29791_v49  ;;  %v27604_v43 = vpack.c.bf16 %v4642_v12, %v4639_v57 }
 0x44c   :  { %22025 = vmatmul.mubr.f32.vlgmr.msra.gmra.mrb[14].mxu1 %v3244_v22  ;;  %22067 = vmatmul.mubr.f32.vlgmr.msra.gmra.mrb[10].mxu0 %v3244_v22 }
 0x44d   :  { %24141 = vmatpush3.bf16.msra.mxu1 %v27598_v0  ;;  %22077 = vmatprep.mubr.msk.f32.mxu1 %vm25810_vm2, %v29793_v40 }
 0x44e   :  { %24142 = vmatprep.subr.bf16.mxu1 %v29791_v49  ;;  %24177 = vmatpush3.bf16.msra.mxu0 %v27604_v43 }
 0x44f   :  { %24178 = vmatprep.subr.bf16.mxu0 %v29791_v49  ;;  %22143 = vmatprep.mubr.msk.f32.mxu0 %vm25810_vm2, %v29793_v40 }
 0x451   :  { %24144 = vmatpush3.bf16.msra.mxu1 %v27610_v50 }
 0x452   :  { %24145 = vmatprep.subr.bf16.mxu1 %v29791_v49  ;;  %24180 = vmatpush3.bf16.msra.mxu0 %v27619_v28 }
 0x453   :  { %24181 = vmatprep.subr.bf16.mxu0 %v29791_v49 }
 0x4b6   :  { %v3157_v3 = vpop.xlane.xlu0 %3156 }
 0x4b7   :  { %v3158_v17 = vrot.slane %v3157_v3, 4 }
 0x4b9   :  { %v3159_v32 = vadd.f32 %v3158_v17, %v3157_v3 }
 0x4bb   :  { %v3160_v44 = vrot.slane %v3159_v32, 2 }
 0x4bd   :  { %v3161_v4 = vadd.f32 %v3160_v44, %v3159_v32 }
 0x4bf   :  { %v3162_v33 = vrot.slane %v3161_v4, 1 }
 0x4c1   :  { %v3163_v7 = vadd.f32 %v3162_v33, %v3161_v4  ;;  %v4221_v33 = vand.u32 4294901760, %v4220_v39  ;;  %v29994_v39 = vld [vmem:[#allocation56_spill] sm:$0xff] }
 0x4c3   :  { %25469 = vpush %v3163_v7  ;;  %v4234_v7 = vsub.f32 %v4232_v31, %v4233_v19  ;;  %v5156_v19 = vand.u32 4294901760, %v29994_v39 }
 0x4c5   :  { %v4235_v51 = vand.u32 4294901760, %v4234_v7  ;;  %v27691_v7 = vsub.f32 %v29988_v55, %v4645_v13 }
 0x51f   :  { %v27632_v22 = vpop.f32.mrb[14].mxu1  ;;  %v4103_v11 = vpop.f32.mrb[10].mxu0 }
 0x520   :  { %v25118_v54 = vadd.f32 %v4103_v11, %v29990_v34  ;;  %v22026_v35 = vpop.f32.mrb[15].mxu1  ;;  %v22068_v52 = vpop.f32.mrb[11].mxu0  ;;  %v4214_v11 = vand.u32 4294901760, %v4213_v20  ;;  %v4227_v34 = vsub.f32 %v4225_v26, %v4226_v62  ;;  %v29995_v62 = vld [vmem:[#allocation49_spill] sm:$0xff] }
 0x522   :  { %v4107_v3 = vmax.f32 %v25118_v54, 0.0  ;;  %v4228_v38 = vand.u32 4294901760, %v4227_v34  ;;  %v24146_v6 = vpack.c.bf16 %v4221_v33, %v4214_v11  ;;  %v24155_v54 = vpack.c.bf16 %v4232_v31, %v4225_v26  ;;  %v29992_v26 = vld [vmem:[#allocation54_spill] sm:$0xff] }
 0x523   :  { %v5147_v31 = vand.u32 4294901760, %v29991_v27 }
 0x524   :  { %v4128_v17 = vsel %vm1622_vm3, %v4107_v3, 0  ;;  %v24149_v5 = vpack.c.bf16 %v4235_v51, %v4228_v38  ;;  %v5150_v3 = vand.u32 4294901760, %v29992_v26 }
 0x525   :  { %v4199_v32 = vand.u32 4294901760, %v4128_v17  ;;  %v27712_v51 = vsub.f32 %v29991_v27, %v5147_v31 }
 0x526   :  { %v27715_v38 = vsub.f32 %v29992_v26, %v5150_v3 }
 0x527   :  { %v4200_v44 = vsub.f32 %v4128_v17, %v4199_v32  ;;  %v27663_v17 = vpack.c.bf16 %v5150_v3, %v5147_v31  ;;  %v27730_v31 = vsub.f32 %v29994_v39, %v5156_v19 }
 0x528   :  { %v24224_v26 = vpack.c.bf16 %v27715_v38, %v27712_v51 }
 0x529   :  { %v4201_v4 = vand.u32 4294901760, %v4200_v44 }
 0x52b   :  { %v4202_v35 = vsub.f32 %v4200_v44, %v4201_v4 }
 0x52d   :  { %v4203_v52 = vand.u32 4294901760, %v4202_v35 }
 0x52f   :  { %22078 = vmatmul.mubr.f32.vlgmr.msra.gmra.mrb[16].mxu1 %v4203_v52  ;;  %v4734_v52 = vand.u32 4294901760, %v27691_v7 }
 0x530   :  { %24147 = vmatpush3.bf16.msra.mxu1 %v24146_v6  ;;  %22088 = vmatprep.mubr.msk.f32.mxu1 %vm25810_vm2, %v29793_v40  ;;  %v24164_v6 = vpack.c.bf16 %v4219_v61, %v4212_v8  ;;  %v29993_v61 = vld [vmem:[#allocation28_spill] sm:$0xff] }
 0x531   :  { %24148 = vmatprep.subr.bf16.mxu1 %v29791_v49  ;;  %v5153_v8 = vand.u32 4294901760, %v29993_v61 }
 0x533   :  { %v27668_v20 = vpack.c.bf16 %v5156_v19, %v5153_v8  ;;  %v27727_v27 = vsub.f32 %v29993_v61, %v5153_v8  ;;  %v5249_v19 = vand.u32 4294901760, %v27730_v31 }
 0x534   :  { %24150 = vmatpush3.bf16.msra.mxu1 %v24149_v5 }
 0x535   :  { %24151 = vmatprep.subr.bf16.mxu1 %v29791_v49  ;;  %v24227_v61 = vpack.c.bf16 %v27730_v31, %v27727_v27  ;;  %v5242_v39 = vand.u32 4294901760, %v27727_v27 }
 0x537   :  { %22089 = vmatmul.mubr.f32.vlgmr.msra.gmra.mrb[16].mxu1 %v4199_v32 }
 0x538   :  { %24153 = vmatpush3.bf16.msra.mxu1 %v24152_v37  ;;  %22099 = vmatprep.mubr.msk.f32.mxu1 %vm25810_vm2, %v29793_v40 }
 0x539   :  { %24154 = vmatprep.subr.bf16.mxu1 %v29791_v49 }
 0x53c   :  { %24156 = vmatpush3.bf16.msra.mxu1 %v24155_v54  ;;  %v4735_v54 = vsub.f32 %v27691_v7, %v4734_v52 }
 0x53d   :  { %24157 = vmatprep.subr.bf16.mxu1 %v29791_v49 }
 0x53f   :  { %22100 = vmatmul.mubr.f32.vlgmr.msra.gmra.mrb[16].mxu1 %v4200_v44 }
 0x540   :  { %24159 = vmatpush3.bf16.msra.mxu1 %v27598_v0  ;;  %22110 = vmatprep.mubr.msk.f32.mxu1 %vm25810_vm2, %v29793_v40 }
 0x541   :  { %24160 = vmatprep.subr.bf16.mxu1 %v29791_v49 }
 0x544   :  { %24162 = vmatpush3.bf16.msra.mxu1 %v27610_v50 }
 0x545   :  { %24163 = vmatprep.subr.bf16.mxu1 %v29791_v49 }
 0x547   :  { %22111 = vmatmul.mubr.f32.vlgmr.msra.gmra.mrb[16].mxu1 %v4201_v4 }
 0x548   :  { %24165 = vmatpush3.bf16.msra.mxu1 %v24164_v6  ;;  %22121 = vmatprep.mubr.msk.f32.mxu1 %vm25810_vm2, %v29793_v40 }
 0x549   :  { %24166 = vmatprep.subr.bf16.mxu1 %v29791_v49 }
 0x54c   :  { %24168 = vmatpush3.bf16.msra.mxu1 %v24167_v48 }
 0x54d   :  { %24169 = vmatprep.subr.bf16.mxu1 %v29791_v49 }
 0x54f   :  { %22122 = vmatmul.mubr.f32.vlgmr.msra.gmra.mrb[16].mxu1 %v4199_v32 }
 0x550   :  { %24171 = vmatpush3.bf16.msra.mxu1 %v27598_v0  ;;  %22132 = vmatprep.mubr.msk.f32.mxu1 %vm25810_vm2, %v29793_v40  ;;  %v27679_v0 = vsub.f32 %v26395_v56, %v4639_v57  ;;  %v29996_v56 = vand.u32 4294901760, %v29989_v47 }
 0x551   :  { %24172 = vmatprep.subr.bf16.mxu1 %v29791_v49 }
 0x552   :  { %v4720_v33 = vand.u32 4294901760, %v27679_v0  ;;  %v27697_v57 = vsub.f32 %v29989_v47, %v29996_v56  ;;  %v5228_v56 = vand.u32 4294901760, %v27712_v51 }
 0x554   :  { %24174 = vmatpush3.bf16.msra.mxu1 %v27610_v50  ;;  %v27684_v50 = vsub.f32 %v26729_v16, %v4642_v12  ;;  %v4721_v35 = vsub.f32 %v27679_v0, %v4720_v33  ;;  %v4741_v13 = vand.u32 4294901760, %v27697_v57 }
 0x555   :  { %24211 = vmatprep.subr.bf16.mxu1 %v29791_v49 }
 0x556   :  { %v4727_v11 = vand.u32 4294901760, %v27684_v50  ;;  %v4722_v37 = vand.u32 4294901760, %v4721_v35  ;;  %v4742_v48 = vsub.f32 %v27697_v57, %v4741_v13  ;;  %v24188_v35 = vpack.c.bf16 %v27684_v50, %v27679_v0 }
 0x557   :  { %22133 = vmatmul.mubr.f32.vlgmr.msra.gmra.mrb[16].mxu1 %v4199_v32 }
 0x558   :  { %24213 = vmatpush3.bf16.msra.mxu1 %v27663_v17  ;;  %22209 = vmatprep.mubr.msk.f32.mxu1 %vm25810_vm2, %v29793_v40  ;;  %v4728_v55 = vsub.f32 %v27684_v50, %v4727_v11 }
 0x559   :  { %24214 = vmatprep.subr.bf16.mxu1 %v29791_v49 }
 0x55a   :  { %v4729_v6 = vand.u32 4294901760, %v4728_v55  ;;  %v24239_v55 = vpack.c.bf16 %v5249_v19, %v5242_v39 }
 0x55c   :  { %24216 = vmatpush3.bf16.msra.mxu1 %v27668_v20 }
 0x55d   :  { %24223 = vmatprep.subr.bf16.mxu1 %v29791_v49 }
 0x62a   :  { %v4611_v32 = vpop.f32.mrb[16].mxu1 }
 0x62b   :  { %v25119_v44 = vadd.f32 %v4611_v32, %v29995_v62  ;;  %v22134_v4 = vpop.f32.mrb[17].mxu1  ;;  %v4736_v62 = vand.u32 4294901760, %v4735_v54 }
 0x62c   :  { %v24182_v4 = vpack.c.bf16 %v4729_v6, %v4722_v37  ;;  %v29997_v37 = vld [vmem:[#allocation31_spill] sm:$0xff]  ;;  %v29998_v6 = vld [vmem:[#allocation62_spill] sm:$0xff] }
 0x62d   :  { %v4615_v16 = vmax.f32 %v25119_v44, 0.0  ;;  %v4743_v44 = vand.u32 4294901760, %v4742_v48  ;;  %v5696_v54 = vand.u32 4294901760, %v29997_v37  ;;  %v5699_v48 = vand.u32 4294901760, %v29998_v6 }
 0x62f   :  { %v4636_v12 = vsel %vm1622_vm3, %v4615_v16, 0  ;;  %v5235_v16 = vand.u32 4294901760, %v27715_v38  ;;  %v24185_v8 = vpack.c.bf16 %v4743_v44, %v4736_v62  ;;  %v5229_v62 = vsub.f32 %v27712_v51, %v5228_v56  ;;  %v30000_v51 = vld [vmem:[#allocation60_spill] sm:$0xff] }
 0x630   :  { %v27700_v34 = vand.u32 4294901760, %v4636_v12  ;;  %v5250_v44 = vsub.f32 %v27730_v31, %v5249_v19 }
 0x631   :  { %v5236_v0 = vsub.f32 %v27715_v38, %v5235_v16  ;;  %v5230_v50 = vand.u32 4294901760, %v5229_v62  ;;  %v6167_v38 = vand.u32 4294901760, %v30000_v51 }
 0x632   :  { %v4708_v47 = vsub.f32 %v4636_v12, %v27700_v34  ;;  %v24236_v12 = vpack.c.bf16 %v5235_v16, %v5228_v56 }
 0x634   :  { %v27717_v5 = vand.u32 4294901760, %v4708_v47 }
 0x636   :  { %v4710_v32 = vsub.f32 %v4708_v47, %v27717_v5 }
 0x638   :  { %v4711_v3 = vand.u32 4294901760, %v4710_v32  ;;  %v24191_v32 = vpack.c.bf16 %v27697_v57, %v27691_v7  ;;  %v5251_v57 = vand.u32 4294901760, %v5250_v44 }
 0x63a   :  { %22144 = vmatmul.mubr.f32.vlgmr.msra.gmra.mrb[12].mxu0 %v4711_v3  ;;  %22210 = vmatmul.mubr.f32.vlgmr.msra.gmra.mrb[18].mxu1 %v4711_v3  ;;  %v24203_v3 = vpack.c.bf16 %v4741_v13, %v4734_v52 }
 0x63b   :  { %24183 = vmatpush3.bf16.msra.mxu0 %v24182_v4  ;;  %24225 = vmatpush3.bf16.msra.mxu1 %v24224_v26  ;;  %v27765_v26 = vpack.c.bf16 %v5699_v48, %v5696_v54 }
 0x63c   :  { %24184 = vmatprep.subr.bf16.mxu0 %v29791_v49  ;;  %24226 = vmatprep.subr.bf16.mxu1 %v29791_v49 }
 0x63d   :  { %22231 = vmatprep.mubr.msk.f32.mxu1 %vm25810_vm2, %v29793_v40  ;;  %22154 = vmatprep.mubr.msk.f32.mxu0 %vm25810_vm2, %v29793_v40 }
 0x63f   :  { %24186 = vmatpush3.bf16.msra.mxu0 %v24185_v8  ;;  %24228 = vmatpush3.bf16.msra.mxu1 %v24227_v61  ;;  %v30001_v8 = vld [vmem:[#allocation29_spill] sm:$0xff] }
 0x640   :  { %24187 = vmatprep.subr.bf16.mxu0 %v29791_v49  ;;  %24235 = vmatprep.subr.bf16.mxu1 %v29791_v49 }
 0x642   :  { %22232 = vmatmul.mubr.f32.vlgmr.msra.gmra.mrb[20].mxu1 %v4708_v47  ;;  %22155 = vmatmul.mubr.f32.vlgmr.msra.gmra.mrb[12].mxu0 %v27700_v34 }
 0x643   :  { %24189 = vmatpush3.bf16.msra.mxu0 %v24188_v35  ;;  %24237 = vmatpush3.bf16.msra.mxu1 %v24236_v12 }
 0x644   :  { %24190 = vmatprep.subr.bf16.mxu0 %v29791_v49  ;;  %24238 = vmatprep.subr.bf16.mxu1 %v29791_v49 }
 0x645   :  { %22253 = vmatprep.mubr.msk.f32.mxu1 %vm25810_vm2, %v29793_v40  ;;  %22165 = vmatprep.mubr.msk.f32.mxu0 %vm25810_vm2, %v29793_v40 }
 0x647   :  { %24192 = vmatpush3.bf16.msra.mxu0 %v24191_v32  ;;  %24240 = vmatpush3.bf16.msra.mxu1 %v24239_v55 }
 0x648   :  { %24193 = vmatprep.subr.bf16.mxu0 %v29791_v49  ;;  %24247 = vmatprep.subr.bf16.mxu1 %v29791_v49 }
 0x64a   :  { %22254 = vmatmul.mubr.f32.vlgmr.msra.gmra.mrb[22].mxu1 %v27700_v34  ;;  %22166 = vmatmul.mubr.f32.vlgmr.msra.gmra.mrb[12].mxu0 %v4708_v47  ;;  %v24200_v47 = vpack.c.bf16 %v4727_v11, %v4720_v33  ;;  %v5243_v33 = vsub.f32 %v27727_v27, %v5242_v39  ;;  %v5237_v11 = vand.u32 4294901760, %v5236_v0 }
 0x64b   :  { %24195 = vmatpush3.bf16.msra.mxu0 %v27604_v43  ;;  %22176 = vmatprep.mubr.msk.f32.mxu0 %vm25810_vm2, %v29793_v40 }
 0x64c   :  { %24196 = vmatprep.subr.bf16.mxu0 %v29791_v49  ;;  %24249 = vmatpush3.bf16.msra.mxu1 %v27765_v26  ;;  %v5244_v7 = vand.u32 4294901760, %v5243_v33  ;;  %v24218_v52 = vpack.c.bf16 %v5237_v11, %v5230_v50 }
 0x64d   :  { %22271 = vmatprep.mubr.msk.f32.mxu1 %vm25810_vm2, %v29793_v40  ;;  %24250 = vmatprep.subr.bf16.mxu1 %v29791_v49 }
 0x64e   :  { %v24221_v13 = vpack.c.bf16 %v5251_v57, %v5244_v7 }
 0x64f   :  { %24198 = vmatpush3.bf16.msra.mxu0 %v27619_v28 }
 0x650   :  { %24199 = vmatprep.subr.bf16.mxu0 %v29791_v49 }
 0x652   :  { %22177 = vmatmul.mubr.f32.vlgmr.msra.gmra.mrb[12].mxu0 %v27717_v5 }
 0x653   :  { %24201 = vmatpush3.bf16.msra.mxu0 %v24200_v47  ;;  %22187 = vmatprep.mubr.msk.f32.mxu0 %vm25810_vm2, %v29793_v40  ;;  %v5125_v47 = vstv %s20687_s29 }
 0x654   :  { %24202 = vmatprep.subr.bf16.mxu0 %v29791_v49 }
 0x657   :  { %24204 = vmatpush3.bf16.msra.mxu0 %v24203_v3 }
 0x658   :  { %24205 = vmatprep.subr.bf16.mxu0 %v29791_v49 }
 0x65a   :  { %22188 = vmatmul.mubr.f32.vlgmr.msra.gmra.mrb[12].mxu0 %v27700_v34 }
 0x65b   :  { %24207 = vmatpush3.bf16.msra.mxu0 %v27604_v43  ;;  %22198 = vmatprep.mubr.msk.f32.mxu0 %vm25810_vm2, %v29793_v40  ;;  %v29999_v43 = vld [vmem:[#allocation30_spill] sm:$0xff] }
 0x65c   :  { %24208 = vmatprep.subr.bf16.mxu0 %v29791_v49 }
 0x65f   :  { %24210 = vmatpush3.bf16.msra.mxu0 %v27619_v28  ;;  %v6164_v28 = vand.u32 4294901760, %v29999_v43 }
 0x660   :  { %24217 = vmatprep.subr.bf16.mxu0 %v29791_v49 }
 0x661   :  { %v27827_v27 = vpack.c.bf16 %v6167_v38, %v6164_v28 }
 0x662   :  { %22199 = vmatmul.mubr.f32.vlgmr.msra.gmra.mrb[12].mxu0 %v27700_v34 }
 0x663   :  { %24219 = vmatpush3.bf16.msra.mxu0 %v24218_v52  ;;  %22220 = vmatprep.mubr.msk.f32.mxu0 %vm25810_vm2, %v29793_v40 }
 0x664   :  { %24220 = vmatprep.subr.bf16.mxu0 %v29791_v49 }
 0x667   :  { %24222 = vmatpush3.bf16.msra.mxu0 %v24221_v13 }
 0x668   :  { %24229 = vmatprep.subr.bf16.mxu0 %v29791_v49 }
 0x66a   :  { %22221 = vmatmul.mubr.f32.vlgmr.msra.gmra.mrb[14].mxu0 %v27700_v34 }
 0x66b   :  { %24231 = vmatpush3.bf16.msra.mxu0 %v27663_v17  ;;  %22242 = vmatprep.mubr.msk.f32.mxu0 %vm25810_vm2, %v29793_v40 }
 0x66c   :  { %24232 = vmatprep.subr.bf16.mxu0 %v29791_v49 }
 0x66f   :  { %24234 = vmatpush3.bf16.msra.mxu0 %v27668_v20 }
 0x670   :  { %24241 = vmatprep.subr.bf16.mxu0 %v29791_v49 }
 0x672   :  { %22243 = vmatmul.mubr.f32.vlgmr.msra.gmra.mrb[16].mxu0 %v27717_v5 }
 0x673   :  { %24243 = vmatpush3.bf16.msra.mxu0 %v27663_v17  ;;  %22264 = vmatprep.mubr.msk.f32.mxu0 %vm25810_vm2, %v29793_v40 }
 0x674   :  { %24244 = vmatprep.subr.bf16.mxu0 %v29791_v49 }
 0x677   :  { %24246 = vmatpush3.bf16.msra.mxu0 %v27668_v20 }
 0x678   :  { %24265 = vmatprep.subr.bf16.mxu0 %v29791_v49 }
 0x67a   :  { %22265 = vmatmul.mubr.f32.vlgmr.msra.gmra.mrb[18].mxu0 %v27700_v34  ;;  %v30002_v34 = vld [vmem:[#allocation58_spill] sm:$0xff] }
 0x67b   :  { %24267 = vmatpush3.bf16.msra.mxu0 %v27827_v27  ;;  %22313 = vmatprep.mubr.msk.f32.mxu0 %vm25810_vm2, %v29793_v40 }
 0x67c   :  { %24268 = vmatprep.subr.bf16.mxu0 %v29791_v49 }
 0x70d   :  { %v5221_v17 = vpop.f32.mrb[18].mxu1 }
 0x70e   :  { %v22211_v5 = vpop.f32.mrb[19].mxu1  ;;  %v5222_v19 = vadd.f32 %v5221_v17, %v30002_v34 }
 0x715   :  { %v5392_v31 = vpop.f32.mrb[20].mxu1 }
 0x716   :  { %v22233_v4 = vpop.f32.mrb[21].mxu1 }
 0x71d   :  { %v5552_v56 = vpop.f32.mrb[22].mxu1 }
 0x71e   :  { %v22255_v16 = vpop.f32.mrb[23].mxu1 }
 0x735   :  { %v5119_v61 = vpop.f32.mrb[12].mxu0 }
 0x736   :  { %v25120_v20 = vadd.f32 %v5119_v61, %v30001_v8  ;;  %v22200_v39 = vpop.f32.mrb[13].mxu0 }
 0x738   :  { %25521 = vtanh.f32 %v25120_v20 }
 0x73d   :  { %v5312_v12 = vpop.f32.mrb[14].mxu0 }
 0x73e   :  { %v5313_v35 = vadd.f32 %v5312_v12, %v5222_v19  ;;  %v22222_v55 = vpop.f32.mrb[15].mxu0 }
 0x740   :  { %v5393_v32 = vadd.f32 %v5392_v31, %v5313_v35 }
 0x742   :  { %v25522_v3 = vpop.eup %25521 }
 0x743   :  { %v5126_v62 = vmul.f32 %v25522_v3, %v5125_v47 }
 0x745   :  { %v5469_v0 = vpop.f32.mrb[16].mxu0  ;;  %v5637_v50 = vsel %vm638_vm1, %v5126_v62, 0.0  ;;  %v5631_v33 = vmul.f32 1.442695, %v5126_v62 }
 0x746   :  { %v5470_v11 = vadd.f32 %v5469_v0, %v5393_v32  ;;  %v22244_v44 = vpop.f32.mrb[17].mxu0  ;;  %5638 = vadd.xlane.f32.xlu0 %v5637_v50 }
 0x747   :  { %25523 = vpow2.f32 %v5631_v33  ;;  %v27845_v44 = vsub.f32 %v29999_v43, %v6164_v28 }
 0x748   :  { %v5553_v7 = vadd.f32 %v5552_v56, %v5470_v11 }
 0x74d   :  { %v5627_v57 = vpop.f32.mrb[18].mxu0 }
 0x74e   :  { %v5628_v52 = vadd.f32 %v5627_v57, %v5553_v7  ;;  %v22266_v13 = vpop.f32.mrb[19].mxu0  ;;  %v27850_v7 = vsub.f32 %v29997_v37, %v5696_v54  ;;  %v27855_v57 = vsub.f32 %v30000_v51, %v6167_v38 }
 0x750   :  { %v5775_v43 = vand.u32 4294901760, %v27850_v7  ;;  %v6250_v28 = vand.u32 4294901760, %v27855_v57 }
 0x751   :  { %v25524_v17 = vpop.eup %25523 }
 0x752   :  { %v5633_v5 = vmul.f32 %v25524_v17, %v27632_v22  ;;  %v6243_v17 = vand.u32 4294901760, %v27845_v44 }
 0x754   :  { %v5634_v4 = vadd.f32 %v5633_v5, %v5628_v52  ;;  %v27860_v52 = vsub.f32 %v29998_v6, %v5699_v48  ;;  %v6244_v6 = vsub.f32 %v27845_v44, %v6243_v17  ;;  %v5776_v48 = vsub.f32 %v27850_v7, %v5775_v43 }
 0x756   :  { %v5641_v31 = vsel %vm638_vm1, %v5634_v4, 0.0  ;;  %v5648_v16 = vmul.f32 %v5634_v4, %v5634_v4  ;;  %v5782_v37 = vand.u32 4294901760, %v27860_v52 }
 0x757   :  { %v5642_v61 = vrot.slane %v5641_v31, 4 }
 0x758   :  { %v5649_v8 = vsel %vm638_vm1, %v5648_v16, 0.0 }
 0x759   :  { %v5643_v20 = vadd.f32 %v5642_v61, %v5641_v31  ;;  %v5650_v39 = vrot.slane %v5649_v8, 4 }
 0x75b   :  { %v5644_v34 = vrot.slane %v5643_v20, 2  ;;  %v5651_v19 = vadd.f32 %v5650_v39, %v5649_v8  ;;  %v6251_v8 = vsub.f32 %v27855_v57, %v6250_v28 }
 0x75d   :  { %v5645_v12 = vadd.f32 %v5644_v34, %v5643_v20  ;;  %v5652_v35 = vrot.slane %v5651_v19, 2  ;;  %v5783_v20 = vsub.f32 %v27860_v52, %v5782_v37 }
 0x75f   :  { %v5646_v56 = vrot.slane %v5645_v12, 1  ;;  %v5653_v55 = vadd.f32 %v5652_v35, %v5651_v19  ;;  %v5777_v35 = vand.u32 4294901760, %v5776_v48 }
 0x761   :  { %v5647_v32 = vadd.f32 %v5646_v56, %v5645_v12  ;;  %v5654_v47 = vrot.slane %v5653_v55, 1  ;;  %v6245_v12 = vand.u32 4294901760, %v6244_v6  ;;  %v6252_v56 = vand.u32 4294901760, %v6251_v8  ;;  %v30009_v6 = vld [vmem:[#allocation36_spill] sm:$0xff] }
 0x762   :  { %v29763_v48 = vand.u32 4294901760, %v30009_v6 }
 0x763   :  { %v5656_v3 = vmul.f32 0.125, %v5647_v32  ;;  %v5655_v62 = vadd.f32 %v5654_v47, %v5653_v55  ;;  %v5784_v55 = vand.u32 4294901760, %v5783_v20 }
 0x765   :  { %v5657_v22 = vmul.f32 %v5656_v3, %v5647_v32  ;;  %v5661_v54 = vsub.f32 %v5634_v4, %v5656_v3  ;;  %v24269_v3 = vpack.c.bf16 %v6252_v56, %v6245_v12 }
 0x767   :  { %v5658_v0 = vsub.f32 %v5655_v62, %v5657_v22  ;;  %v24251_v62 = vpack.c.bf16 %v5784_v55, %v5777_v35 }
 0x769   :  { %v5659_v50 = vmul.f32 0.14285715, %v5658_v0 }
 0x76b   :  { %v5660_v33 = vmax.f32 %v5659_v50, 0.0 }
 0x76d   :  { %v5662_v11 = vadd.f32 1e-12, %v5660_v33  ;;  %25525 = vrsqrt.f32 %v5660_v33  ;;  %vm5667_vm9 = vcmp.eq.f32.partialorder %v5660_v33, inf  ;;  %v5670_v51 = vand.u32 2147483648, %v5660_v33 }
 0x76e   :  { %vm5669_vm10 = vcmp.eq.f32.partialorder %v5660_v33, 0.0 }
 0x76f   :  { %25527 = vrsqrt.f32 %v5662_v11  ;;  %v24254_v11 = vpack.c.bf16 %v27860_v52, %v27850_v7  ;;  %v24278_v7 = vpack.c.bf16 %v6250_v28, %v6243_v17  ;;  %v30004_v17 = vld [vmem:[#allocation64_spill] sm:$0xff]  ;;  %v30005_v28 = vld [vmem:[#allocation35_spill] sm:$0xff] }
 0x777   :  { %v25526_v13 = vpop.eup %25525 }
 0x778   :  { %v5666_v5 = vmul.f32 %v25526_v13, %v5660_v33  ;;  %v24272_v13 = vpack.c.bf16 %v27855_v57, %v27845_v44  ;;  %v24260_v44 = vpack.c.bf16 %v5782_v37, %v5775_v43  ;;  %v30003_v57 = vld [vmem:[#allocation33_spill] sm:$0xff]  ;;  %v6642_v43 = vand.u32 4294901760, %v30004_v17 }
 0x779   :  { %v25528_v31 = vpop.eup %25527  ;;  %v6645_v52 = vand.u32 4294901760, %v30003_v57  ;;  %v7146_v37 = vand.u32 4294901760, %v30005_v28 }
 0x77a   :  { %v5664_v38 = vmul.f32 %v25528_v31, %v5661_v54  ;;  %v5668_v16 = vsel %vm5667_vm9, %v5660_v33, %v5666_v5  ;;  %v30006_v54 = vld [vmem:[#allocation70_spill] sm:$0xff] }
 0x77b   :  { %v5671_v61 = vsel %vm5669_vm10, %v5670_v51, %v5668_v16  ;;  %v27921_v5 = vpack.c.bf16 %v6645_v52, %v6642_v43  ;;  %v30007_v31 = vld [vmem:[#allocation34_spill] sm:$0xff] }
 0x77c   :  { %v5693_v39 = vsel %vm638_vm1, %v5664_v38, 0  ;;  %v5672_v34 = vadd.f32 1e-06, %v5671_v61  ;;  %v6651_v51 = vand.u32 4294901760, %v30007_v31  ;;  %v30008_v38 = vld [vmem:[#allocation66_spill] sm:$0xff]  ;;  %v30010_v61 = vld [vmem:[#allocation72_spill] sm:$0xff] }
 0x77d   :  { %v27871_v4 = vand.u32 4294901760, %v5693_v39  ;;  %v6648_v16 = vand.u32 4294901760, %v30008_v38  ;;  %v29762_v8 = vand.u32 4294901760, %v30010_v61 }
 0x77e   :  { %25529 = vlog2.f32 %v5672_v34  ;;  %v27955_v34 = vpop.xlane.xlu1 %3118 }
 0x77f   :  { %v5763_v19 = vsub.f32 %v5693_v39, %v27871_v4  ;;  %v27935_v20 = vpack.c.bf16 %v6651_v51, %v6648_v16  ;;  %v27944_v39 = vpack.c.bf16 %v29762_v8, %v29763_v48  ;;  %30011 = vst [vmem:[#allocation26_spill] sm:$0xff] %v27955_v34 }
 0x781   :  { %v5764_v32 = vand.u32 4294901760, %v5763_v19 }
 0x783   :  { %v5765_v47 = vsub.f32 %v5763_v19, %v5764_v32 }
 0x785   :  { %v5766_v22 = vand.u32 4294901760, %v5765_v47  ;;  %v6729_v47 = vsub.f32 %v30003_v57, %v6645_v52 }
 0x787   :  { %22272 = vmatmul.mubr.f32.vlgmr.msra.gmra.mrb[24].mxu1 %v5766_v22  ;;  %22314 = vmatmul.mubr.f32.vlgmr.msra.gmra.mrb[20].mxu0 %v5766_v22 }
 0x788   :  { %v25530_v0 = vpop.eup %25529  ;;  %24270 = vmatpush3.bf16.msra.mxu0 %v24269_v3  ;;  %24252 = vmatpush3.bf16.msra.mxu1 %v24251_v62  ;;  %v6722_v3 = vsub.f32 %v30004_v17, %v6642_v43 }
 0x789   :  { %v5674_v50 = vmul.f32 0.6931472, %v25530_v0  ;;  %22278 = vmatprep.mubr.msk.f32.mxu1 %vm25810_vm2, %v29793_v40  ;;  %22320 = vmatprep.mubr.msk.f32.mxu0 %vm25810_vm2, %v29793_v40  ;;  %v30012_v0 = vld [vmem:[#allocation32_spill] sm:$0xff] }
 0x78a   :  { %24271 = vmatprep.subr.bf16.mxu0 %v29791_v49  ;;  %24253 = vmatprep.subr.bf16.mxu1 %v29791_v49 }
 0x78b   :  { %v5675_v33 = vsel %vm673_vm6, %v5674_v50, 0.0 }
 0x78c   :  { %5676 = vadd.xlane.f32.xlu1 %v5675_v33 }
 0x78f   :  { %22279 = vmatmul.mubr.f32.vlgmr.msra.gmra.mrb[24].mxu1 %v27871_v4  ;;  %22321 = vmatmul.mubr.f32.vlgmr.msra.gmra.mrb[20].mxu0 %v27871_v4 }
 0x790   :  { %24273 = vmatpush3.bf16.msra.mxu0 %v24272_v13  ;;  %24255 = vmatpush3.bf16.msra.mxu1 %v24254_v11  ;;  %v6730_v13 = vand.u32 4294901760, %v6729_v47 }
 0x791   :  { %22285 = vmatprep.mubr.msk.f32.mxu1 %vm25810_vm2, %v29793_v40  ;;  %22327 = vmatprep.mubr.msk.f32.mxu0 %vm25810_vm2, %v29793_v40 }
 0x792   :  { %24274 = vmatprep.subr.bf16.mxu0 %v29791_v49  ;;  %24256 = vmatprep.subr.bf16.mxu1 %v29791_v49  ;;  %v6731_v57 = vsub.f32 %v6729_v47, %v6730_v13 }
 0x797   :  { %22286 = vmatmul.mubr.f32.vlgmr.msra.gmra.mrb[24].mxu1 %v5763_v19  ;;  %22328 = vmatmul.mubr.f32.vlgmr.msra.gmra.mrb[20].mxu0 %v5763_v19 }
 0x798   :  { %24276 = vmatpush3.bf16.msra.mxu0 %v27827_v27  ;;  %24258 = vmatpush3.bf16.msra.mxu1 %v27765_v26 }
 0x799   :  { %22292 = vmatprep.mubr.msk.f32.mxu1 %vm25810_vm2, %v29793_v40  ;;  %22334 = vmatprep.mubr.msk.f32.mxu0 %vm25810_vm2, %v29793_v40 }
 0x79a   :  { %24277 = vmatprep.subr.bf16.mxu0 %v29791_v49  ;;  %24259 = vmatprep.subr.bf16.mxu1 %v29791_v49 }
 0x79f   :  { %22293 = vmatmul.mubr.f32.vlgmr.msra.gmra.mrb[24].mxu1 %v5764_v32  ;;  %22335 = vmatmul.mubr.f32.vlgmr.msra.gmra.mrb[20].mxu0 %v5764_v32 }
 0x7a0   :  { %24279 = vmatpush3.bf16.msra.mxu0 %v24278_v7  ;;  %24261 = vmatpush3.bf16.msra.mxu1 %v24260_v44  ;;  %v6743_v44 = vsub.f32 %v30007_v31, %v6651_v51  ;;  %v6723_v7 = vand.u32 4294901760, %v6722_v3 }
 0x7a1   :  { %22299 = vmatprep.mubr.msk.f32.mxu1 %vm25810_vm2, %v29793_v40  ;;  %22341 = vmatprep.mubr.msk.f32.mxu0 %vm25810_vm2, %v29793_v40 }
 0x7a2   :  { %24280 = vmatprep.subr.bf16.mxu0 %v29791_v49  ;;  %24262 = vmatprep.subr.bf16.mxu1 %v29791_v49  ;;  %v6744_v52 = vand.u32 4294901760, %v6743_v44  ;;  %v6724_v17 = vsub.f32 %v6722_v3, %v6723_v7 }
 0x7a7   :  { %22300 = vmatmul.mubr.f32.vlgmr.msra.gmra.mrb[24].mxu1 %v27871_v4  ;;  %22342 = vmatmul.mubr.f32.vlgmr.msra.gmra.mrb[20].mxu0 %v27871_v4 }
 0x7a8   :  { %24282 = vmatpush3.bf16.msra.mxu0 %v27827_v27  ;;  %24264 = vmatpush3.bf16.msra.mxu1 %v27765_v26  ;;  %v7149_v27 = vand.u32 4294901760, %v30006_v54 }
 0x7a9   :  { %22306 = vmatprep.mubr.msk.f32.mxu1 %vm25810_vm2, %v29793_v40  ;;  %22348 = vmatprep.mubr.msk.f32.mxu0 %vm25810_vm2, %v29793_v40 }
 0x7aa   :  { %24283 = vmatprep.subr.bf16.mxu1 %v29791_v49  ;;  %24319 = vmatprep.subr.bf16.mxu0 %v29791_v49  ;;  %v27927_v26 = vpack.c.bf16 %v7149_v27, %v7146_v37 }
 0x7af   :  { %22307 = vmatmul.mubr.f32.vlgmr.msra.gmra.mrb[24].mxu1 %v27871_v4  ;;  %22349 = vmatmul.mubr.f32.vlgmr.msra.gmra.mrb[20].mxu0 %v27871_v4 }
 0x7b0   :  { %24285 = vmatpush3.bf16.msra.mxu1 %v27921_v5  ;;  %22359 = vmatprep.mubr.msk.f32.mxu1 %vm25810_vm2, %v29793_v40 }
 0x7b1   :  { %24286 = vmatprep.subr.bf16.mxu1 %v29791_v49  ;;  %24321 = vmatpush3.bf16.msra.mxu0 %v27927_v26 }
 0x7b2   :  { %24322 = vmatprep.subr.bf16.mxu0 %v29791_v49  ;;  %22425 = vmatprep.mubr.msk.f32.mxu0 %vm25810_vm2, %v29793_v40 }
 0x7b4   :  { %24288 = vmatpush3.bf16.msra.mxu1 %v27935_v20 }
 0x7b5   :  { %24289 = vmatprep.subr.bf16.mxu1 %v29791_v49  ;;  %24324 = vmatpush3.bf16.msra.mxu0 %v27944_v39 }
 0x7b6   :  { %24325 = vmatprep.subr.bf16.mxu0 %v29791_v49 }
 0x819   :  { %v5677_v4 = vpop.xlane.xlu1 %5676 }
 0x81a   :  { %v5678_v19 = vrot.slane %v5677_v4, 4 }
 0x81c   :  { %v5679_v12 = vadd.f32 %v5678_v19, %v5677_v4  ;;  %v6736_v4 = vsub.f32 %v30008_v38, %v6648_v16  ;;  %v24296_v16 = vpack.c.bf16 %v6729_v47, %v6722_v3  ;;  %v30013_v47 = vld [vmem:[#allocation37_spill] sm:$0xff] }
 0x81d   :  { %v7650_v3 = vand.u32 4294901760, %v30013_v47 }
 0x81e   :  { %v5680_v35 = vrot.slane %v5679_v12, 2  ;;  %v6737_v43 = vand.u32 4294901760, %v6736_v4 }
 0x820   :  { %v5681_v56 = vadd.f32 %v5680_v35, %v5679_v12 }
 0x822   :  { %v5682_v55 = vrot.slane %v5681_v56, 1 }
 0x824   :  { %v5683_v32 = vadd.f32 %v5682_v55, %v5681_v56 }
 0x826   :  { %25471 = vpush %v5683_v32  ;;  %v6732_v32 = vand.u32 4294901760, %v6731_v57 }
 0x882   :  { %v27959_v62 = vpop.f32.mrb[24].mxu1  ;;  %v6618_v22 = vpop.f32.mrb[20].mxu0 }
 0x883   :  { %v25121_v50 = vadd.f32 %v6618_v22, %v30012_v0  ;;  %v22308_v33 = vpop.f32.mrb[25].mxu1  ;;  %v22350_v11 = vpop.f32.mrb[21].mxu0  ;;  %v6745_v22 = vsub.f32 %v6743_v44, %v6744_v52  ;;  %v6725_v0 = vand.u32 4294901760, %v6724_v17  ;;  %v30017_v17 = vld [vmem:[#allocation68_spill] sm:$0xff] }
 0x884   :  { %v6738_v33 = vsub.f32 %v6736_v4, %v6737_v43 }
 0x885   :  { %v6622_v19 = vmax.f32 %v25121_v50, 0.0  ;;  %v6746_v31 = vand.u32 4294901760, %v6745_v22  ;;  %v24290_v48 = vpack.c.bf16 %v6732_v32, %v6725_v0  ;;  %v24299_v50 = vpack.c.bf16 %v6743_v44, %v6736_v4  ;;  %v30014_v44 = vld [vmem:[#allocation74_spill] sm:$0xff] }
 0x886   :  { %v6739_v51 = vand.u32 4294901760, %v6738_v33  ;;  %v7653_v4 = vand.u32 4294901760, %v30014_v44  ;;  %v30018_v32 = vand.u32 4294901760, %v30009_v6 }
 0x887   :  { %v6639_v12 = vsel %vm1622_vm3, %v6622_v19, 0 }
 0x888   :  { %v6710_v35 = vand.u32 4294901760, %v6639_v12  ;;  %v24293_v38 = vpack.c.bf16 %v6746_v31, %v6739_v51  ;;  %v27990_v19 = vpack.c.bf16 %v7653_v4, %v7650_v3  ;;  %v28018_v22 = vsub.f32 %v30009_v6, %v30018_v32 }
 0x88a   :  { %v6711_v56 = vsub.f32 %v6639_v12, %v6710_v35  ;;  %v30016_v12 = vld [vmem:[#allocation75_spill] sm:$0xff]  ;;  %v7241_v31 = vand.u32 4294901760, %v28018_v22 }
 0x88b   :  { %v7659_v57 = vand.u32 4294901760, %v30016_v12 }
 0x88c   :  { %v6712_v55 = vand.u32 4294901760, %v6711_v56 }
 0x88e   :  { %v6713_v11 = vsub.f32 %v6711_v56, %v6712_v55 }
 0x890   :  { %v6714_v8 = vand.u32 4294901760, %v6713_v11 }
 0x892   :  { %22360 = vmatmul.mubr.f32.vlgmr.msra.gmra.mrb[26].mxu1 %v6714_v8  ;;  %v24311_v8 = vpack.c.bf16 %v6744_v52, %v6737_v43 }
 0x893   :  { %24291 = vmatpush3.bf16.msra.mxu1 %v24290_v48  ;;  %22370 = vmatprep.mubr.msk.f32.mxu1 %vm25810_vm2, %v29793_v40  ;;  %v24308_v48 = vpack.c.bf16 %v6730_v13, %v6723_v7  ;;  %v30015_v13 = vld [vmem:[#allocation38_spill] sm:$0xff] }
 0x894   :  { %24292 = vmatprep.subr.bf16.mxu1 %v29791_v49  ;;  %v7656_v7 = vand.u32 4294901760, %v30015_v13 }
 0x896   :  { %v27995_v52 = vpack.c.bf16 %v7659_v57, %v7656_v7 }
 0x897   :  { %24294 = vmatpush3.bf16.msra.mxu1 %v24293_v38  ;;  %v28039_v38 = vsub.f32 %v30013_v47, %v7650_v3  ;;  %v28054_v47 = vsub.f32 %v30015_v13, %v7656_v7  ;;  %v28057_v3 = vsub.f32 %v30016_v12, %v7659_v57 }
 0x898   :  { %24295 = vmatprep.subr.bf16.mxu1 %v29791_v49 }
 0x899   :  { %v24371_v13 = vpack.c.bf16 %v28057_v3, %v28054_v47  ;;  %v7745_v12 = vand.u32 4294901760, %v28054_v47  ;;  %v7752_v57 = vand.u32 4294901760, %v28057_v3 }
 0x89a   :  { %22371 = vmatmul.mubr.f32.vlgmr.msra.gmra.mrb[26].mxu1 %v6710_v35 }
 0x89b   :  { %24297 = vmatpush3.bf16.msra.mxu1 %v24296_v16  ;;  %22381 = vmatprep.mubr.msk.f32.mxu1 %vm25810_vm2, %v29793_v40  ;;  %v28042_v16 = vsub.f32 %v30014_v44, %v7653_v4 }
 0x89c   :  { %24298 = vmatprep.subr.bf16.mxu1 %v29791_v49 }
 0x89d   :  { %v24368_v44 = vpack.c.bf16 %v28042_v16, %v28039_v38 }
 0x89f   :  { %24300 = vmatpush3.bf16.msra.mxu1 %v24299_v50 }
 0x8a0   :  { %24301 = vmatprep.subr.bf16.mxu1 %v29791_v49 }
 0x8a2   :  { %22382 = vmatmul.mubr.f32.vlgmr.msra.gmra.mrb[26].mxu1 %v6711_v56 }
 0x8a3   :  { %24303 = vmatpush3.bf16.msra.mxu1 %v27921_v5  ;;  %22392 = vmatprep.mubr.msk.f32.mxu1 %vm25810_vm2, %v29793_v40 }
 0x8a4   :  { %24304 = vmatprep.subr.bf16.mxu1 %v29791_v49 }
 0x8a7   :  { %24306 = vmatpush3.bf16.msra.mxu1 %v27935_v20 }
 0x8a8   :  { %24307 = vmatprep.subr.bf16.mxu1 %v29791_v49 }
 0x8aa   :  { %22393 = vmatmul.mubr.f32.vlgmr.msra.gmra.mrb[26].mxu1 %v6712_v55 }
 0x8ab   :  { %24309 = vmatpush3.bf16.msra.mxu1 %v24308_v48  ;;  %22403 = vmatprep.mubr.msk.f32.mxu1 %vm25810_vm2, %v29793_v40 }
 0x8ac   :  { %24310 = vmatprep.subr.bf16.mxu1 %v29791_v49 }
 0x8af   :  { %24312 = vmatpush3.bf16.msra.mxu1 %v24311_v8  ;;  %v7242_v8 = vsub.f32 %v28018_v22, %v7241_v31 }
 0x8b0   :  { %24313 = vmatprep.subr.bf16.mxu1 %v29791_v49 }
 0x8b2   :  { %22404 = vmatmul.mubr.f32.vlgmr.msra.gmra.mrb[26].mxu1 %v6710_v35 }
 0x8b3   :  { %24315 = vmatpush3.bf16.msra.mxu1 %v27921_v5  ;;  %22414 = vmatprep.mubr.msk.f32.mxu1 %vm25810_vm2, %v29793_v40  ;;  %v28006_v5 = vsub.f32 %v30005_v28, %v7146_v37  ;;  %v30019_v28 = vand.u32 4294901760, %v30010_v61 }
 0x8b4   :  { %24316 = vmatprep.subr.bf16.mxu1 %v29791_v49 }
 0x8b5   :  { %v7227_v55 = vand.u32 4294901760, %v28006_v5  ;;  %v28024_v37 = vsub.f32 %v30010_v61, %v30019_v28 }
 0x8b7   :  { %24318 = vmatpush3.bf16.msra.mxu1 %v27935_v20  ;;  %v28011_v20 = vsub.f32 %v30006_v54, %v7149_v27  ;;  %v7228_v11 = vsub.f32 %v28006_v5, %v7227_v55  ;;  %v7248_v51 = vand.u32 4294901760, %v28024_v37 }
 0x8b8   :  { %24355 = vmatprep.subr.bf16.mxu1 %v29791_v49 }
 0x8b9   :  { %v7234_v0 = vand.u32 4294901760, %v28011_v20  ;;  %v7229_v48 = vand.u32 4294901760, %v7228_v11 }
 0x8ba   :  { %22415 = vmatmul.mubr.f32.vlgmr.msra.gmra.mrb[26].mxu1 %v6710_v35 }
 0x8bb   :  { %24357 = vmatpush3.bf16.msra.mxu1 %v27990_v19  ;;  %22491 = vmatprep.mubr.msk.f32.mxu1 %vm25810_vm2, %v29793_v40  ;;  %v7235_v6 = vsub.f32 %v28011_v20, %v7234_v0 }
 0x8bc   :  { %24358 = vmatprep.subr.bf16.mxu1 %v29791_v49 }
 0x8bf   :  { %24360 = vmatpush3.bf16.msra.mxu1 %v27995_v52 }
 0x8c0   :  { %24367 = vmatprep.subr.bf16.mxu1 %v29791_v49 }
 0x98d   :  { %v7122_v35 = vpop.f32.mrb[26].mxu1 }
 0x98e   :  { %v25122_v43 = vadd.f32 %v7122_v35, %v30017_v17  ;;  %v22416_v56 = vpop.f32.mrb[27].mxu1  ;;  %v7236_v35 = vand.u32 4294901760, %v7235_v6  ;;  %v7249_v17 = vsub.f32 %v28024_v37, %v7248_v51  ;;  %v24332_v6 = vpack.c.bf16 %v28011_v20, %v28006_v5 }
 0x98f   :  { %v7243_v56 = vand.u32 4294901760, %v7242_v8  ;;  %v30020_v8 = vld [vmem:[#allocation41_spill] sm:$0xff] }
 0x990   :  { %v7126_v54 = vmax.f32 %v25122_v43, 0.0  ;;  %v7250_v32 = vand.u32 4294901760, %v7249_v17  ;;  %v24326_v28 = vpack.c.bf16 %v7236_v35, %v7229_v48  ;;  %v24383_v48 = vpack.c.bf16 %v7752_v57, %v7745_v12  ;;  %v30021_v17 = vld [vmem:[#allocation80_spill] sm:$0xff] }
 0x991   :  { %v8199_v35 = vand.u32 4294901760, %v30020_v8 }
 0x992   :  { %v7143_v27 = vsel %vm1622_vm3, %v7126_v54, 0  ;;  %v7731_v54 = vand.u32 4294901760, %v28039_v38  ;;  %v24329_v7 = vpack.c.bf16 %v7250_v32, %v7243_v56  ;;  %v24347_v56 = vpack.c.bf16 %v7248_v51, %v7241_v31 }
 0x993   :  { %v28027_v33 = vand.u32 4294901760, %v7143_v27 }
 0x994   :  { %v7732_v32 = vsub.f32 %v28039_v38, %v7731_v54  ;;  %v30023_v38 = vld [vmem:[#allocation79_spill] sm:$0xff] }
 0x995   :  { %v7215_v61 = vsub.f32 %v7143_v27, %v28027_v33  ;;  %v7738_v27 = vand.u32 4294901760, %v28042_v16 }
 0x996   :  { %v7733_v20 = vand.u32 4294901760, %v7732_v32 }
 0x997   :  { %v28044_v50 = vand.u32 4294901760, %v7215_v61  ;;  %v24380_v11 = vpack.c.bf16 %v7738_v27, %v7731_v54  ;;  %v7739_v5 = vsub.f32 %v28042_v16, %v7738_v27  ;;  %v8670_v16 = vand.u32 4294901760, %v30023_v38 }
 0x999   :  { %v7217_v43 = vsub.f32 %v7215_v61, %v28044_v50 }
 0x99b   :  { %v7218_v4 = vand.u32 4294901760, %v7217_v43  ;;  %v8202_v43 = vand.u32 4294901760, %v30021_v17 }
 0x99d   :  { %22426 = vmatmul.mubr.f32.vlgmr.msra.gmra.mrb[22].mxu0 %v7218_v4  ;;  %22492 = vmatmul.mubr.f32.vlgmr.msra.gmra.mrb[28].mxu1 %v7218_v4  ;;  %v28092_v4 = vpack.c.bf16 %v8202_v43, %v8199_v35 }
 0x99e   :  { %24327 = vmatpush3.bf16.msra.mxu0 %v24326_v28  ;;  %24369 = vmatpush3.bf16.msra.mxu1 %v24368_v44  ;;  %v24335_v44 = vpack.c.bf16 %v28024_v37, %v28018_v22  ;;  %v7753_v28 = vsub.f32 %v28057_v3, %v7752_v57 }
 0x99f   :  { %24328 = vmatprep.subr.bf16.mxu0 %v29791_v49  ;;  %24370 = vmatprep.subr.bf16.mxu1 %v29791_v49 }
 0x9a0   :  { %22513 = vmatprep.mubr.msk.f32.mxu1 %vm25810_vm2, %v29793_v40  ;;  %22436 = vmatprep.mubr.msk.f32.mxu0 %vm25810_vm2, %v29793_v40  ;;  %v7754_v37 = vand.u32 4294901760, %v7753_v28 }
 0x9a2   :  { %24330 = vmatpush3.bf16.msra.mxu0 %v24329_v7  ;;  %24372 = vmatpush3.bf16.msra.mxu1 %v24371_v13 }
 0x9a3   :  { %24331 = vmatprep.subr.bf16.mxu0 %v29791_v49  ;;  %24379 = vmatprep.subr.bf16.mxu1 %v29791_v49 }
 0x9a5   :  { %22514 = vmatmul.mubr.f32.vlgmr.msra.gmra.mrb[30].mxu1 %v7215_v61  ;;  %22437 = vmatmul.mubr.f32.vlgmr.msra.gmra.mrb[22].mxu0 %v28027_v33 }
 0x9a6   :  { %24333 = vmatpush3.bf16.msra.mxu0 %v24332_v6  ;;  %24381 = vmatpush3.bf16.msra.mxu1 %v24380_v11 }
 0x9a7   :  { %24334 = vmatprep.subr.bf16.mxu0 %v29791_v49  ;;  %24382 = vmatprep.subr.bf16.mxu1 %v29791_v49 }
 0x9a8   :  { %22535 = vmatprep.mubr.msk.f32.mxu1 %vm25810_vm2, %v29793_v40  ;;  %22447 = vmatprep.mubr.msk.f32.mxu0 %vm25810_vm2, %v29793_v40 }
 0x9aa   :  { %24336 = vmatpush3.bf16.msra.mxu0 %v24335_v44  ;;  %24384 = vmatpush3.bf16.msra.mxu1 %v24383_v48 }
 0x9ab   :  { %24337 = vmatprep.subr.bf16.mxu0 %v29791_v49  ;;  %24391 = vmatprep.subr.bf16.mxu1 %v29791_v49 }
 0x9ad   :  { %22536 = vmatmul.mubr.f32.vlgmr.msra.gmra.mrb[32].mxu1 %v28027_v33  ;;  %22448 = vmatmul.mubr.f32.vlgmr.msra.gmra.mrb[22].mxu0 %v7215_v61  ;;  %v24344_v61 = vpack.c.bf16 %v7234_v0, %v7227_v55  ;;  %v7746_v55 = vsub.f32 %v28054_v47, %v7745_v12  ;;  %v7740_v0 = vand.u32 4294901760, %v7739_v5  ;;  %v30024_v12 = vld [vmem:[#allocation39_spill] sm:$0xff] }
 0x9ae   :  { %24339 = vmatpush3.bf16.msra.mxu0 %v27927_v26  ;;  %22458 = vmatprep.mubr.msk.f32.mxu0 %vm25810_vm2, %v29793_v40 }
 0x9af   :  { %24340 = vmatprep.subr.bf16.mxu0 %v29791_v49  ;;  %24393 = vmatpush3.bf16.msra.mxu1 %v28092_v4  ;;  %v7747_v22 = vand.u32 4294901760, %v7746_v55  ;;  %v24362_v31 = vpack.c.bf16 %v7740_v0, %v7733_v20 }
 0x9b0   :  { %22553 = vmatprep.mubr.msk.f32.mxu1 %vm25810_vm2, %v29793_v40  ;;  %24394 = vmatprep.subr.bf16.mxu1 %v29791_v49 }
 0x9b1   :  { %v24365_v51 = vpack.c.bf16 %v7754_v37, %v7747_v22 }
 0x9b2   :  { %24342 = vmatpush3.bf16.msra.mxu0 %v27944_v39 }
 0x9b3   :  { %24343 = vmatprep.subr.bf16.mxu0 %v29791_v49 }
 0x9b5   :  { %22459 = vmatmul.mubr.f32.vlgmr.msra.gmra.mrb[22].mxu0 %v28044_v50 }
 0x9b6   :  { %24345 = vmatpush3.bf16.msra.mxu0 %v24344_v61  ;;  %22469 = vmatprep.mubr.msk.f32.mxu0 %vm25810_vm2, %v29793_v40 }
 0x9b7   :  { %24346 = vmatprep.subr.bf16.mxu0 %v29791_v49 }
 0x9ba   :  { %24348 = vmatpush3.bf16.msra.mxu0 %v24347_v56  ;;  %v7632_v56 = vstv %s20688_s24 }
 0x9bb   :  { %24349 = vmatprep.subr.bf16.mxu0 %v29791_v49 }
 0x9bd   :  { %22470 = vmatmul.mubr.f32.vlgmr.msra.gmra.mrb[22].mxu0 %v28027_v33 }
 0x9be   :  { %24351 = vmatpush3.bf16.msra.mxu0 %v27927_v26  ;;  %22480 = vmatprep.mubr.msk.f32.mxu0 %vm25810_vm2, %v29793_v40  ;;  %v30022_v26 = vld [vmem:[#allocation40_spill] sm:$0xff] }
 0x9bf   :  { %24352 = vmatprep.subr.bf16.mxu0 %v29791_v49 }
 0x9c2   :  { %24354 = vmatpush3.bf16.msra.mxu0 %v27944_v39  ;;  %v8667_v39 = vand.u32 4294901760, %v30022_v26 }
 0x9c3   :  { %24361 = vmatprep.subr.bf16.mxu0 %v29791_v49 }
 0x9c4   :  { %v28154_v47 = vpack.c.bf16 %v8670_v16, %v8667_v39 }
 0x9c5   :  { %22481 = vmatmul.mubr.f32.vlgmr.msra.gmra.mrb[22].mxu0 %v28027_v33 }
 0x9c6   :  { %24363 = vmatpush3.bf16.msra.mxu0 %v24362_v31  ;;  %22502 = vmatprep.mubr.msk.f32.mxu0 %vm25810_vm2, %v29793_v40 }
 0x9c7   :  { %24364 = vmatprep.subr.bf16.mxu0 %v29791_v49 }
 0x9ca   :  { %24366 = vmatpush3.bf16.msra.mxu0 %v24365_v51 }
 0x9cb   :  { %24373 = vmatprep.subr.bf16.mxu0 %v29791_v49 }
 0x9cd   :  { %22503 = vmatmul.mubr.f32.vlgmr.msra.gmra.mrb[24].mxu0 %v28027_v33 }
 0x9ce   :  { %24375 = vmatpush3.bf16.msra.mxu0 %v27990_v19  ;;  %22524 = vmatprep.mubr.msk.f32.mxu0 %vm25810_vm2, %v29793_v40 }
 0x9cf   :  { %24376 = vmatprep.subr.bf16.mxu0 %v29791_v49 }
 0x9d2   :  { %24378 = vmatpush3.bf16.msra.mxu0 %v27995_v52 }
 0x9d3   :  { %24385 = vmatprep.subr.bf16.mxu0 %v29791_v49 }
 0x9d5   :  { %22525 = vmatmul.mubr.f32.vlgmr.msra.gmra.mrb[26].mxu0 %v28044_v50 }
 0x9d6   :  { %24387 = vmatpush3.bf16.msra.mxu0 %v27990_v19  ;;  %22546 = vmatprep.mubr.msk.f32.mxu0 %vm25810_vm2, %v29793_v40 }
 0x9d7   :  { %24388 = vmatprep.subr.bf16.mxu0 %v29791_v49 }
 0x9da   :  { %24390 = vmatpush3.bf16.msra.mxu0 %v27995_v52 }
 0x9db   :  { %24409 = vmatprep.subr.bf16.mxu0 %v29791_v49 }
 0x9dd   :  { %22547 = vmatmul.mubr.f32.vlgmr.msra.gmra.mrb[28].mxu0 %v28027_v33  ;;  %v30025_v33 = vld [vmem:[#allocation77_spill] sm:$0xff] }
 0x9de   :  { %24411 = vmatpush3.bf16.msra.mxu0 %v28154_v47  ;;  %22595 = vmatprep.mubr.msk.f32.mxu0 %vm25810_vm2, %v29793_v40 }
 0x9df   :  { %24412 = vmatprep.subr.bf16.mxu0 %v29791_v49 }
 0xa70   :  { %v7724_v19 = vpop.f32.mrb[28].mxu1 }
 0xa71   :  { %v22493_v50 = vpop.f32.mrb[29].mxu1  ;;  %v7725_v11 = vadd.f32 %v7724_v19, %v30025_v33 }
 0xa78   :  { %v7895_v3 = vpop.f32.mrb[30].mxu1 }
 0xa79   :  { %v22515_v54 = vpop.f32.mrb[31].mxu1 }
 0xa80   :  { %v8055_v27 = vpop.f32.mrb[32].mxu1 }
 0xa81   :  { %v22537_v13 = vpop.f32.mrb[33].mxu1 }
 0xa98   :  { %v7626_v7 = vpop.f32.mrb[22].mxu0 }
 0xa99   :  { %v25123_v52 = vadd.f32 %v7626_v7, %v30024_v12  ;;  %v22482_v57 = vpop.f32.mrb[23].mxu0 }
 0xa9b   :  { %25531 = vtanh.f32 %v25123_v52 }
 0xaa0   :  { %v7815_v6 = vpop.f32.mrb[24].mxu0 }
 0xaa1   :  { %v7816_v48 = vadd.f32 %v7815_v6, %v7725_v11  ;;  %v22504_v44 = vpop.f32.mrb[25].mxu0 }
 0xaa3   :  { %v7896_v61 = vadd.f32 %v7895_v3, %v7816_v48 }
 0xaa5   :  { %v25532_v32 = vpop.eup %25531 }
 0xaa6   :  { %v7633_v5 = vmul.f32 %v25532_v32, %v7632_v56 }
 0xaa8   :  { %v7972_v20 = vpop.f32.mrb[26].mxu0  ;;  %v8140_v55 = vsel %vm638_vm1, %v7633_v5, 0.0  ;;  %v8134_v0 = vmul.f32 1.442695, %v7633_v5 }
 0xaa9   :  { %v7973_v28 = vadd.f32 %v7972_v20, %v7896_v61  ;;  %v22526_v22 = vpop.f32.mrb[27].mxu0  ;;  %8141 = vadd.xlane.f32.xlu0 %v8140_v55 }
 0xaaa   :  { %25533 = vpow2.f32 %v8134_v0 }
 0xaab   :  { %v8056_v37 = vadd.f32 %v8055_v27, %v7973_v28 }
 0xab0   :  { %v8130_v31 = vpop.f32.mrb[28].mxu0 }
 0xab1   :  { %v8131_v51 = vadd.f32 %v8130_v31, %v8056_v37  ;;  %v22548_v50 = vpop.f32.mrb[29].mxu0  ;;  %v28172_v37 = vsub.f32 %v30022_v26, %v8667_v39  ;;  %v28177_v31 = vsub.f32 %v30020_v8, %v8199_v35 }
 0xab2   :  { %v28187_v50 = vsub.f32 %v30021_v17, %v8202_v43 }
 0xab3   :  { %v8278_v26 = vand.u32 4294901760, %v28177_v31 }
 0xab4   :  { %v25534_v19 = vpop.eup %25533  ;;  %v8285_v8 = vand.u32 4294901760, %v28187_v50 }
 0xab5   :  { %v8136_v54 = vmul.f32 %v25534_v19, %v27959_v62  ;;  %v8279_v43 = vsub.f32 %v28177_v31, %v8278_v26 }
 0xab7   :  { %v8137_v13 = vadd.f32 %v8136_v54, %v8131_v51  ;;  %v28182_v51 = vsub.f32 %v30023_v38, %v8670_v16  ;;  %v8746_v54 = vand.u32 4294901760, %v28172_v37 }
 0xab9   :  { %v8144_v3 = vsel %vm638_vm1, %v8137_v13, 0.0  ;;  %v8151_v7 = vmul.f32 %v8137_v13, %v8137_v13  ;;  %v8753_v39 = vand.u32 4294901760, %v28182_v51  ;;  %v8747_v17 = vsub.f32 %v28172_v37, %v8746_v54 }
 0xaba   :  { %v8145_v12 = vrot.slane %v8144_v3, 4 }
 0xabb   :  { %v8152_v52 = vsel %vm638_vm1, %v8151_v7, 0.0 }
 0xabc   :  { %v8146_v57 = vadd.f32 %v8145_v12, %v8144_v3  ;;  %v8153_v33 = vrot.slane %v8152_v52, 4 }
 0xabe   :  { %v8147_v11 = vrot.slane %v8146_v57, 2  ;;  %v8154_v6 = vadd.f32 %v8153_v33, %v8152_v52  ;;  %v8286_v33 = vsub.f32 %v28187_v50, %v8285_v8 }
 0xac0   :  { %v8148_v48 = vadd.f32 %v8147_v11, %v8146_v57  ;;  %v8155_v44 = vrot.slane %v8154_v6, 2  ;;  %v8754_v57 = vsub.f32 %v28182_v51, %v8753_v39 }
 0xac2   :  { %v8149_v27 = vrot.slane %v8148_v48, 1  ;;  %v8156_v61 = vadd.f32 %v8155_v44, %v8154_v6  ;;  %v8748_v44 = vand.u32 4294901760, %v8747_v17 }
 0xac4   :  { %v8150_v56 = vadd.f32 %v8149_v27, %v8148_v48  ;;  %v8157_v32 = vrot.slane %v8156_v61, 1  ;;  %v8280_v27 = vand.u32 4294901760, %v8279_v43 }
 0xac6   :  { %v8159_v5 = vmul.f32 0.125, %v8150_v56  ;;  %v8158_v20 = vadd.f32 %v8157_v32, %v8156_v61  ;;  %v8755_v61 = vand.u32 4294901760, %v8754_v57 }
 0xac8   :  { %v8160_v62 = vmul.f32 %v8159_v5, %v8150_v56  ;;  %v8164_v35 = vsub.f32 %v8137_v13, %v8159_v5  ;;  %v8287_v56 = vand.u32 4294901760, %v8286_v33  ;;  %v30036_v33 = vld [vmem:[#allocation90_spill] sm:$0xff] }
 0xaca   :  { %v8161_v55 = vsub.f32 %v8158_v20, %v8160_v62  ;;  %v24413_v20 = vpack.c.bf16 %v8755_v61, %v8748_v44  ;;  %v24395_v62 = vpack.c.bf16 %v8287_v56, %v8280_v27 }
 0xacc   :  { %v8162_v0 = vmul.f32 0.14285715, %v8161_v55 }
 0xace   :  { %v8163_v28 = vmax.f32 %v8162_v0, 0.0 }
 0xad0   :  { %v8165_v22 = vadd.f32 1e-12, %v8163_v28  ;;  %25535 = vrsqrt.f32 %v8163_v28  ;;  %vm8170_vm11 = vcmp.eq.f32.partialorder %v8163_v28, inf  ;;  %v8173_v38 = vand.u32 2147483648, %v8163_v28 }
 0xad1   :  { %vm8172_vm12 = vcmp.eq.f32.partialorder %v8163_v28, 0.0 }
 0xad2   :  { %25537 = vrsqrt.f32 %v8165_v22 }
 0xada   :  { %v25536_v19 = vpop.eup %25535 }
 0xadb   :  { %v8169_v3 = vmul.f32 %v25536_v19, %v8163_v28  ;;  %v24398_v19 = vpack.c.bf16 %v28187_v50, %v28177_v31  ;;  %v24422_v31 = vpack.c.bf16 %v8753_v39, %v8746_v54  ;;  %v30027_v54 = vld [vmem:[#allocation82_spill] sm:$0xff] }
 0xadc   :  { %v25538_v7 = vpop.eup %25537 }
 0xadd   :  { %v8167_v16 = vmul.f32 %v25538_v7, %v8164_v35  ;;  %v8171_v12 = vsel %vm8170_vm11, %v8163_v28, %v8169_v3  ;;  %v24416_v35 = vpack.c.bf16 %v28182_v51, %v28172_v37  ;;  %v24404_v37 = vpack.c.bf16 %v8285_v8, %v8278_v26  ;;  %v30026_v51 = vld [vmem:[#allocation43_spill] sm:$0xff]  ;;  %v30028_v8 = vld [vmem:[#allocation45_spill] sm:$0xff] }
 0xade   :  { %v8174_v52 = vsel %vm8172_vm12, %v8173_v38, %v8171_v12  ;;  %v9148_v50 = vand.u32 4294901760, %v30026_v51  ;;  %v9145_v26 = vand.u32 4294901760, %v30027_v54  ;;  %v30030_v3 = vld [vmem:[#allocation87_spill] sm:$0xff]  ;;  %v30032_v38 = vld [vmem:[#allocation44_spill] sm:$0xff] }
 0xadf   :  { %v8196_v11 = vsel %vm638_vm1, %v8167_v16, 0  ;;  %v8175_v6 = vadd.f32 1e-06, %v8174_v52  ;;  %v9154_v16 = vand.u32 4294901760, %v30032_v38  ;;  %v30033_v12 = vld [vmem:[#allocation84_spill] sm:$0xff]  ;;  %v30034_v52 = vld [vmem:[#allocation46_spill] sm:$0xff] }
 0xae0   :  { %v28198_v13 = vand.u32 4294901760, %v8196_v11  ;;  %v28246_v39 = vpack.c.bf16 %v9148_v50, %v9145_v26  ;;  %v9151_v17 = vand.u32 4294901760, %v30033_v12  ;;  %v30035_v57 = vand.u32 4294901760, %v30034_v52 }
 0xae1   :  { %25539 = vlog2.f32 %v8175_v6 }
 0xae2   :  { %v8266_v48 = vsub.f32 %v8196_v11, %v28198_v13  ;;  %v28258_v43 = vpack.c.bf16 %v9154_v16, %v9151_v17  ;;  %v30037_v11 = vand.u32 4294901760, %v30036_v33 }
 0xae4   :  { %v8267_v32 = vand.u32 4294901760, %v8266_v48  ;;  %v28267_v6 = vpack.c.bf16 %v30037_v11, %v30035_v57 }
 0xae6   :  { %v8268_v5 = vsub.f32 %v8266_v48, %v8267_v32 }
 0xae8   :  { %v8269_v55 = vand.u32 4294901760, %v8268_v5  ;;  %v9232_v5 = vsub.f32 %v30026_v51, %v9148_v50 }
 0xaea   :  { %22554 = vmatmul.mubr.f32.vlgmr.msra.gmra.mrb[34].mxu1 %v8269_v55  ;;  %22596 = vmatmul.mubr.f32.vlgmr.msra.gmra.mrb[30].mxu0 %v8269_v55 }
 0xaeb   :  { %v25540_v0 = vpop.eup %25539  ;;  %24414 = vmatpush3.bf16.msra.mxu0 %v24413_v20  ;;  %24396 = vmatpush3.bf16.msra.mxu1 %v24395_v62  ;;  %v9225_v20 = vsub.f32 %v30027_v54, %v9145_v26 }
 0xaec   :  { %v8177_v28 = vmul.f32 0.6931472, %v25540_v0  ;;  %22560 = vmatprep.mubr.msk.f32.mxu1 %vm25810_vm2, %v29793_v40  ;;  %22602 = vmatprep.mubr.msk.f32.mxu0 %vm25810_vm2, %v29793_v40  ;;  %v30038_v0 = vld [vmem:[#allocation42_spill] sm:$0xff] }
 0xaed   :  { %24415 = vmatprep.subr.bf16.mxu0 %v29791_v49  ;;  %24397 = vmatprep.subr.bf16.mxu1 %v29791_v49 }
 0xaee   :  { %v8178_v22 = vsel %vm673_vm6, %v8177_v28, 0.0 }
 0xaef   :  { %8179 = vadd.xlane.f32.xlu1 %v8178_v22 }
 0xaf2   :  { %22561 = vmatmul.mubr.f32.vlgmr.msra.gmra.mrb[34].mxu1 %v28198_v13  ;;  %22603 = vmatmul.mubr.f32.vlgmr.msra.gmra.mrb[30].mxu0 %v28198_v13 }
 0xaf3   :  { %24417 = vmatpush3.bf16.msra.mxu0 %v24416_v35  ;;  %24399 = vmatpush3.bf16.msra.mxu1 %v24398_v19  ;;  %v9233_v35 = vand.u32 4294901760, %v9232_v5 }
 0xaf4   :  { %22567 = vmatprep.mubr.msk.f32.mxu1 %vm25810_vm2, %v29793_v40  ;;  %22609 = vmatprep.mubr.msk.f32.mxu0 %vm25810_vm2, %v29793_v40 }
 0xaf5   :  { %24418 = vmatprep.subr.bf16.mxu0 %v29791_v49  ;;  %24400 = vmatprep.subr.bf16.mxu1 %v29791_v49  ;;  %v9234_v51 = vsub.f32 %v9232_v5, %v9233_v35 }
 0xaf7   :  { %v9235_v33 = vand.u32 4294901760, %v9234_v51  ;;  %v30049_v51 = vld [vmem:[#allocation100_spill] sm:$0xff] }
 0xafa   :  { %22568 = vmatmul.mubr.f32.vlgmr.msra.gmra.mrb[34].mxu1 %v8266_v48  ;;  %22610 = vmatmul.mubr.f32.vlgmr.msra.gmra.mrb[30].mxu0 %v8266_v48 }
 0xafb   :  { %24420 = vmatpush3.bf16.msra.mxu0 %v28154_v47  ;;  %24402 = vmatpush3.bf16.msra.mxu1 %v28092_v4 }
 0xafc   :  { %22574 = vmatprep.mubr.msk.f32.mxu1 %vm25810_vm2, %v29793_v40  ;;  %22616 = vmatprep.mubr.msk.f32.mxu0 %vm25810_vm2, %v29793_v40 }
 0xafd   :  { %24421 = vmatprep.subr.bf16.mxu0 %v29791_v49  ;;  %24403 = vmatprep.subr.bf16.mxu1 %v29791_v49 }
 0xb02   :  { %22575 = vmatmul.mubr.f32.vlgmr.msra.gmra.mrb[34].mxu1 %v8267_v32  ;;  %22617 = vmatmul.mubr.f32.vlgmr.msra.gmra.mrb[30].mxu0 %v8267_v32 }
 0xb03   :  { %24423 = vmatpush3.bf16.msra.mxu0 %v24422_v31  ;;  %24405 = vmatpush3.bf16.msra.mxu1 %v24404_v37  ;;  %v9246_v37 = vsub.f32 %v30032_v38, %v9154_v16  ;;  %v9226_v31 = vand.u32 4294901760, %v9225_v20 }
 0xb04   :  { %22581 = vmatprep.mubr.msk.f32.mxu1 %vm25810_vm2, %v29793_v40  ;;  %22623 = vmatprep.mubr.msk.f32.mxu0 %vm25810_vm2, %v29793_v40 }
 0xb05   :  { %24424 = vmatprep.subr.bf16.mxu0 %v29791_v49  ;;  %24406 = vmatprep.subr.bf16.mxu1 %v29791_v49  ;;  %v9247_v50 = vand.u32 4294901760, %v9246_v37  ;;  %v9227_v54 = vsub.f32 %v9225_v20, %v9226_v31 }
 0xb07   :  { %v9248_v11 = vsub.f32 %v9246_v37, %v9247_v50 }
 0xb09   :  { %v9249_v38 = vand.u32 4294901760, %v9248_v11 }
 0xb0a   :  { %22582 = vmatmul.mubr.f32.vlgmr.msra.gmra.mrb[34].mxu1 %v28198_v13  ;;  %22624 = vmatmul.mubr.f32.vlgmr.msra.gmra.mrb[30].mxu0 %v28198_v13 }
 0xb0b   :  { %24426 = vmatpush3.bf16.msra.mxu0 %v28154_v47  ;;  %24408 = vmatpush3.bf16.msra.mxu1 %v28092_v4  ;;  %v30029_v47 = vand.u32 4294901760, %v30028_v8  ;;  %v30031_v4 = vand.u32 4294901760, %v30030_v3  ;;  %v9239_v8 = vsub.f32 %v30033_v12, %v9151_v17  ;;  %v24440_v17 = vpack.c.bf16 %v9232_v5, %v9225_v20  ;;  %v30039_v20 = vld [vmem:[#allocation47_spill] sm:$0xff] }
 0xb0c   :  { %22588 = vmatprep.mubr.msk.f32.mxu1 %vm25810_vm2, %v29793_v40  ;;  %22630 = vmatprep.mubr.msk.f32.mxu0 %vm25810_vm2, %v29793_v40 }
 0xb0d   :  { %24427 = vmatprep.subr.bf16.mxu1 %v29791_v49  ;;  %24463 = vmatprep.subr.bf16.mxu0 %v29791_v49  ;;  %v28252_v7 = vpack.c.bf16 %v30031_v4, %v30029_v47  ;;  %v9240_v26 = vand.u32 4294901760, %v9239_v8 }
 0xb0f   :  { %v24455_v5 = vpack.c.bf16 %v9247_v50, %v9240_v26  ;;  %v9744_v50 = vand.u32 4294901760, %v30049_v51 }
 0xb12   :  { %22589 = vmatmul.mubr.f32.vlgmr.msra.gmra.mrb[34].mxu1 %v28198_v13  ;;  %22631 = vmatmul.mubr.f32.vlgmr.msra.gmra.mrb[30].mxu0 %v28198_v13 }
 0xb13   :  { %24429 = vmatpush3.bf16.msra.mxu1 %v28246_v39  ;;  %22641 = vmatprep.mubr.msk.f32.mxu1 %vm25810_vm2, %v29793_v40 }
 0xb14   :  { %24430 = vmatprep.subr.bf16.mxu1 %v29791_v49  ;;  %24465 = vmatpush3.bf16.msra.mxu0 %v28252_v7 }
 0xb15   :  { %24466 = vmatprep.subr.bf16.mxu0 %v29791_v49  ;;  %22707 = vmatprep.mubr.msk.f32.mxu0 %vm25810_vm2, %v29793_v40 }
 0xb17   :  { %24432 = vmatpush3.bf16.msra.mxu1 %v28258_v43 }
 0xb18   :  { %24433 = vmatprep.subr.bf16.mxu1 %v29791_v49  ;;  %24468 = vmatpush3.bf16.msra.mxu0 %v28267_v6 }
 0xb19   :  { %24469 = vmatprep.subr.bf16.mxu0 %v29791_v49 }
 0xb7c   :  { %v8180_v13 = vpop.xlane.xlu1 %8179 }
 0xb7d   :  { %v8181_v48 = vrot.slane %v8180_v13, 4 }
 0xb7f   :  { %v8182_v44 = vadd.f32 %v8181_v48, %v8180_v13  ;;  %v9228_v13 = vand.u32 4294901760, %v9227_v54  ;;  %v9241_v48 = vsub.f32 %v9239_v8, %v9240_v26  ;;  %v30050_v26 = vld [vmem:[#allocation101_spill] sm:$0xff] }
 0xb81   :  { %v8183_v27 = vrot.slane %v8182_v44, 2  ;;  %v9242_v16 = vand.u32 4294901760, %v9241_v48 }
 0xb83   :  { %v8184_v61 = vadd.f32 %v8183_v27, %v8182_v44  ;;  %v24437_v12 = vpack.c.bf16 %v9249_v38, %v9242_v16 }
 0xb85   :  { %v8185_v56 = vrot.slane %v8184_v61, 1 }
 0xb87   :  { %v8186_v32 = vadd.f32 %v8185_v56, %v8184_v61  ;;  %v24434_v61 = vpack.c.bf16 %v9235_v33, %v9228_v13  ;;  %v24443_v56 = vpack.c.bf16 %v9246_v37, %v9239_v8  ;;  %v30045_v37 = vld [vmem:[#allocation93_spill] sm:$0xff]  ;;  %v9745_v33 = vsub.f32 %v30049_v51, %v9744_v50 }
 0xb89   :  { %25473 = vpush %v8186_v32  ;;  %v24452_v32 = vpack.c.bf16 %v9233_v35, %v9226_v31 }
 0xbe5   :  { %v28280_v62 = vpop.f32.mrb[34].mxu1  ;;  %v9121_v55 = vpop.f32.mrb[30].mxu0 }
 0xbe6   :  { %v25124_v28 = vadd.f32 %v9121_v55, %v30038_v0  ;;  %v22590_v22 = vpop.f32.mrb[35].mxu1  ;;  %v22632_v19 = vpop.f32.mrb[31].mxu0  ;;  %v30040_v55 = vand.u32 4294901760, %v30039_v20  ;;  %v30041_v0 = vld [vmem:[#allocation92_spill] sm:$0xff] }
 0xbe7   :  { %v30043_v19 = vld [vmem:[#allocation48_spill] sm:$0xff] }
 0xbe8   :  { %v9125_v47 = vmax.f32 %v25124_v28, 0.0  ;;  %v30042_v28 = vand.u32 4294901760, %v30041_v0  ;;  %v30044_v35 = vand.u32 4294901760, %v30043_v19 }
 0xbea   :  { %v9142_v3 = vsel %vm1622_vm3, %v9125_v47, 0  ;;  %v28312_v22 = vpack.c.bf16 %v30042_v28, %v30040_v55  ;;  %v30048_v47 = vld [vmem:[#allocation89_spill] sm:$0xff]  ;;  %v30054_v55 = vld [vmem:[#allocation103_spill] sm:$0xff] }
 0xbeb   :  { %v9213_v4 = vand.u32 4294901760, %v9142_v3  ;;  %v10255_v0 = vand.u32 4294901760, %v30054_v55 }
 0xbed   :  { %v9214_v52 = vsub.f32 %v9142_v3, %v9213_v4  ;;  %v9737_v3 = vand.u32 4294901760, %v30048_v47 }
 0xbef   :  { %v9215_v57 = vand.u32 4294901760, %v9214_v52  ;;  %v9738_v54 = vsub.f32 %v30048_v47, %v9737_v3 }
 0xbf1   :  { %v9216_v44 = vsub.f32 %v9214_v52, %v9215_v57  ;;  %v9739_v11 = vand.u32 4294901760, %v9738_v54 }
 0xbf3   :  { %v9217_v27 = vand.u32 4294901760, %v9216_v44  ;;  %v9746_v44 = vand.u32 4294901760, %v9745_v33 }
 0xbf5   :  { %22642 = vmatmul.mubr.f32.vlgmr.msra.gmra.mrb[36].mxu1 %v9217_v27 }
 0xbf6   :  { %24435 = vmatpush3.bf16.msra.mxu1 %v24434_v61  ;;  %22652 = vmatprep.mubr.msk.f32.mxu1 %vm25810_vm2, %v29793_v40 }
 0xbf7   :  { %24436 = vmatprep.subr.bf16.mxu1 %v29791_v49 }
 0xbfa   :  { %24438 = vmatpush3.bf16.msra.mxu1 %v24437_v12  ;;  %v30051_v12 = vld [vmem:[#allocation96_spill] sm:$0xff] }
 0xbfb   :  { %24439 = vmatprep.subr.bf16.mxu1 %v29791_v49 }
 0xbfd   :  { %22653 = vmatmul.mubr.f32.vlgmr.msra.gmra.mrb[36].mxu1 %v9213_v4 }
 0xbfe   :  { %24441 = vmatpush3.bf16.msra.mxu1 %v24440_v17  ;;  %22663 = vmatprep.mubr.msk.f32.mxu1 %vm25810_vm2, %v29793_v40  ;;  %v10234_v17 = vand.u32 4294901760, %v30051_v12 }
 0xbff   :  { %24442 = vmatprep.subr.bf16.mxu1 %v29791_v49 }
 0xc02   :  { %24444 = vmatpush3.bf16.msra.mxu1 %v24443_v56  ;;  %v30052_v56 = vld [vmem:[#allocation102_spill] sm:$0xff] }
 0xc03   :  { %24445 = vmatprep.subr.bf16.mxu1 %v29791_v49 }
 0xc05   :  { %22664 = vmatmul.mubr.f32.vlgmr.msra.gmra.mrb[36].mxu1 %v9214_v52  ;;  %v9751_v52 = vand.u32 4294901760, %v30050_v26 }
 0xc06   :  { %24447 = vmatpush3.bf16.msra.mxu1 %v28246_v39  ;;  %22674 = vmatprep.mubr.msk.f32.mxu1 %vm25810_vm2, %v29793_v40 }
 0xc07   :  { %24448 = vmatprep.subr.bf16.mxu1 %v29791_v49  ;;  %v9752_v13 = vsub.f32 %v30050_v26, %v9751_v52  ;;  %v28338_v16 = vpack.c.bf16 %v9751_v52, %v9744_v50 }
 0xc09   :  { %v9753_v27 = vand.u32 4294901760, %v9752_v13 }
 0xc0a   :  { %24450 = vmatpush3.bf16.msra.mxu1 %v28258_v43 }
 0xc0b   :  { %24451 = vmatprep.subr.bf16.mxu1 %v29791_v49  ;;  %v24473_v61 = vpack.c.bf16 %v9753_v27, %v9746_v44 }
 0xc0d   :  { %22675 = vmatmul.mubr.f32.vlgmr.msra.gmra.mrb[36].mxu1 %v9215_v57 }
 0xc0e   :  { %24453 = vmatpush3.bf16.msra.mxu1 %v24452_v32  ;;  %22685 = vmatprep.mubr.msk.f32.mxu1 %vm25810_vm2, %v29793_v40  ;;  %v10241_v32 = vand.u32 4294901760, %v30052_v56 }
 0xc0f   :  { %24454 = vmatprep.subr.bf16.mxu1 %v29791_v49 }
 0xc10   :  { %v24524_v28 = vpack.c.bf16 %v10241_v32, %v10234_v17 }
 0xc12   :  { %24456 = vmatpush3.bf16.msra.mxu1 %v24455_v5  ;;  %v30053_v5 = vld [vmem:[#allocation98_spill] sm:$0xff] }
 0xc13   :  { %24457 = vmatprep.subr.bf16.mxu1 %v29791_v49  ;;  %v10248_v20 = vand.u32 4294901760, %v30053_v5 }
 0xc15   :  { %22686 = vmatmul.mubr.f32.vlgmr.msra.gmra.mrb[36].mxu1 %v9213_v4  ;;  %v24527_v19 = vpack.c.bf16 %v10255_v0, %v10248_v20 }
 0xc16   :  { %24459 = vmatpush3.bf16.msra.mxu1 %v28246_v39  ;;  %22696 = vmatprep.mubr.msk.f32.mxu1 %vm25810_vm2, %v29793_v40  ;;  %v30046_v39 = vand.u32 4294901760, %v30045_v37  ;;  %v10242_v37 = vsub.f32 %v30052_v56, %v10241_v32 }
 0xc17   :  { %24460 = vmatprep.subr.bf16.mxu1 %v29791_v49 }
 0xc18   :  { %v28320_v31 = vpack.c.bf16 %v30046_v39, %v30044_v35  ;;  %v10235_v35 = vsub.f32 %v30051_v12, %v10234_v17  ;;  %v10249_v39 = vsub.f32 %v30053_v5, %v10248_v20 }
 0xc1a   :  { %24462 = vmatpush3.bf16.msra.mxu1 %v28258_v43  ;;  %v30047_v43 = vld [vmem:[#allocation88_spill] sm:$0xff]  ;;  %v10250_v50 = vand.u32 4294901760, %v10249_v39 }
 0xc1b   :  { %24499 = vmatprep.subr.bf16.mxu1 %v29791_v49  ;;  %v9730_v8 = vand.u32 4294901760, %v30047_v43 }
 0xc1d   :  { %22697 = vmatmul.mubr.f32.vlgmr.msra.gmra.mrb[36].mxu1 %v9213_v4  ;;  %v9731_v4 = vsub.f32 %v30047_v43, %v9730_v8  ;;  %v28336_v48 = vpack.c.bf16 %v9737_v3, %v9730_v8  ;;  %v10256_v8 = vsub.f32 %v30054_v55, %v10255_v0  ;;  %v10236_v3 = vand.u32 4294901760, %v10235_v35 }
 0xc1e   :  { %24501 = vmatpush3.bf16.msra.mxu1 %v28312_v22  ;;  %22773 = vmatprep.mubr.msk.f32.mxu1 %vm25810_vm2, %v29793_v40  ;;  %v30056_v35 = vpack.c.bf16 %v30052_v56, %v30051_v12 }
 0xc1f   :  { %24502 = vmatprep.subr.bf16.mxu1 %v29791_v49  ;;  %v9732_v57 = vand.u32 4294901760, %v9731_v4  ;;  %v10243_v4 = vand.u32 4294901760, %v10242_v37  ;;  %v10257_v54 = vand.u32 4294901760, %v10256_v8 }
 0xc21   :  { %v24470_v38 = vpack.c.bf16 %v9739_v11, %v9732_v57  ;;  %v24506_v52 = vpack.c.bf16 %v10243_v4, %v10236_v3  ;;  %v24509_v57 = vpack.c.bf16 %v10257_v54, %v10250_v50  ;;  %v30055_v11 = vld [vmem:[#allocation85_spill] sm:$0xff] }
 0xc22   :  { %24504 = vmatpush3.bf16.msra.mxu1 %v28320_v31 }
 0xc23   :  { %24511 = vmatprep.subr.bf16.mxu1 %v29791_v49 }
 0xcf0   :  { %v9625_v33 = vpop.f32.mrb[36].mxu1 }
 0xcf1   :  { %v25125_v13 = vadd.f32 %v9625_v33, %v30055_v11  ;;  %v22698_v44 = vpop.f32.mrb[37].mxu1 }
 0xcf3   :  { %v9629_v27 = vmax.f32 %v25125_v13, 0.0 }
 0xcf5   :  { %v9646_v34 = vsel %vm1622_vm3, %v9629_v27, 0 }
 0xcf6   :  { %v28350_v17 = vand.u32 4294901760, %v9646_v34 }
 0xcf8   :  { %v9718_v32 = vsub.f32 %v9646_v34, %v28350_v17  ;;  %v30058_v34 = vpack.c.bf16 %v30048_v47, %v30047_v43  ;;  %v30062_v43 = vld [vmem:[#allocation99_spill] sm:$0xff] }
 0xcf9   :  { %v30063_v47 = vand.u32 4294901760, %v30062_v43 }
 0xcfa   :  { %v9719_v20 = vand.u32 4294901760, %v9718_v32 }
 0xcfc   :  { %v9720_v63 = vsub.f32 %v9718_v32, %v9719_v20 }
 0xcfe   :  { %v9721_v0 = vand.u32 4294901760, %v9720_v63  ;;  %v30057_v63 = vpack.c.bf16 %v30054_v55, %v30053_v5 }
 0xd00   :  { %22708 = vmatmul.mubr.f32.vlgmr.msra.gmra.mrb[32].mxu0 %v9721_v0  ;;  %22774 = vmatmul.mubr.f32.vlgmr.msra.gmra.mrb[38].mxu1 %v9721_v0 }
 0xd01   :  { %24471 = vmatpush3.bf16.msra.mxu0 %v24470_v38  ;;  %24513 = vmatpush3.bf16.msra.mxu1 %v30056_v35  ;;  %v30059_v38 = vpack.c.bf16 %v30050_v26, %v30049_v51  ;;  %v25587_v51 = vld [vmem:[#allocation11 + $0x8] sm:$0xff]  ;;  %v25588_v26 = vld [vmem:[#allocation11 + $0x18] sm:$0xff] }
 0xd02   :  { %24472 = vmatprep.subr.bf16.mxu0 %v29791_v49  ;;  %24514 = vmatprep.subr.bf16.mxu1 %v29791_v49 }
 0xd03   :  { %22795 = vmatprep.mubr.msk.f32.mxu1 %vm25810_vm2, %v29793_v40  ;;  %22718 = vmatprep.mubr.msk.f32.mxu0 %vm25810_vm2, %v29793_v40 }
 0xd05   :  { %24474 = vmatpush3.bf16.msra.mxu0 %v24473_v61  ;;  %24516 = vmatpush3.bf16.msra.mxu1 %v30057_v63  ;;  %v30060_v61 = vld [vmem:[#allocation51_spill] sm:$0xff]  ;;  %v30064_v63 = vld [vmem:[#allocation50_spill] sm:$0xff] }
 0xd06   :  { %24475 = vmatprep.subr.bf16.mxu0 %v29791_v49  ;;  %24523 = vmatprep.subr.bf16.mxu1 %v29791_v49  ;;  %v30061_v12 = vand.u32 4294901760, %v30060_v61  ;;  %v30065_v61 = vld [vmem:[#allocation95_spill] sm:$0xff] }
 0xd08   :  { %22796 = vmatmul.mubr.f32.vlgmr.msra.gmra.mrb[40].mxu1 %v9718_v32  ;;  %22719 = vmatmul.mubr.f32.vlgmr.msra.gmra.mrb[32].mxu0 %v28350_v17  ;;  %v28384_v56 = vpack.c.bf16 %v30063_v47, %v30061_v12 }
 0xd09   :  { %24477 = vmatpush3.bf16.msra.mxu0 %v30058_v34  ;;  %24525 = vmatpush3.bf16.msra.mxu1 %v24524_v28 }
 0xd0a   :  { %24478 = vmatprep.subr.bf16.mxu0 %v29791_v49  ;;  %24526 = vmatprep.subr.bf16.mxu1 %v29791_v49 }
 0xd0b   :  { %22817 = vmatprep.mubr.msk.f32.mxu1 %vm25810_vm2, %v29793_v40  ;;  %22729 = vmatprep.mubr.msk.f32.mxu0 %vm25810_vm2, %v29793_v40 }
 0xd0d   :  { %24480 = vmatpush3.bf16.msra.mxu0 %v30059_v38  ;;  %24528 = vmatpush3.bf16.msra.mxu1 %v24527_v19 }
 0xd0e   :  { %24481 = vmatprep.subr.bf16.mxu0 %v29791_v49  ;;  %24535 = vmatprep.subr.bf16.mxu1 %v29791_v49 }
 0xd10   :  { %22818 = vmatmul.mubr.f32.vlgmr.msra.gmra.mrb[42].mxu1 %v28350_v17  ;;  %22730 = vmatmul.mubr.f32.vlgmr.msra.gmra.mrb[32].mxu0 %v9718_v32 }
 0xd11   :  { %24483 = vmatpush3.bf16.msra.mxu0 %v28252_v7  ;;  %22740 = vmatprep.mubr.msk.f32.mxu0 %vm25810_vm2, %v29793_v40 }
 0xd12   :  { %24484 = vmatprep.subr.bf16.mxu0 %v29791_v49  ;;  %24537 = vmatpush3.bf16.msra.mxu1 %v28384_v56 }
 0xd13   :  { %22835 = vmatprep.mubr.msk.f32.mxu1 %vm25810_vm2, %v29793_v40  ;;  %24538 = vmatprep.subr.bf16.mxu1 %v29791_v49 }
 0xd15   :  { %24486 = vmatpush3.bf16.msra.mxu0 %v28267_v6 }
 0xd16   :  { %24487 = vmatprep.subr.bf16.mxu0 %v29791_v49 }
 0xd18   :  { %22741 = vmatmul.mubr.f32.vlgmr.msra.gmra.mrb[32].mxu0 %v9719_v20 }
 0xd19   :  { %24489 = vmatpush3.bf16.msra.mxu0 %v28336_v48  ;;  %22751 = vmatprep.mubr.msk.f32.mxu0 %vm25810_vm2, %v29793_v40  ;;  %v11166_v48 = vand.u32 4294901760, %v25588_v26 }
 0xd1a   :  { %24490 = vmatprep.subr.bf16.mxu0 %v29791_v49 }
 0xd1d   :  { %24492 = vmatpush3.bf16.msra.mxu0 %v28338_v16 }
 0xd1e   :  { %24493 = vmatprep.subr.bf16.mxu0 %v29791_v49 }
 0xd20   :  { %22752 = vmatmul.mubr.f32.vlgmr.msra.gmra.mrb[32].mxu0 %v28350_v17 }
 0xd21   :  { %24495 = vmatpush3.bf16.msra.mxu0 %v28252_v7  ;;  %22762 = vmatprep.mubr.msk.f32.mxu0 %vm25810_vm2, %v29793_v40  ;;  %v10781_v7 = vand.u32 4294901760, %v27043_v41 }
 0xd22   :  { %24496 = vmatprep.subr.bf16.mxu0 %v29791_v49 }
 0xd23   :  { %v10782_v55 = vsub.f32 %v27043_v41, %v10781_v7 }
 0xd25   :  { %24498 = vmatpush3.bf16.msra.mxu0 %v28267_v6  ;;  %v10788_v6 = vand.u32 4294901760, %v27069_v9  ;;  %v10783_v39 = vand.u32 4294901760, %v10782_v55 }
 0xd26   :  { %24505 = vmatprep.subr.bf16.mxu0 %v29791_v49 }
 0xd27   :  { %v10789_v28 = vsub.f32 %v27069_v9, %v10788_v6  ;;  %v28457_v0 = vpack.c.bf16 %v10788_v6, %v10781_v7 }
 0xd28   :  { %22763 = vmatmul.mubr.f32.vlgmr.msra.gmra.mrb[32].mxu0 %v28350_v17 }
 0xd29   :  { %24507 = vmatpush3.bf16.msra.mxu0 %v24506_v52  ;;  %22784 = vmatprep.mubr.msk.f32.mxu0 %vm25810_vm2, %v29793_v40  ;;  %v10790_v8 = vand.u32 4294901760, %v10789_v28 }
 0xd2a   :  { %24508 = vmatprep.subr.bf16.mxu0 %v29791_v49 }
 0xd2d   :  { %24510 = vmatpush3.bf16.msra.mxu0 %v24509_v57  ;;  %v28451_v57 = vpack.c.bf16 %v10790_v8, %v10783_v39 }
 0xd2e   :  { %24517 = vmatprep.subr.bf16.mxu0 %v29791_v49 }
 0xd30   :  { %22785 = vmatmul.mubr.f32.vlgmr.msra.gmra.mrb[34].mxu0 %v28350_v17 }
 0xd31   :  { %24519 = vmatpush3.bf16.msra.mxu0 %v28312_v22  ;;  %22806 = vmatprep.mubr.msk.f32.mxu0 %vm25810_vm2, %v29793_v40 }
 0xd32   :  { %24520 = vmatprep.subr.bf16.mxu0 %v29791_v49 }
 0xd35   :  { %24522 = vmatpush3.bf16.msra.mxu0 %v28320_v31 }
 0xd36   :  { %24529 = vmatprep.subr.bf16.mxu0 %v29791_v49 }
 0xd38   :  { %22807 = vmatmul.mubr.f32.vlgmr.msra.gmra.mrb[36].mxu0 %v9719_v20 }
 0xd39   :  { %24531 = vmatpush3.bf16.msra.mxu0 %v28312_v22  ;;  %22828 = vmatprep.mubr.msk.f32.mxu0 %vm25810_vm2, %v29793_v40  ;;  %v11163_v22 = vand.u32 4294901760, %v25587_v51 }
 0xd3a   :  { %24532 = vmatprep.subr.bf16.mxu0 %v29791_v49 }
 0xd3b   :  { %v28435_v16 = vpack.c.bf16 %v11166_v48, %v11163_v22  ;;  %v28437_v5 = vsub.f32 %v25587_v51, %v11163_v22 }
 0xd3d   :  { %24534 = vmatpush3.bf16.msra.mxu0 %v28320_v31  ;;  %v28439_v31 = vsub.f32 %v25588_v26, %v11166_v48  ;;  %v11242_v19 = vand.u32 4294901760, %v28437_v5  ;;  %v10135_v26 = vstv %s20689_s7 }
 0xd3e   :  { %24553 = vmatprep.subr.bf16.mxu0 %v29791_v49 }
 0xd3f   :  { %v11249_v37 = vand.u32 4294901760, %v28439_v31  ;;  %v11243_v3 = vsub.f32 %v28437_v5, %v11242_v19  ;;  %v24560_v13 = vpack.c.bf16 %v28439_v31, %v28437_v5  ;;  %v30069_v5 = vand.u32 4294901760, %v26989_v15  ;;  %v25589_v15 = vld [vmem:[#allocation14 + $0x8] sm:$0xff] }
 0xd40   :  { %22829 = vmatmul.mubr.f32.vlgmr.msra.gmra.mrb[38].mxu0 %v28350_v17 }
 0xd41   :  { %22877 = vmatprep.mubr.msk.f32.mxu0 %vm25810_vm2, %v29793_v40  ;;  %24555 = vmatpush3.bf16.msra.mxu0 %v28435_v16  ;;  %v11250_v4 = vsub.f32 %v28439_v31, %v11249_v37  ;;  %v11244_v50 = vand.u32 4294901760, %v11243_v3  ;;  %v28455_v20 = vpack.c.bf16 %v11249_v37, %v11242_v19 }
 0xd42   :  { %24556 = vmatprep.subr.bf16.mxu0 %v29791_v49 }
 0xd43   :  { %v11251_v54 = vand.u32 4294901760, %v11250_v4 }
 0xd45   :  { %v28449_v52 = vpack.c.bf16 %v11251_v54, %v11244_v50 }
 0xdd3   :  { %v10227_v33 = vpop.f32.mrb[38].mxu1 }
 0xdd4   :  { %v22775_v11 = vpop.f32.mrb[39].mxu1  ;;  %v10228_v12 = vadd.f32 %v10227_v33, %v30065_v61 }
 0xddb   :  { %v10398_v44 = vpop.f32.mrb[40].mxu1 }
 0xddc   :  { %v22797_v27 = vpop.f32.mrb[41].mxu1 }
 0xde3   :  { %v10558_v17 = vpop.f32.mrb[42].mxu1 }
 0xde4   :  { %v22819_v32 = vpop.f32.mrb[43].mxu1 }
 0xdfb   :  { %v10129_v35 = vpop.f32.mrb[32].mxu0 }
 0xdfc   :  { %v25126_v34 = vadd.f32 %v10129_v35, %v30064_v63  ;;  %v22764_v38 = vpop.f32.mrb[33].mxu0 }
 0xdfe   :  { %25541 = vtanh.f32 %v25126_v34 }
 0xe03   :  { %v10318_v43 = vpop.f32.mrb[34].mxu0 }
 0xe04   :  { %v10319_v47 = vadd.f32 %v10318_v43, %v10228_v12  ;;  %v22786_v51 = vpop.f32.mrb[35].mxu0 }
 0xe06   :  { %v10399_v22 = vadd.f32 %v10398_v44, %v10319_v47 }
 0xe08   :  { %v25542_v48 = vpop.eup %25541 }
 0xe09   :  { %v10136_v55 = vmul.f32 %v25542_v48, %v10135_v26 }
 0xe0b   :  { %v10475_v28 = vpop.f32.mrb[36].mxu0  ;;  %v10643_v19 = vsel %vm638_vm1, %v10136_v55, 0.0  ;;  %v10637_v7 = vmul.f32 1.442695, %v10136_v55 }
 0xe0c   :  { %v10476_v6 = vadd.f32 %v10475_v28, %v10399_v22  ;;  %v22808_v37 = vpop.f32.mrb[37].mxu0  ;;  %10644 = vadd.xlane.f32.xlu0 %v10643_v19 }
 0xe0d   :  { %25543 = vpow2.f32 %v10637_v7 }
 0xe0e   :  { %v10559_v39 = vadd.f32 %v10558_v17, %v10476_v6 }
 0xe13   :  { %v10633_v8 = vpop.f32.mrb[38].mxu0 }
 0xe14   :  { %v10634_v3 = vadd.f32 %v10633_v8, %v10559_v39  ;;  %v22830_v4 = vpop.f32.mrb[39].mxu0 }
 0xe17   :  { %v25544_v50 = vpop.eup %25543 }
 0xe18   :  { %v10639_v54 = vmul.f32 %v25544_v50, %v28280_v62 }
 0xe1a   :  { %v10640_v33 = vadd.f32 %v10639_v54, %v10634_v3 }
 0xe1c   :  { %v10647_v11 = vsel %vm638_vm1, %v10640_v33, 0.0  ;;  %v10654_v44 = vmul.f32 %v10640_v33, %v10640_v33 }
 0xe1d   :  { %v10648_v27 = vrot.slane %v10647_v11, 4 }
 0xe1e   :  { %v10655_v32 = vsel %vm638_vm1, %v10654_v44, 0.0 }
 0xe1f   :  { %v10649_v35 = vadd.f32 %v10648_v27, %v10647_v11  ;;  %v10656_v63 = vrot.slane %v10655_v32, 4 }
 0xe21   :  { %v10650_v34 = vrot.slane %v10649_v35, 2  ;;  %v10657_v38 = vadd.f32 %v10656_v63, %v10655_v32 }
 0xe23   :  { %v10651_v61 = vadd.f32 %v10650_v34, %v10649_v35  ;;  %v10658_v12 = vrot.slane %v10657_v38, 2 }
 0xe25   :  { %v10652_v17 = vrot.slane %v10651_v61, 1  ;;  %v10659_v43 = vadd.f32 %v10658_v12, %v10657_v38 }
 0xe27   :  { %v10653_v47 = vadd.f32 %v10652_v17, %v10651_v61  ;;  %v10660_v51 = vrot.slane %v10659_v43, 1  ;;  %v25590_v61 = vld [vmem:[#allocation14 + $0x18] sm:$0xff] }
 0xe28   :  { %v11640_v12 = vand.u32 4294901760, %v25590_v61 }
 0xe29   :  { %v10662_v22 = vmul.f32 0.125, %v10653_v47  ;;  %v10661_v26 = vadd.f32 %v10660_v51, %v10659_v43  ;;  %v25591_v51 = vld [vmem:[#allocation14 + $0x28] sm:$0xff] }
 0xe2b   :  { %v10663_v62 = vmul.f32 %v10662_v22, %v10653_v47  ;;  %v10667_v6 = vsub.f32 %v10640_v33, %v10662_v22  ;;  %v11724_v47 = vsub.f32 %v25590_v61, %v11640_v12  ;;  %v11643_v22 = vand.u32 4294901760, %v25591_v51 }
 0xe2d   :  { %v10664_v48 = vsub.f32 %v10661_v26, %v10663_v62  ;;  %v25592_v26 = vld [vmem:[#allocation14 + $0x38] sm:$0xff] }
 0xe2e   :  { %v11646_v62 = vand.u32 4294901760, %v25592_v26 }
 0xe2f   :  { %v10665_v55 = vmul.f32 0.14285715, %v10664_v48 }
 0xe31   :  { %v10666_v28 = vmax.f32 %v10665_v55, 0.0  ;;  %v11725_v55 = vand.u32 4294901760, %v11724_v47 }
 0xe33   :  { %v10668_v19 = vadd.f32 1e-12, %v10666_v28  ;;  %25545 = vrsqrt.f32 %v10666_v28  ;;  %vm10673_vm13 = vcmp.eq.f32.partialorder %v10666_v28, inf  ;;  %v10676_v8 = vand.u32 2147483648, %v10666_v28 }
 0xe34   :  { %vm10675_vm14 = vcmp.eq.f32.partialorder %v10666_v28, 0.0 }
 0xe35   :  { %25547 = vrsqrt.f32 %v10668_v19  ;;  %v11731_v19 = vsub.f32 %v25591_v51, %v11643_v22 }
 0xe3d   :  { %v25546_v7 = vpop.eup %25545 }
 0xe3e   :  { %v10672_v37 = vmul.f32 %v25546_v7, %v10666_v28  ;;  %v11738_v7 = vsub.f32 %v25592_v26, %v11646_v62 }
 0xe3f   :  { %v25548_v39 = vpop.eup %25547 }
 0xe40   :  { %v10670_v3 = vmul.f32 %v25548_v39, %v10667_v6  ;;  %v10674_v4 = vsel %vm10673_vm13, %v10666_v28, %v10672_v37  ;;  %v28535_v28 = vpack.c.bf16 %v11646_v62, %v11643_v22  ;;  %v11726_v37 = vsub.f32 %v11724_v47, %v11725_v55 }
 0xe41   :  { %v10677_v50 = vsel %vm10675_vm14, %v10676_v8, %v10674_v4  ;;  %v11732_v8 = vand.u32 4294901760, %v11731_v19 }
 0xe42   :  { %v10699_v54 = vsel %vm638_vm1, %v10670_v3, 0  ;;  %v10678_v11 = vadd.f32 1e-06, %v10677_v50  ;;  %v11739_v3 = vand.u32 4294901760, %v11738_v7  ;;  %v11727_v4 = vand.u32 4294901760, %v11726_v37 }
 0xe43   :  { %v10768_v44 = vand.u32 4294901760, %v10699_v54  ;;  %v11733_v50 = vsub.f32 %v11731_v19, %v11732_v8 }
 0xe44   :  { %25549 = vlog2.f32 %v10678_v11 }
 0xe45   :  { %v10769_v27 = vsub.f32 %v10699_v54, %v10768_v44  ;;  %v11740_v54 = vsub.f32 %v11738_v7, %v11739_v3 }
 0xe47   :  { %v10770_v32 = vand.u32 4294901760, %v10769_v27 }
 0xe49   :  { %v10771_v35 = vsub.f32 %v10769_v27, %v10770_v32 }
 0xe4b   :  { %v10772_v63 = vand.u32 4294901760, %v10771_v35 }
 0xe4d   :  { %22836 = vmatmul.mubr.f32.vlgmr.msra.gmra.mrb[44].mxu1 %v10772_v63  ;;  %22878 = vmatmul.mubr.f32.vlgmr.msra.gmra.mrb[40].mxu0 %v10772_v63 }
 0xe4e   :  { %v25550_v33 = vpop.eup %25549  ;;  %24558 = vmatpush3.bf16.msra.mxu0 %v28449_v52  ;;  %24540 = vmatpush3.bf16.msra.mxu1 %v28451_v57  ;;  %v30066_v52 = vpack.c.bf16 %v27069_v9, %v27043_v41  ;;  %v30067_v9 = vld [vmem:[#allocation53_spill] sm:$0xff] }
 0xe4f   :  { %v10680_v34 = vmul.f32 0.6931472, %v25550_v33  ;;  %22842 = vmatprep.mubr.msk.f32.mxu1 %vm25810_vm2, %v29793_v40  ;;  %22884 = vmatprep.mubr.msk.f32.mxu0 %vm25810_vm2, %v29793_v40  ;;  %v30068_v41 = vand.u32 4294901760, %v30067_v9  ;;  %v30072_v57 = vld [vmem:[#allocation105_spill] sm:$0xff] }
 0xe50   :  { %24559 = vmatprep.subr.bf16.mxu0 %v29791_v49  ;;  %24541 = vmatprep.subr.bf16.mxu1 %v29791_v49 }
 0xe51   :  { %v10681_v38 = vsel %vm673_vm6, %v10680_v34, 0.0  ;;  %v28515_v31 = vpack.c.bf16 %v30069_v5, %v30068_v41 }
 0xe52   :  { %10682 = vadd.xlane.f32.xlu1 %v10681_v38  ;;  %v24587_v38 = vpack.c.bf16 %v11738_v7, %v11731_v19  ;;  %v30077_v7 = vld [vmem:[#allocation107_spill] sm:$0xff] }
 0xe55   :  { %22843 = vmatmul.mubr.f32.vlgmr.msra.gmra.mrb[44].mxu1 %v10768_v44  ;;  %22885 = vmatmul.mubr.f32.vlgmr.msra.gmra.mrb[40].mxu0 %v10768_v44 }
 0xe56   :  { %24561 = vmatpush3.bf16.msra.mxu0 %v24560_v13  ;;  %24543 = vmatpush3.bf16.msra.mxu1 %v30066_v52  ;;  %v30073_v13 = vand.u32 4294901760, %v30072_v57 }
 0xe57   :  { %22849 = vmatprep.mubr.msk.f32.mxu1 %vm25810_vm2, %v29793_v40  ;;  %22891 = vmatprep.mubr.msk.f32.mxu0 %vm25810_vm2, %v29793_v40 }
 0xe58   :  { %24562 = vmatprep.subr.bf16.mxu0 %v29791_v49  ;;  %24544 = vmatprep.subr.bf16.mxu1 %v29791_v49 }
 0xe5d   :  { %22850 = vmatmul.mubr.f32.vlgmr.msra.gmra.mrb[44].mxu1 %v10769_v27  ;;  %22892 = vmatmul.mubr.f32.vlgmr.msra.gmra.mrb[40].mxu0 %v10769_v27  ;;  %v11741_v27 = vand.u32 4294901760, %v11740_v54 }
 0xe5e   :  { %24564 = vmatpush3.bf16.msra.mxu0 %v28435_v16  ;;  %24546 = vmatpush3.bf16.msra.mxu1 %v28384_v56 }
 0xe5f   :  { %22856 = vmatprep.mubr.msk.f32.mxu1 %vm25810_vm2, %v29793_v40  ;;  %22898 = vmatprep.mubr.msk.f32.mxu0 %vm25810_vm2, %v29793_v40 }
 0xe60   :  { %24565 = vmatprep.subr.bf16.mxu0 %v29791_v49  ;;  %24547 = vmatprep.subr.bf16.mxu1 %v29791_v49 }
 0xe65   :  { %22857 = vmatmul.mubr.f32.vlgmr.msra.gmra.mrb[44].mxu1 %v10770_v32  ;;  %22899 = vmatmul.mubr.f32.vlgmr.msra.gmra.mrb[40].mxu0 %v10770_v32 }
 0xe66   :  { %24567 = vmatpush3.bf16.msra.mxu0 %v28455_v20  ;;  %24549 = vmatpush3.bf16.msra.mxu1 %v28457_v0  ;;  %v11637_v0 = vand.u32 4294901760, %v25589_v15 }
 0xe67   :  { %22863 = vmatprep.mubr.msk.f32.mxu1 %vm25810_vm2, %v29793_v40  ;;  %22905 = vmatprep.mubr.msk.f32.mxu0 %vm25810_vm2, %v29793_v40 }
 0xe68   :  { %24568 = vmatprep.subr.bf16.mxu0 %v29791_v49  ;;  %24550 = vmatprep.subr.bf16.mxu1 %v29791_v49  ;;  %v28531_v17 = vpack.c.bf16 %v11640_v12, %v11637_v0  ;;  %v11717_v43 = vsub.f32 %v25589_v15, %v11637_v0  ;;  %v30074_v15 = vld [vmem:[#allocation24_spill] sm:$0xff] }
 0xe6a   :  { %v11718_v48 = vand.u32 4294901760, %v11717_v43  ;;  %v24584_v33 = vpack.c.bf16 %v11724_v47, %v11717_v43 }
 0xe6c   :  { %v11719_v6 = vsub.f32 %v11717_v43, %v11718_v48 }
 0xe6d   :  { %22864 = vmatmul.mubr.f32.vlgmr.msra.gmra.mrb[44].mxu1 %v10768_v44  ;;  %22906 = vmatmul.mubr.f32.vlgmr.msra.gmra.mrb[40].mxu0 %v10768_v44 }
 0xe6e   :  { %24570 = vmatpush3.bf16.msra.mxu0 %v28435_v16  ;;  %24552 = vmatpush3.bf16.msra.mxu1 %v28384_v56  ;;  %v30070_v16 = vld [vmem:[#allocation55_spill] sm:$0xff]  ;;  %v11720_v39 = vand.u32 4294901760, %v11719_v6  ;;  %v30078_v6 = vand.u32 4294901760, %v30077_v7 }
 0xe6f   :  { %22870 = vmatprep.mubr.msk.f32.mxu1 %vm25810_vm2, %v29793_v40  ;;  %22912 = vmatprep.mubr.msk.f32.mxu0 %vm25810_vm2, %v29793_v40  ;;  %v30071_v56 = vand.u32 4294901760, %v30070_v16  ;;  %v24596_v16 = vpack.c.bf16 %v11725_v55, %v11718_v48  ;;  %v30075_v48 = vld [vmem:[#allocation57_spill] sm:$0xff] }
 0xe70   :  { %24571 = vmatprep.subr.bf16.mxu1 %v29791_v49  ;;  %24607 = vmatprep.subr.bf16.mxu0 %v29791_v49  ;;  %v24578_v11 = vpack.c.bf16 %v11727_v4, %v11720_v39  ;;  %v30076_v55 = vand.u32 4294901760, %v30075_v48  ;;  %v30079_v39 = vld [vmem:[#allocation59_spill] sm:$0xff]  ;;  %v12229_v4 = vand.u32 4294901760, %v27074_v45 }
 0xe71   :  { %v28521_v20 = vpack.c.bf16 %v30073_v13, %v30071_v56  ;;  %v24599_v56 = vpack.c.bf16 %v11739_v3, %v11732_v8  ;;  %v30080_v8 = vand.u32 4294901760, %v30079_v39 }
 0xe72   :  { %v28569_v37 = vpack.c.bf16 %v30078_v6, %v30076_v55 }
 0xe75   :  { %22871 = vmatmul.mubr.f32.vlgmr.msra.gmra.mrb[44].mxu1 %v10768_v44  ;;  %22913 = vmatmul.mubr.f32.vlgmr.msra.gmra.mrb[40].mxu0 %v10768_v44  ;;  %v11734_v44 = vand.u32 4294901760, %v11733_v50 }
 0xe76   :  { %22923 = vmatprep.mubr.msk.f32.mxu1 %vm25810_vm2, %v29793_v40  ;;  %24609 = vmatpush3.bf16.msra.mxu0 %v28515_v31 }
 0xe77   :  { %24610 = vmatprep.subr.bf16.mxu0 %v29791_v49  ;;  %22989 = vmatprep.mubr.msk.f32.mxu0 %vm25810_vm2, %v29793_v40  ;;  %v24581_v32 = vpack.c.bf16 %v11741_v27, %v11734_v44  ;;  %v30083_v44 = vld [vmem:[#allocation125_spill] sm:$0xff] }
 0xe78   :  { %24573 = vmatpush3.bf16.msra.mxu1 %v28531_v17  ;;  %v12243_v27 = vand.u32 4294901760, %v30083_v44 }
 0xe79   :  { %24574 = vmatprep.subr.bf16.mxu1 %v29791_v49 }
 0xe7a   :  { %24612 = vmatpush3.bf16.msra.mxu0 %v28521_v20 }
 0xe7b   :  { %24613 = vmatprep.subr.bf16.mxu0 %v29791_v49 }
 0xe7c   :  { %24576 = vmatpush3.bf16.msra.mxu1 %v28535_v28 }
 0xe7d   :  { %24577 = vmatprep.subr.bf16.mxu1 %v29791_v49 }
 0xedf   :  { %v10683_v35 = vpop.xlane.xlu1 %10682 }
 0xee0   :  { %v10684_v63 = vrot.slane %v10683_v35, 4 }
 0xee2   :  { %v10685_v34 = vadd.f32 %v10684_v63, %v10683_v35 }
 0xee4   :  { %v10686_v52 = vrot.slane %v10685_v34, 2 }
 0xee6   :  { %v10687_v9 = vadd.f32 %v10686_v52, %v10685_v34 }
 0xee8   :  { %v10688_v41 = vrot.slane %v10687_v9, 1 }
 0xeea   :  { %v10689_v5 = vadd.f32 %v10688_v41, %v10687_v9 }
 0xeec   :  { %25475 = vpush %v10689_v5 }
 0xf48   :  { %v28539_v57 = vpop.f32.mrb[44].mxu1  ;;  %v11617_v13 = vpop.f32.mrb[40].mxu0 }
 0xf49   :  { %v25127_v0 = vadd.f32 %v11617_v13, %v30074_v15  ;;  %v22872_v61 = vpop.f32.mrb[45].mxu1  ;;  %v22914_v12 = vpop.f32.mrb[41].mxu0  ;;  %v30085_v13 = vld [vmem:[#allocation126_spill] sm:$0xff] }
 0xf4a   :  { %v12733_v15 = vand.u32 4294901760, %v30085_v13  ;;  %v30087_v12 = vld [vmem:[#allocation129_spill] sm:$0xff] }
 0xf4b   :  { %v11621_v51 = vmax.f32 %v25127_v0, 0.0  ;;  %v30086_v0 = vld [vmem:[#allocation127_spill] sm:$0xff] }
 0xf4c   :  { %v12740_v61 = vand.u32 4294901760, %v30086_v0 }
 0xf4d   :  { %v11634_v22 = vsel %vm1622_vm3, %v11621_v51, 0  ;;  %v12747_v51 = vand.u32 4294901760, %v30087_v12 }
 0xf4e   :  { %v11705_v43 = vand.u32 4294901760, %v11634_v22 }
 0xf50   :  { %v11706_v47 = vsub.f32 %v11634_v22, %v11705_v43 }
 0xf52   :  { %v11707_v26 = vand.u32 4294901760, %v11706_v47 }
 0xf54   :  { %v11708_v62 = vsub.f32 %v11706_v47, %v11707_v26 }
 0xf56   :  { %v11709_v19 = vand.u32 4294901760, %v11708_v62  ;;  %v12741_v62 = vsub.f32 %v30086_v0, %v12740_v61 }
 0xf58   :  { %22924 = vmatmul.mubr.f32.vlgmr.msra.gmra.mrb[46].mxu1 %v11709_v19  ;;  %v12748_v19 = vsub.f32 %v30087_v12, %v12747_v51  ;;  %v12742_v7 = vand.u32 4294901760, %v12741_v62 }
 0xf59   :  { %24579 = vmatpush3.bf16.msra.mxu1 %v24578_v11  ;;  %22934 = vmatprep.mubr.msk.f32.mxu1 %vm25810_vm2, %v29793_v40  ;;  %v12230_v11 = vsub.f32 %v27074_v45, %v12229_v4 }
 0xf5a   :  { %24580 = vmatprep.subr.bf16.mxu1 %v29791_v49  ;;  %v12749_v6 = vand.u32 4294901760, %v12748_v19 }
 0xf5b   :  { %v12231_v63 = vand.u32 4294901760, %v12230_v11 }
 0xf5d   :  { %24582 = vmatpush3.bf16.msra.mxu1 %v24581_v32 }
 0xf5e   :  { %24583 = vmatprep.subr.bf16.mxu1 %v29791_v49 }
 0xf60   :  { %22935 = vmatmul.mubr.f32.vlgmr.msra.gmra.mrb[46].mxu1 %v11705_v43 }
 0xf61   :  { %24585 = vmatpush3.bf16.msra.mxu1 %v24584_v33  ;;  %22945 = vmatprep.mubr.msk.f32.mxu1 %vm25810_vm2, %v29793_v40  ;;  %v12244_v33 = vsub.f32 %v30083_v44, %v12243_v27 }
 0xf62   :  { %24586 = vmatprep.subr.bf16.mxu1 %v29791_v49 }
 0xf63   :  { %v12245_v52 = vand.u32 4294901760, %v12244_v33 }
 0xf65   :  { %24588 = vmatpush3.bf16.msra.mxu1 %v24587_v38 }
 0xf66   :  { %24589 = vmatprep.subr.bf16.mxu1 %v29791_v49 }
 0xf68   :  { %22946 = vmatmul.mubr.f32.vlgmr.msra.gmra.mrb[46].mxu1 %v11706_v47 }
 0xf69   :  { %24591 = vmatpush3.bf16.msra.mxu1 %v28531_v17  ;;  %22956 = vmatprep.mubr.msk.f32.mxu1 %vm25810_vm2, %v29793_v40 }
 0xf6a   :  { %24592 = vmatprep.subr.bf16.mxu1 %v29791_v49 }
 0xf6d   :  { %24594 = vmatpush3.bf16.msra.mxu1 %v28535_v28 }
 0xf6e   :  { %24595 = vmatprep.subr.bf16.mxu1 %v29791_v49 }
 0xf70   :  { %22957 = vmatmul.mubr.f32.vlgmr.msra.gmra.mrb[46].mxu1 %v11707_v26  ;;  %v12734_v26 = vsub.f32 %v30085_v13, %v12733_v15 }
 0xf71   :  { %24597 = vmatpush3.bf16.msra.mxu1 %v24596_v16  ;;  %22967 = vmatprep.mubr.msk.f32.mxu1 %vm25810_vm2, %v29793_v40  ;;  %v30084_v16 = vld [vmem:[#allocation122_spill] sm:$0xff] }
 0xf72   :  { %24598 = vmatprep.subr.bf16.mxu1 %v29791_v49  ;;  %v12735_v55 = vand.u32 4294901760, %v12734_v26 }
 0xf75   :  { %24600 = vmatpush3.bf16.msra.mxu1 %v24599_v56  ;;  %v12726_v56 = vand.u32 4294901760, %v30084_v16 }
 0xf76   :  { %24601 = vmatprep.subr.bf16.mxu1 %v29791_v49 }
 0xf77   :  { %v24668_v22 = vpack.c.bf16 %v12733_v15, %v12726_v56  ;;  %v12727_v47 = vsub.f32 %v30084_v16, %v12726_v56  ;;  %v30101_v15 = vld [vmem:[#allocation131_spill] sm:$0xff] }
 0xf78   :  { %22968 = vmatmul.mubr.f32.vlgmr.msra.gmra.mrb[46].mxu1 %v11705_v43 }
 0xf79   :  { %24603 = vmatpush3.bf16.msra.mxu1 %v28531_v17  ;;  %22978 = vmatprep.mubr.msk.f32.mxu1 %vm25810_vm2, %v29793_v40  ;;  %v30081_v17 = vand.u32 4294901760, %v26999_v29  ;;  %v30082_v29 = vld [vmem:[#allocation124_spill] sm:$0xff]  ;;  %v12728_v48 = vand.u32 4294901760, %v12727_v47 }
 0xf7a   :  { %24604 = vmatprep.subr.bf16.mxu1 %v29791_v49  ;;  %v12236_v54 = vand.u32 4294901760, %v30082_v29 }
 0xf7b   :  { %v28577_v3 = vpack.c.bf16 %v30081_v17, %v30080_v8  ;;  %v24650_v39 = vpack.c.bf16 %v12735_v55, %v12728_v48  ;;  %v24653_v8 = vpack.c.bf16 %v12749_v6, %v12742_v7 }
 0xf7c   :  { %v12237_v35 = vsub.f32 %v30082_v29, %v12236_v54  ;;  %v28595_v41 = vpack.c.bf16 %v12243_v27, %v12236_v54 }
 0xf7d   :  { %24606 = vmatpush3.bf16.msra.mxu1 %v28535_v28  ;;  %v12222_v28 = vand.u32 4294901760, %v27048_v59 }
 0xf7e   :  { %24643 = vmatprep.subr.bf16.mxu1 %v29791_v49  ;;  %v12238_v38 = vand.u32 4294901760, %v12237_v35 }
 0xf7f   :  { %v12223_v50 = vsub.f32 %v27048_v59, %v12222_v28  ;;  %v28593_v34 = vpack.c.bf16 %v12229_v4, %v12222_v28  ;;  %v25593_v28 = vld [vmem:[%s29530_s9 + $0x1] ss:$0 sm:$0xff]  ;;  %s20691_s9 = sld [smem:[#allocation3 + $0x4]] }
 0xf80   :  { %22979 = vmatmul.mubr.f32.vlgmr.msra.gmra.mrb[46].mxu1 %v11705_v43  ;;  %v24617_v5 = vpack.c.bf16 %v12245_v52, %v12238_v38  ;;  %v24671_v43 = vpack.c.bf16 %v12747_v51, %v12740_v61  ;;  %v30088_v38 = vpack.c.bf16 %v30085_v13, %v30084_v16  ;;  %v30089_v52 = vpack.c.bf16 %v30087_v12, %v30086_v0  ;;  %v30092_v16 = vld [vmem:[#allocation65_spill] sm:$0xff]  ;;  %v30102_v12 = vld [vmem:[#allocation132_spill] sm:$0xff] }
 0xf81   :  { %24645 = vmatpush3.bf16.msra.mxu1 %v28569_v37  ;;  %23055 = vmatprep.mubr.msk.f32.mxu1 %vm25810_vm2, %v29793_v40  ;;  %v12224_v32 = vand.u32 4294901760, %v12223_v50  ;;  %v30093_v56 = vand.u32 4294901760, %v30092_v16  ;;  %v13751_v0 = vand.u32 4294901760, %v30101_v15  ;;  %v13273_v51 = vand.u32 4294901760, %v30102_v12 }
 0xf82   :  { %24646 = vmatprep.subr.bf16.mxu1 %v29791_v49 }
 0xf83   :  { %v24614_v9 = vpack.c.bf16 %v12231_v63, %v12224_v32  ;;  %v13274_v26 = vsub.f32 %v30102_v12, %v13273_v51 }
 0xf85   :  { %24648 = vmatpush3.bf16.msra.mxu1 %v28577_v3  ;;  %v13275_v55 = vand.u32 4294901760, %v13274_v26 }
 0xf86   :  { %24655 = vmatprep.subr.bf16.mxu1 %v29791_v49 }
0x1053   :  { %v12117_v17 = vpop.f32.mrb[46].mxu1 }
0x1054   :  { %v25128_v4 = vadd.f32 %v25593_v28, %v12117_v17  ;;  %v22980_v50 = vpop.f32.mrb[47].mxu1 }
0x1056   :  { %v12121_v54 = vmax.f32 %v25128_v4, 0.0 }
0x1058   :  { %v12138_v11 = vsel %vm1622_vm3, %v12121_v54, 0 }
0x1059   :  { %v28609_v27 = vand.u32 4294901760, %v12138_v11 }
0x105b   :  { %v12210_v32 = vsub.f32 %v12138_v11, %v28609_v27 }
0x105d   :  { %v12211_v35 = vand.u32 4294901760, %v12210_v32 }
0x105f   :  { %v12212_v63 = vsub.f32 %v12210_v32, %v12211_v35 }
0x1061   :  { %v12213_v33 = vand.u32 4294901760, %v12212_v63 }
0x1063   :  { %22990 = vmatmul.mubr.f32.vlgmr.msra.gmra.mrb[42].mxu0 %v12213_v33  ;;  %23056 = vmatmul.mubr.f32.vlgmr.msra.gmra.mrb[48].mxu1 %v12213_v33  ;;  %v30105_v33 = vld [vmem:[#allocation109_spill] sm:$0xff] }
0x1064   :  { %24615 = vmatpush3.bf16.msra.mxu0 %v24614_v9  ;;  %24657 = vmatpush3.bf16.msra.mxu1 %v30088_v38  ;;  %v30090_v9 = vpack.c.bf16 %v27074_v45, %v27048_v59  ;;  %v30094_v59 = vld [vmem:[#allocation111_spill] sm:$0xff] }
0x1065   :  { %24616 = vmatprep.subr.bf16.mxu0 %v29791_v49  ;;  %24658 = vmatprep.subr.bf16.mxu1 %v29791_v49  ;;  %v30095_v45 = vand.u32 4294901760, %v30094_v59 }
0x1066   :  { %23077 = vmatprep.mubr.msk.f32.mxu1 %vm25810_vm2, %v29793_v40  ;;  %23000 = vmatprep.mubr.msk.f32.mxu0 %vm25810_vm2, %v29793_v40 }
0x1067   :  { %v28643_v13 = vpack.c.bf16 %v30095_v45, %v30093_v56  ;;  %v12627_v56 = vstv %s20691_s9 }
0x1068   :  { %24618 = vmatpush3.bf16.msra.mxu0 %v24617_v5  ;;  %24660 = vmatpush3.bf16.msra.mxu1 %v30089_v52  ;;  %v30091_v5 = vpack.c.bf16 %v30083_v44, %v30082_v29  ;;  %v30098_v29 = vld [vmem:[#allocation110_spill] sm:$0xff] }
0x1069   :  { %24619 = vmatprep.subr.bf16.mxu0 %v29791_v49  ;;  %24667 = vmatprep.subr.bf16.mxu1 %v29791_v49  ;;  %v30099_v44 = vand.u32 4294901760, %v30098_v29 }
0x106b   :  { %23078 = vmatmul.mubr.f32.vlgmr.msra.gmra.mrb[50].mxu1 %v12210_v32  ;;  %23001 = vmatmul.mubr.f32.vlgmr.msra.gmra.mrb[42].mxu0 %v28609_v27 }
0x106c   :  { %24621 = vmatpush3.bf16.msra.mxu0 %v30090_v9  ;;  %24669 = vmatpush3.bf16.msra.mxu1 %v24668_v22  ;;  %v30103_v22 = vld [vmem:[#allocation135_spill] sm:$0xff] }
0x106d   :  { %24622 = vmatprep.subr.bf16.mxu0 %v29791_v49  ;;  %24670 = vmatprep.subr.bf16.mxu1 %v29791_v49 }
0x106e   :  { %23099 = vmatprep.mubr.msk.f32.mxu1 %vm25810_vm2, %v29793_v40  ;;  %23011 = vmatprep.mubr.msk.f32.mxu0 %vm25810_vm2, %v29793_v40 }
0x1070   :  { %24624 = vmatpush3.bf16.msra.mxu0 %v30091_v5  ;;  %24672 = vmatpush3.bf16.msra.mxu1 %v24671_v43  ;;  %v13280_v43 = vand.u32 4294901760, %v30103_v22 }
0x1071   :  { %24625 = vmatprep.subr.bf16.mxu0 %v29791_v49  ;;  %24679 = vmatprep.subr.bf16.mxu1 %v29791_v49 }
0x1072   :  { %v13281_v19 = vsub.f32 %v30103_v22, %v13280_v43  ;;  %v28714_v11 = vpack.c.bf16 %v13280_v43, %v13273_v51 }
0x1073   :  { %23100 = vmatmul.mubr.f32.vlgmr.msra.gmra.mrb[52].mxu1 %v28609_v27  ;;  %23012 = vmatmul.mubr.f32.vlgmr.msra.gmra.mrb[42].mxu0 %v12210_v32  ;;  %v30104_v32 = vld [vmem:[#allocation61_spill] sm:$0xff] }
0x1074   :  { %24627 = vmatpush3.bf16.msra.mxu0 %v28515_v31  ;;  %23022 = vmatprep.mubr.msk.f32.mxu0 %vm25810_vm2, %v29793_v40  ;;  %v13282_v7 = vand.u32 4294901760, %v13281_v19 }
0x1075   :  { %24628 = vmatprep.subr.bf16.mxu0 %v29791_v49  ;;  %24681 = vmatpush3.bf16.msra.mxu1 %v28643_v13 }
0x1076   :  { %23117 = vmatprep.mubr.msk.f32.mxu1 %vm25810_vm2, %v29793_v40  ;;  %24682 = vmatprep.subr.bf16.mxu1 %v29791_v49 }
0x1078   :  { %24630 = vmatpush3.bf16.msra.mxu0 %v28521_v20 }
0x1079   :  { %24631 = vmatprep.subr.bf16.mxu0 %v29791_v49 }
0x107b   :  { %23023 = vmatmul.mubr.f32.vlgmr.msra.gmra.mrb[42].mxu0 %v12211_v35 }
0x107c   :  { %24633 = vmatpush3.bf16.msra.mxu0 %v28593_v34  ;;  %23033 = vmatprep.mubr.msk.f32.mxu0 %vm25810_vm2, %v29793_v40 }
0x107d   :  { %24634 = vmatprep.subr.bf16.mxu0 %v29791_v49 }
0x1080   :  { %24636 = vmatpush3.bf16.msra.mxu0 %v28595_v41 }
0x1081   :  { %24637 = vmatprep.subr.bf16.mxu0 %v29791_v49 }
0x1083   :  { %23034 = vmatmul.mubr.f32.vlgmr.msra.gmra.mrb[42].mxu0 %v28609_v27 }
0x1084   :  { %24639 = vmatpush3.bf16.msra.mxu0 %v28515_v31  ;;  %23044 = vmatprep.mubr.msk.f32.mxu0 %vm25810_vm2, %v29793_v40  ;;  %v30096_v31 = vld [vmem:[#allocation63_spill] sm:$0xff] }
0x1085   :  { %24640 = vmatprep.subr.bf16.mxu0 %v29791_v49 }
0x1088   :  { %24642 = vmatpush3.bf16.msra.mxu0 %v28521_v20  ;;  %v30097_v20 = vand.u32 4294901760, %v30096_v31 }
0x1089   :  { %24649 = vmatprep.subr.bf16.mxu0 %v29791_v49 }
0x108a   :  { %v28691_v34 = vpack.c.bf16 %v30099_v44, %v30097_v20 }
0x108b   :  { %23045 = vmatmul.mubr.f32.vlgmr.msra.gmra.mrb[42].mxu0 %v28609_v27 }
0x108c   :  { %24651 = vmatpush3.bf16.msra.mxu0 %v24650_v39  ;;  %23066 = vmatprep.mubr.msk.f32.mxu0 %vm25810_vm2, %v29793_v40  ;;  %v28712_v39 = vpack.c.bf16 %v13282_v7, %v13275_v55 }
0x108d   :  { %24652 = vmatprep.subr.bf16.mxu0 %v29791_v49 }
0x1090   :  { %24654 = vmatpush3.bf16.msra.mxu0 %v24653_v8 }
0x1091   :  { %24661 = vmatprep.subr.bf16.mxu0 %v29791_v49 }
0x1093   :  { %23067 = vmatmul.mubr.f32.vlgmr.msra.gmra.mrb[44].mxu0 %v28609_v27 }
0x1094   :  { %24663 = vmatpush3.bf16.msra.mxu0 %v28569_v37  ;;  %23088 = vmatprep.mubr.msk.f32.mxu0 %vm25810_vm2, %v29793_v40 }
0x1095   :  { %24664 = vmatprep.subr.bf16.mxu0 %v29791_v49 }
0x1098   :  { %24666 = vmatpush3.bf16.msra.mxu0 %v28577_v3 }
0x1099   :  { %24673 = vmatprep.subr.bf16.mxu0 %v29791_v49 }
0x109b   :  { %23089 = vmatmul.mubr.f32.vlgmr.msra.gmra.mrb[46].mxu0 %v12211_v35 }
0x109c   :  { %24675 = vmatpush3.bf16.msra.mxu0 %v28569_v37  ;;  %23110 = vmatprep.mubr.msk.f32.mxu0 %vm25810_vm2, %v29793_v40  ;;  %v30100_v37 = vld [vmem:[#allocation130_spill] sm:$0xff] }
0x109d   :  { %24676 = vmatprep.subr.bf16.mxu0 %v29791_v49  ;;  %v13744_v41 = vand.u32 4294901760, %v30100_v37 }
0x109f   :  { %v13745_v61 = vsub.f32 %v30100_v37, %v13744_v41  ;;  %v28708_v48 = vpack.c.bf16 %v13751_v0, %v13744_v41 }
0x10a0   :  { %24678 = vmatpush3.bf16.msra.mxu0 %v28577_v3  ;;  %v13752_v3 = vsub.f32 %v30101_v15, %v13751_v0 }
0x10a1   :  { %24697 = vmatprep.subr.bf16.mxu0 %v29791_v49  ;;  %v13746_v47 = vand.u32 4294901760, %v13745_v61 }
0x10a2   :  { %v13753_v62 = vand.u32 4294901760, %v13752_v3 }
0x10a3   :  { %23111 = vmatmul.mubr.f32.vlgmr.msra.gmra.mrb[48].mxu0 %v28609_v27 }
0x10a4   :  { %24699 = vmatpush3.bf16.msra.mxu0 %v28691_v34  ;;  %23159 = vmatprep.mubr.msk.f32.mxu0 %vm25810_vm2, %v29793_v40  ;;  %v28710_v6 = vpack.c.bf16 %v13753_v62, %v13746_v47 }
0x10a5   :  { %24700 = vmatprep.subr.bf16.mxu0 %v29791_v49 }
0x1136   :  { %v12719_v8 = vpop.f32.mrb[48].mxu1 }
0x1137   :  { %v23057_v17 = vpop.f32.mrb[49].mxu1  ;;  %v12720_v38 = vadd.f32 %v12719_v8, %v30105_v33 }
0x113e   :  { %v12890_v28 = vpop.f32.mrb[50].mxu1 }
0x113f   :  { %v23079_v4 = vpop.f32.mrb[51].mxu1 }
0x1146   :  { %v13050_v50 = vpop.f32.mrb[52].mxu1 }
0x1147   :  { %v23101_v54 = vpop.f32.mrb[53].mxu1 }
0x115e   :  { %v12621_v27 = vpop.f32.mrb[42].mxu0 }
0x115f   :  { %v25129_v35 = vadd.f32 %v12621_v27, %v30104_v32  ;;  %v23046_v63 = vpop.f32.mrb[43].mxu0 }
0x1161   :  { %25551 = vtanh.f32 %v25129_v35 }
0x1166   :  { %v12810_v52 = vpop.f32.mrb[44].mxu0 }
0x1167   :  { %v12811_v9 = vadd.f32 %v12810_v52, %v12720_v38  ;;  %v23068_v5 = vpop.f32.mrb[45].mxu0 }
0x1169   :  { %v12891_v16 = vadd.f32 %v12890_v28, %v12811_v9 }
0x116b   :  { %v25552_v59 = vpop.eup %25551 }
0x116c   :  { %v12628_v45 = vmul.f32 %v25552_v59, %v12627_v56 }
0x116e   :  { %v12967_v31 = vpop.f32.mrb[46].mxu0  ;;  %v13135_v20 = vsel %vm638_vm1, %v12628_v45, 0.0  ;;  %v13129_v29 = vmul.f32 1.442695, %v12628_v45 }
0x116f   :  { %v12968_v44 = vadd.f32 %v12967_v31, %v12891_v16  ;;  %v23090_v41 = vpop.f32.mrb[47].mxu0  ;;  %13136 = vadd.xlane.f32.xlu0 %v13135_v20 }
0x1170   :  { %25553 = vpow2.f32 %v13129_v29 }
0x1171   :  { %v13051_v0 = vadd.f32 %v13050_v50, %v12968_v44 }
0x1176   :  { %v13125_v61 = vpop.f32.mrb[48].mxu0 }
0x1177   :  { %v13126_v51 = vadd.f32 %v13125_v61, %v13051_v0  ;;  %v23112_v3 = vpop.f32.mrb[49].mxu0 }
0x117a   :  { %v25554_v43 = vpop.eup %25553 }
0x117b   :  { %v13131_v47 = vmul.f32 %v25554_v43, %v28539_v57 }
0x117d   :  { %v13132_v26 = vadd.f32 %v13131_v47, %v13126_v51 }
0x117f   :  { %v13139_v62 = vsel %vm638_vm1, %v13132_v26, 0.0  ;;  %v13146_v19 = vmul.f32 %v13132_v26, %v13132_v26 }
0x1180   :  { %v13140_v55 = vrot.slane %v13139_v62, 4 }
0x1181   :  { %v13147_v7 = vsel %vm638_vm1, %v13146_v19, 0.0 }
0x1182   :  { %v13141_v8 = vadd.f32 %v13140_v55, %v13139_v62  ;;  %v13148_v17 = vrot.slane %v13147_v7, 4 }
0x1184   :  { %v13142_v28 = vrot.slane %v13141_v8, 2  ;;  %v13149_v4 = vadd.f32 %v13148_v17, %v13147_v7  ;;  %v30114_v7 = vld [vmem:[#allocation118_spill] sm:$0xff]  ;;  %v30116_v17 = vld [vmem:[#allocation115_spill] sm:$0xff] }
0x1186   :  { %v13143_v54 = vadd.f32 %v13142_v28, %v13141_v8  ;;  %v13150_v27 = vrot.slane %v13149_v4, 2  ;;  %v30117_v28 = vand.u32 4294901760, %v30116_v17 }
0x1188   :  { %v13144_v50 = vrot.slane %v13143_v54, 1  ;;  %v13151_v32 = vadd.f32 %v13150_v27, %v13149_v4  ;;  %v30118_v4 = vld [vmem:[#allocation71_spill] sm:$0xff] }
0x118a   :  { %v13145_v35 = vadd.f32 %v13144_v50, %v13143_v54  ;;  %v13152_v63 = vrot.slane %v13151_v32, 1  ;;  %v30119_v54 = vand.u32 4294901760, %v30118_v4  ;;  %v30120_v50 = vld [vmem:[#allocation76_spill] sm:$0xff] }
0x118c   :  { %v13154_v33 = vmul.f32 0.125, %v13145_v35  ;;  %v13153_v38 = vadd.f32 %v13152_v63, %v13151_v32  ;;  %v28784_v27 = vpack.c.bf16 %v30119_v54, %v30117_v28  ;;  %v30121_v32 = vand.u32 4294901760, %v30120_v50 }
0x118e   :  { %v13155_v57 = vmul.f32 %v13154_v33, %v13145_v35  ;;  %v13159_v59 = vsub.f32 %v13132_v26, %v13154_v33  ;;  %v30122_v35 = vld [vmem:[#allocation120_spill] sm:$0xff] }
0x118f   :  { %v30123_v63 = vand.u32 4294901760, %v30122_v35 }
0x1190   :  { %v13156_v52 = vsub.f32 %v13153_v38, %v13155_v57  ;;  %v30124_v38 = vld [vmem:[#allocation134_spill] sm:$0xff] }
0x1191   :  { %v28793_v33 = vpack.c.bf16 %v30123_v63, %v30121_v32  ;;  %v14235_v57 = vand.u32 4294901760, %v30124_v38 }
0x1192   :  { %v13157_v9 = vmul.f32 0.14285715, %v13156_v52  ;;  %v30125_v52 = vld [vmem:[#allocation136_spill] sm:$0xff] }
0x1193   :  { %v30129_v35 = vpack.c.bf16 %v30124_v38, %v30125_v52 }
0x1194   :  { %v13158_v5 = vmax.f32 %v13157_v9, 0.0  ;;  %v14228_v9 = vand.u32 4294901760, %v30125_v52 }
0x1196   :  { %v13160_v16 = vadd.f32 1e-12, %v13158_v5  ;;  %25555 = vrsqrt.f32 %v13158_v5  ;;  %vm13165_vm15 = vcmp.eq.f32.partialorder %v13158_v5, inf  ;;  %v13168_v20 = vand.u32 2147483648, %v13158_v5 }
0x1197   :  { %vm13167_vm0 = vcmp.eq.f32.partialorder %v13158_v5, 0.0 }
0x1198   :  { %25557 = vrsqrt.f32 %v13160_v16  ;;  %v30126_v16 = vld [vmem:[#allocation138_spill] sm:$0xff] }
0x11a0   :  { %v25556_v56 = vpop.eup %25555 }
0x11a1   :  { %v13164_v45 = vmul.f32 %v25556_v56, %v13158_v5  ;;  %v14249_v56 = vand.u32 4294901760, %v30126_v16 }
0x11a2   :  { %v25558_v31 = vpop.eup %25557 }
0x11a3   :  { %v13162_v29 = vmul.f32 %v25558_v31, %v13159_v59  ;;  %v13166_v44 = vsel %vm13165_vm15, %v13158_v5, %v13164_v45  ;;  %v14236_v5 = vsub.f32 %v30124_v38, %v14235_v57  ;;  %v14229_v59 = vsub.f32 %v30125_v52, %v14228_v9  ;;  %v30127_v45 = vld [vmem:[#allocation139_spill] sm:$0xff]  ;;  %v30131_v38 = vld [vmem:[#allocation78_spill] sm:$0xff]  ;;  %v30133_v52 = vld [vmem:[#allocation121_spill] sm:$0xff] }
0x11a4   :  { %v13169_v41 = vsel %vm13167_vm0, %v13168_v20, %v13166_v44  ;;  %v14242_v31 = vand.u32 4294901760, %v30127_v45  ;;  %v30130_v63 = vpack.c.bf16 %v30126_v16, %v30127_v45 }
0x11a5   :  { %v13191_v0 = vsel %vm638_vm1, %v13162_v29, 0  ;;  %v13170_v61 = vadd.f32 1e-06, %v13169_v41  ;;  %v14237_v20 = vand.u32 4294901760, %v14236_v5  ;;  %v14250_v29 = vsub.f32 %v30126_v16, %v14249_v56  ;;  %v30135_v16 = vld [vmem:[#allocation81_spill] sm:$0xff] }
0x11a6   :  { %v13260_v51 = vand.u32 4294901760, %v13191_v0  ;;  %v14230_v44 = vand.u32 4294901760, %v14229_v59  ;;  %v14243_v41 = vsub.f32 %v30127_v45, %v14242_v31  ;;  %v30137_v59 = vld [vmem:[#allocation123_spill] sm:$0xff] }
0x11a7   :  { %25559 = vlog2.f32 %v13170_v61  ;;  %v14251_v61 = vand.u32 4294901760, %v14250_v29 }
0x11a8   :  { %v13261_v3 = vsub.f32 %v13191_v0, %v13260_v51  ;;  %v24740_v0 = vpack.c.bf16 %v14235_v57, %v14228_v9  ;;  %v30132_v57 = vand.u32 4294901760, %v30131_v38  ;;  %v30134_v9 = vand.u32 4294901760, %v30133_v52 }
0x11aa   :  { %v13262_v43 = vand.u32 4294901760, %v13261_v3  ;;  %v28848_v5 = vpack.c.bf16 %v30134_v9, %v30132_v57 }
0x11ac   :  { %v13263_v47 = vsub.f32 %v13261_v3, %v13262_v43 }
0x11ae   :  { %v13264_v62 = vand.u32 4294901760, %v13263_v47 }
0x11b0   :  { %23118 = vmatmul.mubr.f32.vlgmr.msra.gmra.mrb[54].mxu1 %v13264_v62  ;;  %23160 = vmatmul.mubr.f32.vlgmr.msra.gmra.mrb[50].mxu0 %v13264_v62 }
0x11b1   :  { %v25560_v26 = vpop.eup %25559  ;;  %24702 = vmatpush3.bf16.msra.mxu0 %v28710_v6  ;;  %24684 = vmatpush3.bf16.msra.mxu1 %v28712_v39  ;;  %v30106_v6 = vpack.c.bf16 %v30101_v15, %v30100_v37  ;;  %v30107_v39 = vpack.c.bf16 %v30103_v22, %v30102_v12  ;;  %v30108_v37 = vld [vmem:[#allocation113_spill] sm:$0xff] }
0x11b2   :  { %v13172_v19 = vmul.f32 0.6931472, %v25560_v26  ;;  %23124 = vmatprep.mubr.msk.f32.mxu1 %vm25810_vm2, %v29793_v40  ;;  %23166 = vmatprep.mubr.msk.f32.mxu0 %vm25810_vm2, %v29793_v40  ;;  %v30109_v15 = vand.u32 4294901760, %v30108_v37  ;;  %v30110_v12 = vld [vmem:[#allocation69_spill] sm:$0xff] }
0x11b3   :  { %24703 = vmatprep.subr.bf16.mxu0 %v29791_v49  ;;  %24685 = vmatprep.subr.bf16.mxu1 %v29791_v49  ;;  %v30111_v22 = vand.u32 4294901760, %v30110_v12 }
0x11b4   :  { %v13173_v55 = vsel %vm673_vm6, %v13172_v19, 0.0 }
0x11b5   :  { %13174 = vadd.xlane.f32.xlu1 %v13173_v55 }
0x11b8   :  { %23125 = vmatmul.mubr.f32.vlgmr.msra.gmra.mrb[54].mxu1 %v13260_v51  ;;  %23167 = vmatmul.mubr.f32.vlgmr.msra.gmra.mrb[50].mxu0 %v13260_v51 }
0x11b9   :  { %24705 = vmatpush3.bf16.msra.mxu0 %v30106_v6  ;;  %24687 = vmatpush3.bf16.msra.mxu1 %v30107_v39 }
0x11ba   :  { %23131 = vmatprep.mubr.msk.f32.mxu1 %vm25810_vm2, %v29793_v40  ;;  %23173 = vmatprep.mubr.msk.f32.mxu0 %vm25810_vm2, %v29793_v40 }
0x11bb   :  { %24706 = vmatprep.subr.bf16.mxu0 %v29791_v49  ;;  %24688 = vmatprep.subr.bf16.mxu1 %v29791_v49 }
0x11c0   :  { %23132 = vmatmul.mubr.f32.vlgmr.msra.gmra.mrb[54].mxu1 %v13261_v3  ;;  %23174 = vmatmul.mubr.f32.vlgmr.msra.gmra.mrb[50].mxu0 %v13261_v3  ;;  %v24722_v3 = vpack.c.bf16 %v14237_v20, %v14230_v44  ;;  %v30140_v20 = vld [vmem:[#allocation140_spill] sm:$0xff] }
0x11c1   :  { %24708 = vmatpush3.bf16.msra.mxu0 %v28691_v34  ;;  %24690 = vmatpush3.bf16.msra.mxu1 %v28643_v13  ;;  %v14739_v29 = vand.u32 4294901760, %v30140_v20 }
0x11c2   :  { %23138 = vmatprep.mubr.msk.f32.mxu1 %vm25810_vm2, %v29793_v40  ;;  %23180 = vmatprep.mubr.msk.f32.mxu0 %vm25810_vm2, %v29793_v40 }
0x11c3   :  { %24709 = vmatprep.subr.bf16.mxu0 %v29791_v49  ;;  %24691 = vmatprep.subr.bf16.mxu1 %v29791_v49 }
0x11c8   :  { %23139 = vmatmul.mubr.f32.vlgmr.msra.gmra.mrb[54].mxu1 %v13262_v43  ;;  %23181 = vmatmul.mubr.f32.vlgmr.msra.gmra.mrb[50].mxu0 %v13262_v43  ;;  %v24743_v43 = vpack.c.bf16 %v14249_v56, %v14242_v31  ;;  %v30136_v56 = vand.u32 4294901760, %v30135_v16  ;;  %v30143_v16 = vld [vmem:[#allocation116_spill] sm:$0xff] }
0x11c9   :  { %24711 = vmatpush3.bf16.msra.mxu0 %v28708_v48  ;;  %24693 = vmatpush3.bf16.msra.mxu1 %v28714_v11  ;;  %v28772_v48 = vpack.c.bf16 %v30111_v22, %v30109_v15  ;;  %v30112_v11 = vld [vmem:[#allocation73_spill] sm:$0xff]  ;;  %v30128_v22 = vld [vmem:[#allocation67_spill] sm:$0xff] }
0x11ca   :  { %23145 = vmatprep.mubr.msk.f32.mxu1 %vm25810_vm2, %v29793_v40  ;;  %23187 = vmatprep.mubr.msk.f32.mxu0 %vm25810_vm2, %v29793_v40 }
0x11cb   :  { %24712 = vmatprep.subr.bf16.mxu0 %v29791_v49  ;;  %24694 = vmatprep.subr.bf16.mxu1 %v29791_v49 }
0x11d0   :  { %23146 = vmatmul.mubr.f32.vlgmr.msra.gmra.mrb[54].mxu1 %v13260_v51  ;;  %23188 = vmatmul.mubr.f32.vlgmr.msra.gmra.mrb[50].mxu0 %v13260_v51 }
0x11d1   :  { %24714 = vmatpush3.bf16.msra.mxu0 %v28691_v34  ;;  %24696 = vmatpush3.bf16.msra.mxu1 %v28643_v13  ;;  %v30113_v34 = vand.u32 4294901760, %v30112_v11  ;;  %v30115_v13 = vand.u32 4294901760, %v30114_v7 }
0x11d2   :  { %23152 = vmatprep.mubr.msk.f32.mxu1 %vm25810_vm2, %v29793_v40  ;;  %23194 = vmatprep.mubr.msk.f32.mxu0 %vm25810_vm2, %v29793_v40 }
0x11d3   :  { %24715 = vmatprep.subr.bf16.mxu1 %v29791_v49  ;;  %24751 = vmatprep.subr.bf16.mxu0 %v29791_v49  ;;  %v28778_v8 = vpack.c.bf16 %v30115_v13, %v30113_v34 }
0x11d8   :  { %23153 = vmatmul.mubr.f32.vlgmr.msra.gmra.mrb[54].mxu1 %v13260_v51  ;;  %23195 = vmatmul.mubr.f32.vlgmr.msra.gmra.mrb[50].mxu0 %v13260_v51  ;;  %v14244_v51 = vand.u32 4294901760, %v14243_v41  ;;  %v30141_v41 = vld [vmem:[#allocation142_spill] sm:$0xff] }
0x11d9   :  { %24717 = vmatpush3.bf16.msra.mxu1 %v28772_v48  ;;  %23205 = vmatprep.mubr.msk.f32.mxu1 %vm25810_vm2, %v29793_v40 }
0x11da   :  { %24718 = vmatprep.subr.bf16.mxu1 %v29791_v49  ;;  %24753 = vmatpush3.bf16.msra.mxu0 %v28778_v8  ;;  %v24725_v47 = vpack.c.bf16 %v14251_v61, %v14244_v51  ;;  %v14740_v61 = vsub.f32 %v30140_v20, %v14739_v29  ;;  %v30142_v51 = vld [vmem:[#allocation143_spill] sm:$0xff] }
0x11db   :  { %24754 = vmatprep.subr.bf16.mxu0 %v29791_v49  ;;  %23271 = vmatprep.mubr.msk.f32.mxu0 %vm25810_vm2, %v29793_v40 }
0x11dd   :  { %24720 = vmatpush3.bf16.msra.mxu1 %v28784_v27 }
0x11de   :  { %24721 = vmatprep.subr.bf16.mxu1 %v29791_v49  ;;  %24756 = vmatpush3.bf16.msra.mxu0 %v28793_v33 }
0x11df   :  { %24757 = vmatprep.subr.bf16.mxu0 %v29791_v49 }
0x1242   :  { %v13175_v62 = vpop.xlane.xlu1 %13174 }
0x1243   :  { %v13176_v26 = vrot.slane %v13175_v62, 4 }
0x1245   :  { %v13177_v19 = vadd.f32 %v13176_v26, %v13175_v62  ;;  %v14741_v62 = vand.u32 4294901760, %v14740_v61 }
0x1247   :  { %v13178_v55 = vrot.slane %v13177_v19, 2 }
0x1249   :  { %v13179_v6 = vadd.f32 %v13178_v55, %v13177_v19 }
0x124b   :  { %v13180_v39 = vrot.slane %v13179_v6, 1 }
0x124d   :  { %v13181_v37 = vadd.f32 %v13180_v39, %v13179_v6 }
0x124f   :  { %25477 = vpush %v13181_v37 }
0x12ab   :  { %v28812_v15 = vpop.f32.mrb[54].mxu1  ;;  %v14119_v12 = vpop.f32.mrb[50].mxu0 }
0x12ac   :  { %v25130_v11 = vadd.f32 %v14119_v12, %v30128_v22  ;;  %v23154_v34 = vpop.f32.mrb[55].mxu1  ;;  %v23196_v7 = vpop.f32.mrb[51].mxu0  ;;  %v15236_v22 = vand.u32 4294901760, %v27239_v10 }
0x12ad   :  { %v15250_v34 = vand.u32 4294901760, %v27249_v2  ;;  %v15257_v7 = vand.u32 4294901760, %v27279_v60 }
0x12ae   :  { %v14123_v13 = vmax.f32 %v25130_v11, 0.0  ;;  %v15243_v11 = vand.u32 4294901760, %v27267_v25 }
0x12b0   :  { %v14144_v17 = vsel %vm1622_vm3, %v14123_v13, 0  ;;  %v24812_v13 = vpack.c.bf16 %v15243_v11, %v15236_v22 }
0x12b1   :  { %v14215_v28 = vand.u32 4294901760, %v14144_v17 }
0x12b3   :  { %v14216_v4 = vsub.f32 %v14144_v17, %v14215_v28  ;;  %v24815_v17 = vpack.c.bf16 %v15257_v7, %v15250_v34 }
0x12b5   :  { %v14217_v54 = vand.u32 4294901760, %v14216_v4 }
0x12b7   :  { %v14218_v50 = vsub.f32 %v14216_v4, %v14217_v54 }
0x12b9   :  { %v14219_v32 = vand.u32 4294901760, %v14218_v50  ;;  %v15258_v50 = vsub.f32 %v27279_v60, %v15257_v7 }
0x12bb   :  { %23206 = vmatmul.mubr.f32.vlgmr.msra.gmra.mrb[56].mxu1 %v14219_v32  ;;  %v15259_v38 = vand.u32 4294901760, %v15258_v50 }
0x12bc   :  { %24723 = vmatpush3.bf16.msra.mxu1 %v24722_v3  ;;  %23216 = vmatprep.mubr.msk.f32.mxu1 %vm25810_vm2, %v29793_v40  ;;  %v14753_v3 = vand.u32 4294901760, %v30142_v51 }
0x12bd   :  { %24724 = vmatprep.subr.bf16.mxu1 %v29791_v49 }
0x12be   :  { %v14754_v26 = vsub.f32 %v30142_v51, %v14753_v3 }
0x12c0   :  { %24726 = vmatpush3.bf16.msra.mxu1 %v24725_v47  ;;  %v14755_v6 = vand.u32 4294901760, %v14754_v26  ;;  %v30156_v26 = vld [vmem:[#allocation152_spill] sm:$0xff] }
0x12c1   :  { %24727 = vmatprep.subr.bf16.mxu1 %v29791_v49 }
0x12c3   :  { %23217 = vmatmul.mubr.f32.vlgmr.msra.gmra.mrb[56].mxu1 %v14215_v28 }
0x12c4   :  { %24729 = vmatpush3.bf16.msra.mxu1 %v30129_v35  ;;  %23227 = vmatprep.mubr.msk.f32.mxu1 %vm25810_vm2, %v29793_v40 }
0x12c5   :  { %24730 = vmatprep.subr.bf16.mxu1 %v29791_v49 }
0x12c8   :  { %24732 = vmatpush3.bf16.msra.mxu1 %v30130_v63 }
0x12c9   :  { %24733 = vmatprep.subr.bf16.mxu1 %v29791_v49 }
0x12cb   :  { %23228 = vmatmul.mubr.f32.vlgmr.msra.gmra.mrb[56].mxu1 %v14216_v4  ;;  %v15244_v4 = vsub.f32 %v27267_v25, %v15243_v11 }
0x12cc   :  { %24735 = vmatpush3.bf16.msra.mxu1 %v28772_v48  ;;  %23238 = vmatprep.mubr.msk.f32.mxu1 %vm25810_vm2, %v29793_v40 }
0x12cd   :  { %24736 = vmatprep.subr.bf16.mxu1 %v29791_v49  ;;  %v15245_v35 = vand.u32 4294901760, %v15244_v4 }
0x12d0   :  { %24738 = vmatpush3.bf16.msra.mxu1 %v28784_v27 }
0x12d1   :  { %24739 = vmatprep.subr.bf16.mxu1 %v29791_v49 }
0x12d3   :  { %23239 = vmatmul.mubr.f32.vlgmr.msra.gmra.mrb[56].mxu1 %v14217_v54  ;;  %v15251_v54 = vsub.f32 %v27249_v2, %v15250_v34 }
0x12d4   :  { %24741 = vmatpush3.bf16.msra.mxu1 %v24740_v0  ;;  %23249 = vmatprep.mubr.msk.f32.mxu1 %vm25810_vm2, %v29793_v40  ;;  %v14746_v0 = vand.u32 4294901760, %v30141_v41 }
0x12d5   :  { %24742 = vmatprep.subr.bf16.mxu1 %v29791_v49  ;;  %v15252_v63 = vand.u32 4294901760, %v15251_v54 }
0x12d6   :  { %v14747_v47 = vsub.f32 %v30141_v41, %v14746_v0  ;;  %v28874_v37 = vpack.c.bf16 %v14753_v3, %v14746_v0 }
0x12d7   :  { %v24797_v52 = vpack.c.bf16 %v15259_v38, %v15252_v63 }
0x12d8   :  { %24744 = vmatpush3.bf16.msra.mxu1 %v24743_v43  ;;  %v14748_v55 = vand.u32 4294901760, %v14747_v47  ;;  %v30145_v47 = vpack.c.bf16 %v27279_v60, %v27249_v2  ;;  %v30148_v2 = vand.u32 4294901760, %v26922_v24  ;;  %v30149_v60 = vld [vmem:[#allocation137_spill] sm:$0xff]  ;;  %v30151_v24 = vld [vmem:[#allocation86_spill] sm:$0xff] }
0x12d9   :  { %24745 = vmatprep.subr.bf16.mxu1 %v29791_v49 }
0x12da   :  { %v24761_v12 = vpack.c.bf16 %v14755_v6, %v14748_v55  ;;  %v30157_v6 = vld [vmem:[#allocation155_spill] sm:$0xff] }
0x12db   :  { %23250 = vmatmul.mubr.f32.vlgmr.msra.gmra.mrb[56].mxu1 %v14215_v28 }
0x12dc   :  { %24747 = vmatpush3.bf16.msra.mxu1 %v28772_v48  ;;  %23260 = vmatprep.mubr.msk.f32.mxu1 %vm25810_vm2, %v29793_v40  ;;  %v30138_v48 = vand.u32 4294901760, %v30137_v59 }
0x12dd   :  { %24748 = vmatprep.subr.bf16.mxu1 %v29791_v49 }
0x12de   :  { %v28856_v45 = vpack.c.bf16 %v30138_v48, %v30136_v56 }
0x12e0   :  { %24750 = vmatpush3.bf16.msra.mxu1 %v28784_v27  ;;  %v30139_v27 = vld [vmem:[#allocation141_spill] sm:$0xff] }
0x12e1   :  { %24787 = vmatprep.subr.bf16.mxu1 %v29791_v49  ;;  %v14732_v31 = vand.u32 4294901760, %v30139_v27 }
0x12e3   :  { %23261 = vmatmul.mubr.f32.vlgmr.msra.gmra.mrb[56].mxu1 %v14215_v28  ;;  %v14733_v44 = vsub.f32 %v30139_v27, %v14732_v31  ;;  %v28872_v19 = vpack.c.bf16 %v14739_v29, %v14732_v31  ;;  %v15237_v28 = vsub.f32 %v27239_v10, %v15236_v22 }
0x12e4   :  { %24789 = vmatpush3.bf16.msra.mxu1 %v28848_v5  ;;  %23337 = vmatprep.mubr.msk.f32.mxu1 %vm25810_vm2, %v29793_v40 }
0x12e5   :  { %24790 = vmatprep.subr.bf16.mxu1 %v29791_v49  ;;  %v14734_v43 = vand.u32 4294901760, %v14733_v44  ;;  %v15238_v32 = vand.u32 4294901760, %v15237_v28 }
0x12e7   :  { %v24758_v39 = vpack.c.bf16 %v14741_v62, %v14734_v43  ;;  %v24794_v57 = vpack.c.bf16 %v15245_v35, %v15238_v32  ;;  %v30144_v43 = vpack.c.bf16 %v27267_v25, %v27239_v10  ;;  %v30146_v25 = vpack.c.bf16 %v30140_v20, %v30139_v27 }
0x12e8   :  { %24792 = vmatpush3.bf16.msra.mxu1 %v28856_v45  ;;  %v30147_v10 = vpack.c.bf16 %v30142_v51, %v30141_v41  ;;  %v30150_v27 = vand.u32 4294901760, %v30149_v60 }
0x12e9   :  { %24799 = vmatprep.subr.bf16.mxu1 %v29791_v49 }
0x12ea   :  { %v28920_v20 = vpack.c.bf16 %v30150_v27, %v30148_v2 }
0x13b6   :  { %v14627_v9 = vpop.f32.mrb[56].mxu1 }
0x13b7   :  { %v25131_v56 = vadd.f32 %v14627_v9, %v30143_v16  ;;  %v23262_v59 = vpop.f32.mrb[57].mxu1  ;;  %v30159_v16 = vld [vmem:[#allocation83_spill] sm:$0xff] }
0x13b9   :  { %v14631_v48 = vmax.f32 %v25131_v56, 0.0 }
0x13bb   :  { %v14648_v31 = vsel %vm1622_vm3, %v14631_v48, 0  ;;  %v30160_v48 = vld [vmem:[#allocation128_spill] sm:$0xff] }
0x13bc   :  { %v28886_v29 = vand.u32 4294901760, %v14648_v31 }
0x13be   :  { %v14720_v44 = vsub.f32 %v14648_v31, %v28886_v29 }
0x13c0   :  { %v14721_v0 = vand.u32 4294901760, %v14720_v44 }
0x13c2   :  { %v14722_v61 = vsub.f32 %v14720_v44, %v14721_v0 }
0x13c4   :  { %v14723_v3 = vand.u32 4294901760, %v14722_v61 }
0x13c6   :  { %23272 = vmatmul.mubr.f32.vlgmr.msra.gmra.mrb[52].mxu0 %v14723_v3  ;;  %23338 = vmatmul.mubr.f32.vlgmr.msra.gmra.mrb[58].mxu1 %v14723_v3  ;;  %v15137_v3 = vstv %s20692_s5 }
0x13c7   :  { %24759 = vmatpush3.bf16.msra.mxu0 %v24758_v39  ;;  %24801 = vmatpush3.bf16.msra.mxu1 %v30144_v43  ;;  %v15783_v39 = vand.u32 4294901760, %v30157_v6 }
0x13c8   :  { %24760 = vmatprep.subr.bf16.mxu0 %v29791_v49  ;;  %24802 = vmatprep.subr.bf16.mxu1 %v29791_v49 }
0x13c9   :  { %23359 = vmatprep.mubr.msk.f32.mxu1 %vm25810_vm2, %v29793_v40  ;;  %23282 = vmatprep.mubr.msk.f32.mxu0 %vm25810_vm2, %v29793_v40  ;;  %v15784_v11 = vsub.f32 %v30157_v6, %v15783_v39 }
0x13cb   :  { %24762 = vmatpush3.bf16.msra.mxu0 %v24761_v12  ;;  %24804 = vmatpush3.bf16.msra.mxu1 %v30145_v47 }
0x13cc   :  { %24763 = vmatprep.subr.bf16.mxu0 %v29791_v49  ;;  %24811 = vmatprep.subr.bf16.mxu1 %v29791_v49 }
0x13ce   :  { %23360 = vmatmul.mubr.f32.vlgmr.msra.gmra.mrb[60].mxu1 %v14720_v44  ;;  %23283 = vmatmul.mubr.f32.vlgmr.msra.gmra.mrb[52].mxu0 %v28886_v29 }
0x13cf   :  { %24765 = vmatpush3.bf16.msra.mxu0 %v30146_v25  ;;  %24813 = vmatpush3.bf16.msra.mxu1 %v24812_v13 }
0x13d0   :  { %24766 = vmatprep.subr.bf16.mxu0 %v29791_v49  ;;  %24814 = vmatprep.subr.bf16.mxu1 %v29791_v49 }
0x13d1   :  { %23381 = vmatprep.mubr.msk.f32.mxu1 %vm25810_vm2, %v29793_v40  ;;  %23293 = vmatprep.mubr.msk.f32.mxu0 %vm25810_vm2, %v29793_v40 }
0x13d3   :  { %24768 = vmatpush3.bf16.msra.mxu0 %v30147_v10  ;;  %24816 = vmatpush3.bf16.msra.mxu1 %v24815_v17  ;;  %v15785_v17 = vand.u32 4294901760, %v15784_v11 }
0x13d4   :  { %24769 = vmatprep.subr.bf16.mxu0 %v29791_v49  ;;  %24823 = vmatprep.subr.bf16.mxu1 %v29791_v49 }
0x13d6   :  { %23382 = vmatmul.mubr.f32.vlgmr.msra.gmra.mrb[62].mxu1 %v28886_v29  ;;  %23294 = vmatmul.mubr.f32.vlgmr.msra.gmra.mrb[52].mxu0 %v14720_v44 }
0x13d7   :  { %24771 = vmatpush3.bf16.msra.mxu0 %v28778_v8  ;;  %23304 = vmatprep.mubr.msk.f32.mxu0 %vm25810_vm2, %v29793_v40 }
0x13d8   :  { %24772 = vmatprep.subr.bf16.mxu0 %v29791_v49  ;;  %24825 = vmatpush3.bf16.msra.mxu1 %v28920_v20 }
0x13d9   :  { %23399 = vmatprep.mubr.msk.f32.mxu1 %vm25810_vm2, %v29793_v40  ;;  %24826 = vmatprep.subr.bf16.mxu1 %v29791_v49 }
0x13db   :  { %24774 = vmatpush3.bf16.msra.mxu0 %v28793_v33 }
0x13dc   :  { %24775 = vmatprep.subr.bf16.mxu0 %v29791_v49 }
0x13de   :  { %23305 = vmatmul.mubr.f32.vlgmr.msra.gmra.mrb[52].mxu0 %v14721_v0 }
0x13df   :  { %24777 = vmatpush3.bf16.msra.mxu0 %v28872_v19  ;;  %23315 = vmatprep.mubr.msk.f32.mxu0 %vm25810_vm2, %v29793_v40  ;;  %v16258_v19 = vand.u32 4294901760, %v30156_v26 }
0x13e0   :  { %24778 = vmatprep.subr.bf16.mxu0 %v29791_v49 }
0x13e3   :  { %24780 = vmatpush3.bf16.msra.mxu0 %v28874_v37  ;;  %v30158_v37 = vld [vmem:[#allocation156_spill] sm:$0xff] }
0x13e4   :  { %24781 = vmatprep.subr.bf16.mxu0 %v29791_v49  ;;  %v15790_v12 = vand.u32 4294901760, %v30158_v37 }
0x13e6   :  { %23316 = vmatmul.mubr.f32.vlgmr.msra.gmra.mrb[52].mxu0 %v28886_v29  ;;  %v15791_v7 = vsub.f32 %v30158_v37, %v15790_v12 }
0x13e7   :  { %24783 = vmatpush3.bf16.msra.mxu0 %v28778_v8  ;;  %23326 = vmatprep.mubr.msk.f32.mxu0 %vm25810_vm2, %v29793_v40  ;;  %v30152_v8 = vand.u32 4294901760, %v30151_v24 }
0x13e8   :  { %24784 = vmatprep.subr.bf16.mxu0 %v29791_v49  ;;  %v15792_v28 = vand.u32 4294901760, %v15791_v7 }
0x13ea   :  { %v28989_v54 = vpack.c.bf16 %v15792_v28, %v15785_v17 }
0x13eb   :  { %24786 = vmatpush3.bf16.msra.mxu0 %v28793_v33  ;;  %v30153_v33 = vld [vmem:[#allocation133_spill] sm:$0xff] }
0x13ec   :  { %24793 = vmatprep.subr.bf16.mxu0 %v29791_v49  ;;  %v30154_v41 = vand.u32 4294901760, %v30153_v33 }
0x13ee   :  { %23327 = vmatmul.mubr.f32.vlgmr.msra.gmra.mrb[52].mxu0 %v28886_v29  ;;  %v28968_v51 = vpack.c.bf16 %v30154_v41, %v30152_v8 }
0x13ef   :  { %24795 = vmatpush3.bf16.msra.mxu0 %v24794_v57  ;;  %23348 = vmatprep.mubr.msk.f32.mxu0 %vm25810_vm2, %v29793_v40 }
0x13f0   :  { %24796 = vmatprep.subr.bf16.mxu0 %v29791_v49 }
0x13f3   :  { %24798 = vmatpush3.bf16.msra.mxu0 %v24797_v52  ;;  %v28991_v52 = vpack.c.bf16 %v15790_v12, %v15783_v39 }
0x13f4   :  { %24805 = vmatprep.subr.bf16.mxu0 %v29791_v49 }
0x13f6   :  { %23349 = vmatmul.mubr.f32.vlgmr.msra.gmra.mrb[54].mxu0 %v28886_v29 }
0x13f7   :  { %24807 = vmatpush3.bf16.msra.mxu0 %v28848_v5  ;;  %23370 = vmatprep.mubr.msk.f32.mxu0 %vm25810_vm2, %v29793_v40 }
0x13f8   :  { %24808 = vmatprep.subr.bf16.mxu0 %v29791_v49 }
0x13fb   :  { %24810 = vmatpush3.bf16.msra.mxu0 %v28856_v45 }
0x13fc   :  { %24817 = vmatprep.subr.bf16.mxu0 %v29791_v49 }
0x13fe   :  { %23371 = vmatmul.mubr.f32.vlgmr.msra.gmra.mrb[56].mxu0 %v14721_v0 }
0x13ff   :  { %24819 = vmatpush3.bf16.msra.mxu0 %v28848_v5  ;;  %23392 = vmatprep.mubr.msk.f32.mxu0 %vm25810_vm2, %v29793_v40  ;;  %v30155_v5 = vld [vmem:[#allocation151_spill] sm:$0xff] }
0x1400   :  { %24820 = vmatprep.subr.bf16.mxu0 %v29791_v49  ;;  %v16251_v62 = vand.u32 4294901760, %v30155_v5 }
0x1402   :  { %v16252_v55 = vsub.f32 %v30155_v5, %v16251_v62  ;;  %v28985_v13 = vpack.c.bf16 %v16258_v19, %v16251_v62 }
0x1403   :  { %24822 = vmatpush3.bf16.msra.mxu0 %v28856_v45  ;;  %v16259_v45 = vsub.f32 %v30156_v26, %v16258_v19 }
0x1404   :  { %24841 = vmatprep.subr.bf16.mxu0 %v29791_v49  ;;  %v16253_v22 = vand.u32 4294901760, %v16252_v55 }
0x1405   :  { %v16260_v34 = vand.u32 4294901760, %v16259_v45 }
0x1406   :  { %23393 = vmatmul.mubr.f32.vlgmr.msra.gmra.mrb[58].mxu0 %v28886_v29 }
0x1407   :  { %24843 = vmatpush3.bf16.msra.mxu0 %v28968_v51  ;;  %23441 = vmatprep.mubr.msk.f32.mxu0 %vm25810_vm2, %v29793_v40  ;;  %v28987_v4 = vpack.c.bf16 %v16260_v34, %v16253_v22 }
0x1408   :  { %24844 = vmatprep.subr.bf16.mxu0 %v29791_v49 }
0x1499   :  { %v15229_v50 = vpop.f32.mrb[58].mxu1 }
0x149a   :  { %v23339_v32 = vpop.f32.mrb[59].mxu1  ;;  %v15230_v31 = vadd.f32 %v15229_v50, %v30160_v48 }
0x14a1   :  { %v15400_v35 = vpop.f32.mrb[60].mxu1 }
0x14a2   :  { %v23361_v63 = vpop.f32.mrb[61].mxu1 }
0x14a9   :  { %v15560_v38 = vpop.f32.mrb[62].mxu1 }
0x14aa   :  { %v23383_v57 = vpop.f32.mrb[63].mxu1 }
0x14c1   :  { %v15131_v9 = vpop.f32.mrb[52].mxu0 }
0x14c2   :  { %v25132_v56 = vadd.f32 %v15131_v9, %v30159_v16  ;;  %v23328_v59 = vpop.f32.mrb[53].mxu0 }
0x14c4   :  { %25561 = vtanh.f32 %v25132_v56 }
0x14c9   :  { %v15320_v29 = vpop.f32.mrb[54].mxu0 }
0x14ca   :  { %v15321_v44 = vadd.f32 %v15320_v29, %v15230_v31  ;;  %v23350_v0 = vpop.f32.mrb[55].mxu0 }
0x14cc   :  { %v15401_v61 = vadd.f32 %v15400_v35, %v15321_v44 }
0x14ce   :  { %v25562_v43 = vpop.eup %25561 }
0x14cf   :  { %v15138_v47 = vmul.f32 %v25562_v43, %v15137_v3 }
0x14d1   :  { %v15477_v25 = vpop.f32.mrb[56].mxu0  ;;  %v15645_v10 = vsel %vm638_vm1, %v15138_v47, 0.0  ;;  %v15639_v2 = vmul.f32 1.442695, %v15138_v47 }
0x14d2   :  { %v15478_v60 = vadd.f32 %v15477_v25, %v15401_v61  ;;  %v23372_v27 = vpop.f32.mrb[57].mxu0  ;;  %15646 = vadd.xlane.f32.xlu0 %v15645_v10 }
0x14d3   :  { %25563 = vpow2.f32 %v15639_v2 }
0x14d4   :  { %v15561_v24 = vadd.f32 %v15560_v38, %v15478_v60 }
0x14d9   :  { %v15635_v8 = vpop.f32.mrb[58].mxu0 }
0x14da   :  { %v15636_v33 = vadd.f32 %v15635_v8, %v15561_v24  ;;  %v23394_v41 = vpop.f32.mrb[59].mxu0 }
0x14dd   :  { %v25564_v62 = vpop.eup %25563 }
0x14de   :  { %v15641_v19 = vmul.f32 %v25564_v62, %v28812_v15 }
0x14e0   :  { %v15642_v55 = vadd.f32 %v15641_v19, %v15636_v33  ;;  %v30169_v19 = vld [vmem:[#allocation153_spill] sm:$0xff] }
0x14e2   :  { %v15649_v39 = vsel %vm638_vm1, %v15642_v55, 0.0  ;;  %v15656_v45 = vmul.f32 %v15642_v55, %v15642_v55 }
0x14e3   :  { %v15650_v12 = vrot.slane %v15649_v39, 4 }
0x14e4   :  { %v15657_v22 = vsel %vm638_vm1, %v15656_v45, 0.0 }
0x14e5   :  { %v15651_v11 = vadd.f32 %v15650_v12, %v15649_v39  ;;  %v15658_v34 = vrot.slane %v15657_v22, 4  ;;  %v30171_v39 = vld [vmem:[#allocation146_spill] sm:$0xff]  ;;  %v30173_v12 = vld [vmem:[#allocation97_spill] sm:$0xff] }
0x14e6   :  { %v30172_v45 = vand.u32 4294901760, %v30171_v39 }
0x14e7   :  { %v15652_v7 = vrot.slane %v15651_v11, 2  ;;  %v15659_v17 = vadd.f32 %v15658_v34, %v15657_v22  ;;  %v30174_v22 = vand.u32 4294901760, %v30173_v12  ;;  %v30175_v34 = vld [vmem:[#allocation106_spill] sm:$0xff] }
0x14e9   :  { %v15653_v28 = vadd.f32 %v15652_v7, %v15651_v11  ;;  %v15660_v50 = vrot.slane %v15659_v17, 2  ;;  %v29061_v11 = vpack.c.bf16 %v30174_v22, %v30172_v45  ;;  %v30176_v7 = vand.u32 4294901760, %v30175_v34  ;;  %v30185_v45 = vld [vmem:[#allocation108_spill] sm:$0xff] }
0x14ea   :  { %v30186_v12 = vand.u32 4294901760, %v30185_v45  ;;  %v30187_v22 = vand.u32 4294901760, %v27382_v42  ;;  %v17235_v42 = vand.u32 4294901760, %v27398_v36 }
0x14eb   :  { %v15654_v32 = vrot.slane %v15653_v28, 1  ;;  %v15661_v35 = vadd.f32 %v15660_v50, %v15659_v17  ;;  %v30177_v17 = vand.u32 4294901760, %v27363_v21  ;;  %v30178_v21 = vld [vmem:[#allocation157_spill] sm:$0xff] }
0x14ec   :  { %v16738_v50 = vand.u32 4294901760, %v30178_v21  ;;  %v29125_v34 = vpack.c.bf16 %v30187_v22, %v30186_v12 }
0x14ed   :  { %v15655_v63 = vadd.f32 %v15654_v32, %v15653_v28  ;;  %v15662_v38 = vrot.slane %v15661_v35, 1  ;;  %v29070_v28 = vpack.c.bf16 %v30177_v17, %v30176_v7  ;;  %v30179_v32 = vld [vmem:[#allocation159_spill] sm:$0xff]  ;;  %v30188_v7 = vand.u32 4294901760, %v27005_v30 }
0x14ee   :  { %v17236_v30 = vsub.f32 %v27398_v36, %v17235_v42 }
0x14ef   :  { %v15664_v57 = vmul.f32 0.125, %v15655_v63  ;;  %v15663_v9 = vadd.f32 %v15662_v38, %v15661_v35  ;;  %v16731_v35 = vand.u32 4294901760, %v30179_v32  ;;  %v30180_v38 = vld [vmem:[#allocation160_spill] sm:$0xff] }
0x14f1   :  { %v15665_v15 = vmul.f32 %v15664_v57, %v15655_v63  ;;  %v15669_v29 = vsub.f32 %v15642_v55, %v15664_v57  ;;  %v16739_v63 = vsub.f32 %v30178_v21, %v16738_v50  ;;  %v16752_v57 = vand.u32 4294901760, %v30180_v38 }
0x14f3   :  { %v15666_v16 = vsub.f32 %v15663_v9, %v15665_v15  ;;  %v16732_v9 = vsub.f32 %v30179_v32, %v16731_v35  ;;  %v30181_v15 = vld [vmem:[#allocation161_spill] sm:$0xff] }
0x14f4   :  { %v30184_v39 = vpack.c.bf16 %v30180_v38, %v30181_v15 }
0x14f5   :  { %v15667_v56 = vmul.f32 0.14285715, %v15666_v16  ;;  %v16745_v16 = vand.u32 4294901760, %v30181_v15 }
0x14f7   :  { %v15668_v59 = vmax.f32 %v15667_v56, 0.0  ;;  %v16740_v56 = vand.u32 4294901760, %v16739_v63 }
0x14f9   :  { %v15670_v48 = vadd.f32 1e-12, %v15668_v59  ;;  %25565 = vrsqrt.f32 %v15668_v59  ;;  %vm15675_vm4 = vcmp.eq.f32.partialorder %v15668_v59, inf  ;;  %v15678_v61 = vand.u32 2147483648, %v15668_v59 }
0x14fa   :  { %vm15677_vm5 = vcmp.eq.f32.partialorder %v15668_v59, 0.0 }
0x14fb   :  { %25567 = vrsqrt.f32 %v15670_v48  ;;  %v16733_v48 = vand.u32 4294901760, %v16732_v9 }
0x1503   :  { %v25566_v31 = vpop.eup %25565 }
0x1504   :  { %v15674_v44 = vmul.f32 %v25566_v31, %v15668_v59  ;;  %v16746_v31 = vsub.f32 %v30181_v15, %v16745_v16 }
0x1505   :  { %v25568_v0 = vpop.eup %25567 }
0x1506   :  { %v15672_v3 = vmul.f32 %v25568_v0, %v15669_v29  ;;  %v15676_v43 = vsel %vm15675_vm4, %v15668_v59, %v15674_v44  ;;  %v16753_v59 = vsub.f32 %v30180_v38, %v16752_v57  ;;  %v24884_v29 = vpack.c.bf16 %v16738_v50, %v16731_v35  ;;  %v30192_v35 = vld [vmem:[#allocation164_spill] sm:$0xff] }
0x1507   :  { %v15679_v47 = vsel %vm15677_vm5, %v15678_v61, %v15676_v43  ;;  %v16747_v0 = vand.u32 4294901760, %v16746_v31  ;;  %v24866_v61 = vpack.c.bf16 %v16740_v56, %v16733_v48  ;;  %v17256_v63 = vand.u32 4294901760, %v30192_v35 }
0x1508   :  { %v15701_v25 = vsel %vm638_vm1, %v15672_v3, 0  ;;  %v15680_v10 = vadd.f32 1e-06, %v15679_v47  ;;  %v16754_v44 = vand.u32 4294901760, %v16753_v59  ;;  %v24887_v3 = vpack.c.bf16 %v16752_v57, %v16745_v16 }
0x1509   :  { %v15770_v2 = vand.u32 4294901760, %v15701_v25  ;;  %v17237_v38 = vand.u32 4294901760, %v17236_v30  ;;  %v17257_v15 = vsub.f32 %v30192_v35, %v17256_v63 }
0x150a   :  { %25569 = vlog2.f32 %v15680_v10  ;;  %v24869_v43 = vpack.c.bf16 %v16754_v44, %v16747_v0  ;;  %v30193_v44 = vld [vmem:[#allocation165_spill] sm:$0xff] }
0x150b   :  { %v15771_v60 = vsub.f32 %v15701_v25, %v15770_v2  ;;  %v17258_v59 = vand.u32 4294901760, %v17257_v15  ;;  %v17739_v0 = vand.u32 4294901760, %v30193_v44  ;;  %v30211_v15 = vld [vmem:[#allocation172_spill] sm:$0xff] }
0x150d   :  { %v15772_v27 = vand.u32 4294901760, %v15771_v60 }
0x150f   :  { %v15773_v24 = vsub.f32 %v15771_v60, %v15772_v27 }
0x1511   :  { %v15774_v8 = vand.u32 4294901760, %v15773_v24 }
0x1513   :  { %23400 = vmatmul.mubr.f32.vlgmr.msra.gmra.mrb[64].mxu1 %v15774_v8  ;;  %23442 = vmatmul.mubr.f32.vlgmr.msra.gmra.mrb[60].mxu0 %v15774_v8 }
0x1514   :  { %v25570_v33 = vpop.eup %25569  ;;  %24846 = vmatpush3.bf16.msra.mxu0 %v28987_v4  ;;  %24828 = vmatpush3.bf16.msra.mxu1 %v28989_v54  ;;  %v30161_v4 = vpack.c.bf16 %v30156_v26, %v30155_v5  ;;  %v30162_v54 = vpack.c.bf16 %v30158_v37, %v30157_v6  ;;  %v30163_v5 = vld [vmem:[#allocation144_spill] sm:$0xff]  ;;  %v30165_v6 = vld [vmem:[#allocation94_spill] sm:$0xff] }
0x1515   :  { %v15682_v41 = vmul.f32 0.6931472, %v25570_v33  ;;  %23406 = vmatprep.mubr.msk.f32.mxu1 %vm25810_vm2, %v29793_v40  ;;  %23448 = vmatprep.mubr.msk.f32.mxu0 %vm25810_vm2, %v29793_v40  ;;  %v30164_v26 = vand.u32 4294901760, %v30163_v5  ;;  %v30166_v37 = vand.u32 4294901760, %v30165_v6 }
0x1516   :  { %24847 = vmatprep.subr.bf16.mxu0 %v29791_v49  ;;  %24829 = vmatprep.subr.bf16.mxu1 %v29791_v49 }
0x1517   :  { %v15683_v62 = vsel %vm673_vm6, %v15682_v41, 0.0  ;;  %v30182_v41 = vld [vmem:[#allocation91_spill] sm:$0xff] }
0x1518   :  { %15684 = vadd.xlane.f32.xlu1 %v15683_v62 }
0x151b   :  { %23407 = vmatmul.mubr.f32.vlgmr.msra.gmra.mrb[64].mxu1 %v15770_v2  ;;  %23449 = vmatmul.mubr.f32.vlgmr.msra.gmra.mrb[60].mxu0 %v15770_v2 }
0x151c   :  { %24849 = vmatpush3.bf16.msra.mxu0 %v30161_v4  ;;  %24831 = vmatpush3.bf16.msra.mxu1 %v30162_v54 }
0x151d   :  { %23413 = vmatprep.mubr.msk.f32.mxu1 %vm25810_vm2, %v29793_v40  ;;  %23455 = vmatprep.mubr.msk.f32.mxu0 %vm25810_vm2, %v29793_v40 }
0x151e   :  { %24850 = vmatprep.subr.bf16.mxu0 %v29791_v49  ;;  %24832 = vmatprep.subr.bf16.mxu1 %v29791_v49 }
0x1523   :  { %23414 = vmatmul.mubr.f32.vlgmr.msra.gmra.mrb[64].mxu1 %v15771_v60  ;;  %23456 = vmatmul.mubr.f32.vlgmr.msra.gmra.mrb[60].mxu0 %v15771_v60 }
0x1524   :  { %24852 = vmatpush3.bf16.msra.mxu0 %v28968_v51  ;;  %24834 = vmatpush3.bf16.msra.mxu1 %v28920_v20 }
0x1525   :  { %23420 = vmatprep.mubr.msk.f32.mxu1 %vm25810_vm2, %v29793_v40  ;;  %23462 = vmatprep.mubr.msk.f32.mxu0 %vm25810_vm2, %v29793_v40 }
0x1526   :  { %24853 = vmatprep.subr.bf16.mxu0 %v29791_v49  ;;  %24835 = vmatprep.subr.bf16.mxu1 %v29791_v49 }
0x152b   :  { %23421 = vmatmul.mubr.f32.vlgmr.msra.gmra.mrb[64].mxu1 %v15772_v27  ;;  %23463 = vmatmul.mubr.f32.vlgmr.msra.gmra.mrb[60].mxu0 %v15772_v27 }
0x152c   :  { %24855 = vmatpush3.bf16.msra.mxu0 %v28985_v13  ;;  %24837 = vmatpush3.bf16.msra.mxu1 %v28991_v52  ;;  %v29049_v13 = vpack.c.bf16 %v30166_v37, %v30164_v26  ;;  %v30167_v52 = vld [vmem:[#allocation104_spill] sm:$0xff] }
0x152d   :  { %23427 = vmatprep.mubr.msk.f32.mxu1 %vm25810_vm2, %v29793_v40  ;;  %23469 = vmatprep.mubr.msk.f32.mxu0 %vm25810_vm2, %v29793_v40 }
0x152e   :  { %24856 = vmatprep.subr.bf16.mxu0 %v29791_v49  ;;  %24838 = vmatprep.subr.bf16.mxu1 %v29791_v49 }
0x1533   :  { %23428 = vmatmul.mubr.f32.vlgmr.msra.gmra.mrb[64].mxu1 %v15770_v2  ;;  %23470 = vmatmul.mubr.f32.vlgmr.msra.gmra.mrb[60].mxu0 %v15770_v2 }
0x1534   :  { %24858 = vmatpush3.bf16.msra.mxu0 %v28968_v51  ;;  %24840 = vmatpush3.bf16.msra.mxu1 %v28920_v20  ;;  %v30168_v51 = vand.u32 4294901760, %v30167_v52  ;;  %v30170_v20 = vand.u32 4294901760, %v30169_v19 }
0x1535   :  { %23434 = vmatprep.mubr.msk.f32.mxu1 %vm25810_vm2, %v29793_v40  ;;  %23476 = vmatprep.mubr.msk.f32.mxu0 %vm25810_vm2, %v29793_v40 }
0x1536   :  { %24859 = vmatprep.subr.bf16.mxu1 %v29791_v49  ;;  %24895 = vmatprep.subr.bf16.mxu0 %v29791_v49  ;;  %v29055_v55 = vpack.c.bf16 %v30170_v20, %v30168_v51  ;;  %v30183_v20 = vpack.c.bf16 %v30178_v21, %v30179_v32 }
0x153b   :  { %23435 = vmatmul.mubr.f32.vlgmr.msra.gmra.mrb[64].mxu1 %v15770_v2  ;;  %23477 = vmatmul.mubr.f32.vlgmr.msra.gmra.mrb[60].mxu0 %v15770_v2 }
0x153c   :  { %24861 = vmatpush3.bf16.msra.mxu1 %v29049_v13  ;;  %23487 = vmatprep.mubr.msk.f32.mxu1 %vm25810_vm2, %v29793_v40 }
0x153d   :  { %24862 = vmatprep.subr.bf16.mxu1 %v29791_v49  ;;  %24897 = vmatpush3.bf16.msra.mxu0 %v29055_v55 }
0x153e   :  { %24898 = vmatprep.subr.bf16.mxu0 %v29791_v49  ;;  %23553 = vmatprep.mubr.msk.f32.mxu0 %vm25810_vm2, %v29793_v40 }
0x1540   :  { %24864 = vmatpush3.bf16.msra.mxu1 %v29061_v11 }
0x1541   :  { %24865 = vmatprep.subr.bf16.mxu1 %v29791_v49  ;;  %24900 = vmatpush3.bf16.msra.mxu0 %v29070_v28 }
0x1542   :  { %24901 = vmatprep.subr.bf16.mxu0 %v29791_v49 }
0x15a5   :  { %v15685_v47 = vpop.xlane.xlu1 %15684 }
0x15a6   :  { %v15686_v25 = vrot.slane %v15685_v47, 4 }
0x15a8   :  { %v15687_v10 = vadd.f32 %v15686_v25, %v15685_v47  ;;  %v30196_v25 = vld [vmem:[#allocation169_spill] sm:$0xff] }
0x15aa   :  { %v15688_v2 = vrot.slane %v15687_v10, 2 }
0x15ac   :  { %v15689_v60 = vadd.f32 %v15688_v2, %v15687_v10  ;;  %v17760_v10 = vand.u32 4294901760, %v30196_v25 }
0x15ae   :  { %v15690_v27 = vrot.slane %v15689_v60, 1 }
0x15b0   :  { %v15691_v24 = vadd.f32 %v15690_v27, %v15689_v60  ;;  %v17740_v27 = vsub.f32 %v30193_v44, %v17739_v0 }
0x15b2   :  { %25479 = vpush %v15691_v24 }
0x160e   :  { %v29089_v8 = vpop.f32.mrb[64].mxu1  ;;  %v16626_v33 = vpop.f32.mrb[60].mxu0 }
0x160f   :  { %v25133_v62 = vadd.f32 %v16626_v33, %v30182_v41  ;;  %v23436_v4 = vpop.f32.mrb[65].mxu1  ;;  %v23478_v54 = vpop.f32.mrb[61].mxu0  ;;  %v17761_v41 = vsub.f32 %v30196_v25, %v17760_v10 }
0x1611   :  { %v16630_v5 = vmax.f32 %v25133_v62, 0.0  ;;  %v17741_v62 = vand.u32 4294901760, %v17740_v27 }
0x1613   :  { %v16647_v26 = vsel %vm1622_vm3, %v16630_v5, 0  ;;  %v17762_v5 = vand.u32 4294901760, %v17761_v41 }
0x1614   :  { %v16718_v6 = vand.u32 4294901760, %v16647_v26 }
0x1616   :  { %v16719_v37 = vsub.f32 %v16647_v26, %v16718_v6 }
0x1618   :  { %v16720_v52 = vand.u32 4294901760, %v16719_v37 }
0x161a   :  { %v16721_v51 = vsub.f32 %v16719_v37, %v16720_v52 }
0x161c   :  { %v16722_v19 = vand.u32 4294901760, %v16721_v51 }
0x161e   :  { %23488 = vmatmul.mubr.f32.vlgmr.msra.gmra.mrb[66].mxu1 %v16722_v19 }
0x161f   :  { %24867 = vmatpush3.bf16.msra.mxu1 %v24866_v61  ;;  %23498 = vmatprep.mubr.msk.f32.mxu1 %vm25810_vm2, %v29793_v40  ;;  %v30194_v61 = vld [vmem:[#allocation166_spill] sm:$0xff] }
0x1620   :  { %24868 = vmatprep.subr.bf16.mxu1 %v29791_v49 }
0x1623   :  { %24870 = vmatpush3.bf16.msra.mxu1 %v24869_v43  ;;  %v30195_v43 = vld [vmem:[#allocation167_spill] sm:$0xff] }
0x1624   :  { %24871 = vmatprep.subr.bf16.mxu1 %v29791_v49  ;;  %v17753_v47 = vand.u32 4294901760, %v30195_v43 }
0x1626   :  { %23499 = vmatmul.mubr.f32.vlgmr.msra.gmra.mrb[66].mxu1 %v16718_v6  ;;  %v24959_v60 = vpack.c.bf16 %v17760_v10, %v17753_v47  ;;  %v17754_v33 = vsub.f32 %v30195_v43, %v17753_v47 }
0x1627   :  { %24873 = vmatpush3.bf16.msra.mxu1 %v30183_v20  ;;  %23509 = vmatprep.mubr.msk.f32.mxu1 %vm25810_vm2, %v29793_v40 }
0x1628   :  { %24874 = vmatprep.subr.bf16.mxu1 %v29791_v49  ;;  %v17755_v54 = vand.u32 4294901760, %v17754_v33 }
0x162b   :  { %24876 = vmatpush3.bf16.msra.mxu1 %v30184_v39 }
0x162c   :  { %24877 = vmatprep.subr.bf16.mxu1 %v29791_v49 }
0x162e   :  { %23510 = vmatmul.mubr.f32.vlgmr.msra.gmra.mrb[66].mxu1 %v16719_v37 }
0x162f   :  { %24879 = vmatpush3.bf16.msra.mxu1 %v29049_v13  ;;  %23520 = vmatprep.mubr.msk.f32.mxu1 %vm25810_vm2, %v29793_v40 }
0x1630   :  { %24880 = vmatprep.subr.bf16.mxu1 %v29791_v49 }
0x1633   :  { %24882 = vmatpush3.bf16.msra.mxu1 %v29061_v11 }
0x1634   :  { %24883 = vmatprep.subr.bf16.mxu1 %v29791_v49 }
0x1636   :  { %23521 = vmatmul.mubr.f32.vlgmr.msra.gmra.mrb[66].mxu1 %v16720_v52  ;;  %v30197_v52 = vld [vmem:[#allocation150_spill] sm:$0xff] }
0x1637   :  { %24885 = vmatpush3.bf16.msra.mxu1 %v24884_v29  ;;  %23531 = vmatprep.mubr.msk.f32.mxu1 %vm25810_vm2, %v29793_v40 }
0x1638   :  { %24886 = vmatprep.subr.bf16.mxu1 %v29791_v49 }
0x163b   :  { %24888 = vmatpush3.bf16.msra.mxu1 %v24887_v3  ;;  %v17746_v3 = vand.u32 4294901760, %v30194_v61 }
0x163c   :  { %24889 = vmatprep.subr.bf16.mxu1 %v29791_v49 }
0x163d   :  { %v24956_v2 = vpack.c.bf16 %v17746_v3, %v17739_v0  ;;  %v17747_v24 = vsub.f32 %v30194_v61, %v17746_v3 }
0x163e   :  { %23532 = vmatmul.mubr.f32.vlgmr.msra.gmra.mrb[66].mxu1 %v16718_v6 }
0x163f   :  { %24891 = vmatpush3.bf16.msra.mxu1 %v29049_v13  ;;  %23542 = vmatprep.mubr.msk.f32.mxu1 %vm25810_vm2, %v29793_v40  ;;  %v30189_v13 = vand.u32 4294901760, %v27427_v18  ;;  %v30191_v18 = vld [vmem:[#allocation162_spill] sm:$0xff]  ;;  %v17748_v4 = vand.u32 4294901760, %v17747_v24 }
0x1640   :  { %24892 = vmatprep.subr.bf16.mxu1 %v29791_v49  ;;  %v17249_v50 = vand.u32 4294901760, %v30191_v18 }
0x1641   :  { %v29133_v17 = vpack.c.bf16 %v30189_v13, %v30188_v7  ;;  %v24938_v26 = vpack.c.bf16 %v17748_v4, %v17741_v62 }
0x1642   :  { %v17250_v57 = vsub.f32 %v30191_v18, %v17249_v50  ;;  %v29151_v31 = vpack.c.bf16 %v17256_v63, %v17249_v50  ;;  %v30201_v50 = vpack.c.bf16 %v30192_v35, %v30191_v18  ;;  %v30208_v18 = vld [vmem:[#allocation170_spill] sm:$0xff] }
0x1643   :  { %24894 = vmatpush3.bf16.msra.mxu1 %v29061_v11  ;;  %v30190_v11 = vld [vmem:[#allocation163_spill] sm:$0xff]  ;;  %v30209_v35 = vand.u32 4294901760, %v30208_v18 }
0x1644   :  { %24931 = vmatprep.subr.bf16.mxu1 %v29791_v49  ;;  %v17242_v21 = vand.u32 4294901760, %v30190_v11  ;;  %v17251_v56 = vand.u32 4294901760, %v17250_v57  ;;  %v30200_v30 = vpack.c.bf16 %v30190_v11, %v27398_v36  ;;  %v30204_v36 = vld [vmem:[#allocation173_spill] sm:$0xff] }
0x1646   :  { %23543 = vmatmul.mubr.f32.vlgmr.msra.gmra.mrb[66].mxu1 %v16718_v6  ;;  %v17243_v32 = vsub.f32 %v30190_v11, %v17242_v21  ;;  %v29149_v16 = vpack.c.bf16 %v17242_v21, %v17235_v42  ;;  %v24905_v29 = vpack.c.bf16 %v17258_v59, %v17251_v56  ;;  %v24941_v6 = vpack.c.bf16 %v17762_v5, %v17755_v54  ;;  %v30213_v54 = vld [vmem:[#allocation112_spill] sm:$0xff] }
0x1647   :  { %24933 = vmatpush3.bf16.msra.mxu1 %v29125_v34  ;;  %23619 = vmatprep.mubr.msk.f32.mxu1 %vm25810_vm2, %v29793_v40  ;;  %v30198_v42 = vpack.c.bf16 %v30194_v61, %v30193_v44  ;;  %v30199_v21 = vpack.c.bf16 %v30196_v25, %v30195_v43  ;;  %v30205_v11 = vand.u32 4294901760, %v30204_v36  ;;  %v18286_v59 = vand.u32 4294901760, %v27482_v58 }
0x1648   :  { %24934 = vmatprep.subr.bf16.mxu1 %v29791_v49  ;;  %v17244_v9 = vand.u32 4294901760, %v17243_v32  ;;  %v30202_v32 = vld [vmem:[#allocation117_spill] sm:$0xff] }
0x1649   :  { %v30203_v63 = vand.u32 4294901760, %v30202_v32  ;;  %v18287_v44 = vsub.f32 %v27482_v58, %v18286_v59 }
0x164a   :  { %v24902_v48 = vpack.c.bf16 %v17244_v9, %v17237_v38 }
0x164b   :  { %24936 = vmatpush3.bf16.msra.mxu1 %v29133_v17  ;;  %v29197_v38 = vpack.c.bf16 %v30205_v11, %v30203_v63  ;;  %v18288_v43 = vand.u32 4294901760, %v18287_v44 }
0x164c   :  { %24943 = vmatprep.subr.bf16.mxu1 %v29791_v49 }
0x1719   :  { %v17130_v37 = vpop.f32.mrb[66].mxu1 }
0x171a   :  { %v25134_v51 = vadd.f32 %v17130_v37, %v30197_v52  ;;  %v23544_v19 = vpop.f32.mrb[67].mxu1 }
0x171c   :  { %v17134_v20 = vmax.f32 %v25134_v51, 0.0 }
0x171e   :  { %v17151_v39 = vsel %vm1622_vm3, %v17134_v20, 0 }
0x171f   :  { %v29163_v45 = vand.u32 4294901760, %v17151_v39 }
0x1721   :  { %v17223_v12 = vsub.f32 %v17151_v39, %v29163_v45  ;;  %v17640_v39 = vstv %s20693_s0 }
0x1723   :  { %v17224_v22 = vand.u32 4294901760, %v17223_v12 }
0x1725   :  { %v17225_v7 = vsub.f32 %v17223_v12, %v17224_v22 }
0x1727   :  { %v17226_v13 = vand.u32 4294901760, %v17225_v7 }
0x1729   :  { %23554 = vmatmul.mubr.f32.vlgmr.msra.gmra.mrb[62].mxu0 %v17226_v13  ;;  %23620 = vmatmul.mubr.f32.vlgmr.msra.gmra.mrb[68].mxu1 %v17226_v13 }
0x172a   :  { %24903 = vmatpush3.bf16.msra.mxu0 %v24902_v48  ;;  %24945 = vmatpush3.bf16.msra.mxu1 %v30198_v42  ;;  %v30212_v48 = vld [vmem:[#allocation174_spill] sm:$0xff] }
0x172b   :  { %24904 = vmatprep.subr.bf16.mxu0 %v29791_v49  ;;  %24946 = vmatprep.subr.bf16.mxu1 %v29791_v49 }
0x172c   :  { %23641 = vmatprep.mubr.msk.f32.mxu1 %vm25810_vm2, %v29793_v40  ;;  %23564 = vmatprep.mubr.msk.f32.mxu0 %vm25810_vm2, %v29793_v40 }
0x172e   :  { %24906 = vmatpush3.bf16.msra.mxu0 %v24905_v29  ;;  %24948 = vmatpush3.bf16.msra.mxu1 %v30199_v21 }
0x172f   :  { %24907 = vmatprep.subr.bf16.mxu0 %v29791_v49  ;;  %24955 = vmatprep.subr.bf16.mxu1 %v29791_v49 }
0x1731   :  { %23642 = vmatmul.mubr.f32.vlgmr.msra.gmra.mrb[70].mxu1 %v17223_v12  ;;  %23565 = vmatmul.mubr.f32.vlgmr.msra.gmra.mrb[62].mxu0 %v29163_v45 }
0x1732   :  { %24909 = vmatpush3.bf16.msra.mxu0 %v30200_v30  ;;  %24957 = vmatpush3.bf16.msra.mxu1 %v24956_v2 }
0x1733   :  { %24910 = vmatprep.subr.bf16.mxu0 %v29791_v49  ;;  %24958 = vmatprep.subr.bf16.mxu1 %v29791_v49 }
0x1734   :  { %23663 = vmatprep.mubr.msk.f32.mxu1 %vm25810_vm2, %v29793_v40  ;;  %23575 = vmatprep.mubr.msk.f32.mxu0 %vm25810_vm2, %v29793_v40 }
0x1736   :  { %24912 = vmatpush3.bf16.msra.mxu0 %v30201_v50  ;;  %24960 = vmatpush3.bf16.msra.mxu1 %v24959_v60 }
0x1737   :  { %24913 = vmatprep.subr.bf16.mxu0 %v29791_v49  ;;  %24967 = vmatprep.subr.bf16.mxu1 %v29791_v49 }
0x1739   :  { %23664 = vmatmul.mubr.f32.vlgmr.msra.gmra.mrb[72].mxu1 %v29163_v45  ;;  %23576 = vmatmul.mubr.f32.vlgmr.msra.gmra.mrb[62].mxu0 %v17223_v12 }
0x173a   :  { %24915 = vmatpush3.bf16.msra.mxu0 %v29055_v55  ;;  %23586 = vmatprep.mubr.msk.f32.mxu0 %vm25810_vm2, %v29793_v40 }
0x173b   :  { %24916 = vmatprep.subr.bf16.mxu0 %v29791_v49  ;;  %24969 = vmatpush3.bf16.msra.mxu1 %v29197_v38 }
0x173c   :  { %23681 = vmatprep.mubr.msk.f32.mxu1 %vm25810_vm2, %v29793_v40  ;;  %24970 = vmatprep.subr.bf16.mxu1 %v29791_v49 }
0x173e   :  { %24918 = vmatpush3.bf16.msra.mxu0 %v29070_v28 }
0x173f   :  { %24919 = vmatprep.subr.bf16.mxu0 %v29791_v49 }
0x1741   :  { %23587 = vmatmul.mubr.f32.vlgmr.msra.gmra.mrb[62].mxu0 %v17224_v22 }
0x1742   :  { %24921 = vmatpush3.bf16.msra.mxu0 %v29149_v16  ;;  %23597 = vmatprep.mubr.msk.f32.mxu0 %vm25810_vm2, %v29793_v40  ;;  %v18761_v16 = vand.u32 4294901760, %v30211_v15 }
0x1743   :  { %24922 = vmatprep.subr.bf16.mxu0 %v29791_v49 }
0x1746   :  { %24924 = vmatpush3.bf16.msra.mxu0 %v29151_v31  ;;  %v18293_v31 = vand.u32 4294901760, %v30212_v48 }
0x1747   :  { %24925 = vmatprep.subr.bf16.mxu0 %v29791_v49 }
0x1748   :  { %v18294_v61 = vsub.f32 %v30212_v48, %v18293_v31  ;;  %v29268_v62 = vpack.c.bf16 %v18293_v31, %v18286_v59  ;;  %v25594_v31 = vld [vmem:[%s29532_s11] ss:$0 sm:$0xff] }
0x1749   :  { %23598 = vmatmul.mubr.f32.vlgmr.msra.gmra.mrb[62].mxu0 %v29163_v45 }
0x174a   :  { %24927 = vmatpush3.bf16.msra.mxu0 %v29055_v55  ;;  %23608 = vmatprep.mubr.msk.f32.mxu0 %vm25810_vm2, %v29793_v40  ;;  %v30206_v55 = vld [vmem:[#allocation114_spill] sm:$0xff]  ;;  %v18295_v47 = vand.u32 4294901760, %v18294_v61 }
0x174b   :  { %24928 = vmatprep.subr.bf16.mxu0 %v29791_v49 }
0x174c   :  { %v29266_v10 = vpack.c.bf16 %v18295_v47, %v18288_v43 }
0x174e   :  { %24930 = vmatpush3.bf16.msra.mxu0 %v29070_v28  ;;  %v30207_v28 = vand.u32 4294901760, %v30206_v55 }
0x174f   :  { %24937 = vmatprep.subr.bf16.mxu0 %v29791_v49 }
0x1750   :  { %v29245_v57 = vpack.c.bf16 %v30209_v35, %v30207_v28 }
0x1751   :  { %23609 = vmatmul.mubr.f32.vlgmr.msra.gmra.mrb[62].mxu0 %v29163_v45 }
0x1752   :  { %24939 = vmatpush3.bf16.msra.mxu0 %v24938_v26  ;;  %23630 = vmatprep.mubr.msk.f32.mxu0 %vm25810_vm2, %v29793_v40 }
0x1753   :  { %24940 = vmatprep.subr.bf16.mxu0 %v29791_v49 }
0x1756   :  { %24942 = vmatpush3.bf16.msra.mxu0 %v24941_v6  ;;  %v30214_v6 = vld [vmem:[#allocation168_spill] sm:$0xff] }
0x1757   :  { %24949 = vmatprep.subr.bf16.mxu0 %v29791_v49 }
0x1759   :  { %23631 = vmatmul.mubr.f32.vlgmr.msra.gmra.mrb[64].mxu0 %v29163_v45 }
0x175a   :  { %24951 = vmatpush3.bf16.msra.mxu0 %v29125_v34  ;;  %23652 = vmatprep.mubr.msk.f32.mxu0 %vm25810_vm2, %v29793_v40 }
0x175b   :  { %24952 = vmatprep.subr.bf16.mxu0 %v29791_v49 }
0x175e   :  { %24954 = vmatpush3.bf16.msra.mxu0 %v29133_v17 }
0x175f   :  { %24961 = vmatprep.subr.bf16.mxu0 %v29791_v49 }
0x1761   :  { %23653 = vmatmul.mubr.f32.vlgmr.msra.gmra.mrb[66].mxu0 %v17224_v22 }
0x1762   :  { %24963 = vmatpush3.bf16.msra.mxu0 %v29125_v34  ;;  %23674 = vmatprep.mubr.msk.f32.mxu0 %vm25810_vm2, %v29793_v40  ;;  %v30210_v34 = vld [vmem:[#allocation171_spill] sm:$0xff] }
0x1763   :  { %24964 = vmatprep.subr.bf16.mxu0 %v29791_v49  ;;  %v18754_v9 = vand.u32 4294901760, %v30210_v34 }
0x1765   :  { %v18755_v56 = vsub.f32 %v30210_v34, %v18754_v9  ;;  %v29262_v3 = vpack.c.bf16 %v18761_v16, %v18754_v9 }
0x1766   :  { %24966 = vmatpush3.bf16.msra.mxu0 %v29133_v17  ;;  %v18762_v17 = vsub.f32 %v30211_v15, %v18761_v16 }
0x1767   :  { %24985 = vmatprep.subr.bf16.mxu0 %v29791_v49  ;;  %v18756_v29 = vand.u32 4294901760, %v18755_v56 }
0x1768   :  { %v18763_v0 = vand.u32 4294901760, %v18762_v17 }
0x1769   :  { %23675 = vmatmul.mubr.f32.vlgmr.msra.gmra.mrb[68].mxu0 %v29163_v45 }
0x176a   :  { %24987 = vmatpush3.bf16.msra.mxu0 %v29245_v57  ;;  %23723 = vmatprep.mubr.msk.f32.mxu0 %vm25810_vm2, %v29793_v40  ;;  %v29264_v25 = vpack.c.bf16 %v18763_v0, %v18756_v29 }
0x176b   :  { %24988 = vmatprep.subr.bf16.mxu0 %v29791_v49 }
0x17fc   :  { %v17732_v2 = vpop.f32.mrb[68].mxu1 }
0x17fd   :  { %v23621_v60 = vpop.f32.mrb[69].mxu1  ;;  %v17733_v37 = vadd.f32 %v17732_v2, %v30214_v6 }
0x1804   :  { %v17903_v27 = vpop.f32.mrb[70].mxu1 }
0x1805   :  { %v23643_v24 = vpop.f32.mrb[71].mxu1 }
0x180c   :  { %v18063_v33 = vpop.f32.mrb[72].mxu1 }
0x180d   :  { %v23665_v41 = vpop.f32.mrb[73].mxu1 }
0x1824   :  { %v17634_v4 = vpop.f32.mrb[62].mxu0 }
0x1825   :  { %v25135_v5 = vadd.f32 %v17634_v4, %v30213_v54  ;;  %v23610_v26 = vpop.f32.mrb[63].mxu0 }
0x1827   :  { %25571 = vtanh.f32 %v25135_v5 }
0x182c   :  { %v17823_v52 = vpop.f32.mrb[64].mxu0 }
0x182d   :  { %v17824_v51 = vadd.f32 %v17823_v52, %v17733_v37  ;;  %v23632_v19 = vpop.f32.mrb[65].mxu0 }
0x182f   :  { %v17904_v20 = vadd.f32 %v17903_v27, %v17824_v51 }
0x1831   :  { %v25572_v45 = vpop.eup %25571 }
0x1832   :  { %v17641_v12 = vmul.f32 %v25572_v45, %v17640_v39 }
0x1834   :  { %v17980_v22 = vpop.f32.mrb[66].mxu0  ;;  %v18148_v7 = vsel %vm638_vm1, %v17641_v12, 0.0  ;;  %v18142_v13 = vmul.f32 1.442695, %v17641_v12 }
0x1835   :  { %v17981_v42 = vadd.f32 %v17980_v22, %v17904_v20  ;;  %v23654_v21 = vpop.f32.mrb[67].mxu0  ;;  %18149 = vadd.xlane.f32.xlu0 %v18148_v7 }
0x1836   :  { %25573 = vpow2.f32 %v18142_v13 }
0x1837   :  { %v18064_v30 = vadd.f32 %v18063_v33, %v17981_v42 }
0x183c   :  { %v18138_v50 = vpop.f32.mrb[68].mxu0 }
0x183d   :  { %v18139_v32 = vadd.f32 %v18138_v50, %v18064_v30  ;;  %v23676_v63 = vpop.f32.mrb[69].mxu0  ;;  %v19248_v50 = vand.u32 4294901760, %v27504_v14 }
0x1840   :  { %v25574_v36 = vpop.eup %25573 }
0x1841   :  { %v18144_v11 = vmul.f32 %v25574_v36, %v29089_v8 }
0x1843   :  { %v18145_v55 = vadd.f32 %v18144_v11, %v18139_v32  ;;  %v19249_v11 = vsub.f32 %v27504_v14, %v19248_v50 }
0x1845   :  { %v18152_v28 = vsel %vm638_vm1, %v18145_v55, 0.0  ;;  %v18159_v18 = vmul.f32 %v18145_v55, %v18145_v55 }
0x1846   :  { %v18153_v35 = vrot.slane %v18152_v28, 4 }
0x1847   :  { %v18160_v9 = vsel %vm638_vm1, %v18159_v18, 0.0  ;;  %v19250_v18 = vand.u32 4294901760, %v19249_v11 }
0x1848   :  { %v18154_v16 = vadd.f32 %v18153_v35, %v18152_v28  ;;  %v18161_v56 = vrot.slane %v18160_v9, 4 }
0x184a   :  { %v18155_v59 = vrot.slane %v18154_v16, 2  ;;  %v18162_v17 = vadd.f32 %v18161_v56, %v18160_v9 }
0x184b   :  { %19650 = vrot.lane.b32.xlu0 %v25594_v31, %s25799_s19 }
0x184c   :  { %v18156_v29 = vadd.f32 %v18155_v59, %v18154_v16  ;;  %v18163_v44 = vrot.slane %v18162_v17, 2 }
0x184e   :  { %v18157_v8 = vrot.slane %v18156_v29, 1  ;;  %v18164_v0 = vadd.f32 %v18163_v44, %v18162_v17 }
0x1850   :  { %v18158_v61 = vadd.f32 %v18157_v8, %v18156_v29  ;;  %v18165_v43 = vrot.slane %v18164_v0, 1 }
0x1852   :  { %v18167_v47 = vmul.f32 0.125, %v18158_v61  ;;  %v18166_v2 = vadd.f32 %v18165_v43, %v18164_v0  ;;  %v30220_v43 = vld [vmem:[#allocation119_spill] sm:$0xff] }
0x1854   :  { %v18168_v60 = vmul.f32 %v18167_v47, %v18158_v61  ;;  %v18172_v54 = vsub.f32 %v18145_v55, %v18167_v47 }
0x1856   :  { %v18169_v27 = vsub.f32 %v18166_v2, %v18168_v60 }
0x1858   :  { %v18170_v24 = vmul.f32 0.14285715, %v18169_v27 }
0x185a   :  { %v18171_v33 = vmax.f32 %v18170_v24, 0.0 }
0x185c   :  { %v18173_v41 = vadd.f32 1e-12, %v18171_v33  ;;  %25575 = vrsqrt.f32 %v18171_v33  ;;  %vm18178_vm7 = vcmp.eq.f32.partialorder %v18171_v33, inf  ;;  %v18181_v6 = vand.u32 2147483648, %v18171_v33 }
0x185d   :  { %vm18180_vm8 = vcmp.eq.f32.partialorder %v18171_v33, 0.0 }
0x185e   :  { %25577 = vrsqrt.f32 %v18173_v41 }
0x1866   :  { %v25576_v4 = vpop.eup %25575 }
0x1867   :  { %v18177_v5 = vmul.f32 %v25576_v4, %v18171_v33 }
0x1868   :  { %v25578_v26 = vpop.eup %25577 }
0x1869   :  { %v18175_v37 = vmul.f32 %v25578_v26, %v18172_v54  ;;  %v18179_v52 = vsel %vm18178_vm7, %v18171_v33, %v18177_v5 }
0x186a   :  { %v18182_v51 = vsel %vm18180_vm8, %v18181_v6, %v18179_v52  ;;  %v30222_v6 = vpack.c.bf16 %v27272_v1, %v27504_v14 }
0x186b   :  { %v18204_v19 = vsel %vm638_vm1, %v18175_v37, 0  ;;  %v18183_v20 = vadd.f32 1e-06, %v18182_v51  ;;  %v30225_v37 = vld [vmem:[#allocation182_spill] sm:$0xff] }
0x186c   :  { %v18273_v39 = vand.u32 4294901760, %v18204_v19  ;;  %v30226_v52 = vand.u32 4294901760, %v30225_v37 }
0x186d   :  { %25579 = vlog2.f32 %v18183_v20 }
0x186e   :  { %v18274_v45 = vsub.f32 %v18204_v19, %v18273_v39  ;;  %v30227_v19 = vld [vmem:[#allocation180_spill] sm:$0xff] }
0x1870   :  { %v18275_v12 = vand.u32 4294901760, %v18274_v45 }
0x1872   :  { %v18276_v22 = vsub.f32 %v18274_v45, %v18275_v12 }
0x1874   :  { %v18277_v7 = vand.u32 4294901760, %v18276_v22  ;;  %v30230_v22 = vld [vmem:[#allocation148_spill] sm:$0xff] }
0x1876   :  { %23682 = vmatmul.mubr.f32.vlgmr.msra.gmra.mrb[74].mxu1 %v18277_v7  ;;  %23724 = vmatmul.mubr.f32.vlgmr.msra.gmra.mrb[70].mxu0 %v18277_v7  ;;  %v19752_v7 = vand.u32 4294901760, %v30230_v22 }
0x1877   :  { %v25580_v13 = vpop.eup %25579  ;;  %24990 = vmatpush3.bf16.msra.mxu0 %v29264_v25  ;;  %24972 = vmatpush3.bf16.msra.mxu1 %v29266_v10  ;;  %v30215_v25 = vpack.c.bf16 %v30211_v15, %v30210_v34  ;;  %v30216_v10 = vpack.c.bf16 %v30212_v48, %v27482_v58  ;;  %v25595_v58 = vld [vmem:[%s29534_s13] ss:$0 sm:$0xff]  ;;  %v30217_v34 = vld [vmem:[#allocation175_spill] sm:$0xff]  ;;  %v30219_v15 = vld [vmem:[#allocation176_spill] sm:$0xff]  ;;  %s20694_s13 = sld [smem:[#allocation3 + $0x7]] }
0x1878   :  { %v18185_v42 = vmul.f32 0.6931472, %v25580_v13  ;;  %23688 = vmatprep.mubr.msk.f32.mxu1 %vm25810_vm2, %v29793_v40  ;;  %23730 = vmatprep.mubr.msk.f32.mxu0 %vm25810_vm2, %v29793_v40  ;;  %v19234_v48 = vand.u32 4294901760, %v30219_v15 }
0x1879   :  { %24991 = vmatprep.subr.bf16.mxu0 %v29791_v49  ;;  %24973 = vmatprep.subr.bf16.mxu1 %v29791_v49 }
0x187a   :  { %v18186_v21 = vsel %vm673_vm6, %v18185_v42, 0.0  ;;  %v19235_v30 = vsub.f32 %v30219_v15, %v19234_v48  ;;  %v30231_v42 = vld [vmem:[#allocation179_spill] sm:$0xff] }
0x187b   :  { %18187 = vadd.xlane.f32.xlu1 %v18186_v21  ;;  %v19759_v21 = vand.u32 4294901760, %v30231_v42 }
0x187c   :  { %v19236_v36 = vand.u32 4294901760, %v19235_v30  ;;  %v30232_v30 = vld [vmem:[#allocation154_spill] sm:$0xff] }
0x187e   :  { %23689 = vmatmul.mubr.f32.vlgmr.msra.gmra.mrb[74].mxu1 %v18273_v39  ;;  %23731 = vmatmul.mubr.f32.vlgmr.msra.gmra.mrb[70].mxu0 %v18273_v39 }
0x187f   :  { %24993 = vmatpush3.bf16.msra.mxu0 %v30215_v25  ;;  %24975 = vmatpush3.bf16.msra.mxu1 %v30216_v10  ;;  %v19753_v10 = vsub.f32 %v30230_v22, %v19752_v7 }
0x1880   :  { %23695 = vmatprep.mubr.msk.f32.mxu1 %vm25810_vm2, %v29793_v40  ;;  %23737 = vmatprep.mubr.msk.f32.mxu0 %vm25810_vm2, %v29793_v40 }
0x1881   :  { %24994 = vmatprep.subr.bf16.mxu0 %v29791_v49  ;;  %24976 = vmatprep.subr.bf16.mxu1 %v29791_v49 }
0x1886   :  { %23696 = vmatmul.mubr.f32.vlgmr.msra.gmra.mrb[74].mxu1 %v18274_v45  ;;  %23738 = vmatmul.mubr.f32.vlgmr.msra.gmra.mrb[70].mxu0 %v18274_v45 }
0x1887   :  { %24996 = vmatpush3.bf16.msra.mxu0 %v29245_v57  ;;  %24978 = vmatpush3.bf16.msra.mxu1 %v29197_v38 }
0x1888   :  { %23702 = vmatprep.mubr.msk.f32.mxu1 %vm25810_vm2, %v29793_v40  ;;  %23744 = vmatprep.mubr.msk.f32.mxu0 %vm25810_vm2, %v29793_v40 }
0x1889   :  { %24997 = vmatprep.subr.bf16.mxu0 %v29791_v49  ;;  %24979 = vmatprep.subr.bf16.mxu1 %v29791_v49 }
0x188c   :  { %20157 = vrot.lane.b32.xlu1 %v25595_v58, %s25799_s19  ;;  %s25817_s19 = smov [#allocation17]  }
0x188d   :  { %s20667_s17 = sshll.u32 %s25817_s19, 4  ;;  %s20668_s17 = int_to_ptr.vmem [resolvable:$true] %s20667_s17 }
0x188e   :  { %23703 = vmatmul.mubr.f32.vlgmr.msra.gmra.mrb[74].mxu1 %v18275_v12  ;;  %23745 = vmatmul.mubr.f32.vlgmr.msra.gmra.mrb[70].mxu0 %v18275_v12  ;;  %s25762_s15 = scalar_lea.vmem %s20668_s17, 128  ;;  %p25767_p6 = scmp.lt.s32.totalorder %s20668_s17, %s20668_s17 }
0x188f   :  { %24999 = vmatpush3.bf16.msra.mxu0 %v29262_v3  ;;  %24981 = vmatpush3.bf16.msra.mxu1 %v29268_v62  ;;  %v19255_v62 = vand.u32 4294901760, %v27272_v1  ;;  %p25763_p5 = scmp.ne.s32.totalorder %s20668_s17, %s25762_s15  ;;  %p25768_p7 = scmp.lt.s32.totalorder %s25762_s15, %s25762_s15 }
0x1890   :  { %23709 = vmatprep.mubr.msk.f32.mxu1 %vm25810_vm2, %v29793_v40  ;;  %23751 = vmatprep.mubr.msk.f32.mxu0 %vm25810_vm2, %v29793_v40 }
0x1891   :  { %25000 = vmatprep.subr.bf16.mxu0 %v29791_v49  ;;  %24982 = vmatprep.subr.bf16.mxu1 %v29791_v49  ;;  %v19256_v63 = vsub.f32 %v27272_v1, %v19255_v62  ;;  %v25031_v9 = vpack.c.bf16 %v19255_v62, %v19248_v50  ;;  %v30223_v1 = vld [vmem:[#allocation149_spill] sm:$0xff]  ;;  %v20242_v50 = vand.u32 4294901760, %v30232_v30  ;;  %p25769_p8 = por %p25768_p7, %p25767_p6 }
0x1892   :  { %v30224_v14 = vand.u32 4294901760, %v30223_v1 }
0x1893   :  { %v19257_v28 = vand.u32 4294901760, %v19256_v63  ;;  %p25770_p9 = pnand %p25769_p8, %p25763_p5 }
0x1894   :  { %v29388_v51 = vpack.c.bf16 %v30226_v52, %v30224_v14  ;;  %v30240_v14 = vpack.c.bf16 %v30231_v42, %v30230_v22 }
0x1895   :  { %v25013_v16 = vpack.c.bf16 %v19257_v28, %v19250_v18 }
0x1896   :  { %23710 = vmatmul.mubr.f32.vlgmr.msra.gmra.mrb[74].mxu1 %v18273_v39  ;;  %23752 = vmatmul.mubr.f32.vlgmr.msra.gmra.mrb[70].mxu0 %v18273_v39 }
0x1897   :  { %25002 = vmatpush3.bf16.msra.mxu0 %v29245_v57  ;;  %24984 = vmatpush3.bf16.msra.mxu1 %v29197_v38  ;;  %v30218_v38 = vld [vmem:[#allocation145_spill] sm:$0xff] }
0x1898   :  { %23716 = vmatprep.mubr.msk.f32.mxu1 %vm25810_vm2, %v29793_v40  ;;  %23758 = vmatprep.mubr.msk.f32.mxu0 %vm25810_vm2, %v29793_v40  ;;  %v19241_v57 = vand.u32 4294901760, %v30218_v38  ;;  %v30221_v26 = vpack.c.bf16 %v30218_v38, %v30219_v15 }
0x1899   :  { %25003 = vmatprep.subr.bf16.mxu1 %v29791_v49  ;;  %25039 = vmatprep.subr.bf16.mxu0 %v29791_v49 }
0x189a   :  { %v19242_v3 = vsub.f32 %v30218_v38, %v19241_v57  ;;  %v25028_v55 = vpack.c.bf16 %v19241_v57, %v19234_v48  ;;  %v19754_v57 = vand.u32 4294901760, %v19753_v10 }
0x189c   :  { %v19243_v32 = vand.u32 4294901760, %v19242_v3  ;;  %v25067_v3 = vpack.c.bf16 %v19759_v21, %v19752_v7 }
0x189e   :  { %23717 = vmatmul.mubr.f32.vlgmr.msra.gmra.mrb[74].mxu1 %v18273_v39  ;;  %23759 = vmatmul.mubr.f32.vlgmr.msra.gmra.mrb[70].mxu0 %v18273_v39  ;;  %v25010_v35 = vpack.c.bf16 %v19243_v32, %v19236_v36  ;;  %v30229_v39 = vld [vmem:[#allocation178_spill] sm:$0xff]  ;;  %v30233_v32 = vld [vmem:[#allocation181_spill] sm:$0xff] }
0x189f   :  { %25005 = vmatpush3.bf16.msra.mxu1 %v30217_v34  ;;  %23769 = vmatprep.mubr.msk.f32.mxu1 %vm25810_vm2, %v29793_v40  ;;  %v19745_v45 = vand.u32 4294901760, %v30229_v39  ;;  %v20249_v63 = vand.u32 4294901760, %v30233_v32  ;;  %v30234_v36 = vld [vmem:[#allocation158_spill] sm:$0xff] }
0x18a0   :  { %25006 = vmatprep.subr.bf16.mxu1 %v29791_v49  ;;  %25041 = vmatpush3.bf16.msra.mxu0 %v27513_v53  ;;  %v20256_v11 = vand.u32 4294901760, %v30234_v36 }
0x18a1   :  { %25042 = vmatprep.subr.bf16.mxu0 %v29791_v49  ;;  %23835 = vmatprep.mubr.msk.f32.mxu0 %vm25810_vm2, %v29793_v40  ;;  %v19746_v13 = vsub.f32 %v30229_v39, %v19745_v45  ;;  %v25100_v18 = vpack.c.bf16 %v20249_v63, %v20242_v50 }
0x18a3   :  { %25008 = vmatpush3.bf16.msra.mxu1 %v27502_v23  ;;  %v19747_v58 = vand.u32 4294901760, %v19746_v13 }
0x18a4   :  { %25009 = vmatprep.subr.bf16.mxu1 %v29791_v49  ;;  %25044 = vmatpush3.bf16.msra.mxu0 %v27521_v46 }
0x18a5   :  { %25045 = vmatprep.subr.bf16.mxu0 %v29791_v49 }
0x1908   :  { %v18188_v56 = vpop.xlane.xlu1 %18187 }
0x1909   :  { %v18189_v59 = vrot.slane %v18188_v56, 4 }
0x190b   :  { %v18190_v17 = vadd.f32 %v18189_v59, %v18188_v56  ;;  %v20257_v56 = vsub.f32 %v30234_v36, %v20256_v11 }
0x190d   :  { %v18191_v31 = vrot.slane %v18190_v17, 2 }
0x190f   :  { %v18192_v29 = vadd.f32 %v18191_v31, %v18190_v17 }
0x1911   :  { %v18193_v44 = vrot.slane %v18192_v29, 1 }
0x1913   :  { %v18194_v8 = vadd.f32 %v18193_v44, %v18192_v29  ;;  %v20258_v29 = vand.u32 4294901760, %v20257_v56 }
0x1915   :  { %25481 = vpush %v18194_v8 }
0x1971   :  { %v29350_v0 = vpop.f32.mrb[74].mxu1  ;;  %v19129_v61 = vpop.f32.mrb[70].mxu0 }
0x1972   :  { %v25136_v47 = vadd.f32 %v19129_v61, %v30220_v43  ;;  %v23718_v2 = vpop.f32.mrb[75].mxu1  ;;  %v23760_v60 = vpop.f32.mrb[71].mxu0 }
0x1974   :  { %v19133_v27 = vmax.f32 %v25136_v47, 0.0  ;;  %v30236_v47 = vld [vmem:[#allocation177_spill] sm:$0xff] }
0x1976   :  { %v19150_v24 = vsel %vm1622_vm3, %v19133_v27, 0 }
0x1977   :  { %v19221_v33 = vand.u32 4294901760, %v19150_v24 }
0x1979   :  { %v19222_v41 = vsub.f32 %v19150_v24, %v19221_v33 }
0x197b   :  { %v19223_v4 = vand.u32 4294901760, %v19222_v41 }
0x197d   :  { %v19224_v54 = vsub.f32 %v19222_v41, %v19223_v4 }
0x197f   :  { %v19225_v5 = vand.u32 4294901760, %v19224_v54 }
0x1981   :  { %23770 = vmatmul.mubr.f32.vlgmr.msra.gmra.mrb[76].mxu1 %v19225_v5 }
0x1982   :  { %25011 = vmatpush3.bf16.msra.mxu1 %v25010_v35  ;;  %23780 = vmatprep.mubr.msk.f32.mxu1 %vm25810_vm2, %v29793_v40 }
0x1983   :  { %25012 = vmatprep.subr.bf16.mxu1 %v29791_v49 }
0x1986   :  { %25014 = vmatpush3.bf16.msra.mxu1 %v25013_v16  ;;  %v20250_v16 = vsub.f32 %v30233_v32, %v20249_v63 }
0x1987   :  { %25015 = vmatprep.subr.bf16.mxu1 %v29791_v49 }
0x1988   :  { %v20251_v31 = vand.u32 4294901760, %v20250_v16 }
0x1989   :  { %23781 = vmatmul.mubr.f32.vlgmr.msra.gmra.mrb[76].mxu1 %v19221_v33 }
0x198a   :  { %25017 = vmatpush3.bf16.msra.mxu1 %v30221_v26  ;;  %23791 = vmatprep.mubr.msk.f32.mxu1 %vm25810_vm2, %v29793_v40  ;;  %v30237_v26 = vpack.c.bf16 %v30233_v32, %v30232_v30 }
0x198b   :  { %25018 = vmatprep.subr.bf16.mxu1 %v29791_v49 }
0x198e   :  { %25020 = vmatpush3.bf16.msra.mxu1 %v30222_v6 }
0x198f   :  { %25021 = vmatprep.subr.bf16.mxu1 %v29791_v49 }
0x1991   :  { %23792 = vmatmul.mubr.f32.vlgmr.msra.gmra.mrb[76].mxu1 %v19222_v41 }
0x1992   :  { %25023 = vmatpush3.bf16.msra.mxu1 %v30217_v34  ;;  %23802 = vmatprep.mubr.msk.f32.mxu1 %vm25810_vm2, %v29793_v40 }
0x1993   :  { %25024 = vmatprep.subr.bf16.mxu1 %v29791_v49 }
0x1996   :  { %25026 = vmatpush3.bf16.msra.mxu1 %v27502_v23 }
0x1997   :  { %25027 = vmatprep.subr.bf16.mxu1 %v29791_v49 }
0x1999   :  { %23803 = vmatmul.mubr.f32.vlgmr.msra.gmra.mrb[76].mxu1 %v19223_v4 }
0x199a   :  { %25029 = vmatpush3.bf16.msra.mxu1 %v25028_v55  ;;  %23813 = vmatprep.mubr.msk.f32.mxu1 %vm25810_vm2, %v29793_v40  ;;  %v30235_v55 = vld [vmem:[#allocation183_spill] sm:$0xff] }
0x199b   :  { %25030 = vmatprep.subr.bf16.mxu1 %v29791_v49  ;;  %v20263_v28 = vand.u32 4294901760, %v30235_v55  ;;  %v30238_v6 = vpack.c.bf16 %v30235_v55, %v30234_v36 }
0x199d   :  { %v25103_v35 = vpack.c.bf16 %v20263_v28, %v20256_v11  ;;  %v20264_v59 = vsub.f32 %v30235_v55, %v20263_v28 }
0x199e   :  { %25032 = vmatpush3.bf16.msra.mxu1 %v25031_v9  ;;  %v20243_v9 = vsub.f32 %v30232_v30, %v20242_v50 }
0x199f   :  { %25033 = vmatprep.subr.bf16.mxu1 %v29791_v49  ;;  %v20265_v44 = vand.u32 4294901760, %v20264_v59 }
0x19a0   :  { %v20244_v17 = vand.u32 4294901760, %v20243_v9 }
0x19a1   :  { %23814 = vmatmul.mubr.f32.vlgmr.msra.gmra.mrb[76].mxu1 %v19221_v33  ;;  %v25085_v61 = vpack.c.bf16 %v20265_v44, %v20258_v29 }
0x19a2   :  { %25035 = vmatpush3.bf16.msra.mxu1 %v30217_v34  ;;  %23824 = vmatprep.mubr.msk.f32.mxu1 %vm25810_vm2, %v29793_v40  ;;  %v19760_v34 = vsub.f32 %v30231_v42, %v19759_v21  ;;  %v25082_v8 = vpack.c.bf16 %v20251_v31, %v20244_v17  ;;  %v20158_v42 = vpop.permute.xlu1 %20157 }
0x19a3   :  { %25036 = vmatprep.subr.bf16.mxu1 %v29791_v49 }
0x19a4   :  { %v19761_v15 = vand.u32 4294901760, %v19760_v34 }
0x19a6   :  { %25038 = vmatpush3.bf16.msra.mxu1 %v27502_v23  ;;  %v30228_v23 = vld [vmem:[#allocation147_spill] sm:$0xff]  ;;  %v25049_v62 = vpack.c.bf16 %v19761_v15, %v19754_v57 }
0x19a7   :  { %25075 = vmatprep.subr.bf16.mxu1 %v29791_v49  ;;  %v19738_v20 = vand.u32 4294901760, %v30228_v23  ;;  %v30239_v1 = vpack.c.bf16 %v30229_v39, %v30228_v23 }
0x19a9   :  { %23825 = vmatmul.mubr.f32.vlgmr.msra.gmra.mrb[76].mxu1 %v19221_v33  ;;  %v19739_v12 = vsub.f32 %v30228_v23, %v19738_v20  ;;  %v25064_v38 = vpack.c.bf16 %v19745_v45, %v19738_v20  ;;  %v29481_v23 = vpop.xlane.xlu0 %5638 }
0x19aa   :  { %25077 = vmatpush3.bf16.msra.mxu1 %v30227_v19  ;;  %23901 = vmatprep.mubr.msk.f32.mxu1 %vm25810_vm2, %v29793_v40 }
0x19ab   :  { %25078 = vmatprep.subr.bf16.mxu1 %v29791_v49  ;;  %v19740_v25 = vand.u32 4294901760, %v19739_v12 }
0x19ad   :  { %v25046_v48 = vpack.c.bf16 %v19747_v58, %v19740_v25  ;;  %v29483_v45 = vpop.xlane.xlu0 %8141 }
0x19ae   :  { %25080 = vmatpush3.bf16.msra.mxu1 %v29388_v51 }
0x19af   :  { %25087 = vmatprep.subr.bf16.mxu1 %v29791_v49 }
0x1a7c   :  { %v19633_v43 = vpop.f32.mrb[76].mxu1 }
0x1a7d   :  { %v25137_v2 = vadd.f32 %v19633_v43, %v30236_v47  ;;  %v23826_v60 = vpop.f32.mrb[77].mxu1 }
0x1a7f   :  { %v19637_v27 = vmax.f32 %v25137_v2, 0.0 }
0x1a81   :  { %v19654_v24 = vsel %vm1622_vm3, %v19637_v27, 0 }
0x1a82   :  { %v29414_v33 = vand.u32 4294901760, %v19654_v24 }
0x1a84   :  { %v19726_v41 = vsub.f32 %v19654_v24, %v29414_v33 }
0x1a86   :  { %v19727_v4 = vand.u32 4294901760, %v19726_v41 }
0x1a88   :  { %v19728_v54 = vsub.f32 %v19726_v41, %v19727_v4 }
0x1a8a   :  { %v19729_v5 = vand.u32 4294901760, %v19728_v54 }
0x1a8c   :  { %23836 = vmatmul.mubr.f32.vlgmr.msra.gmra.mrb[72].mxu0 %v19729_v5  ;;  %23902 = vmatmul.mubr.f32.vlgmr.msra.gmra.mrb[78].mxu1 %v19729_v5 }
0x1a8d   :  { %25047 = vmatpush3.bf16.msra.mxu0 %v25046_v48  ;;  %25089 = vmatpush3.bf16.msra.mxu1 %v30237_v26 }
0x1a8e   :  { %25048 = vmatprep.subr.bf16.mxu0 %v29791_v49  ;;  %25090 = vmatprep.subr.bf16.mxu1 %v29791_v49 }
0x1a8f   :  { %23923 = vmatprep.mubr.msk.f32.mxu1 %vm25810_vm2, %v29793_v40  ;;  %23846 = vmatprep.mubr.msk.f32.mxu0 %vm25810_vm2, %v29793_v40 }
0x1a91   :  { %25050 = vmatpush3.bf16.msra.mxu0 %v25049_v62  ;;  %25092 = vmatpush3.bf16.msra.mxu1 %v30238_v6 }
0x1a92   :  { %25051 = vmatprep.subr.bf16.mxu0 %v29791_v49  ;;  %25099 = vmatprep.subr.bf16.mxu1 %v29791_v49 }
0x1a94   :  { %23924 = vmatmul.mubr.f32.vlgmr.msra.gmra.mrb[80].mxu1 %v19726_v41  ;;  %23847 = vmatmul.mubr.f32.vlgmr.msra.gmra.mrb[72].mxu0 %v29414_v33 }
0x1a95   :  { %25053 = vmatpush3.bf16.msra.mxu0 %v30239_v1  ;;  %25101 = vmatpush3.bf16.msra.mxu1 %v25100_v18 }
0x1a96   :  { %25054 = vmatprep.subr.bf16.mxu0 %v29791_v49  ;;  %25102 = vmatprep.subr.bf16.mxu1 %v29791_v49 }
0x1a97   :  { %23945 = vmatprep.mubr.msk.f32.mxu1 %vm25810_vm2, %v29793_v40  ;;  %23857 = vmatprep.mubr.msk.f32.mxu0 %vm25810_vm2, %v29793_v40 }
0x1a99   :  { %25056 = vmatpush3.bf16.msra.mxu0 %v30240_v14  ;;  %25104 = vmatpush3.bf16.msra.mxu1 %v25103_v35 }
0x1a9a   :  { %25057 = vmatprep.subr.bf16.mxu0 %v29791_v49 }
0x1a9c   :  { %23946 = vmatmul.mubr.f32.vlgmr.msra.gmra.mrb[82].mxu1 %v29414_v33  ;;  %23858 = vmatmul.mubr.f32.vlgmr.msra.gmra.mrb[72].mxu0 %v19726_v41 }
0x1a9d   :  { %25059 = vmatpush3.bf16.msra.mxu0 %v27513_v53  ;;  %23868 = vmatprep.mubr.msk.f32.mxu0 %vm25810_vm2, %v29793_v40 }
0x1a9e   :  { %25060 = vmatprep.subr.bf16.mxu0 %v29791_v49 }
0x1aa1   :  { %25062 = vmatpush3.bf16.msra.mxu0 %v27521_v46 }
0x1aa2   :  { %25063 = vmatprep.subr.bf16.mxu0 %v29791_v49 }
0x1aa4   :  { %23869 = vmatmul.mubr.f32.vlgmr.msra.gmra.mrb[72].mxu0 %v19727_v4 }
0x1aa5   :  { %25065 = vmatpush3.bf16.msra.mxu0 %v25064_v38  ;;  %23879 = vmatprep.mubr.msk.f32.mxu0 %vm25810_vm2, %v29793_v40  ;;  %v20143_v38 = vstv %s20694_s13 }
0x1aa6   :  { %25066 = vmatprep.subr.bf16.mxu0 %v29791_v49 }
0x1aa9   :  { %25068 = vmatpush3.bf16.msra.mxu0 %v25067_v3 }
0x1aaa   :  { %25069 = vmatprep.subr.bf16.mxu0 %v29791_v49 }
0x1aac   :  { %23880 = vmatmul.mubr.f32.vlgmr.msra.gmra.mrb[72].mxu0 %v29414_v33 }
0x1aad   :  { %25071 = vmatpush3.bf16.msra.mxu0 %v27513_v53  ;;  %23890 = vmatprep.mubr.msk.f32.mxu0 %vm25810_vm2, %v29793_v40 }
0x1aae   :  { %25072 = vmatprep.subr.bf16.mxu0 %v29791_v49 }
0x1ab1   :  { %25074 = vmatpush3.bf16.msra.mxu0 %v27521_v46 }
0x1ab2   :  { %25081 = vmatprep.subr.bf16.mxu0 %v29791_v49 }
0x1ab4   :  { %23891 = vmatmul.mubr.f32.vlgmr.msra.gmra.mrb[72].mxu0 %v29414_v33 }
0x1ab5   :  { %25083 = vmatpush3.bf16.msra.mxu0 %v25082_v8  ;;  %23912 = vmatprep.mubr.msk.f32.mxu0 %vm25810_vm2, %v29793_v40 }
0x1ab6   :  { %25084 = vmatprep.subr.bf16.mxu0 %v29791_v49 }
0x1ab9   :  { %25086 = vmatpush3.bf16.msra.mxu0 %v25085_v61 }
0x1aba   :  { %25093 = vmatprep.subr.bf16.mxu0 %v29791_v49 }
0x1abc   :  { %23913 = vmatmul.mubr.f32.vlgmr.msra.gmra.mrb[74].mxu0 %v29414_v33 }
0x1abd   :  { %25095 = vmatpush3.bf16.msra.mxu0 %v30227_v19  ;;  %23934 = vmatprep.mubr.msk.f32.mxu0 %vm25810_vm2, %v29793_v40 }
0x1abe   :  { %25096 = vmatprep.subr.bf16.mxu0 %v29791_v49 }
0x1ac1   :  { %25098 = vmatpush3.bf16.msra.mxu0 %v29388_v51 }
0x1ac2   :  { %25105 = vmatprep.subr.bf16.mxu0 %v29791_v49 }
0x1ac4   :  { %23935 = vmatmul.mubr.f32.vlgmr.msra.gmra.mrb[76].mxu0 %v19727_v4 }
0x1ac5   :  { %25107 = vmatpush3.bf16.msra.mxu0 %v30227_v19  ;;  %23956 = vmatprep.mubr.msk.f32.mxu0 %vm25810_vm2, %v29793_v40  ;;  %v29485_v19 = vpop.xlane.xlu0 %10644 }
0x1ac6   :  { %25108 = vmatprep.subr.bf16.mxu0 %v29791_v49 }
0x1ac9   :  { %25110 = vmatpush3.bf16.msra.mxu0 %v29388_v51  ;;  %v29487_v12 = vpop.xlane.xlu0 %13136 }
0x1acc   :  { %23957 = vmatmul.mubr.f32.vlgmr.msra.gmra.mrb[78].mxu0 %v29414_v33 }
0x1acd   :  { %v29489_v40 = vpop.xlane.xlu0 %15646 }
0x1ad1   :  { %v29491_v49 = vpop.xlane.xlu0 %18149 }
0x1ad5   :  { %v19651_v51 = vpop.permute.xlu0 %19650 }
0x1b5f   :  { %v20235_v46 = vpop.f32.mrb[78].mxu1 }
0x1b60   :  { %v23903_v53 = vpop.f32.mrb[79].mxu1  ;;  %v20236_v21 = vadd.f32 %v20235_v46, %v20158_v42 }
0x1b67   :  { %v20406_v37 = vpop.f32.mrb[80].mxu1 }
0x1b68   :  { %v23925_v52 = vpop.f32.mrb[81].mxu1 }
0x1b6f   :  { %v20566_v20 = vpop.f32.mrb[82].mxu1 }
0x1b70   :  { %v23947_v39 = vpop.f32.mrb[83].mxu1 }
0x1b87   :  { %v20137_v22 = vpop.f32.mrb[72].mxu0 }
0x1b88   :  { %v25138_v7 = vadd.f32 %v20137_v22, %v19651_v51  ;;  %v23892_v13 = vpop.f32.mrb[73].mxu0 }
0x1b8a   :  { %25581 = vtanh.f32 %v25138_v7 }
0x1b8f   :  { %v20326_v25 = vpop.f32.mrb[74].mxu0 }
0x1b90   :  { %v20327_v10 = vadd.f32 %v20326_v25, %v20236_v21  ;;  %v23914_v58 = vpop.f32.mrb[75].mxu0 }
0x1b92   :  { %v20407_v34 = vadd.f32 %v20406_v37, %v20327_v10 }
0x1b94   :  { %v25582_v57 = vpop.eup %25581 }
0x1b95   :  { %v20144_v15 = vmul.f32 %v25582_v57, %v20143_v38 }
0x1b97   :  { %v20483_v48 = vpop.f32.mrb[76].mxu0  ;;  %v20651_v3 = vsel %vm638_vm1, %v20144_v15, 0.0  ;;  %v20645_v62 = vmul.f32 1.442695, %v20144_v15 }
0x1b98   :  { %v20484_v30 = vadd.f32 %v20483_v48, %v20407_v34  ;;  %v23936_v50 = vpop.f32.mrb[77].mxu0  ;;  %20652 = vadd.xlane.f32.xlu1 %v20651_v3 }
0x1b99   :  { %25583 = vpow2.f32 %v20645_v62 }
0x1b9a   :  { %v20567_v32 = vadd.f32 %v20566_v20, %v20484_v30 }
0x1b9f   :  { %v20641_v63 = vpop.f32.mrb[78].mxu0 }
0x1ba0   :  { %v20642_v36 = vadd.f32 %v20641_v63, %v20567_v32  ;;  %v23958_v11 = vpop.f32.mrb[79].mxu0 }
0x1ba3   :  { %v25584_v55 = vpop.eup %25583 }
0x1ba4   :  { %v20647_v28 = vmul.f32 %v25584_v55, %v29350_v0 }
0x1ba6   :  { %v20648_v18 = vadd.f32 %v20647_v28, %v20642_v36 }
0x1ba8   :  { %20655 = vst.msk [vmem:[#allocation17] sm:$0xff] %vm638_vm1, %v20648_v18 }
0x1ba9   :  { %25773 = shalt.err (!%p25770_p9)
}
0x1baa   :  { %s25774_s20 = scalar_lea.hbm %s29535_s14, 128 }
0x1bab   :  { %p25775_p10 = scmp.ne.s32.totalorder %s29535_s14, %s25774_s20  ;;  %p25778_p11 = scmp.lt.u32.totalorder %s25774_s20, %s29535_s14 }
0x1bad   :  { %p25780_p12 = pnand %p25778_p11, %p25775_p10 }
0x1baf   :  { %25783 = shalt.err (!%p25780_p12)
}
0x1bb0   :  { %20670 = dma.vmem_to_hbm [thread:$0]  %s20668_s17, 128, %s29535_s14, [#allocation5]   ;;  %v30241_v9 = vld [vmem:[#allocation26_spill] sm:$0xff]  ;;  %v20657_v26 = vstv %s29522_s1  ;;  %vm20659_vm1 = vcmask 7168  }
0x1bb1   :  { %s25468_s6 = spop %25467  ;;  %s30242_s15 = sld [smem:[#allocation184_spill]] }
0x1bb2   :  { %s25470_s18 = spop %25469  ;;  %s684_s12 = ssub.f32 0.0, %s25468_s6 }
0x1bb3   :  { %s3165_s2 = ssub.f32 0.0, %s25470_s18  ;;  %s25472_s29 = spop %25471 }
0x1bb4   :  { %v3115_v0 = vstv %s684_s12  ;;  %s5685_s24 = ssub.f32 0.0, %s25472_s29  ;;  %s25474_s7 = spop %25473 }
0x1bb5   :  { %v5635_v35 = vstv %s3165_s2  ;;  %v3120_v16 = vadd.f32 %v30241_v9, %v3115_v0  ;;  %s8188_s25 = ssub.f32 0.0, %s25474_s7  ;;  %s25476_s26 = spop %25475 }
0x1bb6   :  { %v8138_v59 = vstv %s5685_s24  ;;  %s10691_s14 = ssub.f32 0.0, %s25476_s26  ;;  %s25478_s9 = spop %25477 }
0x1bb7   :  { %v5636_v56 = vadd.f32 %v5635_v35, %v3120_v16  ;;  %v10641_v29 = vstv %s8188_s25  ;;  %s13183_s5 = ssub.f32 0.0, %s25478_s9  ;;  %s25480_s0 = spop %25479 }
0x1bb8   :  { %v13133_v61 = vstv %s10691_s14  ;;  %s15693_s21 = ssub.f32 0.0, %s25480_s0  ;;  %s25482_s27 = spop %25481 }
0x1bb9   :  { %v5640_v17 = vadd.f32 %v29481_v23, %v5636_v56  ;;  %v15643_v2 = vstv %s13183_s5  ;;  %s18196_s11 = ssub.f32 0.0, %s25482_s27 }
0x1bba   :  { %v18146_v24 = vstv %s15693_s21 }
0x1bbb   :  { %v8139_v31 = vadd.f32 %v8138_v59, %v5640_v17  ;;  %v20649_v4 = vstv %s18196_s11 }
0x1bbd   :  { %v8143_v44 = vadd.f32 %v29483_v45, %v8139_v31 }
0x1bbf   :  { %v10642_v8 = vadd.f32 %v10641_v29, %v8143_v44 }
0x1bc1   :  { %v10646_v43 = vadd.f32 %v29485_v19, %v10642_v8 }
0x1bc3   :  { %v13134_v47 = vadd.f32 %v13133_v61, %v10646_v43 }
0x1bc5   :  { %v13138_v60 = vadd.f32 %v29487_v12, %v13134_v47 }
0x1bc7   :  { %v15644_v27 = vadd.f32 %v15643_v2, %v13138_v60 }
0x1bc9   :  { %v15648_v33 = vadd.f32 %v29489_v40, %v15644_v27 }
0x1bcb   :  { %v18147_v41 = vadd.f32 %v18146_v24, %v15648_v33 }
0x1bcd   :  { %v18151_v54 = vadd.f32 %v29491_v49, %v18147_v41 }
0x1bcf   :  { %v20650_v5 = vadd.f32 %v20649_v4, %v18151_v54 }
0x1c25   :  { %v20653_v6 = vpop.xlane.xlu1 %20652 }
0x1c26   :  { %v20654_v1 = vadd.f32 %v20653_v6, %v20650_v5 }
0x1c28   :  { %v20658_v14 = vadd.f32 %v20657_v26, %v20654_v1 }
0x1c2a   :  { %20660 = vst.msk [vmem:[%s30242_s15] sm:$0xff] %vm20659_vm1, %v20658_v14 }
0x1c2b   :  { %25794 = dma.done.wait [#allocation5], 128  }
0x1c2c   :  { %25795 = vsyncadd [#allocation5], 4294967168 }
0x1c2d   :  { %20678 = vsyncpa [#allocation4], 1 }
0x1c2e   :  { %20679 = vsyncpa [#allocation9], 1 }
0x1c2f   :  { %20680 = vsyncpa [#allocation12], 1 }
0x1c30   :  { %20681 = vsyncpa [#allocation15], 1 }
0x1c31   :  { %20682 = vsyncpa [#allocation5], 1 }
0x1c32   :  { %20683 = vsyncpa [#allocation6], 1 }

</bundles_post_ra>
